<compile_context>
chip_gen: v5e
topology: v5e:2x2
jax: 0.10.0
libtpu: 0.0.40
codegen_flags: <defaults>
</compile_context>

<pallas_src>
import functools

import jax
import jax.numpy as jnp
from jax.experimental import pallas as pl
from jax.experimental.pallas import tpu as pltpu


# ---------------------------------------------------------------------------
# Kernel 1: fused q/k/v 1x1 projection  ->  x_flat @ [wq | wk | wv]
# ---------------------------------------------------------------------------
def _qkv_matmul_kernel(x_ref, w_ref, o_ref):
    o_ref[...] = jnp.dot(x_ref[...], w_ref[...],
                         preferred_element_type=jnp.float32)


def pallas_qkv_proj(x_flat, w_qkv):
    M, K = x_flat.shape
    K2, N = w_qkv.shape
    assert K == K2
    Mp = ((M + 7) // 8) * 8                      # pad rows to sublane multiple only
    xp = jnp.pad(x_flat, ((0, Mp - M), (0, 0)))
    out = pl.pallas_call(
        _qkv_matmul_kernel,
        out_shape=jax.ShapeDtypeStruct((Mp, N), jnp.float32),
        grid=(1,),
        in_specs=[pl.BlockSpec((Mp, K), lambda i: (0, 0)),
                  pl.BlockSpec((K, N), lambda i: (0, 0))],
        out_specs=pl.BlockSpec((Mp, N), lambda i: (0, 0)),
        compiler_params=pltpu.CompilerParams(
            dimension_semantics=("arbitrary",)),
    )(xp, w_qkv)
    return out[:M]


# ---------------------------------------------------------------------------
# Kernel 2: ConvBlock  fc(1x1, 12->25)  o  dep_conv(identity 5x5, groups=16)
# fused into one contraction over 12*25 = 300 features, + BatchNorm (training-
# mode batch stats, gamma=1, beta=0).  Because the 4 output channels of every
# dep_conv group are identical, BN is computed once per head_dim channel and
# each normalized row is emitted 4x (channel layout c -> d = c//4).
#
#   w_ref   : (8, 300)   f32, row 0 = flattened fc weight, rows 1..7 zero-pad
#   p_ref   : (group, 300, ncols)  im2col'd qkv features for `group` d-channels
#   o_ref   : (4*group, ncols)     BN-normalized dep_conv output (rows = chans)
# ---------------------------------------------------------------------------
def _dep_bn_kernel(w_ref, p_ref, o_ref, *, group, eps):
    rows = []
    for j in range(group):
        r = jnp.dot(w_ref[...], p_ref[j],
                    preferred_element_type=jnp.float32)        # (8, ncols)
        d = r[0:1, :]                                          # (1, ncols)
        mu = jnp.mean(d, axis=1, keepdims=True)                # (1, 1)
        var = jnp.mean(jnp.square(d - mu), axis=1, keepdims=True)
        bn = (d - mu) * jax.lax.rsqrt(var + eps)               # (1, ncols)
        rows.extend([bn] * 4)                                  # 4 identical out chans / group
    o_ref[...] = jnp.concatenate(rows, axis=0)                 # (4*group, ncols)


def pallas_dep_bn(w8, patches, group=4, eps=1e-5):
    HD, KF, NC = patches.shape                                 # (16, 300, b*oh*oh)
    assert HD % group == 0
    return pl.pallas_call(
        functools.partial(_dep_bn_kernel, group=group, eps=eps),
        out_shape=jax.ShapeDtypeStruct((4 * HD, NC), jnp.float32),
        grid=(HD // group,),
        in_specs=[pl.BlockSpec((8, KF), lambda d: (0, 0)),
                  pl.BlockSpec((group, KF, NC), lambda d: (d, 0, 0))],
        out_specs=pl.BlockSpec((4 * group, NC), lambda d: (d, 0)),
        compiler_params=pltpu.CompilerParams(
            dimension_semantics=("parallel",)),
    )(w8, patches)


# ---------------------------------------------------------------------------
# Kernel 3: global attention, but ONLY for token index 1 (the only token that
# is consumed downstream).  No softmax in the reference (raw scores).
#   q_ref : (1, H, D) bf16   -- q token 1 per head (raw reference reshape)
#   k_ref : (1, H, N, D) bf16, v_ref : (1, H, N, D) bf16
#   o_ref : (1, H, D) f32
# ---------------------------------------------------------------------------
def _attn_tok1_kernel(q_ref, k_ref, v_ref, o_ref, *, scale, head_num):
    q_all = q_ref[0]                                           # (H, D)
    outs = []
    for h in range(head_num):
        qh = q_all[h:h + 1, :]                                 # (1, D)
        kh = k_ref[0, h]                                       # (N, D)
        vh = v_ref[0, h]                                       # (N, D)
        s = jax.lax.dot_general(qh, kh, (((1,), (1,)), ((), ())),
                                preferred_element_type=jnp.float32) * scale   # (1, N)
        outs.append(jnp.dot(s.astype(vh.dtype), vh,
                            preferred_element_type=jnp.float32))              # (1, D)
    o_ref[0] = jnp.concatenate(outs, axis=0)                   # (H, D)


def pallas_attention_tok1(q1, k, v, scale):
    B, H, N, D = k.shape
    assert q1.shape == (B, H, D)
    return pl.pallas_call(
        functools.partial(_attn_tok1_kernel, scale=scale, head_num=H),
        out_shape=jax.ShapeDtypeStruct((B, H, D), jnp.float32),
        grid=(B,),
        in_specs=[pl.BlockSpec((1, H, D), lambda i: (i, 0, 0)),
                  pl.BlockSpec((1, H, N, D), lambda i: (i, 0, 0, 0)),
                  pl.BlockSpec((1, H, N, D), lambda i: (i, 0, 0, 0))],
        out_specs=pl.BlockSpec((1, H, D), lambda i: (i, 0, 0)),
        compiler_params=pltpu.CompilerParams(
            dimension_semantics=("parallel",)),
    )(q1, k, v)


# ---------------------------------------------------------------------------
# Kernel 4: conv_global (3x3, pad 1, no bias) as a lane-dense matmul
#   (64, 576) @ (576, b*oh*oh), fused with the final combine
#   out = 0.5 * BN(out_conv) + 0.5 * conv_global(out_attn)
# ---------------------------------------------------------------------------
def _global_combine_kernel(w_ref, x_ref, bn_ref, o_ref):
    g = jnp.dot(w_ref[...], x_ref[...], preferred_element_type=jnp.float32)
    o_ref[...] = 0.5 * g + 0.5 * bn_ref[...]


def pallas_global_combine(w2d, x_cols, bn64):
    C, KF = w2d.shape
    KF2, NC = x_cols.shape
    assert KF == KF2 and bn64.shape == (C, NC)
    return pl.pallas_call(
        _global_combine_kernel,
        out_shape=jax.ShapeDtypeStruct((C, NC), jnp.float32),
        grid=(1,),
        in_specs=[pl.BlockSpec((C, KF), lambda i: (0, 0)),
                  pl.BlockSpec((KF, NC), lambda i: (0, 0)),
                  pl.BlockSpec((C, NC), lambda i: (0, 0))],
        out_specs=pl.BlockSpec((C, NC), lambda i: (0, 0)),
        compiler_params=pltpu.CompilerParams(
            dimension_semantics=("arbitrary",)),
    )(w2d, x_cols, bn64)


# ---------------------------------------------------------------------------
# Plain-JAX glue (padding / unfold / im2col / reshapes)
# ---------------------------------------------------------------------------
def reflection_pad2d(x, p):
    return jnp.pad(x, ((0, 0), (0, 0), (p, p), (p, p)), mode="reflect")


def unfold(x, K):
    # torch.nn.Unfold(kernel_size=K, stride=1): (b, C*K*K, L),
    # channel index = c*K*K + ky*K + kx, L row-major over output positions.
    b, C, Hp, Wp = x.shape
    OH, OW = Hp - K + 1, Wp - K + 1
    cols = [x[:, :, ky:ky + OH, kx:kx + OW]
            for ky in range(K) for kx in range(K)]
    patches = jnp.stack(cols, axis=2)            # (b, C, K*K, OH, OW)
    return patches.reshape(b, C * K * K, OH * OW)


# ---------------------------------------------------------------------------
# Parameters (deterministic, in-script)
# ---------------------------------------------------------------------------
def init_params(key, in_planes=64, out_planes=64, head_num=4, kernel_conv=5):
    ks = jax.random.split(key, 5)
    p = {}
    p["wq"] = 0.1 * jax.random.normal(ks[0], (in_planes, out_planes), jnp.float32)
    p["wk"] = 0.1 * jax.random.normal(ks[1], (in_planes, out_planes), jnp.float32)
    p["wv"] = 0.1 * jax.random.normal(ks[2], (in_planes, out_planes), jnp.float32)
    # ConvBlock.fc : 1x1 conv (3*head_num -> kernel_conv^2), no bias; stored (in, out)
    p["w_fc"] = 0.1 * jax.random.normal(
        ks[3], (3 * head_num, kernel_conv * kernel_conv), jnp.float32)
    # Attention.conv_global : 3x3 conv, padding 1, no bias (out, in, ky, kx)
    p["w_global"] = 0.1 * jax.random.normal(
        ks[4], (in_planes, in_planes, 3, 3), jnp.float32)
    return p


# ---------------------------------------------------------------------------
# MPAcV forward
# ---------------------------------------------------------------------------
def mpacv_forward(x1, params, i):
    in_planes = 64
    head_num = 4
    head_dim = in_planes // head_num              # 16
    kernel_conv = 5
    size = 19 if i == 1 else 17

    b, c, h, w = x1.shape
    assert c == in_planes and h == size and w == size
    hw = h * w
    oh = size - 4                                 # output spatial of both branches
    ncols = b * oh * oh

    # ---- conv1x1qkv_block: single fused Pallas matmul (x @ [wq|wk|wv]) ----
    x_flat = x1.transpose(0, 2, 3, 1).reshape(b * hw, in_planes)
    w_qkv = jnp.concatenate([params["wq"], params["wk"], params["wv"]], axis=1)   # (64,192)
    y = pallas_qkv_proj(x_flat, w_qkv).reshape(b, h, w, 3 * in_planes)
    q_conv = y[..., 0:in_planes].transpose(0, 3, 1, 2)                 # (b,64,h,w)
    k_conv = y[..., in_planes:2 * in_planes].transpose(0, 3, 1, 2)
    v_conv = y[..., 2 * in_planes:].transpose(0, 3, 1, 2)

    # ---- ConvBlock: fc o dep_conv fused as one 12*25-feature contraction + BN ----
    # g[b, c(=qkv head), d, y, x] = cat([q,k,v] viewed as (b,4,16,h,w))
    g = jnp.concatenate(
        [q_conv.reshape(b, head_num, head_dim, h, w),
         k_conv.reshape(b, head_num, head_dim, h, w),
         v_conv.reshape(b, head_num, head_dim, h, w)], axis=1)         # (b,12,16,h,w)
    wins = jnp.stack(
        [g[:, :, :, dy:dy + oh, dx:dx + oh]
         for dy in range(kernel_conv) for dx in range(kernel_conv)],
        axis=3)                                                        # (b,12,16,25,oh,oh)
    kf = 3 * head_num * kernel_conv * kernel_conv                      # 300
    # P[d, c*25 + i, b*oh*oh + y*oh + x]
    patches_dep = wins.transpose(2, 1, 3, 0, 4, 5).reshape(head_dim, kf, ncols)
    wvec = params["w_fc"].reshape(1, kf)                               # [c*25+i] = fc[i,c]
    w8 = jnp.concatenate([wvec, jnp.zeros((7, kf), jnp.float32)], axis=0)
    # dep_conv.bias is nulled by init_rate_0 in the reference -> no bias
    bn_conv64 = pallas_dep_bn(w8, patches_dep)                         # (64, ncols), BN'ed

    # ---- UnfoldBlock (pos_embed / cls tokens are zeros in the reference) ----
    Ku = size - 4
    C_tok = in_planes * Ku * Ku
    D = C_tok // head_num

    def unfold_branch(t):
        u = unfold(reflection_pad2d(t, 1), Ku).transpose(0, 2, 1)      # (b, L, C_tok)
        cls = jnp.zeros((b, 1, C_tok), jnp.float32)                    # cls token = 0
        return jnp.concatenate([cls, u], axis=1)                       # (b, L+1, C_tok)

    q_tok = unfold_branch(q_conv)
    k_tok = unfold_branch(k_conv)
    v_tok = unfold_branch(v_conv)
    N = q_tok.shape[1]

    # raw contiguous reshape exactly as the reference (it mixes tokens/channels)
    qh = q_tok.reshape(b, head_num, N, D)
    kh = k_tok.reshape(b, head_num, N, D)
    vh = v_tok.reshape(b, head_num, N, D)
    q1 = qh[:, :, 1, :]                                                # only token 1 is used
    scale = float(head_dim) ** (-0.5)
    attn1 = pallas_attention_tok1(q1.astype(jnp.bfloat16),
                                  kh.astype(jnp.bfloat16),
                                  vh.astype(jnp.bfloat16), scale)      # (b, H, D) f32
    out_attn = attn1.reshape(b, C_tok).reshape(b, in_planes, oh, oh)

    # ---- conv_global (im2col) + BN(out_conv)*0.5 + out_attn_conv*0.5 combine ----
    xp = jnp.pad(out_attn, ((0, 0), (0, 0), (1, 1), (1, 1)))
    cols = jnp.stack([xp[:, :, ky:ky + oh, kx:kx + oh]
                      for ky in range(3) for kx in range(3)], axis=2)  # (b,64,9,oh,oh)
    x_cols = cols.transpose(1, 2, 0, 3, 4).reshape(in_planes * 9, ncols)
    w2d = params["w_global"].reshape(in_planes, in_planes * 9)         # (64, 576)
    out_t = pallas_global_combine(w2d, x_cols, bn_conv64)              # (64, ncols)
    return out_t.reshape(in_planes, b, oh, oh).transpose(1, 0, 2, 3)   # (b,64,oh,oh)


if __name__ == "__main__":
    key = jax.random.PRNGKey(0)
    kx_, kp_ = jax.random.split(key)

    i = 2                                        # MPAcV(i=2) -> expects 17x17 input
    x1 = jax.random.normal(kx_, (2, 64, 17, 17), jnp.float32)
    params = init_params(kp_)

    fwd = jax.jit(functools.partial(mpacv_forward, i=i))
    out = fwd(x1, params)
    jax.block_until_ready(out)
    assert out.shape == (2, 64, 13, 13), out.shape
    print("KERNEL_OK")
</pallas_src>

<mosaic_0001>
module attributes {stable_mosaic.version = 11 : i64} {
  func.func @_qkv_matmul_kernel(%arg0: i32, %arg1: memref<584x64xf32, #tpu.memory_space<vmem>>, %arg2: memref<64x192xf32, #tpu.memory_space<vmem>>, %arg3: memref<584x192xf32, #tpu.memory_space<vmem>>) attributes {dimension_semantics = [#tpu.dimension_semantics<arbitrary>], iteration_bounds = array<i64: 1>, scalar_prefetch = 0 : i64, scratch_operands = 0 : i64, tpu.core_type = #tpu.core_type<tc>, window_params = [{pipeline_mode = #tpu.pipeline_mode<synchronous>, transform_indices = @transform_0, window_bounds = array<i64: 584, 64>}, {pipeline_mode = #tpu.pipeline_mode<synchronous>, transform_indices = @transform_1, window_bounds = array<i64: 64, 192>}, {pipeline_mode = #tpu.pipeline_mode<synchronous>, transform_indices = @transform_2, window_bounds = array<i64: 584, 192>}]} {
    %c0 = arith.constant 0 : index
    %c0_0 = arith.constant 0 : index
    %0 = vector.load %arg1[%c0, %c0_0] : memref<584x64xf32, #tpu.memory_space<vmem>>, vector<584x64xf32>
    %c0_1 = arith.constant 0 : index
    %c0_2 = arith.constant 0 : index
    %1 = vector.load %arg2[%c0_1, %c0_2] : memref<64x192xf32, #tpu.memory_space<vmem>>, vector<64x192xf32>
    %cst = arith.constant dense<0.000000e+00> : vector<584x192xf32>
    %2 = tpu.matmul %0, %1, %cst {dimension_numbers = #tpu.dot_dimension_numbers<[1], [0], [0], [1], [0, 0, 1, 1], [], []>} : vector<584x64xf32>, vector<64x192xf32>, vector<584x192xf32> -> vector<584x192xf32>
    %c0_3 = arith.constant 0 : index
    %c0_4 = arith.constant 0 : index
    %3 = vector.load %arg3[%c0_3, %c0_4] : memref<584x192xf32, #tpu.memory_space<vmem>>, vector<584x192xf32>
    tpu.vector_store %arg3[%c0_3, %c0_4], %2 {strides = array<i32>} : memref<584x192xf32, #tpu.memory_space<vmem>>, vector<584x192xf32>,
    return
  }
  func.func @transform_0(%arg0: i32) -> (i32, i32) {
    %c0_i32 = arith.constant 0 : i32
    %c0_i32_0 = arith.constant 0 : i32
    %c0_i32_1 = arith.constant 0 : i32
    return %c0_i32, %c0_i32_0 : i32, i32
  }
  func.func @transform_1(%arg0: i32) -> (i32, i32) {
    %c0_i32 = arith.constant 0 : i32
    %c0_i32_0 = arith.constant 0 : i32
    %c0_i32_1 = arith.constant 0 : i32
    return %c0_i32, %c0_i32_0 : i32, i32
  }
  func.func @transform_2(%arg0: i32) -> (i32, i32) {
    %c0_i32 = arith.constant 0 : i32
    %c0_i32_0 = arith.constant 0 : i32
    %c0_i32_1 = arith.constant 0 : i32
    return %c0_i32, %c0_i32_0 : i32, i32
  }
}

module attributes {stable_mosaic.version = 11 : i64} {
  func.func @_attn_tok1_kernel(%arg0: i32, %arg1: memref<1x4x2704xbf16, #tpu.memory_space<vmem>>, %arg2: memref<1x4x50x2704xbf16, #tpu.memory_space<vmem>>, %arg3: memref<1x4x50x2704xbf16, #tpu.memory_space<vmem>>, %arg4: memref<1x4x2704xf32, #tpu.memory_space<vmem>>) attributes {dimension_semantics = [#tpu.dimension_semantics<parallel>], iteration_bounds = array<i64: 2>, scalar_prefetch = 0 : i64, scratch_operands = 0 : i64, tpu.core_type = #tpu.core_type<tc>, window_params = [{transform_indices = @transform_0, window_bounds = array<i64: 1, 4, 2704>}, {transform_indices = @transform_1, window_bounds = array<i64: 1, 4, 50, 2704>}, {transform_indices = @transform_2, window_bounds = array<i64: 1, 4, 50, 2704>}, {transform_indices = @transform_3, window_bounds = array<i64: 1, 4, 2704>}]} {
    %c0 = arith.constant 0 : index
    %c0_0 = arith.constant 0 : index
    %c0_1 = arith.constant 0 : index
    %0 = vector.load %arg1[%c0, %c0_0, %c0_1] : memref<1x4x2704xbf16, #tpu.memory_space<vmem>>, vector<1x4x2704xbf16>
    %1 = vector.shape_cast %0 : vector<1x4x2704xbf16> to vector<4x2704xbf16>
    %2 = vector.extract_strided_slice %1 {offsets = [0, 0], sizes = [1, 2704], strides = [1, 1]} : vector<4x2704xbf16> to vector<1x2704xbf16>
    %c0_2 = arith.constant 0 : index
    %c0_3 = arith.constant 0 : index
    %c0_4 = arith.constant 0 : index
    %c0_5 = arith.constant 0 : index
    %3 = vector.load %arg2[%c0_2, %c0_3, %c0_4, %c0_5] : memref<1x4x50x2704xbf16, #tpu.memory_space<vmem>>, vector<1x1x50x2704xbf16>
    %4 = vector.shape_cast %3 : vector<1x1x50x2704xbf16> to vector<50x2704xbf16>
    %c0_6 = arith.constant 0 : index
    %c0_7 = arith.constant 0 : index
    %c0_8 = arith.constant 0 : index
    %c0_9 = arith.constant 0 : index
    %5 = vector.load %arg3[%c0_6, %c0_7, %c0_8, %c0_9] : memref<1x4x50x2704xbf16, #tpu.memory_space<vmem>>, vector<1x1x50x2704xbf16>
    %6 = vector.shape_cast %5 : vector<1x1x50x2704xbf16> to vector<50x2704xbf16>
    %cst = arith.constant dense<0.000000e+00> : vector<1x50xf32>
    %7 = tpu.matmul %2, %4, %cst {dimension_numbers = #tpu.dot_dimension_numbers<[1], [1], [0], [0], [0, 0, 1, 0], [], []>} : vector<1x2704xbf16>, vector<50x2704xbf16>, vector<1x50xf32> -> vector<1x50xf32>
    %cst_10 = arith.constant 2.500000e-01 : f32
    %8 = vector.broadcast %cst_10 : f32 to vector<1x50xf32>
    %9 = arith.mulf %7, %8 : vector<1x50xf32>
    %10 = arith.truncf %9 : vector<1x50xf32> to vector<1x50xbf16>
    %cst_11 = arith.constant dense<0.000000e+00> : vector<1x2704xf32>
    %11 = tpu.matmul %10, %6, %cst_11 {dimension_numbers = #tpu.dot_dimension_numbers<[1], [0], [0], [1], [0, 0, 1, 1], [], []>} : vector<1x50xbf16>, vector<50x2704xbf16>, vector<1x2704xf32> -> vector<1x2704xf32>
    %12 = vector.extract_strided_slice %1 {offsets = [1, 0], sizes = [1, 2704], strides = [1, 1]} : vector<4x2704xbf16> to vector<1x2704xbf16>
    %c0_12 = arith.constant 0 : index
    %c1 = arith.constant 1 : index
    %c0_13 = arith.constant 0 : index
    %c0_14 = arith.constant 0 : index
    %13 = vector.load %arg2[%c0_12, %c1, %c0_13, %c0_14] : memref<1x4x50x2704xbf16, #tpu.memory_space<vmem>>, vector<1x1x50x2704xbf16>
    %14 = vector.shape_cast %13 : vector<1x1x50x2704xbf16> to vector<50x2704xbf16>
    %c0_15 = arith.constant 0 : index
    %c1_16 = arith.constant 1 : index
    %c0_17 = arith.constant 0 : index
    %c0_18 = arith.constant 0 : index
    %15 = vector.load %arg3[%c0_15, %c1_16, %c0_17, %c0_18] : memref<1x4x50x2704xbf16, #tpu.memory_space<vmem>>, vector<1x1x50x2704xbf16>
    %16 = vector.shape_cast %15 : vector<1x1x50x2704xbf16> to vector<50x2704xbf16>
    %cst_19 = arith.constant dense<0.000000e+00> : vector<1x50xf32>
    %17 = tpu.matmul %12, %14, %cst_19 {dimension_numbers = #tpu.dot_dimension_numbers<[1], [1], [0], [0], [0, 0, 1, 0], [], []>} : vector<1x2704xbf16>, vector<50x2704xbf16>, vector<1x50xf32> -> vector<1x50xf32>
    %cst_20 = arith.constant 2.500000e-01 : f32
    %18 = vector.broadcast %cst_20 : f32 to vector<1x50xf32>
    %19 = arith.mulf %17, %18 : vector<1x50xf32>
    %20 = arith.truncf %19 : vector<1x50xf32> to vector<1x50xbf16>
    %cst_21 = arith.constant dense<0.000000e+00> : vector<1x2704xf32>
    %21 = tpu.matmul %20, %16, %cst_21 {dimension_numbers = #tpu.dot_dimension_numbers<[1], [0], [0], [1], [0, 0, 1, 1], [], []>} : vector<1x50xbf16>, vector<50x2704xbf16>, vector<1x2704xf32> -> vector<1x2704xf32>
    %22 = vector.extract_strided_slice %1 {offsets = [2, 0], sizes = [1, 2704], strides = [1, 1]} : vector<4x2704xbf16> to vector<1x2704xbf16>
    %c0_22 = arith.constant 0 : index
    %c2 = arith.constant 2 : index
    %c0_23 = arith.constant 0 : index
    %c0_24 = arith.constant 0 : index
    %23 = vector.load %arg2[%c0_22, %c2, %c0_23, %c0_24] : memref<1x4x50x2704xbf16, #tpu.memory_space<vmem>>, vector<1x1x50x2704xbf16>
    %24 = vector.shape_cast %23 : vector<1x1x50x2704xbf16> to vector<50x2704xbf16>
    %c0_25 = arith.constant 0 : index
    %c2_26 = arith.constant 2 : index
    %c0_27 = arith.constant 0 : index
    %c0_28 = arith.constant 0 : index
    %25 = vector.load %arg3[%c0_25, %c2_26, %c0_27, %c0_28] : memref<1x4x50x2704xbf16, #tpu.memory_space<vmem>>, vector<1x1x50x2704xbf16>
    %26 = vector.shape_cast %25 : vector<1x1x50x2704xbf16> to vector<50x2704xbf16>
    %cst_29 = arith.constant dense<0.000000e+00> : vector<1x50xf32>
    %27 = tpu.matmul %22, %24, %cst_29 {dimension_numbers = #tpu.dot_dimension_numbers<[1], [1], [0], [0], [0, 0, 1, 0], [], []>} : vector<1x2704xbf16>, vector<50x2704xbf16>, vector<1x50xf32> -> vector<1x50xf32>
    %cst_30 = arith.constant 2.500000e-01 : f32
    %28 = vector.broadcast %cst_30 : f32 to vector<1x50xf32>
    %29 = arith.mulf %27, %28 : vector<1x50xf32>
    %30 = arith.truncf %29 : vector<1x50xf32> to vector<1x50xbf16>
    %cst_31 = arith.constant dense<0.000000e+00> : vector<1x2704xf32>
    %31 = tpu.matmul %30, %26, %cst_31 {dimension_numbers = #tpu.dot_dimension_numbers<[1], [0], [0], [1], [0, 0, 1, 1], [], []>} : vector<1x50xbf16>, vector<50x2704xbf16>, vector<1x2704xf32> -> vector<1x2704xf32>
    %32 = vector.extract_strided_slice %1 {offsets = [3, 0], sizes = [1, 2704], strides = [1, 1]} : vector<4x2704xbf16> to vector<1x2704xbf16>
    %c0_32 = arith.constant 0 : index
    %c3 = arith.constant 3 : index
    %c0_33 = arith.constant 0 : index
    %c0_34 = arith.constant 0 : index
    %33 = vector.load %arg2[%c0_32, %c3, %c0_33, %c0_34] : memref<1x4x50x2704xbf16, #tpu.memory_space<vmem>>, vector<1x1x50x2704xbf16>
    %34 = vector.shape_cast %33 : vector<1x1x50x2704xbf16> to vector<50x2704xbf16>
    %c0_35 = arith.constant 0 : index
    %c3_36 = arith.constant 3 : index
    %c0_37 = arith.constant 0 : index
    %c0_38 = arith.constant 0 : index
    %35 = vector.load %arg3[%c0_35, %c3_36, %c0_37, %c0_38] : memref<1x4x50x2704xbf16, #tpu.memory_space<vmem>>, vector<1x1x50x2704xbf16>
    %36 = vector.shape_cast %35 : vector<1x1x50x2704xbf16> to vector<50x2704xbf16>
    %cst_39 = arith.constant dense<0.000000e+00> : vector<1x50xf32>
    %37 = tpu.matmul %32, %34, %cst_39 {dimension_numbers = #tpu.dot_dimension_numbers<[1], [1], [0], [0], [0, 0, 1, 0], [], []>} : vector<1x2704xbf16>, vector<50x2704xbf16>, vector<1x50xf32> -> vector<1x50xf32>
    %cst_40 = arith.constant 2.500000e-01 : f32
    %38 = vector.broadcast %cst_40 : f32 to vector<1x50xf32>
    %39 = arith.mulf %37, %38 : vector<1x50xf32>
    %40 = arith.truncf %39 : vector<1x50xf32> to vector<1x50xbf16>
    %cst_41 = arith.constant dense<0.000000e+00> : vector<1x2704xf32>
    %41 = tpu.matmul %40, %36, %cst_41 {dimension_numbers = #tpu.dot_dimension_numbers<[1], [0], [0], [1], [0, 0, 1, 1], [], []>} : vector<1x50xbf16>, vector<50x2704xbf16>, vector<1x2704xf32> -> vector<1x2704xf32>
    %42 = tpu.concatenate %11, %21, %31, %41 in 0 : vector<1x2704xf32>, vector<1x2704xf32>, vector<1x2704xf32>, vector<1x2704xf32> -> vector<4x2704xf32>
    %c0_42 = arith.constant 0 : index
    %c0_43 = arith.constant 0 : index
    %c0_44 = arith.constant 0 : index
    %43 = vector.load %arg4[%c0_42, %c0_43, %c0_44] : memref<1x4x2704xf32, #tpu.memory_space<vmem>>, vector<1x4x2704xf32>
    %44 = vector.shape_cast %43 : vector<1x4x2704xf32> to vector<4x2704xf32>
    %45 = vector.shape_cast %42 : vector<4x2704xf32> to vector<1x4x2704xf32>
    tpu.vector_store %arg4[%c0_42, %c0_43, %c0_44], %45 {strides = array<i32>} : memref<1x4x2704xf32, #tpu.memory_space<vmem>>, vector<1x4x2704xf32>,
    return
  }
  func.func @transform_0(%arg0: i32) -> (i32, i32, i32) {
    %c0_i32 = arith.constant 0 : i32
    %c0_i32_0 = arith.constant 0 : i32
    %c0_i32_1 = arith.constant 0 : i32
    return %arg0, %c0_i32, %c0_i32_0 : i32, i32, i32
  }
  func.func @transform_1(%arg0: i32) -> (i32, i32, i32, i32) {
    %c0_i32 = arith.constant 0 : i32
    %c0_i32_0 = arith.constant 0 : i32
    %c0_i32_1 = arith.constant 0 : i32
    %c0_i32_2 = arith.constant 0 : i32
    return %arg0, %c0_i32, %c0_i32_0, %c0_i32_1 : i32, i32, i32, i32
  }
  func.func @transform_2(%arg0: i32) -> (i32, i32, i32, i32) {
    %c0_i32 = arith.constant 0 : i32
    %c0_i32_0 = arith.constant 0 : i32
    %c0_i32_1 = arith.constant 0 : i32
    %c0_i32_2 = arith.constant 0 : i32
    return %arg0, %c0_i32, %c0_i32_0, %c0_i32_1 : i32, i32, i32, i32
  }
  func.func @transform_3(%arg0: i32) -> (i32, i32, i32) {
    %c0_i32 = arith.constant 0 : i32
    %c0_i32_0 = arith.constant 0 : i32
    %c0_i32_1 = arith.constant 0 : i32
    return %arg0, %c0_i32, %c0_i32_0 : i32, i32, i32
  }
}

module attributes {stable_mosaic.version = 11 : i64} {
  func.func @_dep_bn_kernel(%arg0: i32, %arg1: memref<8x300xf32, #tpu.memory_space<vmem>>, %arg2: memref<4x300x338xf32, #tpu.memory_space<vmem>>, %arg3: memref<16x338xf32, #tpu.memory_space<vmem>>) attributes {dimension_semantics = [#tpu.dimension_semantics<parallel>], iteration_bounds = array<i64: 4>, scalar_prefetch = 0 : i64, scratch_operands = 0 : i64, tpu.core_type = #tpu.core_type<tc>, window_params = [{pipeline_mode = #tpu.pipeline_mode<synchronous>, transform_indices = @transform_0, window_bounds = array<i64: 8, 300>}, {transform_indices = @transform_1, window_bounds = array<i64: 4, 300, 338>}, {transform_indices = @transform_2, window_bounds = array<i64: 16, 338>}]} {
    %c0 = arith.constant 0 : index
    %c0_0 = arith.constant 0 : index
    %0 = vector.load %arg1[%c0, %c0_0] : memref<8x300xf32, #tpu.memory_space<vmem>>, vector<8x300xf32>
    %c0_1 = arith.constant 0 : index
    %c0_2 = arith.constant 0 : index
    %c0_3 = arith.constant 0 : index
    %1 = vector.load %arg2[%c0_1, %c0_2, %c0_3] : memref<4x300x338xf32, #tpu.memory_space<vmem>>, vector<1x300x338xf32>
    %2 = vector.shape_cast %1 : vector<1x300x338xf32> to vector<300x338xf32>
    %cst = arith.constant dense<0.000000e+00> : vector<8x338xf32>
    %3 = tpu.matmul %0, %2, %cst {dimension_numbers = #tpu.dot_dimension_numbers<[1], [0], [0], [1], [0, 0, 1, 1], [], []>} : vector<8x300xf32>, vector<300x338xf32>, vector<8x338xf32> -> vector<8x338xf32>
    %4 = vector.extract_strided_slice %3 {offsets = [0, 0], sizes = [1, 338], strides = [1, 1]} : vector<8x338xf32> to vector<1x338xf32>
    %cst_4 = arith.constant dense<0.000000e+00> : vector<1xf32>
    %5 = vector.multi_reduction <add>, %4, %cst_4 [1] : vector<1x338xf32> to vector<1xf32>
    %6 = vector.shape_cast %5 : vector<1xf32> to vector<1x1xf32>
    %cst_5 = arith.constant 3.380000e+02 : f32
    %7 = vector.broadcast %cst_5 : f32 to vector<1x1xf32>
    %8 = arith.divf %6, %7 : vector<1x1xf32>
    %9 = vector.broadcast %8 : vector<1x1xf32> to vector<1x338xf32>
    %10 = arith.subf %4, %9 : vector<1x338xf32>
    %11 = arith.mulf %10, %10 : vector<1x338xf32>
    %cst_6 = arith.constant dense<0.000000e+00> : vector<1xf32>
    %12 = vector.multi_reduction <add>, %11, %cst_6 [1] : vector<1x338xf32> to vector<1xf32>
    %13 = vector.shape_cast %12 : vector<1xf32> to vector<1x1xf32>
    %cst_7 = arith.constant 3.380000e+02 : f32
    %14 = vector.broadcast %cst_7 : f32 to vector<1x1xf32>
    %15 = arith.divf %13, %14 : vector<1x1xf32>
    %16 = vector.broadcast %8 : vector<1x1xf32> to vector<1x338xf32>
    %17 = arith.subf %4, %16 : vector<1x338xf32>
    %cst_8 = arith.constant 9.99999974E-6 : f32
    %18 = vector.broadcast %cst_8 : f32 to vector<1x1xf32>
    %19 = arith.addf %15, %18 : vector<1x1xf32>
    %20 = math.rsqrt %19 : vector<1x1xf32>
    %21 = vector.broadcast %20 : vector<1x1xf32> to vector<1x338xf32>
    %22 = arith.mulf %17, %21 : vector<1x338xf32>
    %c0_9 = arith.constant 0 : index
    %c0_10 = arith.constant 0 : index
    %23 = vector.load %arg1[%c0_9, %c0_10] : memref<8x300xf32, #tpu.memory_space<vmem>>, vector<8x300xf32>
    %c1 = arith.constant 1 : index
    %c0_11 = arith.constant 0 : index
    %c0_12 = arith.constant 0 : index
    %24 = vector.load %arg2[%c1, %c0_11, %c0_12] : memref<4x300x338xf32, #tpu.memory_space<vmem>>, vector<1x300x338xf32>
    %25 = vector.shape_cast %24 : vector<1x300x338xf32> to vector<300x338xf32>
    %cst_13 = arith.constant dense<0.000000e+00> : vector<8x338xf32>
    %26 = tpu.matmul %23, %25, %cst_13 {dimension_numbers = #tpu.dot_dimension_numbers<[1], [0], [0], [1], [0, 0, 1, 1], [], []>} : vector<8x300xf32>, vector<300x338xf32>, vector<8x338xf32> -> vector<8x338xf32>
    %27 = vector.extract_strided_slice %26 {offsets = [0, 0], sizes = [1, 338], strides = [1, 1]} : vector<8x338xf32> to vector<1x338xf32>
    %cst_14 = arith.constant dense<0.000000e+00> : vector<1xf32>
    %28 = vector.multi_reduction <add>, %27, %cst_14 [1] : vector<1x338xf32> to vector<1xf32>
    %29 = vector.shape_cast %28 : vector<1xf32> to vector<1x1xf32>
    %cst_15 = arith.constant 3.380000e+02 : f32
    %30 = vector.broadcast %cst_15 : f32 to vector<1x1xf32>
    %31 = arith.divf %29, %30 : vector<1x1xf32>
    %32 = vector.broadcast %31 : vector<1x1xf32> to vector<1x338xf32>
    %33 = arith.subf %27, %32 : vector<1x338xf32>
    %34 = arith.mulf %33, %33 : vector<1x338xf32>
    %cst_16 = arith.constant dense<0.000000e+00> : vector<1xf32>
    %35 = vector.multi_reduction <add>, %34, %cst_16 [1] : vector<1x338xf32> to vector<1xf32>
    %36 = vector.shape_cast %35 : vector<1xf32> to vector<1x1xf32>
    %cst_17 = arith.constant 3.380000e+02 : f32
    %37 = vector.broadcast %cst_17 : f32 to vector<1x1xf32>
    %38 = arith.divf %36, %37 : vector<1x1xf32>
    %39 = vector.broadcast %31 : vector<1x1xf32> to vector<1x338xf32>
    %40 = arith.subf %27, %39 : vector<1x338xf32>
    %cst_18 = arith.constant 9.99999974E-6 : f32
    %41 = vector.broadcast %cst_18 : f32 to vector<1x1xf32>
    %42 = arith.addf %38, %41 : vector<1x1xf32>
    %43 = math.rsqrt %42 : vector<1x1xf32>
    %44 = vector.broadcast %43 : vector<1x1xf32> to vector<1x338xf32>
    %45 = arith.mulf %40, %44 : vector<1x338xf32>
    %c0_19 = arith.constant 0 : index
    %c0_20 = arith.constant 0 : index
    %46 = vector.load %arg1[%c0_19, %c0_20] : memref<8x300xf32, #tpu.memory_space<vmem>>, vector<8x300xf32>
    %c2 = arith.constant 2 : index
    %c0_21 = arith.constant 0 : index
    %c0_22 = arith.constant 0 : index
    %47 = vector.load %arg2[%c2, %c0_21, %c0_22] : memref<4x300x338xf32, #tpu.memory_space<vmem>>, vector<1x300x338xf32>
    %48 = vector.shape_cast %47 : vector<1x300x338xf32> to vector<300x338xf32>
    %cst_23 = arith.constant dense<0.000000e+00> : vector<8x338xf32>
    %49 = tpu.matmul %46, %48, %cst_23 {dimension_numbers = #tpu.dot_dimension_numbers<[1], [0], [0], [1], [0, 0, 1, 1], [], []>} : vector<8x300xf32>, vector<300x338xf32>, vector<8x338xf32> -> vector<8x338xf32>
    %50 = vector.extract_strided_slice %49 {offsets = [0, 0], sizes = [1, 338], strides = [1, 1]} : vector<8x338xf32> to vector<1x338xf32>
    %cst_24 = arith.constant dense<0.000000e+00> : vector<1xf32>
    %51 = vector.multi_reduction <add>, %50, %cst_24 [1] : vector<1x338xf32> to vector<1xf32>
    %52 = vector.shape_cast %51 : vector<1xf32> to vector<1x1xf32>
    %cst_25 = arith.constant 3.380000e+02 : f32
    %53 = vector.broadcast %cst_25 : f32 to vector<1x1xf32>
    %54 = arith.divf %52, %53 : vector<1x1xf32>
    %55 = vector.broadcast %54 : vector<1x1xf32> to vector<1x338xf32>
    %56 = arith.subf %50, %55 : vector<1x338xf32>
    %57 = arith.mulf %56, %56 : vector<1x338xf32>
    %cst_26 = arith.constant dense<0.000000e+00> : vector<1xf32>
    %58 = vector.multi_reduction <add>, %57, %cst_26 [1] : vector<1x338xf32> to vector<1xf32>
    %59 = vector.shape_cast %58 : vector<1xf32> to vector<1x1xf32>
    %cst_27 = arith.constant 3.380000e+02 : f32
    %60 = vector.broadcast %cst_27 : f32 to vector<1x1xf32>
    %61 = arith.divf %59, %60 : vector<1x1xf32>
    %62 = vector.broadcast %54 : vector<1x1xf32> to vector<1x338xf32>
    %63 = arith.subf %50, %62 : vector<1x338xf32>
    %cst_28 = arith.constant 9.99999974E-6 : f32
    %64 = vector.broadcast %cst_28 : f32 to vector<1x1xf32>
    %65 = arith.addf %61, %64 : vector<1x1xf32>
    %66 = math.rsqrt %65 : vector<1x1xf32>
    %67 = vector.broadcast %66 : vector<1x1xf32> to vector<1x338xf32>
    %68 = arith.mulf %63, %67 : vector<1x338xf32>
    %c0_29 = arith.constant 0 : index
    %c0_30 = arith.constant 0 : index
    %69 = vector.load %arg1[%c0_29, %c0_30] : memref<8x300xf32, #tpu.memory_space<vmem>>, vector<8x300xf32>
    %c3 = arith.constant 3 : index
    %c0_31 = arith.constant 0 : index
    %c0_32 = arith.constant 0 : index
    %70 = vector.load %arg2[%c3, %c0_31, %c0_32] : memref<4x300x338xf32, #tpu.memory_space<vmem>>, vector<1x300x338xf32>
    %71 = vector.shape_cast %70 : vector<1x300x338xf32> to vector<300x338xf32>
    %cst_33 = arith.constant dense<0.000000e+00> : vector<8x338xf32>
    %72 = tpu.matmul %69, %71, %cst_33 {dimension_numbers = #tpu.dot_dimension_numbers<[1], [0], [0], [1], [0, 0, 1, 1], [], []>} : vector<8x300xf32>, vector<300x338xf32>, vector<8x338xf32> -> vector<8x338xf32>
    %73 = vector.extract_strided_slice %72 {offsets = [0, 0], sizes = [1, 338], strides = [1, 1]} : vector<8x338xf32> to vector<1x338xf32>
    %cst_34 = arith.constant dense<0.000000e+00> : vector<1xf32>
    %74 = vector.multi_reduction <add>, %73, %cst_34 [1] : vector<1x338xf32> to vector<1xf32>
    %75 = vector.shape_cast %74 : vector<1xf32> to vector<1x1xf32>
    %cst_35 = arith.constant 3.380000e+02 : f32
    %76 = vector.broadcast %cst_35 : f32 to vector<1x1xf32>
    %77 = arith.divf %75, %76 : vector<1x1xf32>
    %78 = vector.broadcast %77 : vector<1x1xf32> to vector<1x338xf32>
    %79 = arith.subf %73, %78 : vector<1x338xf32>
    %80 = arith.mulf %79, %79 : vector<1x338xf32>
    %cst_36 = arith.constant dense<0.000000e+00> : vector<1xf32>
    %81 = vector.multi_reduction <add>, %80, %cst_36 [1] : vector<1x338xf32> to vector<1xf32>
    %82 = vector.shape_cast %81 : vector<1xf32> to vector<1x1xf32>
    %cst_37 = arith.constant 3.380000e+02 : f32
    %83 = vector.broadcast %cst_37 : f32 to vector<1x1xf32>
    %84 = arith.divf %82, %83 : vector<1x1xf32>
    %85 = vector.broadcast %77 : vector<1x1xf32> to vector<1x338xf32>
    %86 = arith.subf %73, %85 : vector<1x338xf32>
    %cst_38 = arith.constant 9.99999974E-6 : f32
    %87 = vector.broadcast %cst_38 : f32 to vector<1x1xf32>
    %88 = arith.addf %84, %87 : vector<1x1xf32>
    %89 = math.rsqrt %88 : vector<1x1xf32>
    %90 = vector.broadcast %89 : vector<1x1xf32> to vector<1x338xf32>
    %91 = arith.mulf %86, %90 : vector<1x338xf32>
    %92 = tpu.concatenate %22, %22, %22, %22, %45, %45, %45, %45, %68, %68, %68, %68, %91, %91, %91, %91 in 0 : vector<1x338xf32>, vector<1x338xf32>, vector<1x338xf32>, vector<1x338xf32>, vector<1x338xf32>, vector<1x338xf32>, vector<1x338xf32>, vector<1x338xf32>, vector<1x338xf32>, vector<1x338xf32>, vector<1x338xf32>, vector<1x338xf32>, vector<1x338xf32>, vector<1x338xf32>, vector<1x338xf32>, vector<1x338xf32> -> vector<16x338xf32>
    %c0_39 = arith.constant 0 : index
    %c0_40 = arith.constant 0 : index
    %93 = vector.load %arg3[%c0_39, %c0_40] : memref<16x338xf32, #tpu.memory_space<vmem>>, vector<16x338xf32>
    tpu.vector_store %arg3[%c0_39, %c0_40], %92 {strides = array<i32>} : memref<16x338xf32, #tpu.memory_space<vmem>>, vector<16x338xf32>,
    return
  }
  func.func @transform_0(%arg0: i32) -> (i32, i32) {
    %c0_i32 = arith.constant 0 : i32
    %c0_i32_0 = arith.constant 0 : i32
    %c0_i32_1 = arith.constant 0 : i32
    return %c0_i32, %c0_i32_0 : i32, i32
  }
  func.func @transform_1(%arg0: i32) -> (i32, i32, i32) {
    %c0_i32 = arith.constant 0 : i32
    %c0_i32_0 = arith.constant 0 : i32
    %c0_i32_1 = arith.constant 0 : i32
    return %arg0, %c0_i32, %c0_i32_0 : i32, i32, i32
  }
  func.func @transform_2(%arg0: i32) -> (i32, i32) {
    %c0_i32 = arith.constant 0 : i32
    %c0_i32_0 = arith.constant 0 : i32
    return %arg0, %c0_i32 : i32, i32
  }
}

module attributes {stable_mosaic.version = 11 : i64} {
  func.func @_global_combine_kernel(%arg0: i32, %arg1: memref<64x576xf32, #tpu.memory_space<vmem>>, %arg2: memref<576x338xf32, #tpu.memory_space<vmem>>, %arg3: memref<64x338xf32, #tpu.memory_space<vmem>>, %arg4: memref<64x338xf32, #tpu.memory_space<vmem>>) attributes {dimension_semantics = [#tpu.dimension_semantics<arbitrary>], iteration_bounds = array<i64: 1>, scalar_prefetch = 0 : i64, scratch_operands = 0 : i64, tpu.core_type = #tpu.core_type<tc>, window_params = [{pipeline_mode = #tpu.pipeline_mode<synchronous>, transform_indices = @transform_0, window_bounds = array<i64: 64, 576>}, {pipeline_mode = #tpu.pipeline_mode<synchronous>, transform_indices = @transform_1, window_bounds = array<i64: 576, 338>}, {pipeline_mode = #tpu.pipeline_mode<synchronous>, transform_indices = @transform_2, window_bounds = array<i64: 64, 338>}, {pipeline_mode = #tpu.pipeline_mode<synchronous>, transform_indices = @transform_3, window_bounds = array<i64: 64, 338>}]} {
    %c0 = arith.constant 0 : index
    %c0_0 = arith.constant 0 : index
    %0 = vector.load %arg1[%c0, %c0_0] : memref<64x576xf32, #tpu.memory_space<vmem>>, vector<64x576xf32>
    %c0_1 = arith.constant 0 : index
    %c0_2 = arith.constant 0 : index
    %1 = vector.load %arg2[%c0_1, %c0_2] : memref<576x338xf32, #tpu.memory_space<vmem>>, vector<576x338xf32>
    %cst = arith.constant dense<0.000000e+00> : vector<64x338xf32>
    %2 = tpu.matmul %0, %1, %cst {dimension_numbers = #tpu.dot_dimension_numbers<[1], [0], [0], [1], [0, 0, 1, 1], [], []>} : vector<64x576xf32>, vector<576x338xf32>, vector<64x338xf32> -> vector<64x338xf32>
    %cst_3 = arith.constant 5.000000e-01 : f32
    %3 = vector.broadcast %cst_3 : f32 to vector<64x338xf32>
    %4 = arith.mulf %3, %2 : vector<64x338xf32>
    %c0_4 = arith.constant 0 : index
    %c0_5 = arith.constant 0 : index
    %5 = vector.load %arg3[%c0_4, %c0_5] : memref<64x338xf32, #tpu.memory_space<vmem>>, vector<64x338xf32>
    %cst_6 = arith.constant 5.000000e-01 : f32
    %6 = vector.broadcast %cst_6 : f32 to vector<64x338xf32>
    %7 = arith.mulf %6, %5 : vector<64x338xf32>
    %8 = arith.addf %4, %7 : vector<64x338xf32>
    %c0_7 = arith.constant 0 : index
    %c0_8 = arith.constant 0 : index
    %9 = vector.load %arg4[%c0_7, %c0_8] : memref<64x338xf32, #tpu.memory_space<vmem>>, vector<64x338xf32>
    tpu.vector_store %arg4[%c0_7, %c0_8], %8 {strides = array<i32>} : memref<64x338xf32, #tpu.memory_space<vmem>>, vector<64x338xf32>,
    return
  }
  func.func @transform_0(%arg0: i32) -> (i32, i32) {
    %c0_i32 = arith.constant 0 : i32
    %c0_i32_0 = arith.constant 0 : i32
    %c0_i32_1 = arith.constant 0 : i32
    return %c0_i32, %c0_i32_0 : i32, i32
  }
  func.func @transform_1(%arg0: i32) -> (i32, i32) {
    %c0_i32 = arith.constant 0 : i32
    %c0_i32_0 = arith.constant 0 : i32
    %c0_i32_1 = arith.constant 0 : i32
    return %c0_i32, %c0_i32_0 : i32, i32
  }
  func.func @transform_2(%arg0: i32) -> (i32, i32) {
    %c0_i32 = arith.constant 0 : i32
    %c0_i32_0 = arith.constant 0 : i32
    %c0_i32_1 = arith.constant 0 : i32
    return %c0_i32, %c0_i32_0 : i32, i32
  }
  func.func @transform_3(%arg0: i32) -> (i32, i32) {
    %c0_i32 = arith.constant 0 : i32
    %c0_i32_0 = arith.constant 0 : i32
    %c0_i32_1 = arith.constant 0 : i32
    return %c0_i32, %c0_i32_0 : i32, i32
  }
}

</mosaic_0001>

<bundles_post_ra>
// kernel: mpacv_forward.4
= control target key start
LH: loop header
LB: loop body
LE: loop exit
PB: predicated region body
PF: predicated region fallthrough
CT: control target
= control target key end

     0   :  { %vm100_vm0 = vcmask 523264   ;;  %s2047_s1 = inlined_call_operand.vmem [shape: f32[64,192], index: 1, kind: input, shape index: {}]   ;;  %s2048_s0 = inlined_call_operand.vmem [shape: f32[584,64], index: 0, kind: input, shape index: {}]   ;;  %s2049_s2 = inlined_call_operand.vmem [shape: f32[584,192], index: 2, kind: output, shape index: {}]  }
   0x1   :  { %v98_v0 = vld [vmem:[%s2047_s1 + $0x70] sm:$0xff]  ;;  %v96_v1 = vld [vmem:[%s2047_s1 + $0x60] sm:$0xff]  ;;  %v99_v2 = vld [vmem:[%s2047_s1 + $0x78] sm:$0xff] }
   0x2   :  { %1088 = vmatpush.msra.mxu2 %v98_v0  ;;  %328 = vmatpush.msra.mxu0 %v98_v0  ;;  %v94_v3 = vld [vmem:[%s2047_s1 + $0x50] sm:$0xff]  ;;  %v97_v4 = vld [vmem:[%s2047_s1 + $0x68] sm:$0xff]  ;;  %v95_v5 = vld [vmem:[%s2047_s1 + $0x58] sm:$0xff] }
   0x3   :  { %564 = vmatpush.msra.mxu1 %v99_v2  ;;  %1096 = vmatpush.msra.mxu3 %v99_v2  ;;  %v92_v6 = vld [vmem:[%s2047_s1 + $0x40] sm:$0xff]  ;;  %v93_v7 = vld [vmem:[%s2047_s1 + $0x48] sm:$0xff]  ;;  %v90_v8 = vld [vmem:[%s2047_s1 + $0x30] sm:$0xff] }
   0x4   :  { %1089 = vmatpush.msra.mxu2 %v96_v1  ;;  %329 = vmatpush.msra.mxu0 %v96_v1  ;;  %v91_v9 = vld [vmem:[%s2047_s1 + $0x38] sm:$0xff]  ;;  %v88_v10 = vld [vmem:[%s2047_s1 + $0x20] sm:$0xff]  ;;  %v89_v11 = vld [vmem:[%s2047_s1 + $0x28] sm:$0xff] }
   0x5   :  { %565 = vmatpush.msra.mxu1 %v97_v4  ;;  %1097 = vmatpush.msra.mxu3 %v97_v4  ;;  %v86_v12 = vld [vmem:[%s2047_s1 + $0x10] sm:$0xff]  ;;  %v87_v13 = vld [vmem:[%s2047_s1 + $0x18] sm:$0xff]  ;;  %v84_v14 = vld [vmem:[%s2047_s1] sm:$0xff] }
   0x6   :  { %1090 = vmatpush.msra.mxu2 %v94_v3  ;;  %330 = vmatpush.msra.mxu0 %v94_v3  ;;  %v1167_v15 = vld [vmem:[%s2048_s0 + $0x120] sm:$0xff]  ;;  %v85_v16 = vld [vmem:[%s2047_s1 + $0x8] sm:$0xff]  ;;  %v49_v20 = vld [vmem:[%s2048_s0 + $0x130] sm:$0xff] }
   0x7   :  { %566 = vmatpush.msra.mxu1 %v95_v5  ;;  %1098 = vmatpush.msra.mxu3 %v95_v5  ;;  %v11_v17 = vld [vmem:[%s2048_s0] sm:$0xff]  ;;  %v48_v18 = vld [vmem:[%s2048_s0 + $0x128] sm:$0xff]  ;;  %v13_v21 = vld [vmem:[%s2048_s0 + $0x10] sm:$0xff] }
   0x8   :  { %1091 = vmatpush.msra.mxu2 %v92_v6  ;;  %331 = vmatpush.msra.mxu0 %v92_v6  ;;  %v12_v19 = vld [vmem:[%s2048_s0 + $0x8] sm:$0xff]  ;;  %v50_v22 = vld [vmem:[%s2048_s0 + $0x138] sm:$0xff]  ;;  %v51_v24 = vld [vmem:[%s2048_s0 + $0x140] sm:$0xff] }
   0x9   :  { %567 = vmatpush.msra.mxu1 %v93_v7  ;;  %1099 = vmatpush.msra.mxu3 %v93_v7  ;;  %v14_v23 = vld [vmem:[%s2048_s0 + $0x18] sm:$0xff]  ;;  %v15_v25 = vld [vmem:[%s2048_s0 + $0x20] sm:$0xff]  ;;  %v52_v26 = vld [vmem:[%s2048_s0 + $0x148] sm:$0xff] }
   0xa   :  { %1092 = vmatpush.msra.mxu2 %v90_v8  ;;  %332 = vmatpush.msra.mxu0 %v90_v8  ;;  %v16_v27 = vld [vmem:[%s2048_s0 + $0x28] sm:$0xff]  ;;  %v53_v28 = vld [vmem:[%s2048_s0 + $0x150] sm:$0xff]  ;;  %v54_v30 = vld [vmem:[%s2048_s0 + $0x158] sm:$0xff] }
   0xb   :  { %568 = vmatpush.msra.mxu1 %v91_v9  ;;  %1100 = vmatpush.msra.mxu3 %v91_v9  ;;  %v17_v29 = vld [vmem:[%s2048_s0 + $0x30] sm:$0xff]  ;;  %v18_v31 = vld [vmem:[%s2048_s0 + $0x38] sm:$0xff]  ;;  %v55_v32 = vld [vmem:[%s2048_s0 + $0x160] sm:$0xff] }
   0xc   :  { %1093 = vmatpush.msra.mxu2 %v88_v10  ;;  %333 = vmatpush.msra.mxu0 %v88_v10  ;;  %v19_v33 = vld [vmem:[%s2048_s0 + $0x40] sm:$0xff]  ;;  %v56_v34 = vld [vmem:[%s2048_s0 + $0x168] sm:$0xff]  ;;  %v57_v36 = vld [vmem:[%s2048_s0 + $0x170] sm:$0xff] }
   0xd   :  { %569 = vmatpush.msra.mxu1 %v89_v11  ;;  %1101 = vmatpush.msra.mxu3 %v89_v11  ;;  %v20_v35 = vld [vmem:[%s2048_s0 + $0x48] sm:$0xff]  ;;  %v21_v37 = vld [vmem:[%s2048_s0 + $0x50] sm:$0xff]  ;;  %v58_v38 = vld [vmem:[%s2048_s0 + $0x178] sm:$0xff] }
   0xe   :  { %1094 = vmatpush.msra.mxu2 %v86_v12  ;;  %334 = vmatpush.msra.mxu0 %v86_v12  ;;  %v22_v39 = vld [vmem:[%s2048_s0 + $0x58] sm:$0xff]  ;;  %v59_v40 = vld [vmem:[%s2048_s0 + $0x180] sm:$0xff]  ;;  %v60_v42 = vld [vmem:[%s2048_s0 + $0x188] sm:$0xff] }
   0xf   :  { %570 = vmatpush.msra.mxu1 %v87_v13  ;;  %1102 = vmatpush.msra.mxu3 %v87_v13  ;;  %v23_v41 = vld [vmem:[%s2048_s0 + $0x60] sm:$0xff]  ;;  %v24_v43 = vld [vmem:[%s2048_s0 + $0x68] sm:$0xff]  ;;  %v61_v44 = vld [vmem:[%s2048_s0 + $0x190] sm:$0xff] }
  0x10   :  { %1095 = vmatpush.msra.mxu2 %v84_v14  ;;  %335 = vmatpush.msra.mxu0 %v84_v14  ;;  %v25_v45 = vld [vmem:[%s2048_s0 + $0x70] sm:$0xff]  ;;  %v62_v46 = vld [vmem:[%s2048_s0 + $0x198] sm:$0xff]  ;;  %v63_v48 = vld [vmem:[%s2048_s0 + $0x1a0] sm:$0xff] }
  0x11   :  { %978 = vmatmul.msk.f32.vlgmr.msra.gmra.mxu2 %vm100_vm0, %v1167_v15  ;;  %571 = vmatpush.msra.mxu1 %v85_v16  ;;  %v26_v47 = vld [vmem:[%s2048_s0 + $0x78] sm:$0xff]  ;;  %v27_v50 = vld [vmem:[%s2048_s0 + $0x80] sm:$0xff]  ;;  %v64_v51 = vld [vmem:[%s2048_s0 + $0x1a8] sm:$0xff] }
  0x12   :  { %1015 = vmatmul.msk.f32.vlgmr.msra.gmra.mxu1 %vm100_vm0, %v11_v17  ;;  %1103 = vmatpush.msra.mxu3 %v85_v16  ;;  %v28_v56 = vld [vmem:[%s2048_s0 + $0x88] sm:$0xff]  ;;  %v65_v57 = vld [vmem:[%s2048_s0 + $0x1b0] sm:$0xff]  ;;  %v66_v63 = vld [vmem:[%s2048_s0 + $0x1b8] sm:$0xff] }
  0x13   :  { %1052 = vmatmul.msk.f32.vlgmr.msra.gmra.mxu3 %vm100_vm0, %v48_v18  ;;  %942 = vmatmul.msk.f32.vlgmr.msra.gmra.mxu0 %vm100_vm0, %v11_v17  ;;  %v29_v62 = vld [vmem:[%s2048_s0 + $0x90] sm:$0xff]  ;;  %v30_v4 = vld [vmem:[%s2048_s0 + $0x98] sm:$0xff]  ;;  %v67_v5 = vld [vmem:[%s2048_s0 + $0x1c0] sm:$0xff] }
  0x14   :  { %v31_v10 = vld [vmem:[%s2048_s0 + $0xa0] sm:$0xff]  ;;  %v68_v11 = vld [vmem:[%s2048_s0 + $0x1c8] sm:$0xff] }
  0x15   :  { %v32_v17 = vld [vmem:[%s2048_s0 + $0xa8] sm:$0xff] }
  0x19   :  { %979 = vmatmul.msk.f32.gmra.mxu2 %vm100_vm0, %v48_v18  ;;  %v69_v18 = vld [vmem:[%s2048_s0 + $0x1d0] sm:$0xff] }
  0x1a   :  { %1016 = vmatmul.msk.f32.gmra.mxu1 %vm100_vm0, %v12_v19 }
  0x1b   :  { %1053 = vmatmul.msk.f32.gmra.mxu3 %vm100_vm0, %v49_v20  ;;  %943 = vmatmul.msk.f32.gmra.mxu0 %vm100_vm0, %v12_v19 }
  0x21   :  { %980 = vmatmul.msk.f32.gmra.mxu2 %vm100_vm0, %v49_v20 }
  0x22   :  { %1017 = vmatmul.msk.f32.gmra.mxu1 %vm100_vm0, %v13_v21 }
  0x23   :  { %1054 = vmatmul.msk.f32.gmra.mxu3 %vm100_vm0, %v50_v22  ;;  %944 = vmatmul.msk.f32.gmra.mxu0 %vm100_vm0, %v13_v21 }
  0x29   :  { %981 = vmatmul.msk.f32.gmra.mxu2 %vm100_vm0, %v50_v22 }
  0x2a   :  { %1018 = vmatmul.msk.f32.gmra.mxu1 %vm100_vm0, %v14_v23 }
  0x2b   :  { %1055 = vmatmul.msk.f32.gmra.mxu3 %vm100_vm0, %v51_v24  ;;  %945 = vmatmul.msk.f32.gmra.mxu0 %vm100_vm0, %v14_v23  ;;  %v33_v23 = vld [vmem:[%s2048_s0 + $0xb0] sm:$0xff] }
  0x31   :  { %982 = vmatmul.msk.f32.gmra.mxu2 %vm100_vm0, %v51_v24  ;;  %v70_v24 = vld [vmem:[%s2048_s0 + $0x1d8] sm:$0xff] }
  0x32   :  { %1019 = vmatmul.msk.f32.gmra.mxu1 %vm100_vm0, %v15_v25 }
  0x33   :  { %1056 = vmatmul.msk.f32.gmra.mxu3 %vm100_vm0, %v52_v26  ;;  %946 = vmatmul.msk.f32.gmra.mxu0 %vm100_vm0, %v15_v25 }
  0x39   :  { %983 = vmatmul.msk.f32.gmra.mxu2 %vm100_vm0, %v52_v26 }
  0x3a   :  { %1020 = vmatmul.msk.f32.gmra.mxu1 %vm100_vm0, %v16_v27 }
  0x3b   :  { %1057 = vmatmul.msk.f32.gmra.mxu3 %vm100_vm0, %v53_v28  ;;  %947 = vmatmul.msk.f32.gmra.mxu0 %vm100_vm0, %v16_v27 }
  0x41   :  { %984 = vmatmul.msk.f32.gmra.mxu2 %vm100_vm0, %v53_v28 }
  0x42   :  { %1021 = vmatmul.msk.f32.gmra.mxu1 %vm100_vm0, %v17_v29 }
  0x43   :  { %1058 = vmatmul.msk.f32.gmra.mxu3 %vm100_vm0, %v54_v30  ;;  %948 = vmatmul.msk.f32.gmra.mxu0 %vm100_vm0, %v17_v29  ;;  %v34_v29 = vld [vmem:[%s2048_s0 + $0xb8] sm:$0xff] }
  0x49   :  { %985 = vmatmul.msk.f32.gmra.mxu2 %vm100_vm0, %v54_v30  ;;  %v71_v30 = vld [vmem:[%s2048_s0 + $0x1e0] sm:$0xff] }
  0x4a   :  { %1022 = vmatmul.msk.f32.gmra.mxu1 %vm100_vm0, %v18_v31 }
  0x4b   :  { %1059 = vmatmul.msk.f32.gmra.mxu3 %vm100_vm0, %v55_v32  ;;  %949 = vmatmul.msk.f32.gmra.mxu0 %vm100_vm0, %v18_v31 }
  0x51   :  { %986 = vmatmul.msk.f32.gmra.mxu2 %vm100_vm0, %v55_v32 }
  0x52   :  { %1023 = vmatmul.msk.f32.gmra.mxu1 %vm100_vm0, %v19_v33 }
  0x53   :  { %1060 = vmatmul.msk.f32.gmra.mxu3 %vm100_vm0, %v56_v34  ;;  %950 = vmatmul.msk.f32.gmra.mxu0 %vm100_vm0, %v19_v33 }
  0x59   :  { %987 = vmatmul.msk.f32.gmra.mxu2 %vm100_vm0, %v56_v34 }
  0x5a   :  { %1024 = vmatmul.msk.f32.gmra.mxu1 %vm100_vm0, %v20_v35 }
  0x5b   :  { %1061 = vmatmul.msk.f32.gmra.mxu3 %vm100_vm0, %v57_v36  ;;  %951 = vmatmul.msk.f32.gmra.mxu0 %vm100_vm0, %v20_v35  ;;  %v35_v35 = vld [vmem:[%s2048_s0 + $0xc0] sm:$0xff] }
  0x61   :  { %988 = vmatmul.msk.f32.gmra.mxu2 %vm100_vm0, %v57_v36  ;;  %v72_v36 = vld [vmem:[%s2048_s0 + $0x1e8] sm:$0xff] }
  0x62   :  { %1025 = vmatmul.msk.f32.gmra.mxu1 %vm100_vm0, %v21_v37 }
  0x63   :  { %1062 = vmatmul.msk.f32.gmra.mxu3 %vm100_vm0, %v58_v38  ;;  %952 = vmatmul.msk.f32.gmra.mxu0 %vm100_vm0, %v21_v37 }
  0x69   :  { %989 = vmatmul.msk.f32.gmra.mxu2 %vm100_vm0, %v58_v38 }
  0x6a   :  { %1026 = vmatmul.msk.f32.gmra.mxu1 %vm100_vm0, %v22_v39 }
  0x6b   :  { %1063 = vmatmul.msk.f32.gmra.mxu3 %vm100_vm0, %v59_v40  ;;  %953 = vmatmul.msk.f32.gmra.mxu0 %vm100_vm0, %v22_v39 }
  0x71   :  { %990 = vmatmul.msk.f32.gmra.mxu2 %vm100_vm0, %v59_v40 }
  0x72   :  { %1027 = vmatmul.msk.f32.gmra.mxu1 %vm100_vm0, %v23_v41 }
  0x73   :  { %1064 = vmatmul.msk.f32.gmra.mxu3 %vm100_vm0, %v60_v42  ;;  %954 = vmatmul.msk.f32.gmra.mxu0 %vm100_vm0, %v23_v41  ;;  %v36_v41 = vld [vmem:[%s2048_s0 + $0xc8] sm:$0xff] }
  0x79   :  { %991 = vmatmul.msk.f32.gmra.mxu2 %vm100_vm0, %v60_v42  ;;  %v73_v42 = vld [vmem:[%s2048_s0 + $0x1f0] sm:$0xff] }
  0x7a   :  { %1028 = vmatmul.msk.f32.gmra.mxu1 %vm100_vm0, %v24_v43 }
  0x7b   :  { %1065 = vmatmul.msk.f32.gmra.mxu3 %vm100_vm0, %v61_v44  ;;  %955 = vmatmul.msk.f32.gmra.mxu0 %vm100_vm0, %v24_v43 }
  0x81   :  { %992 = vmatmul.msk.f32.gmra.mxu2 %vm100_vm0, %v61_v44 }
  0x82   :  { %1029 = vmatmul.msk.f32.gmra.mxu1 %vm100_vm0, %v25_v45 }
  0x83   :  { %1066 = vmatmul.msk.f32.gmra.mxu3 %vm100_vm0, %v62_v46  ;;  %956 = vmatmul.msk.f32.gmra.mxu0 %vm100_vm0, %v25_v45 }
  0x89   :  { %993 = vmatmul.msk.f32.gmra.mxu2 %vm100_vm0, %v62_v46 }
  0x8a   :  { %1030 = vmatmul.msk.f32.gmra.mxu1 %vm100_vm0, %v26_v47 }
  0x8b   :  { %1067 = vmatmul.msk.f32.gmra.mxu3 %vm100_vm0, %v63_v48  ;;  %957 = vmatmul.msk.f32.gmra.mxu0 %vm100_vm0, %v26_v47  ;;  %v37_v47 = vld [vmem:[%s2048_s0 + $0xd0] sm:$0xff] }
  0x8f   :  { %v573_v49 = vpop.f32.mrf.mxu1 }
  0x90   :  { %793 = vst.msk [vmem:[%s2049_s2 + $0x8] sm:$0xff] %vm100_vm0, %v573_v49  ;;  %v337_v52 = vpop.f32.mrf.mxu0 }
  0x91   :  { %994 = vmatmul.msk.f32.gmra.mxu2 %vm100_vm0, %v63_v48  ;;  %792 = vst [vmem:[%s2049_s2] sm:$0xff] %v337_v52  ;;  %v74_v48 = vld [vmem:[%s2048_s0 + $0x1f8] sm:$0xff] }
  0x92   :  { %1031 = vmatmul.msk.f32.gmra.mxu1 %vm100_vm0, %v27_v50 }
  0x93   :  { %1068 = vmatmul.msk.f32.gmra.mxu3 %vm100_vm0, %v64_v51  ;;  %958 = vmatmul.msk.f32.gmra.mxu0 %vm100_vm0, %v27_v50 }
  0x94   :  { %v445_v53 = vpop.f32.mrf.mxu2 }
  0x95   :  { %864 = vst [vmem:[%s2049_s2 + $0x240] sm:$0xff] %v445_v53  ;;  %v38_v53 = vld [vmem:[%s2048_s0 + $0xd8] sm:$0xff] }
  0x96   :  { %v684_v54 = vpop.f32.mrf.mxu3 }
  0x97   :  { %v576_v55 = vpop.f32.mrf.mxu1  ;;  %867 = vst.msk [vmem:[%s2049_s2 + $0x258] sm:$0xff] %vm100_vm0, %v684_v54  ;;  %v75_v54 = vld [vmem:[%s2048_s0 + $0x200] sm:$0xff] }
  0x98   :  { %795 = vst.msk [vmem:[%s2049_s2 + $0x18] sm:$0xff] %vm100_vm0, %v576_v55  ;;  %v340_v58 = vpop.f32.mrf.mxu0 }
  0x99   :  { %995 = vmatmul.msk.f32.gmra.mxu2 %vm100_vm0, %v64_v51  ;;  %794 = vst [vmem:[%s2049_s2 + $0x10] sm:$0xff] %v340_v58 }
  0x9a   :  { %1032 = vmatmul.msk.f32.gmra.mxu1 %vm100_vm0, %v28_v56 }
  0x9b   :  { %1069 = vmatmul.msk.f32.gmra.mxu3 %vm100_vm0, %v65_v57  ;;  %959 = vmatmul.msk.f32.gmra.mxu0 %vm100_vm0, %v28_v56 }
  0x9c   :  { %v448_v59 = vpop.f32.mrf.mxu2 }
  0x9d   :  { %866 = vst [vmem:[%s2049_s2 + $0x250] sm:$0xff] %v448_v59  ;;  %v39_v59 = vld [vmem:[%s2048_s0 + $0xe0] sm:$0xff] }
  0x9e   :  { %v687_v60 = vpop.f32.mrf.mxu3 }
  0x9f   :  { %v579_v61 = vpop.f32.mrf.mxu1  ;;  %869 = vst.msk [vmem:[%s2049_s2 + $0x268] sm:$0xff] %vm100_vm0, %v687_v60  ;;  %v76_v60 = vld [vmem:[%s2048_s0 + $0x208] sm:$0xff] }
  0xa0   :  { %797 = vst.msk [vmem:[%s2049_s2 + $0x28] sm:$0xff] %vm100_vm0, %v579_v61  ;;  %v343_v0 = vpop.f32.mrf.mxu0 }
  0xa1   :  { %996 = vmatmul.msk.f32.gmra.mxu2 %vm100_vm0, %v65_v57  ;;  %796 = vst [vmem:[%s2049_s2 + $0x20] sm:$0xff] %v343_v0 }
  0xa2   :  { %1033 = vmatmul.msk.f32.gmra.mxu1 %vm100_vm0, %v29_v62 }
  0xa3   :  { %1070 = vmatmul.msk.f32.gmra.mxu3 %vm100_vm0, %v66_v63  ;;  %960 = vmatmul.msk.f32.gmra.mxu0 %vm100_vm0, %v29_v62 }
  0xa4   :  { %v451_v1 = vpop.f32.mrf.mxu2 }
  0xa5   :  { %868 = vst [vmem:[%s2049_s2 + $0x260] sm:$0xff] %v451_v1  ;;  %v40_v1 = vld [vmem:[%s2048_s0 + $0xe8] sm:$0xff] }
  0xa6   :  { %v690_v2 = vpop.f32.mrf.mxu3 }
  0xa7   :  { %v582_v3 = vpop.f32.mrf.mxu1  ;;  %871 = vst.msk [vmem:[%s2049_s2 + $0x278] sm:$0xff] %vm100_vm0, %v690_v2  ;;  %v77_v2 = vld [vmem:[%s2048_s0 + $0x210] sm:$0xff] }
  0xa8   :  { %799 = vst.msk [vmem:[%s2049_s2 + $0x38] sm:$0xff] %vm100_vm0, %v582_v3  ;;  %v346_v6 = vpop.f32.mrf.mxu0 }
  0xa9   :  { %997 = vmatmul.msk.f32.gmra.mxu2 %vm100_vm0, %v66_v63  ;;  %798 = vst [vmem:[%s2049_s2 + $0x30] sm:$0xff] %v346_v6 }
  0xaa   :  { %1034 = vmatmul.msk.f32.gmra.mxu1 %vm100_vm0, %v30_v4 }
  0xab   :  { %1071 = vmatmul.msk.f32.gmra.mxu3 %vm100_vm0, %v67_v5  ;;  %961 = vmatmul.msk.f32.gmra.mxu0 %vm100_vm0, %v30_v4 }
  0xac   :  { %v454_v7 = vpop.f32.mrf.mxu2 }
  0xad   :  { %870 = vst [vmem:[%s2049_s2 + $0x270] sm:$0xff] %v454_v7  ;;  %v41_v7 = vld [vmem:[%s2048_s0 + $0xf0] sm:$0xff] }
  0xae   :  { %v693_v8 = vpop.f32.mrf.mxu3 }
  0xaf   :  { %v585_v9 = vpop.f32.mrf.mxu1  ;;  %873 = vst.msk [vmem:[%s2049_s2 + $0x288] sm:$0xff] %vm100_vm0, %v693_v8  ;;  %v78_v8 = vld [vmem:[%s2048_s0 + $0x218] sm:$0xff] }
  0xb0   :  { %801 = vst.msk [vmem:[%s2049_s2 + $0x48] sm:$0xff] %vm100_vm0, %v585_v9  ;;  %v349_v12 = vpop.f32.mrf.mxu0 }
  0xb1   :  { %998 = vmatmul.msk.f32.gmra.mxu2 %vm100_vm0, %v67_v5  ;;  %800 = vst [vmem:[%s2049_s2 + $0x40] sm:$0xff] %v349_v12 }
  0xb2   :  { %1035 = vmatmul.msk.f32.gmra.mxu1 %vm100_vm0, %v31_v10 }
  0xb3   :  { %1072 = vmatmul.msk.f32.gmra.mxu3 %vm100_vm0, %v68_v11  ;;  %962 = vmatmul.msk.f32.gmra.mxu0 %vm100_vm0, %v31_v10 }
  0xb4   :  { %v457_v13 = vpop.f32.mrf.mxu2 }
  0xb5   :  { %872 = vst [vmem:[%s2049_s2 + $0x280] sm:$0xff] %v457_v13  ;;  %v42_v13 = vld [vmem:[%s2048_s0 + $0xf8] sm:$0xff] }
  0xb6   :  { %v696_v14 = vpop.f32.mrf.mxu3 }
  0xb7   :  { %v588_v16 = vpop.f32.mrf.mxu1  ;;  %875 = vst.msk [vmem:[%s2049_s2 + $0x298] sm:$0xff] %vm100_vm0, %v696_v14  ;;  %v79_v14 = vld [vmem:[%s2048_s0 + $0x220] sm:$0xff] }
  0xb8   :  { %803 = vst.msk [vmem:[%s2049_s2 + $0x58] sm:$0xff] %vm100_vm0, %v588_v16  ;;  %v352_v19 = vpop.f32.mrf.mxu0 }
  0xb9   :  { %999 = vmatmul.msk.f32.gmra.mxu2 %vm100_vm0, %v68_v11  ;;  %802 = vst [vmem:[%s2049_s2 + $0x50] sm:$0xff] %v352_v19 }
  0xba   :  { %1036 = vmatmul.msk.f32.gmra.mxu1 %vm100_vm0, %v32_v17 }
  0xbb   :  { %1073 = vmatmul.msk.f32.gmra.mxu3 %vm100_vm0, %v69_v18  ;;  %963 = vmatmul.msk.f32.gmra.mxu0 %vm100_vm0, %v32_v17 }
  0xbc   :  { %v460_v20 = vpop.f32.mrf.mxu2 }
  0xbd   :  { %874 = vst [vmem:[%s2049_s2 + $0x290] sm:$0xff] %v460_v20  ;;  %v43_v20 = vld [vmem:[%s2048_s0 + $0x100] sm:$0xff] }
  0xbe   :  { %v699_v21 = vpop.f32.mrf.mxu3 }
  0xbf   :  { %v591_v22 = vpop.f32.mrf.mxu1  ;;  %877 = vst.msk [vmem:[%s2049_s2 + $0x2a8] sm:$0xff] %vm100_vm0, %v699_v21  ;;  %v80_v21 = vld [vmem:[%s2048_s0 + $0x228] sm:$0xff] }
  0xc0   :  { %805 = vst.msk [vmem:[%s2049_s2 + $0x68] sm:$0xff] %vm100_vm0, %v591_v22  ;;  %v355_v25 = vpop.f32.mrf.mxu0 }
  0xc1   :  { %1000 = vmatmul.msk.f32.gmra.mxu2 %vm100_vm0, %v69_v18  ;;  %804 = vst [vmem:[%s2049_s2 + $0x60] sm:$0xff] %v355_v25 }
  0xc2   :  { %1037 = vmatmul.msk.f32.gmra.mxu1 %vm100_vm0, %v33_v23 }
  0xc3   :  { %1074 = vmatmul.msk.f32.gmra.mxu3 %vm100_vm0, %v70_v24  ;;  %964 = vmatmul.msk.f32.gmra.mxu0 %vm100_vm0, %v33_v23 }
  0xc4   :  { %v463_v26 = vpop.f32.mrf.mxu2 }
  0xc5   :  { %876 = vst [vmem:[%s2049_s2 + $0x2a0] sm:$0xff] %v463_v26  ;;  %v44_v26 = vld [vmem:[%s2048_s0 + $0x108] sm:$0xff] }
  0xc6   :  { %v702_v27 = vpop.f32.mrf.mxu3 }
  0xc7   :  { %v594_v28 = vpop.f32.mrf.mxu1  ;;  %879 = vst.msk [vmem:[%s2049_s2 + $0x2b8] sm:$0xff] %vm100_vm0, %v702_v27  ;;  %v81_v27 = vld [vmem:[%s2048_s0 + $0x230] sm:$0xff] }
  0xc8   :  { %807 = vst.msk [vmem:[%s2049_s2 + $0x78] sm:$0xff] %vm100_vm0, %v594_v28  ;;  %v358_v31 = vpop.f32.mrf.mxu0 }
  0xc9   :  { %1001 = vmatmul.msk.f32.gmra.mxu2 %vm100_vm0, %v70_v24  ;;  %806 = vst [vmem:[%s2049_s2 + $0x70] sm:$0xff] %v358_v31 }
  0xca   :  { %1038 = vmatmul.msk.f32.gmra.mxu1 %vm100_vm0, %v34_v29 }
  0xcb   :  { %1075 = vmatmul.msk.f32.gmra.mxu3 %vm100_vm0, %v71_v30  ;;  %965 = vmatmul.msk.f32.gmra.mxu0 %vm100_vm0, %v34_v29 }
  0xcc   :  { %v466_v32 = vpop.f32.mrf.mxu2 }
  0xcd   :  { %878 = vst [vmem:[%s2049_s2 + $0x2b0] sm:$0xff] %v466_v32  ;;  %v45_v32 = vld [vmem:[%s2048_s0 + $0x110] sm:$0xff] }
  0xce   :  { %v705_v33 = vpop.f32.mrf.mxu3 }
  0xcf   :  { %v597_v34 = vpop.f32.mrf.mxu1  ;;  %881 = vst.msk [vmem:[%s2049_s2 + $0x2c8] sm:$0xff] %vm100_vm0, %v705_v33  ;;  %v82_v33 = vld [vmem:[%s2048_s0 + $0x238] sm:$0xff] }
  0xd0   :  { %809 = vst.msk [vmem:[%s2049_s2 + $0x88] sm:$0xff] %vm100_vm0, %v597_v34  ;;  %v361_v37 = vpop.f32.mrf.mxu0 }
  0xd1   :  { %1002 = vmatmul.msk.f32.gmra.mxu2 %vm100_vm0, %v71_v30  ;;  %808 = vst [vmem:[%s2049_s2 + $0x80] sm:$0xff] %v361_v37 }
  0xd2   :  { %1039 = vmatmul.msk.f32.gmra.mxu1 %vm100_vm0, %v35_v35 }
  0xd3   :  { %1076 = vmatmul.msk.f32.gmra.mxu3 %vm100_vm0, %v72_v36  ;;  %966 = vmatmul.msk.f32.gmra.mxu0 %vm100_vm0, %v35_v35 }
  0xd4   :  { %v469_v38 = vpop.f32.mrf.mxu2 }
  0xd5   :  { %880 = vst [vmem:[%s2049_s2 + $0x2c0] sm:$0xff] %v469_v38  ;;  %v46_v38 = vld [vmem:[%s2048_s0 + $0x118] sm:$0xff] }
  0xd6   :  { %v708_v39 = vpop.f32.mrf.mxu3 }
  0xd7   :  { %v600_v40 = vpop.f32.mrf.mxu1  ;;  %883 = vst.msk [vmem:[%s2049_s2 + $0x2d8] sm:$0xff] %vm100_vm0, %v708_v39  ;;  %v83_v39 = vld [vmem:[%s2048_s0 + $0x240] sm:$0xff] }
  0xd8   :  { %811 = vst.msk [vmem:[%s2049_s2 + $0x98] sm:$0xff] %vm100_vm0, %v600_v40  ;;  %v364_v43 = vpop.f32.mrf.mxu0 }
  0xd9   :  { %1003 = vmatmul.msk.f32.gmra.mxu2 %vm100_vm0, %v72_v36  ;;  %810 = vst [vmem:[%s2049_s2 + $0x90] sm:$0xff] %v364_v43 }
  0xda   :  { %1040 = vmatmul.msk.f32.gmra.mxu1 %vm100_vm0, %v36_v41 }
  0xdb   :  { %1077 = vmatmul.msk.f32.gmra.mxu3 %vm100_vm0, %v73_v42  ;;  %967 = vmatmul.msk.f32.gmra.mxu0 %vm100_vm0, %v36_v41 }
  0xdc   :  { %v472_v44 = vpop.f32.mrf.mxu2 }
  0xdd   :  { %882 = vst [vmem:[%s2049_s2 + $0x2d0] sm:$0xff] %v472_v44 }
  0xde   :  { %v711_v45 = vpop.f32.mrf.mxu3 }
  0xdf   :  { %v603_v46 = vpop.f32.mrf.mxu1  ;;  %885 = vst.msk [vmem:[%s2049_s2 + $0x2e8] sm:$0xff] %vm100_vm0, %v711_v45 }
  0xe0   :  { %813 = vst.msk [vmem:[%s2049_s2 + $0xa8] sm:$0xff] %vm100_vm0, %v603_v46  ;;  %v367_v49 = vpop.f32.mrf.mxu0 }
  0xe1   :  { %1004 = vmatmul.msk.f32.gmra.mxu2 %vm100_vm0, %v73_v42  ;;  %812 = vst [vmem:[%s2049_s2 + $0xa0] sm:$0xff] %v367_v49 }
  0xe2   :  { %1041 = vmatmul.msk.f32.gmra.mxu1 %vm100_vm0, %v37_v47 }
  0xe3   :  { %1078 = vmatmul.msk.f32.gmra.mxu3 %vm100_vm0, %v74_v48  ;;  %968 = vmatmul.msk.f32.gmra.mxu0 %vm100_vm0, %v37_v47 }
  0xe4   :  { %v475_v50 = vpop.f32.mrf.mxu2 }
  0xe5   :  { %884 = vst [vmem:[%s2049_s2 + $0x2e0] sm:$0xff] %v475_v50 }
  0xe6   :  { %v714_v51 = vpop.f32.mrf.mxu3 }
  0xe7   :  { %v606_v52 = vpop.f32.mrf.mxu1  ;;  %887 = vst.msk [vmem:[%s2049_s2 + $0x2f8] sm:$0xff] %vm100_vm0, %v714_v51 }
  0xe8   :  { %815 = vst.msk [vmem:[%s2049_s2 + $0xb8] sm:$0xff] %vm100_vm0, %v606_v52  ;;  %v370_v55 = vpop.f32.mrf.mxu0 }
  0xe9   :  { %1005 = vmatmul.msk.f32.gmra.mxu2 %vm100_vm0, %v74_v48  ;;  %814 = vst [vmem:[%s2049_s2 + $0xb0] sm:$0xff] %v370_v55 }
  0xea   :  { %1042 = vmatmul.msk.f32.gmra.mxu1 %vm100_vm0, %v38_v53 }
  0xeb   :  { %1079 = vmatmul.msk.f32.gmra.mxu3 %vm100_vm0, %v75_v54  ;;  %969 = vmatmul.msk.f32.gmra.mxu0 %vm100_vm0, %v38_v53 }
  0xec   :  { %v478_v56 = vpop.f32.mrf.mxu2 }
  0xed   :  { %886 = vst [vmem:[%s2049_s2 + $0x2f0] sm:$0xff] %v478_v56 }
  0xee   :  { %v717_v57 = vpop.f32.mrf.mxu3 }
  0xef   :  { %v609_v58 = vpop.f32.mrf.mxu1  ;;  %889 = vst.msk [vmem:[%s2049_s2 + $0x308] sm:$0xff] %vm100_vm0, %v717_v57 }
  0xf0   :  { %817 = vst.msk [vmem:[%s2049_s2 + $0xc8] sm:$0xff] %vm100_vm0, %v609_v58  ;;  %v373_v61 = vpop.f32.mrf.mxu0 }
  0xf1   :  { %1006 = vmatmul.msk.f32.gmra.mxu2 %vm100_vm0, %v75_v54  ;;  %816 = vst [vmem:[%s2049_s2 + $0xc0] sm:$0xff] %v373_v61 }
  0xf2   :  { %1043 = vmatmul.msk.f32.gmra.mxu1 %vm100_vm0, %v39_v59 }
  0xf3   :  { %1080 = vmatmul.msk.f32.gmra.mxu3 %vm100_vm0, %v76_v60  ;;  %970 = vmatmul.msk.f32.gmra.mxu0 %vm100_vm0, %v39_v59 }
  0xf4   :  { %v481_v62 = vpop.f32.mrf.mxu2 }
  0xf5   :  { %888 = vst [vmem:[%s2049_s2 + $0x300] sm:$0xff] %v481_v62 }
  0xf6   :  { %v720_v63 = vpop.f32.mrf.mxu3 }
  0xf7   :  { %v612_v0 = vpop.f32.mrf.mxu1  ;;  %891 = vst.msk [vmem:[%s2049_s2 + $0x318] sm:$0xff] %vm100_vm0, %v720_v63 }
  0xf8   :  { %819 = vst.msk [vmem:[%s2049_s2 + $0xd8] sm:$0xff] %vm100_vm0, %v612_v0  ;;  %v376_v3 = vpop.f32.mrf.mxu0 }
  0xf9   :  { %1007 = vmatmul.msk.f32.gmra.mxu2 %vm100_vm0, %v76_v60  ;;  %818 = vst [vmem:[%s2049_s2 + $0xd0] sm:$0xff] %v376_v3 }
  0xfa   :  { %1044 = vmatmul.msk.f32.gmra.mxu1 %vm100_vm0, %v40_v1 }
  0xfb   :  { %1081 = vmatmul.msk.f32.gmra.mxu3 %vm100_vm0, %v77_v2  ;;  %971 = vmatmul.msk.f32.gmra.mxu0 %vm100_vm0, %v40_v1 }
  0xfc   :  { %v484_v4 = vpop.f32.mrf.mxu2 }
  0xfd   :  { %890 = vst [vmem:[%s2049_s2 + $0x310] sm:$0xff] %v484_v4 }
  0xfe   :  { %v723_v5 = vpop.f32.mrf.mxu3 }
  0xff   :  { %v615_v6 = vpop.f32.mrf.mxu1  ;;  %893 = vst.msk [vmem:[%s2049_s2 + $0x328] sm:$0xff] %vm100_vm0, %v723_v5 }
 0x100   :  { %821 = vst.msk [vmem:[%s2049_s2 + $0xe8] sm:$0xff] %vm100_vm0, %v615_v6  ;;  %v379_v9 = vpop.f32.mrf.mxu0 }
 0x101   :  { %1008 = vmatmul.msk.f32.gmra.mxu2 %vm100_vm0, %v77_v2  ;;  %820 = vst [vmem:[%s2049_s2 + $0xe0] sm:$0xff] %v379_v9 }
 0x102   :  { %1045 = vmatmul.msk.f32.gmra.mxu1 %vm100_vm0, %v41_v7 }
 0x103   :  { %1082 = vmatmul.msk.f32.gmra.mxu3 %vm100_vm0, %v78_v8  ;;  %972 = vmatmul.msk.f32.gmra.mxu0 %vm100_vm0, %v41_v7 }
 0x104   :  { %v487_v10 = vpop.f32.mrf.mxu2 }
 0x105   :  { %892 = vst [vmem:[%s2049_s2 + $0x320] sm:$0xff] %v487_v10 }
 0x106   :  { %v726_v11 = vpop.f32.mrf.mxu3 }
 0x107   :  { %v618_v12 = vpop.f32.mrf.mxu1  ;;  %895 = vst.msk [vmem:[%s2049_s2 + $0x338] sm:$0xff] %vm100_vm0, %v726_v11 }
 0x108   :  { %823 = vst.msk [vmem:[%s2049_s2 + $0xf8] sm:$0xff] %vm100_vm0, %v618_v12  ;;  %v382_v16 = vpop.f32.mrf.mxu0 }
 0x109   :  { %1009 = vmatmul.msk.f32.gmra.mxu2 %vm100_vm0, %v78_v8  ;;  %822 = vst [vmem:[%s2049_s2 + $0xf0] sm:$0xff] %v382_v16 }
 0x10a   :  { %1046 = vmatmul.msk.f32.gmra.mxu1 %vm100_vm0, %v42_v13 }
 0x10b   :  { %1083 = vmatmul.msk.f32.gmra.mxu3 %vm100_vm0, %v79_v14  ;;  %973 = vmatmul.msk.f32.gmra.mxu0 %vm100_vm0, %v42_v13 }
 0x10c   :  { %v490_v17 = vpop.f32.mrf.mxu2 }
 0x10d   :  { %894 = vst [vmem:[%s2049_s2 + $0x330] sm:$0xff] %v490_v17 }
 0x10e   :  { %v729_v18 = vpop.f32.mrf.mxu3 }
 0x10f   :  { %v621_v19 = vpop.f32.mrf.mxu1  ;;  %897 = vst.msk [vmem:[%s2049_s2 + $0x348] sm:$0xff] %vm100_vm0, %v729_v18 }
 0x110   :  { %825 = vst.msk [vmem:[%s2049_s2 + $0x108] sm:$0xff] %vm100_vm0, %v621_v19  ;;  %v385_v22 = vpop.f32.mrf.mxu0 }
 0x111   :  { %1010 = vmatmul.msk.f32.gmra.mxu2 %vm100_vm0, %v79_v14  ;;  %824 = vst [vmem:[%s2049_s2 + $0x100] sm:$0xff] %v385_v22 }
 0x112   :  { %1047 = vmatmul.msk.f32.gmra.mxu1 %vm100_vm0, %v43_v20 }
 0x113   :  { %1084 = vmatmul.msk.f32.gmra.mxu3 %vm100_vm0, %v80_v21  ;;  %974 = vmatmul.msk.f32.gmra.mxu0 %vm100_vm0, %v43_v20 }
 0x114   :  { %v493_v23 = vpop.f32.mrf.mxu2 }
 0x115   :  { %896 = vst [vmem:[%s2049_s2 + $0x340] sm:$0xff] %v493_v23 }
 0x116   :  { %v732_v24 = vpop.f32.mrf.mxu3 }
 0x117   :  { %v624_v25 = vpop.f32.mrf.mxu1  ;;  %899 = vst.msk [vmem:[%s2049_s2 + $0x358] sm:$0xff] %vm100_vm0, %v732_v24 }
 0x118   :  { %827 = vst.msk [vmem:[%s2049_s2 + $0x118] sm:$0xff] %vm100_vm0, %v624_v25  ;;  %v388_v28 = vpop.f32.mrf.mxu0 }
 0x119   :  { %1011 = vmatmul.msk.f32.gmra.mxu2 %vm100_vm0, %v80_v21  ;;  %826 = vst [vmem:[%s2049_s2 + $0x110] sm:$0xff] %v388_v28 }
 0x11a   :  { %1048 = vmatmul.msk.f32.gmra.mxu1 %vm100_vm0, %v44_v26 }
 0x11b   :  { %1085 = vmatmul.msk.f32.gmra.mxu3 %vm100_vm0, %v81_v27  ;;  %975 = vmatmul.msk.f32.gmra.mxu0 %vm100_vm0, %v44_v26 }
 0x11c   :  { %v496_v29 = vpop.f32.mrf.mxu2 }
 0x11d   :  { %898 = vst [vmem:[%s2049_s2 + $0x350] sm:$0xff] %v496_v29 }
 0x11e   :  { %v735_v30 = vpop.f32.mrf.mxu3 }
 0x11f   :  { %v627_v31 = vpop.f32.mrf.mxu1  ;;  %901 = vst.msk [vmem:[%s2049_s2 + $0x368] sm:$0xff] %vm100_vm0, %v735_v30 }
 0x120   :  { %829 = vst.msk [vmem:[%s2049_s2 + $0x128] sm:$0xff] %vm100_vm0, %v627_v31  ;;  %v391_v34 = vpop.f32.mrf.mxu0 }
 0x121   :  { %1012 = vmatmul.msk.f32.gmra.mxu2 %vm100_vm0, %v81_v27  ;;  %828 = vst [vmem:[%s2049_s2 + $0x120] sm:$0xff] %v391_v34 }
 0x122   :  { %1049 = vmatmul.msk.f32.gmra.mxu1 %vm100_vm0, %v45_v32 }
 0x123   :  { %1086 = vmatmul.msk.f32.gmra.mxu3 %vm100_vm0, %v82_v33  ;;  %976 = vmatmul.msk.f32.gmra.mxu0 %vm100_vm0, %v45_v32 }
 0x124   :  { %v499_v35 = vpop.f32.mrf.mxu2 }
 0x125   :  { %900 = vst [vmem:[%s2049_s2 + $0x360] sm:$0xff] %v499_v35 }
 0x126   :  { %v738_v36 = vpop.f32.mrf.mxu3 }
 0x127   :  { %v630_v37 = vpop.f32.mrf.mxu1  ;;  %903 = vst.msk [vmem:[%s2049_s2 + $0x378] sm:$0xff] %vm100_vm0, %v738_v36 }
 0x128   :  { %831 = vst.msk [vmem:[%s2049_s2 + $0x138] sm:$0xff] %vm100_vm0, %v630_v37  ;;  %v394_v40 = vpop.f32.mrf.mxu0 }
 0x129   :  { %1013 = vmatmul.msk.f32.gmra.mxu2 %vm100_vm0, %v82_v33  ;;  %830 = vst [vmem:[%s2049_s2 + $0x130] sm:$0xff] %v394_v40 }
 0x12a   :  { %1050 = vmatmul.msk.f32.gmra.mxu1 %vm100_vm0, %v46_v38 }
 0x12b   :  { %1087 = vmatmul.msk.f32.gmra.mxu3 %vm100_vm0, %v83_v39  ;;  %977 = vmatmul.msk.f32.gmra.mxu0 %vm100_vm0, %v46_v38 }
 0x12c   :  { %v502_v41 = vpop.f32.mrf.mxu2 }
 0x12d   :  { %902 = vst [vmem:[%s2049_s2 + $0x370] sm:$0xff] %v502_v41 }
 0x12e   :  { %v741_v42 = vpop.f32.mrf.mxu3 }
 0x12f   :  { %v633_v43 = vpop.f32.mrf.mxu1  ;;  %905 = vst.msk [vmem:[%s2049_s2 + $0x388] sm:$0xff] %vm100_vm0, %v741_v42 }
 0x130   :  { %833 = vst.msk [vmem:[%s2049_s2 + $0x148] sm:$0xff] %vm100_vm0, %v633_v43  ;;  %v397_v44 = vpop.f32.mrf.mxu0 }
 0x131   :  { %1014 = vmatmul.msk.f32.gmra.mxu2 %vm100_vm0, %v83_v39  ;;  %832 = vst [vmem:[%s2049_s2 + $0x140] sm:$0xff] %v397_v44 }
 0x132   :  { %1051 = vmatmul.msk.f32.gmra.mxu1 %vm100_vm0, %v1167_v15 }
 0x134   :  { %v505_v45 = vpop.f32.mrf.mxu2 }
 0x135   :  { %904 = vst [vmem:[%s2049_s2 + $0x380] sm:$0xff] %v505_v45 }
 0x136   :  { %v744_v46 = vpop.f32.mrf.mxu3 }
 0x137   :  { %v636_v47 = vpop.f32.mrf.mxu1  ;;  %907 = vst.msk [vmem:[%s2049_s2 + $0x398] sm:$0xff] %vm100_vm0, %v744_v46 }
 0x138   :  { %835 = vst.msk [vmem:[%s2049_s2 + $0x158] sm:$0xff] %vm100_vm0, %v636_v47  ;;  %v400_v48 = vpop.f32.mrf.mxu0 }
 0x139   :  { %834 = vst [vmem:[%s2049_s2 + $0x150] sm:$0xff] %v400_v48 }
 0x13c   :  { %v508_v15 = vpop.f32.mrf.mxu2 }
 0x13d   :  { %906 = vst [vmem:[%s2049_s2 + $0x390] sm:$0xff] %v508_v15 }
 0x13e   :  { %v747_v49 = vpop.f32.mrf.mxu3 }
 0x13f   :  { %v639_v50 = vpop.f32.mrf.mxu1  ;;  %909 = vst.msk [vmem:[%s2049_s2 + $0x3a8] sm:$0xff] %vm100_vm0, %v747_v49 }
 0x140   :  { %837 = vst.msk [vmem:[%s2049_s2 + $0x168] sm:$0xff] %vm100_vm0, %v639_v50  ;;  %v403_v51 = vpop.f32.mrf.mxu0 }
 0x141   :  { %836 = vst [vmem:[%s2049_s2 + $0x160] sm:$0xff] %v403_v51 }
 0x144   :  { %v511_v52 = vpop.f32.mrf.mxu2 }
 0x145   :  { %908 = vst [vmem:[%s2049_s2 + $0x3a0] sm:$0xff] %v511_v52 }
 0x146   :  { %v750_v53 = vpop.f32.mrf.mxu3 }
 0x147   :  { %v642_v54 = vpop.f32.mrf.mxu1  ;;  %911 = vst.msk [vmem:[%s2049_s2 + $0x3b8] sm:$0xff] %vm100_vm0, %v750_v53 }
 0x148   :  { %839 = vst.msk [vmem:[%s2049_s2 + $0x178] sm:$0xff] %vm100_vm0, %v642_v54  ;;  %v406_v55 = vpop.f32.mrf.mxu0 }
 0x149   :  { %838 = vst [vmem:[%s2049_s2 + $0x170] sm:$0xff] %v406_v55 }
 0x14c   :  { %v514_v56 = vpop.f32.mrf.mxu2 }
 0x14d   :  { %910 = vst [vmem:[%s2049_s2 + $0x3b0] sm:$0xff] %v514_v56 }
 0x14e   :  { %v753_v57 = vpop.f32.mrf.mxu3 }
 0x14f   :  { %v645_v58 = vpop.f32.mrf.mxu1  ;;  %913 = vst.msk [vmem:[%s2049_s2 + $0x3c8] sm:$0xff] %vm100_vm0, %v753_v57 }
 0x150   :  { %841 = vst.msk [vmem:[%s2049_s2 + $0x188] sm:$0xff] %vm100_vm0, %v645_v58  ;;  %v409_v59 = vpop.f32.mrf.mxu0 }
 0x151   :  { %840 = vst [vmem:[%s2049_s2 + $0x180] sm:$0xff] %v409_v59 }
 0x154   :  { %v517_v60 = vpop.f32.mrf.mxu2 }
 0x155   :  { %912 = vst [vmem:[%s2049_s2 + $0x3c0] sm:$0xff] %v517_v60 }
 0x156   :  { %v756_v61 = vpop.f32.mrf.mxu3 }
 0x157   :  { %v648_v62 = vpop.f32.mrf.mxu1  ;;  %915 = vst.msk [vmem:[%s2049_s2 + $0x3d8] sm:$0xff] %vm100_vm0, %v756_v61 }
 0x158   :  { %843 = vst.msk [vmem:[%s2049_s2 + $0x198] sm:$0xff] %vm100_vm0, %v648_v62  ;;  %v412_v63 = vpop.f32.mrf.mxu0 }
 0x159   :  { %842 = vst [vmem:[%s2049_s2 + $0x190] sm:$0xff] %v412_v63 }
 0x15c   :  { %v520_v0 = vpop.f32.mrf.mxu2 }
 0x15d   :  { %914 = vst [vmem:[%s2049_s2 + $0x3d0] sm:$0xff] %v520_v0 }
 0x15e   :  { %v759_v1 = vpop.f32.mrf.mxu3 }
 0x15f   :  { %v651_v2 = vpop.f32.mrf.mxu1  ;;  %917 = vst.msk [vmem:[%s2049_s2 + $0x3e8] sm:$0xff] %vm100_vm0, %v759_v1 }
 0x160   :  { %845 = vst.msk [vmem:[%s2049_s2 + $0x1a8] sm:$0xff] %vm100_vm0, %v651_v2  ;;  %v415_v3 = vpop.f32.mrf.mxu0 }
 0x161   :  { %844 = vst [vmem:[%s2049_s2 + $0x1a0] sm:$0xff] %v415_v3 }
 0x164   :  { %v523_v4 = vpop.f32.mrf.mxu2 }
 0x165   :  { %916 = vst [vmem:[%s2049_s2 + $0x3e0] sm:$0xff] %v523_v4 }
 0x166   :  { %v762_v5 = vpop.f32.mrf.mxu3 }
 0x167   :  { %v654_v6 = vpop.f32.mrf.mxu1  ;;  %919 = vst.msk [vmem:[%s2049_s2 + $0x3f8] sm:$0xff] %vm100_vm0, %v762_v5 }
 0x168   :  { %847 = vst.msk [vmem:[%s2049_s2 + $0x1b8] sm:$0xff] %vm100_vm0, %v654_v6  ;;  %v418_v7 = vpop.f32.mrf.mxu0 }
 0x169   :  { %846 = vst [vmem:[%s2049_s2 + $0x1b0] sm:$0xff] %v418_v7 }
 0x16c   :  { %v526_v8 = vpop.f32.mrf.mxu2 }
 0x16d   :  { %918 = vst [vmem:[%s2049_s2 + $0x3f0] sm:$0xff] %v526_v8 }
 0x16e   :  { %v765_v9 = vpop.f32.mrf.mxu3 }
 0x16f   :  { %v657_v10 = vpop.f32.mrf.mxu1  ;;  %921 = vst.msk [vmem:[%s2049_s2 + $0x408] sm:$0xff] %vm100_vm0, %v765_v9 }
 0x170   :  { %849 = vst.msk [vmem:[%s2049_s2 + $0x1c8] sm:$0xff] %vm100_vm0, %v657_v10  ;;  %v421_v11 = vpop.f32.mrf.mxu0 }
 0x171   :  { %848 = vst [vmem:[%s2049_s2 + $0x1c0] sm:$0xff] %v421_v11 }
 0x174   :  { %v529_v12 = vpop.f32.mrf.mxu2 }
 0x175   :  { %920 = vst [vmem:[%s2049_s2 + $0x400] sm:$0xff] %v529_v12 }
 0x176   :  { %v768_v13 = vpop.f32.mrf.mxu3 }
 0x177   :  { %v660_v14 = vpop.f32.mrf.mxu1  ;;  %923 = vst.msk [vmem:[%s2049_s2 + $0x418] sm:$0xff] %vm100_vm0, %v768_v13 }
 0x178   :  { %851 = vst.msk [vmem:[%s2049_s2 + $0x1d8] sm:$0xff] %vm100_vm0, %v660_v14  ;;  %v424_v16 = vpop.f32.mrf.mxu0 }
 0x179   :  { %850 = vst [vmem:[%s2049_s2 + $0x1d0] sm:$0xff] %v424_v16 }
 0x17c   :  { %v532_v17 = vpop.f32.mrf.mxu2 }
 0x17d   :  { %922 = vst [vmem:[%s2049_s2 + $0x410] sm:$0xff] %v532_v17 }
 0x17e   :  { %v771_v18 = vpop.f32.mrf.mxu3 }
 0x17f   :  { %v663_v19 = vpop.f32.mrf.mxu1  ;;  %925 = vst.msk [vmem:[%s2049_s2 + $0x428] sm:$0xff] %vm100_vm0, %v771_v18 }
 0x180   :  { %853 = vst.msk [vmem:[%s2049_s2 + $0x1e8] sm:$0xff] %vm100_vm0, %v663_v19  ;;  %v427_v20 = vpop.f32.mrf.mxu0 }
 0x181   :  { %852 = vst [vmem:[%s2049_s2 + $0x1e0] sm:$0xff] %v427_v20 }
 0x184   :  { %v535_v21 = vpop.f32.mrf.mxu2 }
 0x185   :  { %924 = vst [vmem:[%s2049_s2 + $0x420] sm:$0xff] %v535_v21 }
 0x186   :  { %v774_v22 = vpop.f32.mrf.mxu3 }
 0x187   :  { %v666_v23 = vpop.f32.mrf.mxu1  ;;  %927 = vst.msk [vmem:[%s2049_s2 + $0x438] sm:$0xff] %vm100_vm0, %v774_v22 }
 0x188   :  { %855 = vst.msk [vmem:[%s2049_s2 + $0x1f8] sm:$0xff] %vm100_vm0, %v666_v23  ;;  %v430_v24 = vpop.f32.mrf.mxu0 }
 0x189   :  { %854 = vst [vmem:[%s2049_s2 + $0x1f0] sm:$0xff] %v430_v24 }
 0x18c   :  { %v538_v25 = vpop.f32.mrf.mxu2 }
 0x18d   :  { %926 = vst [vmem:[%s2049_s2 + $0x430] sm:$0xff] %v538_v25 }
 0x18e   :  { %v777_v26 = vpop.f32.mrf.mxu3 }
 0x18f   :  { %v669_v27 = vpop.f32.mrf.mxu1  ;;  %929 = vst.msk [vmem:[%s2049_s2 + $0x448] sm:$0xff] %vm100_vm0, %v777_v26 }
 0x190   :  { %857 = vst.msk [vmem:[%s2049_s2 + $0x208] sm:$0xff] %vm100_vm0, %v669_v27  ;;  %v433_v28 = vpop.f32.mrf.mxu0 }
 0x191   :  { %856 = vst [vmem:[%s2049_s2 + $0x200] sm:$0xff] %v433_v28 }
 0x194   :  { %v541_v29 = vpop.f32.mrf.mxu2 }
 0x195   :  { %928 = vst [vmem:[%s2049_s2 + $0x440] sm:$0xff] %v541_v29 }
 0x196   :  { %v780_v30 = vpop.f32.mrf.mxu3 }
 0x197   :  { %v672_v31 = vpop.f32.mrf.mxu1  ;;  %931 = vst.msk [vmem:[%s2049_s2 + $0x458] sm:$0xff] %vm100_vm0, %v780_v30 }
 0x198   :  { %859 = vst.msk [vmem:[%s2049_s2 + $0x218] sm:$0xff] %vm100_vm0, %v672_v31  ;;  %v436_v32 = vpop.f32.mrf.mxu0 }
 0x199   :  { %858 = vst [vmem:[%s2049_s2 + $0x210] sm:$0xff] %v436_v32 }
 0x19c   :  { %v544_v33 = vpop.f32.mrf.mxu2 }
 0x19d   :  { %930 = vst [vmem:[%s2049_s2 + $0x450] sm:$0xff] %v544_v33 }
 0x19e   :  { %v783_v34 = vpop.f32.mrf.mxu3 }
 0x19f   :  { %v675_v35 = vpop.f32.mrf.mxu1  ;;  %933 = vst.msk [vmem:[%s2049_s2 + $0x468] sm:$0xff] %vm100_vm0, %v783_v34 }
 0x1a0   :  { %861 = vst.msk [vmem:[%s2049_s2 + $0x228] sm:$0xff] %vm100_vm0, %v675_v35  ;;  %v439_v36 = vpop.f32.mrf.mxu0 }
 0x1a1   :  { %860 = vst [vmem:[%s2049_s2 + $0x220] sm:$0xff] %v439_v36 }
 0x1a4   :  { %v547_v37 = vpop.f32.mrf.mxu2 }
 0x1a5   :  { %932 = vst [vmem:[%s2049_s2 + $0x460] sm:$0xff] %v547_v37 }
 0x1a6   :  { %v786_v38 = vpop.f32.mrf.mxu3 }
 0x1a7   :  { %v678_v39 = vpop.f32.mrf.mxu1  ;;  %935 = vst.msk [vmem:[%s2049_s2 + $0x478] sm:$0xff] %vm100_vm0, %v786_v38 }
 0x1a8   :  { %863 = vst.msk [vmem:[%s2049_s2 + $0x238] sm:$0xff] %vm100_vm0, %v678_v39  ;;  %v442_v40 = vpop.f32.mrf.mxu0 }
 0x1a9   :  { %862 = vst [vmem:[%s2049_s2 + $0x230] sm:$0xff] %v442_v40 }
 0x1ac   :  { %v550_v41 = vpop.f32.mrf.mxu2 }
 0x1ad   :  { %934 = vst [vmem:[%s2049_s2 + $0x470] sm:$0xff] %v550_v41 }
 0x1ae   :  { %v789_v42 = vpop.f32.mrf.mxu3 }
 0x1af   :  { %v681_v43 = vpop.f32.mrf.mxu1  ;;  %937 = vst.msk [vmem:[%s2049_s2 + $0x488] sm:$0xff] %vm100_vm0, %v789_v42 }
 0x1b0   :  { %865 = vst.msk [vmem:[%s2049_s2 + $0x248] sm:$0xff] %vm100_vm0, %v681_v43 }
 0x1b4   :  { %v553_v44 = vpop.f32.mrf.mxu2 }
 0x1b5   :  { %936 = vst [vmem:[%s2049_s2 + $0x480] sm:$0xff] %v553_v44 }

// kernel: mpacv_forward.6
= control target key start
LH: loop header
LB: loop body
LE: loop exit
PB: predicated region body
PF: predicated region fallthrough
CT: control target
= control target key end

     0   :  { %s10644_s12 = smov 0   ;;  %s12629_s0 = inlined_call_operand.vmem [shape: bf16[2,4,2704], index: 0, kind: input, shape index: {}]   ;;  %s12630_s1 = inlined_call_operand.vmem [shape: bf16[2,4,50,2704], index: 1, kind: input, shape index: {}]   ;;  %s12631_s2 = inlined_call_operand.vmem [shape: bf16[2,4,50,2704], index: 2, kind: input, shape index: {}]   ;;  %s12632_s3 = inlined_call_operand.vmem [shape: f32[2,4,2704], index: 3, kind: output, shape index: {}]  }
   0x1 LB: > { %s7400_s13 = sadd.s32 4294967295, %s10622_s12   ;;  %p7404_p0 = scmp.ge.s32.totalorder %s10622_s12, 1  ;;  %s10622_s12 = sphi %s10644_s12, %s13_s12  }
   0x2   : > { %p157_p1 = scmp.lt.s32.totalorder %s10622_s12, 3 }
   0x4   : > { %p158_p2 = pnand %p7404_p0, %p157_p1 }
   0x6   : > { %161 = sbr.rel (%p158_p2) target bundleno = 1746 (0x6d2), region = 32 }
   0xb   : > { %p191_p3 = scmp.lt.s32.totalorder %s7400_s13, 1  ;;  %vm831_vm0 = vcmask 130048   ;;  %vm1523_vm1 = vcmask 1040384   ;;  %vm1519_vm2 = vcmask 408576   ;;  %vm7206_vm3 = vcmask 1041408  }
   0xc   : > { %vm7229_vm4 = vcmask 1042432   ;;  %vm7285_vm5 = vcmask 1043456   ;;  %vm7318_vm6 = vcmask 130052  }
   0xd   : > { %s12662_s13 = smov (!%p191_p3, %s7400_s13), 1  ;;  %vm7319_vm7 = vmor %vm7318_vm6, %vm7285_vm5 }
   0xe   : > { %s10606_s14 = smul.u32 2464, %s12662_s13 }
   0xf   : > { %s10605_s18 = smul.u32 44, %s12662_s13 }
  0x10   : > { %s10660_s17 = scalar_lea.vmem %s12630_s1, %s10606_s14  ;;  %s10865_s24 = scalar_lea.vmem %s12631_s2, %s10606_s14 }
  0x11   : > { %v284_v0 = vld [vmem:[%s10660_s17 + $0x210] sm:$0x11]  ;;  %v285_v1 = vld [vmem:[%s10660_s17 + $0x218] sm:$0x11]  ;;  %v7587_v10 = vld [vmem:[%s10660_s17 + $0x160] sm:$0xf]  ;;  %s10676_s21 = scalar_lea.vmem %s12629_s0, %s10605_s18 }
  0x12   : > { %v637_v2 = vunpack.c.l.b16 %v284_v0  ;;  %v638_v3 = vunpack.c.h.b16 %v284_v0  ;;  %v639_v4 = vunpack.c.l.b16 %v285_v1  ;;  %v640_v5 = vunpack.c.h.b16 %v285_v1  ;;  %v10132_v11 = vld [vmem:[%s10660_s17 + $0x1b4] sm:$0xf0]  ;;  %v10121_v12 = vld [vmem:[%s10660_s17 + $0x164] sm:$0xf]  ;;  %v7589_v13 = vld [vmem:[%s10660_s17 + $0x1b8] sm:$0xf0] }
  0x13   : > { %v7595_v14 = vld [vmem:[%s10660_s17 + $0x168] sm:$0xf]  ;;  %v10133_v15 = vld [vmem:[%s10660_s17 + $0x1bc] sm:$0xf0]  ;;  %v10122_v16 = vld [vmem:[%s10660_s17 + $0x16c] sm:$0xf]  ;;  %v7588_v18 = vor.u32 %v10132_v11, %v7587_v10  ;;  %v7592_v19 = vor.u32 %v10121_v12, %v7589_v13 }
  0x14   : > { %v725_v6 = vpack.c.b16 %v637_v2, %v637_v2  ;;  %v726_v7 = vpack.c.b16 %v638_v3, %v638_v3  ;;  %v727_v8 = vpack.c.b16 %v639_v4, %v639_v4  ;;  %v728_v9 = vpack.c.b16 %v640_v5, %v640_v5  ;;  %v7597_v17 = vld [vmem:[%s10660_s17 + $0x1c0] sm:$0xf0]  ;;  %v7499_v23 = vld [vmem:[%s10660_s17 + $0xb0] sm:$0xf]  ;;  %v10110_v24 = vld [vmem:[%s10660_s17 + $0x104] sm:$0xf0] }
  0x15   : > { %v7596_v20 = vor.u32 %v10133_v15, %v7595_v14  ;;  %v7600_v21 = vor.u32 %v10122_v16, %v7597_v17  ;;  %v10679_v22 = vld [vmem:[%s10676_s21] sm:$0xff]  ;;  %v10099_v25 = vld [vmem:[%s10660_s17 + $0xb4] sm:$0xf]  ;;  %v7501_v26 = vld [vmem:[%s10660_s17 + $0x108] sm:$0xf0]  ;;  %v7500_v31 = vor.u32 %v10110_v24, %v7499_v23  ;;  %s10607_s25 = smul.u32 88, %s12662_s13 }
  0x16   : > { %850 = vmatpush.bf16.xpose.msra.mxu0 %v725_v6  ;;  %863 = vmatpush.bf16.xpose.msra.mxu1 %v726_v7  ;;  %373 = vst [vmem:[#allocation1] ss:$4 sm:$0xff] %v10679_v22  ;;  %v7507_v27 = vld [vmem:[%s10660_s17 + $0xb8] sm:$0xf]  ;;  %v10111_v28 = vld [vmem:[%s10660_s17 + $0x10c] sm:$0xf0]  ;;  %v7504_v32 = vor.u32 %v10099_v25, %v7501_v26 }
  0x17   : > { %876 = vmatpush.bf16.xpose.msra.mxu2 %v727_v8  ;;  %889 = vmatpush.bf16.xpose.msra.mxu3 %v728_v9  ;;  %v10100_v29 = vld [vmem:[%s10660_s17 + $0xbc] sm:$0xf]  ;;  %v7509_v30 = vld [vmem:[%s10660_s17 + $0x110] sm:$0xf0]  ;;  %v7508_v33 = vor.u32 %v10111_v28, %v7507_v27  ;;  %v286_v35 = vld [vmem:[%s10660_s17 + $0x220] sm:$0x11]  ;;  %s12559_s28 = scalar_lea.vmem %s12632_s3, %s10607_s25 }
  0x18   : > { %v7512_v34 = vor.u32 %v10100_v29, %v7509_v30  ;;  %v287_v36 = vld [vmem:[%s10660_s17 + $0x228] sm:$0x11]  ;;  %v7411_v37 = vld [vmem:[%s10660_s17] sm:$0xf]  ;;  %v10088_v38 = vld [vmem:[%s10660_s17 + $0x54] sm:$0xf0]  ;;  %v641_v41 = vunpack.c.l.b16 %v286_v35  ;;  %v642_v44 = vunpack.c.h.b16 %v286_v35 }
  0x19   : > { %v10077_v39 = vld [vmem:[%s10660_s17 + $0x4] sm:$0xf]  ;;  %v7413_v40 = vld [vmem:[%s10660_s17 + $0x58] sm:$0xf0]  ;;  %v7419_v42 = vld [vmem:[%s10660_s17 + $0x8] sm:$0xf]  ;;  %v643_v45 = vunpack.c.l.b16 %v287_v36  ;;  %v7412_v47 = vor.u32 %v10088_v38, %v7411_v37  ;;  %v644_v51 = vunpack.c.h.b16 %v287_v36 }
  0x1a   : > { %v10089_v43 = vld [vmem:[%s10660_s17 + $0x5c] sm:$0xf0]  ;;  %v10699_v46 = vld [vmem:[%s10676_s21 + $0x8] sm:$0xff]  ;;  %v7416_v48 = vor.u32 %v10077_v39, %v7413_v40  ;;  %v7421_v50 = vld [vmem:[%s10660_s17 + $0x60] sm:$0xf0]  ;;  %v729_v53 = vpack.c.b16 %v641_v41, %v641_v41  ;;  %v730_v54 = vpack.c.b16 %v642_v44, %v642_v44 }
  0x1b   : > { %v10078_v49 = vld [vmem:[%s10660_s17 + $0xc] sm:$0xf]  ;;  %376 = vst [vmem:[#allocation1 + $0x20] ss:$4 sm:$0xff] %v10699_v46  ;;  %v7420_v52 = vor.u32 %v10089_v43, %v7419_v42  ;;  %v731_v55 = vpack.c.b16 %v643_v45, %v643_v45  ;;  %v732_v57 = vpack.c.b16 %v644_v51, %v644_v51  ;;  %v7603_v58 = vld [vmem:[%s10660_s17 + $0x170] sm:$0xf] }
  0x1c   : > { %v7424_v56 = vor.u32 %v10078_v49, %v7421_v50  ;;  %v10134_v59 = vld [vmem:[%s10660_s17 + $0x1c4] sm:$0xf0]  ;;  %v10123_v60 = vld [vmem:[%s10660_s17 + $0x174] sm:$0xf]  ;;  %v7605_v61 = vld [vmem:[%s10660_s17 + $0x1c8] sm:$0xf0] }
  0x1d   : > { %v7611_v62 = vld [vmem:[%s10660_s17 + $0x178] sm:$0xf]  ;;  %v10135_v63 = vld [vmem:[%s10660_s17 + $0x1cc] sm:$0xf0]  ;;  %v10124_v0 = vld [vmem:[%s10660_s17 + $0x17c] sm:$0xf]  ;;  %v7604_v3 = vor.u32 %v10134_v59, %v7603_v58  ;;  %v7608_v6 = vor.u32 %v10123_v60, %v7605_v61 }
  0x1e   : > { %851 = vmatpush.bf16.xpose.msra.mxu0 %v7588_v18  ;;  %864 = vmatpush.bf16.xpose.msra.mxu1 %v7592_v19  ;;  %v377_v1 = vld.sshfl [vmem:[#allocation1] sm:$0xff pattern:$0x73625140]  ;;  %v378_v2 = vld.sshfl [vmem:[#allocation1 + $0x8] sm:$0xff pattern:$0x73625140]  ;;  %v7612_v7 = vor.u32 %v10135_v63, %v7611_v62 }
  0x1f   : > { %877 = vmatpush.bf16.xpose.msra.mxu2 %v7596_v20  ;;  %890 = vmatpush.bf16.xpose.msra.mxu3 %v7600_v21  ;;  %v7613_v4 = vld [vmem:[%s10660_s17 + $0x1d0] sm:$0xf0]  ;;  %v380_v9 = vld.sshfl [vmem:[#allocation1 + $0x18] sm:$0xff pattern:$0x73625140] }
  0x20   : > { %v379_v5 = vld.sshfl [vmem:[#allocation1 + $0x10] sm:$0xff pattern:$0x73625140]  ;;  %v7616_v8 = vor.u32 %v10124_v0, %v7613_v4  ;;  %v7515_v10 = vld [vmem:[%s10660_s17 + $0xc0] sm:$0xf] }
  0x21   : > { %v10112_v11 = vld [vmem:[%s10660_s17 + $0x114] sm:$0xf0]  ;;  %v10101_v12 = vld [vmem:[%s10660_s17 + $0xc4] sm:$0xf]  ;;  %v7517_v13 = vld [vmem:[%s10660_s17 + $0x118] sm:$0xf0] }
  0x22   : > { %v7523_v14 = vld [vmem:[%s10660_s17 + $0xc8] sm:$0xf]  ;;  %v10113_v15 = vld [vmem:[%s10660_s17 + $0x11c] sm:$0xf0]  ;;  %v7516_v16 = vor.u32 %v10112_v11, %v7515_v10  ;;  %v10102_v17 = vld [vmem:[%s10660_s17 + $0xcc] sm:$0xf]  ;;  %v7520_v19 = vor.u32 %v10101_v12, %v7517_v13 }
  0x23   : > { %v7525_v18 = vld [vmem:[%s10660_s17 + $0x120] sm:$0xf0]  ;;  %v7524_v20 = vor.u32 %v10113_v15, %v7523_v14  ;;  %v288_v23 = vld [vmem:[%s10660_s17 + $0x230] sm:$0x11]  ;;  %v289_v25 = vld [vmem:[%s10660_s17 + $0x238] sm:$0x11] }
  0x24   : > { %v7528_v21 = vor.u32 %v10102_v17, %v7525_v18  ;;  %v7427_v24 = vld [vmem:[%s10660_s17 + $0x10] sm:$0xf]  ;;  %v10090_v26 = vld [vmem:[%s10660_s17 + $0x64] sm:$0xf0]  ;;  %v10079_v27 = vld [vmem:[%s10660_s17 + $0x14] sm:$0xf]  ;;  %v648_v38 = vunpack.c.h.b16 %v289_v25 }
  0x25   : > { %v7429_v28 = vld [vmem:[%s10660_s17 + $0x68] sm:$0xf0]  ;;  %v7435_v29 = vld [vmem:[%s10660_s17 + $0x18] sm:$0xf]  ;;  %v10091_v30 = vld [vmem:[%s10660_s17 + $0x6c] sm:$0xf0]  ;;  %v7428_v35 = vor.u32 %v10090_v26, %v7427_v24 }
  0x26   : > { %852 = vmatpush.bf16.xpose.msra.mxu0 %v7500_v31  ;;  %865 = vmatpush.bf16.xpose.msra.mxu1 %v7504_v32  ;;  %v645_v31 = vunpack.c.l.b16 %v288_v23  ;;  %v646_v32 = vunpack.c.h.b16 %v288_v23  ;;  %v10080_v36 = vld [vmem:[%s10660_s17 + $0x1c] sm:$0xf]  ;;  %v7437_v37 = vld [vmem:[%s10660_s17 + $0x70] sm:$0xf0]  ;;  %v7432_v39 = vor.u32 %v10079_v27, %v7429_v28  ;;  %v7436_v40 = vor.u32 %v10091_v30, %v7435_v29  ;;  %v10125_v49 = vld [vmem:[%s10660_s17 + $0x184] sm:$0xf] }
  0x27   : > { %878 = vmatpush.bf16.xpose.msra.mxu2 %v7508_v33  ;;  %891 = vmatpush.bf16.xpose.msra.mxu3 %v7512_v34  ;;  %v10729_v33 = vld [vmem:[%s10676_s21 + $0x10] sm:$0xff]  ;;  %v647_v34 = vunpack.c.l.b16 %v289_v25  ;;  %v7440_v44 = vor.u32 %v10080_v36, %v7437_v37  ;;  %v736_v45 = vpack.c.b16 %v648_v38, %v648_v38  ;;  %v7621_v50 = vld [vmem:[%s10660_s17 + $0x1d8] sm:$0xf0]  ;;  %v7627_v51 = vld [vmem:[%s10660_s17 + $0x188] sm:$0xf] }
  0x28   : > { %386 = vst [vmem:[#allocation1] ss:$4 sm:$0xff] %v10729_v33  ;;  %v733_v41 = vpack.c.b16 %v645_v31, %v645_v31  ;;  %v734_v42 = vpack.c.b16 %v646_v32, %v646_v32  ;;  %v384_v59 = vld.sshfl [vmem:[#allocation1 + $0x38] sm:$0xff pattern:$0x73625140]  ;;  %v7624_v60 = vor.u32 %v10125_v49, %v7621_v50 }
  0x29   : > { %v735_v43 = vpack.c.b16 %v647_v34, %v647_v34  ;;  %v7531_v63 = vld [vmem:[%s10660_s17 + $0xd0] sm:$0xf]  ;;  %v10114_v0 = vld [vmem:[%s10660_s17 + $0x124] sm:$0xf0]  ;;  %v290_v11 = vld [vmem:[%s10660_s17 + $0x240] sm:$0x11] }
  0x2a   : > { %v10115_v4 = vld [vmem:[%s10660_s17 + $0x12c] sm:$0xf0]  ;;  %v7443_v12 = vld [vmem:[%s10660_s17 + $0x20] sm:$0xf]  ;;  %v291_v13 = vld [vmem:[%s10660_s17 + $0x248] sm:$0x11] }
  0x2b   : > { %v10092_v14 = vld [vmem:[%s10660_s17 + $0x74] sm:$0xf0]  ;;  %v10081_v15 = vld [vmem:[%s10660_s17 + $0x24] sm:$0xf]  ;;  %v7451_v17 = vld [vmem:[%s10660_s17 + $0x28] sm:$0xf]  ;;  %v651_v23 = vunpack.c.l.b16 %v291_v13  ;;  %v652_v27 = vunpack.c.h.b16 %v291_v13 }
  0x2c   : > { %v10093_v18 = vld [vmem:[%s10660_s17 + $0x7c] sm:$0xf0]  ;;  %v7444_v24 = vor.u32 %v10092_v14, %v7443_v12  ;;  %v10082_v25 = vld [vmem:[%s10660_s17 + $0x2c] sm:$0xf]  ;;  %v7453_v26 = vld [vmem:[%s10660_s17 + $0x80] sm:$0xf0] }
  0x2d   : > { %v7452_v29 = vor.u32 %v10093_v18, %v7451_v17  ;;  %v739_v32 = vpack.c.b16 %v651_v23, %v651_v23  ;;  %v7456_v34 = vor.u32 %v10082_v25, %v7453_v26  ;;  %v10084_v14 = vld [vmem:[%s10660_s17 + $0x3c] sm:$0xf]  ;;  %v7651_v26 = vld [vmem:[%s10660_s17 + $0x1a0] sm:$0xf] }
  0x2e   : > { %853 = vmatpush.bf16.xpose.msra.mxu0 %v7412_v47  ;;  %866 = vmatpush.bf16.xpose.msra.mxu1 %v7416_v48  ;;  %v7619_v47 = vld [vmem:[%s10660_s17 + $0x180] sm:$0xf]  ;;  %v10136_v48 = vld [vmem:[%s10660_s17 + $0x1d4] sm:$0xf0] }
  0x2f   : > { %879 = vmatpush.bf16.xpose.msra.mxu2 %v7420_v52  ;;  %892 = vmatpush.bf16.xpose.msra.mxu3 %v7424_v56  ;;  %v381_v52 = vld.sshfl [vmem:[#allocation1 + $0x20] sm:$0xff pattern:$0x73625140]  ;;  %v10126_v56 = vld [vmem:[%s10660_s17 + $0x18c] sm:$0xf]  ;;  %v7620_v58 = vor.u32 %v10136_v48, %v7619_v47 }
  0x30   : > { %v389_v36 = vld.sshfl [vmem:[#allocation1] sm:$0xff pattern:$0x73625140]  ;;  %v391_v37 = vld.sshfl [vmem:[#allocation1 + $0x10] sm:$0xff pattern:$0x73625140] }
  0x31   : > { %v390_v38 = vld.sshfl [vmem:[#allocation1 + $0x8] sm:$0xff pattern:$0x73625140]  ;;  %v7645_v47 = vld [vmem:[%s10660_s17 + $0x1f0] sm:$0xf0] }
  0x32   : > { %v392_v49 = vld.sshfl [vmem:[#allocation1 + $0x18] sm:$0xff pattern:$0x73625140] }
  0x35   : > { %854 = vmatmul.bf16.vlgmr.msra.gmra.mxu0 %v377_v1  ;;  %867 = vmatmul.bf16.vlgmr.msra.gmra.mxu1 %v378_v2  ;;  %v10103_v1 = vld [vmem:[%s10660_s17 + $0xd4] sm:$0xf]  ;;  %v7533_v2 = vld [vmem:[%s10660_s17 + $0x128] sm:$0xf0] }
  0x36   : > { %902 = vmatpush.bf16.xpose.msrb.mxu0 %v729_v53  ;;  %915 = vmatpush.bf16.xpose.msrb.mxu1 %v730_v54  ;;  %v10137_v53 = vld [vmem:[%s10660_s17 + $0x1dc] sm:$0xf0]  ;;  %v383_v54 = vld.sshfl [vmem:[#allocation1 + $0x30] sm:$0xff pattern:$0x73625140] }
  0x37   : > { %928 = vmatpush.bf16.xpose.msrb.mxu2 %v731_v55  ;;  %941 = vmatpush.bf16.xpose.msrb.mxu3 %v732_v57  ;;  %v382_v55 = vld.sshfl [vmem:[#allocation1 + $0x28] sm:$0xff pattern:$0x73625140]  ;;  %v7629_v57 = vld [vmem:[%s10660_s17 + $0x1e0] sm:$0xf0]  ;;  %v7628_v61 = vor.u32 %v10137_v53, %v7627_v51 }
  0x38   : > { %880 = vmatmul.bf16.vlgmr.msra.gmra.mxu2 %v379_v5  ;;  %893 = vmatmul.bf16.vlgmr.msra.gmra.mxu3 %v380_v9  ;;  %v7632_v62 = vor.u32 %v10126_v56, %v7629_v57  ;;  %v10104_v5 = vld [vmem:[%s10660_s17 + $0xdc] sm:$0xf]  ;;  %v7547_v53 = vld [vmem:[%s10660_s17 + $0xe0] sm:$0xf]  ;;  %v7555_v57 = vld [vmem:[%s10660_s17 + $0xe8] sm:$0xf] }
  0x39   : > { %v7549_v56 = vld [vmem:[%s10660_s17 + $0x138] sm:$0xf0] }
  0x3e   : > { %903 = vmatpush.bf16.xpose.msrb.mxu0 %v7604_v3  ;;  %916 = vmatpush.bf16.xpose.msrb.mxu1 %v7608_v6  ;;  %v7539_v3 = vld [vmem:[%s10660_s17 + $0xd8] sm:$0xf]  ;;  %v7541_v6 = vld [vmem:[%s10660_s17 + $0x130] sm:$0xf0] }
  0x3f   : > { %929 = vmatpush.bf16.xpose.msrb.mxu2 %v7612_v7  ;;  %942 = vmatpush.bf16.xpose.msrb.mxu3 %v7616_v8  ;;  %v7532_v7 = vor.u32 %v10114_v0, %v7531_v63  ;;  %v7536_v8 = vor.u32 %v10103_v1, %v7533_v2  ;;  %v7540_v9 = vor.u32 %v10115_v4, %v7539_v3  ;;  %v292_v1 = vld [vmem:[%s10660_s17 + $0x250] sm:$0x11]  ;;  %v293_v3 = vld [vmem:[%s10660_s17 + $0x258] sm:$0x11]  ;;  %v10094_v4 = vld [vmem:[%s10660_s17 + $0x84] sm:$0xf0] }
  0x40   : > { %v7544_v10 = vor.u32 %v10104_v5, %v7541_v6  ;;  %v7459_v2 = vld [vmem:[%s10660_s17 + $0x30] sm:$0xf]  ;;  %v10083_v5 = vld [vmem:[%s10660_s17 + $0x34] sm:$0xf]  ;;  %v10786_v6 = vld [vmem:[%s10676_s21 + $0x20] sm:$0xff]  ;;  %v655_v12 = vunpack.c.l.b16 %v293_v3 }
  0x41   : > { %398 = vst [vmem:[#allocation1] ss:$4 sm:$0xff] %v10786_v6  ;;  %v7460_v13 = vor.u32 %v10094_v4, %v7459_v2  ;;  %v10825_v2 = vld [vmem:[%s10676_s21 + $0x28] sm:$0xf]  ;;  %v10097_v4 = vld [vmem:[%s10660_s17 + $0x9c] sm:$0xf0] }
  0x42   : > { %v743_v23 = vpack.c.b16 %v655_v12, %v655_v12 }
  0x46   : > { %904 = vmatpush.bf16.xpose.msrb.mxu0 %v7516_v16  ;;  %917 = vmatpush.bf16.xpose.msrb.mxu1 %v7520_v19  ;;  %v7445_v16 = vld [vmem:[%s10660_s17 + $0x78] sm:$0xf0]  ;;  %v649_v19 = vunpack.c.l.b16 %v290_v11 }
  0x47   : > { %930 = vmatpush.bf16.xpose.msrb.mxu2 %v7524_v20  ;;  %943 = vmatpush.bf16.xpose.msrb.mxu3 %v7528_v21  ;;  %v650_v20 = vunpack.c.h.b16 %v290_v11  ;;  %v10759_v21 = vld [vmem:[%s10676_s21 + $0x18] sm:$0xff]  ;;  %v7448_v28 = vor.u32 %v10081_v15, %v7445_v16  ;;  %v654_v11 = vunpack.c.h.b16 %v292_v1  ;;  %v7469_v15 = vld [vmem:[%s10660_s17 + $0x90] sm:$0xf0]  ;;  %v656_v16 = vunpack.c.h.b16 %v293_v3  ;;  %v7483_v3 = vld [vmem:[%s10660_s17 + $0x48] sm:$0xf] }
  0x48   : > { %388 = vst [vmem:[#allocation1 + $0x20] ss:$4 sm:$0xff] %v10759_v21  ;;  %v737_v30 = vpack.c.b16 %v649_v19, %v649_v19  ;;  %v7484_v12 = vor.u32 %v10097_v4, %v7483_v3 }
  0x49   : > { %v738_v31 = vpack.c.b16 %v650_v20, %v650_v20  ;;  %v742_v20 = vpack.c.b16 %v654_v11, %v654_v11  ;;  %v744_v25 = vpack.c.b16 %v656_v16, %v656_v16  ;;  %v10131_v16 = vld [vmem:[%s10660_s17 + $0x1b4] sm:$0xf] }
  0x4e   : > { %905 = vmatpush.bf16.xpose.msrb.mxu0 %v7428_v35  ;;  %918 = vmatpush.bf16.xpose.msrb.mxu1 %v7432_v39  ;;  %v740_v35 = vpack.c.b16 %v652_v27, %v652_v27  ;;  %v7635_v39 = vld [vmem:[%s10660_s17 + $0x190] sm:$0xf]  ;;  %v10140_v27 = vld [vmem:[%s10660_s17 + $0x1f4] sm:$0xf0] }
  0x4f   : > { %931 = vmatpush.bf16.xpose.msrb.mxu2 %v7436_v40  ;;  %944 = vmatpush.bf16.xpose.msrb.mxu3 %v7440_v44  ;;  %v10138_v40 = vld [vmem:[%s10660_s17 + $0x1e4] sm:$0xf0]  ;;  %v10139_v44 = vld [vmem:[%s10660_s17 + $0x1ec] sm:$0xf0] }
  0x50   : > { %v7636_v48 = vor.u32 %v10138_v40, %v7635_v39  ;;  %v10141_v39 = vld [vmem:[%s10660_s17 + $0x1fc] sm:$0xf0]  ;;  %v10130_v40 = vld [vmem:[%s10660_s17 + $0x1ac] sm:$0xf] }
  0x55   : > { %906 = vmatmul.bf16.vlgmr.msrb.gmra.mxu0 %v381_v52  ;;  %919 = vmatmul.bf16.vlgmr.msrb.gmra.mxu1 %v382_v55  ;;  %v10105_v55 = vld [vmem:[%s10660_s17 + $0xe4] sm:$0xf] }
  0x56   : > { %954 = vmatpush.bf16.xpose.msra.mxu0 %v733_v41  ;;  %967 = vmatpush.bf16.xpose.msra.mxu1 %v734_v42  ;;  %v10127_v41 = vld [vmem:[%s10660_s17 + $0x194] sm:$0xf]  ;;  %v7637_v42 = vld [vmem:[%s10660_s17 + $0x1e8] sm:$0xf0] }
  0x57   : > { %980 = vmatpush.bf16.xpose.msra.mxu2 %v735_v43  ;;  %993 = vmatpush.bf16.xpose.msra.mxu3 %v736_v45  ;;  %v7643_v43 = vld [vmem:[%s10660_s17 + $0x198] sm:$0xf]  ;;  %v10128_v45 = vld [vmem:[%s10660_s17 + $0x19c] sm:$0xf]  ;;  %v7640_v50 = vor.u32 %v10127_v41, %v7637_v42  ;;  %v7661_v41 = vld [vmem:[%s10660_s17 + $0x200] sm:$0xf0]  ;;  %v7652_v42 = vor.u32 %v10140_v27, %v7651_v26 }
  0x58   : > { %932 = vmatmul.bf16.vlgmr.msrb.gmra.mxu2 %v383_v54  ;;  %945 = vmatmul.bf16.vlgmr.msrb.gmra.mxu3 %v384_v59  ;;  %v7644_v51 = vor.u32 %v10139_v44, %v7643_v43  ;;  %v7648_v52 = vor.u32 %v10128_v45, %v7645_v47  ;;  %v10116_v54 = vld [vmem:[%s10660_s17 + $0x134] sm:$0xf0]  ;;  %v10106_v59 = vld [vmem:[%s10660_s17 + $0xec] sm:$0xf]  ;;  %v7664_v47 = vor.u32 %v10130_v40, %v7661_v41  ;;  %v10109_v27 = vld [vmem:[%s10660_s17 + $0x104] sm:$0xf] }
  0x59   : > { %v396_v43 = vld.sshfl [vmem:[#allocation1 + $0x38] sm:$0xff pattern:$0x73625140] }
  0x5e   : > { %955 = vmatpush.bf16.xpose.msra.mxu0 %v7620_v58  ;;  %968 = vmatpush.bf16.xpose.msra.mxu1 %v7624_v60  ;;  %v10117_v58 = vld [vmem:[%s10660_s17 + $0x13c] sm:$0xf0]  ;;  %v7557_v60 = vld [vmem:[%s10660_s17 + $0x140] sm:$0xf0] }
  0x5f   : > { %981 = vmatpush.bf16.xpose.msra.mxu2 %v7628_v61  ;;  %994 = vmatpush.bf16.xpose.msra.mxu3 %v7632_v62  ;;  %v7548_v61 = vor.u32 %v10116_v54, %v7547_v53  ;;  %v7552_v62 = vor.u32 %v10105_v55, %v7549_v56  ;;  %v7556_v63 = vor.u32 %v10117_v58, %v7555_v57  ;;  %v10119_v53 = vld [vmem:[%s10660_s17 + $0x14c] sm:$0xf0]  ;;  %v10108_v54 = vld [vmem:[%s10660_s17 + $0xfc] sm:$0xf]  ;;  %v7573_v55 = vld [vmem:[%s10660_s17 + $0x150] sm:$0xf0] }
  0x60   : > { %v7560_v0 = vor.u32 %v10106_v59, %v7557_v60  ;;  %v294_v57 = vld [vmem:[%s10660_s17 + $0x260] sm:$0x11]  ;;  %v7576_v60 = vor.u32 %v10108_v54, %v7573_v55 }
  0x66   : > { %956 = vmatpush.bf16.xpose.msra.mxu0 %v7532_v7  ;;  %969 = vmatpush.bf16.xpose.msra.mxu1 %v7536_v8  ;;  %v7461_v7 = vld [vmem:[%s10660_s17 + $0x88] sm:$0xf0]  ;;  %v7467_v8 = vld [vmem:[%s10660_s17 + $0x38] sm:$0xf] }
  0x67   : > { %982 = vmatpush.bf16.xpose.msra.mxu2 %v7540_v9  ;;  %995 = vmatpush.bf16.xpose.msra.mxu3 %v7544_v10  ;;  %v10095_v9 = vld [vmem:[%s10660_s17 + $0x8c] sm:$0xf0]  ;;  %v653_v10 = vunpack.c.l.b16 %v292_v1  ;;  %v7464_v17 = vor.u32 %v10083_v5, %v7461_v7  ;;  %v7477_v1 = vld [vmem:[%s10660_s17 + $0x98] sm:$0xf0]  ;;  %v657_v5 = vunpack.c.l.b16 %v294_v57 }
  0x68   : > { %v7468_v18 = vor.u32 %v10095_v9, %v7467_v8  ;;  %v10086_v9 = vld [vmem:[%s10660_s17 + $0x4c] sm:$0xf] }
  0x69   : > { %v741_v19 = vpack.c.b16 %v653_v10, %v653_v10  ;;  %v7485_v10 = vld [vmem:[%s10660_s17 + $0xa0] sm:$0xf0] }
  0x6e   : > { %957 = vmatpush.bf16.xpose.msra.mxu0 %v7444_v24  ;;  %970 = vmatpush.bf16.xpose.msra.mxu1 %v7448_v28  ;;  %v7472_v24 = vor.u32 %v10084_v14, %v7469_v15  ;;  %v393_v28 = vld.sshfl [vmem:[#allocation1 + $0x20] sm:$0xff pattern:$0x73625140]  ;;  %v7488_v15 = vor.u32 %v10086_v9, %v7485_v10 }
  0x6f   : > { %983 = vmatpush.bf16.xpose.msra.mxu2 %v7452_v29  ;;  %996 = vmatpush.bf16.xpose.msra.mxu3 %v7456_v34  ;;  %v10129_v29 = vld [vmem:[%s10660_s17 + $0x1a4] sm:$0xf]  ;;  %v395_v34 = vld.sshfl [vmem:[#allocation1 + $0x30] sm:$0xff pattern:$0x73625140] }
  0x75   : > { %958 = vmatmul.bf16.vlgmr.msra.gmra.mxu0 %v389_v36  ;;  %971 = vmatmul.bf16.vlgmr.msra.gmra.mxu1 %v390_v38  ;;  %v10802_v36 = vld.sshfl [vmem:[#allocation1 + $0x8] sm:$0xff pattern:$0x73625140] }
  0x76   : > { %1006 = vmatpush.bf16.xpose.msrb.mxu0 %v737_v30  ;;  %1019 = vmatpush.bf16.xpose.msrb.mxu1 %v738_v31  ;;  %v7653_v30 = vld [vmem:[%s10660_s17 + $0x1f8] sm:$0xf0]  ;;  %v10798_v31 = vld.sshfl [vmem:[#allocation1] sm:$0xff pattern:$0x73625140] }
  0x77   : > { %1032 = vmatpush.bf16.xpose.msrb.mxu2 %v739_v32  ;;  %1045 = vmatpush.bf16.xpose.msrb.mxu3 %v740_v35  ;;  %v10800_v32 = vld.sshfl [vmem:[#allocation1 + $0x10] sm:$0xff pattern:$0x73625140]  ;;  %v394_v35 = vld.sshfl [vmem:[#allocation1 + $0x28] sm:$0xff pattern:$0x73625140]  ;;  %v7656_v44 = vor.u32 %v10129_v29, %v7653_v30 }
  0x78   : > { %984 = vmatmul.bf16.vlgmr.msra.gmra.mxu2 %v391_v37  ;;  %997 = vmatmul.bf16.vlgmr.msra.gmra.mxu3 %v392_v49  ;;  %v10804_v37 = vld.sshfl [vmem:[#allocation1 + $0x18] sm:$0xff pattern:$0x73625140]  ;;  %v7659_v38 = vld [vmem:[%s10660_s17 + $0x1a8] sm:$0xf] }
  0x79   : > { %2032 = vst [vmem:[#allocation1] ss:$4 sm:$0xff] %v10679_v22  ;;  %v7660_v45 = vor.u32 %v10141_v39, %v7659_v38  ;;  %v10118_v49 = vld [vmem:[%s10660_s17 + $0x144] sm:$0xf0]  ;;  %v7579_v29 = vld [vmem:[%s10660_s17 + $0x100] sm:$0xf] }
  0x7a   : > { %400 = vst [vmem:[#allocation1 + $0x20] ss:$4 sm:$0xff] %v10825_v2  ;;  %v10120_v30 = vld [vmem:[%s10660_s17 + $0x154] sm:$0xf0]  ;;  %v10087_v38 = vld [vmem:[%s10660_s17 + $0x54] sm:$0xf] }
  0x7b   : > { %v10098_v39 = vld [vmem:[%s10660_s17 + $0xa4] sm:$0xf0] }
  0x7e   : > { %1007 = vmatpush.bf16.xpose.msrb.mxu0 %v7636_v48  ;;  %1020 = vmatpush.bf16.xpose.msrb.mxu1 %v7640_v50  ;;  %v7563_v48 = vld [vmem:[%s10660_s17 + $0xf0] sm:$0xf]  ;;  %v10107_v50 = vld [vmem:[%s10660_s17 + $0xf4] sm:$0xf] }
  0x7f   : > { %1033 = vmatpush.bf16.xpose.msrb.mxu2 %v7644_v51  ;;  %1046 = vmatpush.bf16.xpose.msrb.mxu3 %v7648_v52  ;;  %v7565_v51 = vld [vmem:[%s10660_s17 + $0x148] sm:$0xf0]  ;;  %v7571_v52 = vld [vmem:[%s10660_s17 + $0xf8] sm:$0xf]  ;;  %v7564_v56 = vor.u32 %v10118_v49, %v7563_v48 }
  0x80   : > { %v7568_v58 = vor.u32 %v10107_v50, %v7565_v51  ;;  %v7572_v59 = vor.u32 %v10119_v53, %v7571_v52 }
  0x86   : > { %1008 = vmatpush.bf16.xpose.msrb.mxu0 %v7548_v61  ;;  %1021 = vmatpush.bf16.xpose.msrb.mxu1 %v7552_v62  ;;  %v658_v61 = vunpack.c.h.b16 %v294_v57  ;;  %v7475_v62 = vld [vmem:[%s10660_s17 + $0x40] sm:$0xf] }
  0x87   : > { %1034 = vmatpush.bf16.xpose.msrb.mxu2 %v7556_v63  ;;  %1047 = vmatpush.bf16.xpose.msrb.mxu3 %v7560_v0  ;;  %v10096_v63 = vld [vmem:[%s10660_s17 + $0x94] sm:$0xf0]  ;;  %v10085_v0 = vld [vmem:[%s10660_s17 + $0x44] sm:$0xf] }
  0x88   : > { %v746_v7 = vpack.c.b16 %v658_v61, %v658_v61  ;;  %v7476_v8 = vor.u32 %v10096_v63, %v7475_v62  ;;  %v7480_v11 = vor.u32 %v10085_v0, %v7477_v1 }
  0x8a   : > { %v844_v14 = vsel %vm831_vm0, %v746_v7, 0 }
  0x8e   : > { %1009 = vmatpush.bf16.xpose.msrb.mxu0 %v7460_v13  ;;  %1022 = vmatpush.bf16.xpose.msrb.mxu1 %v7464_v17  ;;  %v745_v13 = vpack.c.b16 %v657_v5, %v657_v5  ;;  %v7669_v17 = vld [vmem:[%s10660_s17 + $0x208] sm:$0xf0] }
  0x8f   : > { %1035 = vmatpush.bf16.xpose.msrb.mxu2 %v7468_v18  ;;  %1048 = vmatpush.bf16.xpose.msrb.mxu3 %v7472_v24  ;;  %v405_v18 = vld.sshfl [vmem:[#allocation1 + $0x20] sm:$0xff pattern:$0x73625140]  ;;  %v7672_v24 = vor.u32 %v10131_v16, %v7669_v17 }
  0x91   : > { %v841_v26 = vsel %vm831_vm0, %v7672_v24, 0 }
  0x95   : > { %1010 = vmatmul.bf16.vlgmr.msrb.gmra.mxu0 %v393_v28  ;;  %1023 = vmatmul.bf16.vlgmr.msrb.gmra.mxu1 %v394_v35  ;;  %v7581_v28 = vld [vmem:[%s10660_s17 + $0x158] sm:$0xf0]  ;;  %v7580_v35 = vor.u32 %v10120_v30, %v7579_v29 }
  0x96   : > { %1058 = vmatpush.bf16.xpose.msra.mxu0 %v741_v19  ;;  %1071 = vmatpush.bf16.xpose.msra.mxu1 %v742_v20  ;;  %v406_v19 = vld.sshfl [vmem:[#allocation1 + $0x28] sm:$0xff pattern:$0x73625140]  ;;  %v7667_v20 = vld [vmem:[%s10660_s17 + $0x1b0] sm:$0xf] }
  0x97   : > { %1084 = vmatpush.bf16.xpose.msra.mxu2 %v743_v23  ;;  %1097 = vmatpush.bf16.xpose.msra.mxu3 %v744_v25  ;;  %2034 = vst [vmem:[#allocation1 + $0x20] ss:$4 sm:$0xff] %v10699_v46  ;;  %v10142_v23 = vld [vmem:[%s10660_s17 + $0x204] sm:$0xf0] }
  0x98   : > { %1036 = vmatmul.bf16.vlgmr.msrb.gmra.mxu2 %v395_v34  ;;  %1049 = vmatmul.bf16.vlgmr.msrb.gmra.mxu3 %v396_v43  ;;  %v7668_v25 = vor.u32 %v10142_v23, %v7667_v20  ;;  %v7584_v34 = vor.u32 %v10109_v27, %v7581_v28 }
  0x9e   : > { %1059 = vmatpush.bf16.xpose.msra.mxu0 %v7652_v42  ;;  %1072 = vmatpush.bf16.xpose.msra.mxu1 %v7656_v44 }
  0x9f   : > { %1085 = vmatpush.bf16.xpose.msra.mxu2 %v7660_v45  ;;  %1098 = vmatpush.bf16.xpose.msra.mxu3 %v7664_v47 }
  0xa6   : > { %1060 = vmatpush.bf16.xpose.msra.mxu0 %v7564_v56  ;;  %1073 = vmatpush.bf16.xpose.msra.mxu1 %v7568_v58 }
  0xa7   : > { %1086 = vmatpush.bf16.xpose.msra.mxu2 %v7572_v59  ;;  %1099 = vmatpush.bf16.xpose.msra.mxu3 %v7576_v60 }
  0xae   : > { %1061 = vmatpush.bf16.xpose.msra.mxu0 %v7476_v8  ;;  %1074 = vmatpush.bf16.xpose.msra.mxu1 %v7480_v11 }
  0xaf   : > { %1087 = vmatpush.bf16.xpose.msra.mxu2 %v7484_v12  ;;  %1100 = vmatpush.bf16.xpose.msra.mxu3 %v7488_v15  ;;  %v363_v15 = vld [vmem:[%s10865_s24 + $0x220] sm:$0x11] }
  0xb2   : > { %v868_v43 = vpop.f32.mrf.mxu1 }
  0xb5   : > { %1062 = vmatmul.bf16.vlgmr.msra.gmra.mxu0 %v10798_v31  ;;  %1075 = vmatmul.bf16.vlgmr.msra.gmra.mxu1 %v10802_v36  ;;  %v838_v31 = vsel %vm831_vm0, %v7584_v34, 0  ;;  %v7491_v36 = vld [vmem:[%s10660_s17 + $0x50] sm:$0xf] }
  0xb6   : > { %1110 = vmatpush.bf16.xpose.msrb.mxu0 %v745_v13  ;;  %1123 = vmatpush.bf16.xpose.msrb.mxu1 %v844_v14  ;;  %v7492_v41 = vor.u32 %v10098_v39, %v7491_v36  ;;  %v361_v14 = vld [vmem:[%s10865_s24 + $0x210] sm:$0x11]  ;;  %v10187_v36 = vld [vmem:[%s10865_s24 + $0x164] sm:$0xf] }
  0xb7   : > { %1088 = vmatmul.bf16.vlgmr.msra.gmra.mxu2 %v10800_v32  ;;  %1101 = vmatmul.bf16.vlgmr.msra.gmra.mxu3 %v10804_v37  ;;  %v7493_v32 = vld [vmem:[%s10660_s17 + $0xa8] sm:$0xf0]  ;;  %v855_v37 = vpop.f32.mrf.mxu0  ;;  %v1343_v16 = vunpack.c.l.b16 %v361_v14  ;;  %v1344_v17 = vunpack.c.h.b16 %v361_v14  ;;  %v7678_v14 = vld [vmem:[%s10865_s24 + $0x58] sm:$0xf0] }
  0xb8   : > { %v7496_v40 = vor.u32 %v10087_v38, %v7493_v32  ;;  %v869_v44 = vadd.f32 %v868_v43, %v855_v37  ;;  %v7852_v38 = vld [vmem:[%s10865_s24 + $0x160] sm:$0xf]  ;;  %v10198_v32 = vld [vmem:[%s10865_s24 + $0x1b4] sm:$0xf0] }
  0xb9   : > { %v1431_v23 = vpack.c.b16 %v1343_v16, %v1343_v16  ;;  %v1432_v24 = vpack.c.b16 %v1344_v17, %v1344_v17  ;;  %v7853_v39 = vor.u32 %v10198_v32, %v7852_v38  ;;  %v10156_v16 = vld [vmem:[%s10865_s24 + $0x64] sm:$0xf0] }
  0xba   : > { %v835_v42 = vsel %vm831_vm0, %v7496_v40, 0  ;;  %v870_v49 = vpop.f32.mrf.mxu1  ;;  %v7854_v40 = vld [vmem:[%s10865_s24 + $0x1b8] sm:$0xf0] }
  0xbb   : > { %v881_v45 = vpop.f32.mrf.mxu2  ;;  %v894_v50 = vpop.f32.mrf.mxu3  ;;  %v1525_v30 = vsel %vm1523_vm1, %v1431_v23, 0  ;;  %v1528_v34 = vsel %vm1523_vm1, %v1432_v24, 0  ;;  %v7857_v37 = vor.u32 %v10187_v36, %v7854_v40  ;;  %v7694_v23 = vld [vmem:[%s10865_s24 + $0x68] sm:$0xf0]  ;;  %v10199_v40 = vld [vmem:[%s10865_s24 + $0x1bc] sm:$0xf0] }
  0xbc   : > { %v882_v47 = vadd.f32 %v881_v45, %v869_v44  ;;  %1594 = vmatpush.bf16.msrb.mxu2 %v1525_v30  ;;  %1607 = vmatpush.bf16.msrb.mxu3 %v1528_v34  ;;  %v10189_v44 = vld [vmem:[%s10865_s24 + $0x174] sm:$0xf]  ;;  %v7870_v45 = vld [vmem:[%s10865_s24 + $0x1c8] sm:$0xf0] }
  0xbe   : > { %1111 = vmatpush.bf16.xpose.msrb.mxu0 %v7668_v25  ;;  %1124 = vmatpush.bf16.xpose.msrb.mxu1 %v841_v26  ;;  %v895_v51 = vadd.f32 %v894_v50, %v882_v47  ;;  %v7873_v47 = vor.u32 %v10189_v44, %v7870_v45  ;;  %v7884_v44 = vld [vmem:[%s10865_s24 + $0x180] sm:$0xf] }
  0xbf   : > { %v857_v48 = vpop.f32.mrf.mxu0 }
  0xc0   : > { %1595 = vmatpush.bf16.msrb.mxu2 %v7853_v39  ;;  %1608 = vmatpush.bf16.msrb.mxu3 %v7857_v37  ;;  %v7860_v39 = vld [vmem:[%s10865_s24 + $0x168] sm:$0xf] }
  0xc3   : > { %v883_v52 = vpop.f32.mrf.mxu2  ;;  %v896_v53 = vpop.f32.mrf.mxu3 }
  0xc4   : > { %v10176_v52 = vld [vmem:[%s10865_s24 + $0x104] sm:$0xf0]  ;;  %v10165_v53 = vld [vmem:[%s10865_s24 + $0xb4] sm:$0xf] }
  0xc6   : > { %1112 = vmatpush.bf16.xpose.msrb.mxu0 %v7580_v35  ;;  %1125 = vmatpush.bf16.xpose.msrb.mxu1 %v838_v31 }
  0xce   : > { %1113 = vmatpush.bf16.xpose.msrb.mxu0 %v7492_v41  ;;  %1126 = vmatpush.bf16.xpose.msrb.mxu1 %v835_v42  ;;  %v7868_v41 = vld [vmem:[%s10865_s24 + $0x170] sm:$0xf]  ;;  %v10200_v42 = vld [vmem:[%s10865_s24 + $0x1c4] sm:$0xf0] }
  0xcf   : > { %v7869_v43 = vor.u32 %v10200_v42, %v7868_v41  ;;  %v10188_v41 = vld [vmem:[%s10865_s24 + $0x16c] sm:$0xf] }
  0xd2   : > { %v907_v54 = vpop.f32.mrf.mxu0  ;;  %v920_v56 = vpop.f32.mrf.mxu1 }
  0xd3   : > { %v908_v55 = vadd.f32 %v907_v54, %v895_v51  ;;  %v7764_v51 = vld [vmem:[%s10865_s24 + $0xb0] sm:$0xf] }
  0xd5   : > { %1114 = vmatmul.bf16.vlgmr.msrb.gmra.mxu0 %v405_v18  ;;  %7673 = vmatmul.msk.bf16.vlgmr.msrb.gmra.mxu1 %vm831_vm0, %v406_v19  ;;  %v921_v57 = vadd.f32 %v920_v56, %v908_v55  ;;  %v1347_v18 = vunpack.c.l.b16 %v363_v15  ;;  %v1348_v19 = vunpack.c.h.b16 %v363_v15  ;;  %v7765_v55 = vor.u32 %v10176_v52, %v7764_v51  ;;  %v7766_v56 = vld [vmem:[%s10865_s24 + $0x108] sm:$0xf0]  ;;  %v7692_v15 = vld [vmem:[%s10865_s24 + $0x10] sm:$0xf] }
  0xd7   : > { %v1435_v25 = vpack.c.b16 %v1347_v18, %v1347_v18  ;;  %v1436_v26 = vpack.c.b16 %v1348_v19, %v1348_v19  ;;  %1596 = vmatpush.bf16.msrb.mxu2 %v7765_v55  ;;  %v7693_v18 = vor.u32 %v10156_v16, %v7692_v15  ;;  %v10145_v19 = vld [vmem:[%s10865_s24 + $0x14] sm:$0xf]  ;;  %v10177_v55 = vld [vmem:[%s10865_s24 + $0x10c] sm:$0xf0]  ;;  %v10158_v16 = vld [vmem:[%s10865_s24 + $0x74] sm:$0xf0] }
  0xd8   : > { %v7697_v30 = vor.u32 %v10145_v19, %v7694_v23  ;;  %v7710_v19 = vld [vmem:[%s10865_s24 + $0x78] sm:$0xf0] }
  0xd9   : > { %v1537_v35 = vsel %vm1523_vm1, %v1435_v25, 0  ;;  %v1540_v31 = vsel %vm1523_vm1, %v1436_v26, 0  ;;  %v365_v26 = vld [vmem:[%s10865_s24 + $0x230] sm:$0x11] }
  0xda   : > { %v909_v60 = vpop.f32.mrf.mxu0  ;;  %v922_v62 = vpop.f32.mrf.mxu1  ;;  %1646 = vmatpush.bf16.msra.mxu0 %v1537_v35  ;;  %1659 = vmatpush.bf16.msra.mxu1 %v1540_v31  ;;  %v1351_v34 = vunpack.c.l.b16 %v365_v26  ;;  %v1352_v35 = vunpack.c.h.b16 %v365_v26 }
  0xdb   : > { %v933_v58 = vpop.f32.mrf.mxu2  ;;  %v946_v61 = vpop.f32.mrf.mxu3  ;;  %v7782_v62 = vld [vmem:[%s10865_s24 + $0x118] sm:$0xf0] }
  0xdc   : > { %v934_v59 = vadd.f32 %v933_v58, %v921_v57  ;;  %v7780_v57 = vld [vmem:[%s10865_s24 + $0xc0] sm:$0xf]  ;;  %v10178_v58 = vld [vmem:[%s10865_s24 + $0x114] sm:$0xf0]  ;;  %v1440_v36 = vpack.c.b16 %v1352_v35, %v1352_v35 }
  0xdd   : > { %v7781_v60 = vor.u32 %v10178_v58, %v7780_v57 }
  0xde   : > { %v947_v63 = vadd.f32 %v946_v61, %v934_v59  ;;  %1647 = vmatpush.bf16.msra.mxu0 %v7869_v43  ;;  %1660 = vmatpush.bf16.msra.mxu1 %v7873_v47  ;;  %v7769_v59 = vor.u32 %v10165_v53, %v7766_v56  ;;  %v10167_v61 = vld [vmem:[%s10865_s24 + $0xc4] sm:$0xf]  ;;  %v1552_v37 = vsel %vm1523_vm1, %v1440_v36, 0  ;;  %v7861_v43 = vor.u32 %v10199_v40, %v7860_v39  ;;  %v10202_v47 = vld [vmem:[%s10865_s24 + $0x1d4] sm:$0xf0] }
  0xdf   : > { %v7885_v52 = vor.u32 %v10202_v47, %v7884_v44  ;;  %v10166_v56 = vld [vmem:[%s10865_s24 + $0xbc] sm:$0xf] }
  0xe0   : > { %1609 = vmatpush.bf16.msrb.mxu3 %v7769_v59  ;;  %v7774_v59 = vld [vmem:[%s10865_s24 + $0x110] sm:$0xf0] }
  0xe2   : > { %1648 = vmatpush.bf16.msra.mxu0 %v7781_v60  ;;  %v7796_v60 = vld [vmem:[%s10865_s24 + $0xd0] sm:$0xf] }
  0xe3   : > { %v935_v0 = vpop.f32.mrf.mxu2  ;;  %v948_v1 = vpop.f32.mrf.mxu3 }
  0xe4   : > { %v7785_v0 = vor.u32 %v10167_v61, %v7782_v62  ;;  %v362_v1 = vld [vmem:[%s10865_s24 + $0x218] sm:$0x11]  ;;  %v10180_v61 = vld [vmem:[%s10865_s24 + $0x124] sm:$0xf0] }
  0xe6   : > { %1661 = vmatpush.bf16.msra.mxu1 %v7785_v0  ;;  %1649 = vmatpush.bf16.msra.mxu0 %v7693_v18  ;;  %v7777_v0 = vor.u32 %v10166_v56, %v7774_v59  ;;  %v10147_v18 = vld [vmem:[%s10865_s24 + $0x24] sm:$0xf]  ;;  %v7900_v56 = vld [vmem:[%s10865_s24 + $0x190] sm:$0xf]  ;;  %v10193_v59 = vld [vmem:[%s10865_s24 + $0x194] sm:$0xf] }
  0xea   : > { %1662 = vmatpush.bf16.msra.mxu1 %v7697_v30 }
  0xee   : > { %1711 = vmatpush.bf16.msrb.mxu1 %v1552_v37 }
  0xf2   : > { %v959_v3 = vpop.f32.mrf.mxu0  ;;  %v972_v4 = vpop.f32.mrf.mxu1 }
  0xf3   : > { %v960_v49 = vadd.f32 %v959_v3, %v947_v63  ;;  %v7676_v3 = vld [vmem:[%s10865_s24] sm:$0xf] }
  0xf5   : > { %v973_v54 = vadd.f32 %v972_v4, %v960_v49  ;;  %v10154_v4 = vld [vmem:[%s10865_s24 + $0x54] sm:$0xf0]  ;;  %v7886_v49 = vld [vmem:[%s10865_s24 + $0x1d8] sm:$0xf0] }
  0xfa   : > { %v961_v7 = vpop.f32.mrf.mxu0  ;;  %v974_v9 = vpop.f32.mrf.mxu1 }
  0xfb   : > { %v10854_v5 = vpop.f32.mrf.mxu2  ;;  %v10856_v8 = vpop.f32.mrf.mxu3  ;;  %v10143_v7 = vld [vmem:[%s10865_s24 + $0x4] sm:$0xf]  ;;  %v1345_v9 = vunpack.c.l.b16 %v362_v1 }
  0xfc   : > { %v986_v63 = vadd.f32 %v10854_v5, %v973_v54  ;;  %v7681_v5 = vor.u32 %v10143_v7, %v7678_v14  ;;  %v7772_v54 = vld [vmem:[%s10865_s24 + $0xb8] sm:$0xf]  ;;  %v7797_v7 = vor.u32 %v10180_v61, %v7796_v60  ;;  %v7686_v14 = vld [vmem:[%s10865_s24 + $0x60] sm:$0xf0]  ;;  %v7902_v60 = vld [vmem:[%s10865_s24 + $0x1e8] sm:$0xf0] }
  0xfd   : > { %v1433_v24 = vpack.c.b16 %v1345_v9, %v1345_v9  ;;  %v7773_v58 = vor.u32 %v10177_v55, %v7772_v54  ;;  %v7788_v61 = vld [vmem:[%s10865_s24 + $0xc8] sm:$0xf] }
  0xfe   : > { %1610 = vmatpush.bf16.msrb.mxu3 %v7681_v5 }
  0xff   : > { %v1531_v31 = vsel %vm1523_vm1, %v1433_v24, 0 }
 0x103   : > { %v987_v10 = vpop.f32.mrf.mxu2  ;;  %v1000_v11 = vpop.f32.mrf.mxu3 }
 0x104   : > { %v1346_v10 = vunpack.c.h.b16 %v362_v1  ;;  %v7677_v11 = vor.u32 %v10154_v4, %v7676_v3  ;;  %v10169_v1 = vld [vmem:[%s10865_s24 + $0xd4] sm:$0xf]  ;;  %v7798_v3 = vld [vmem:[%s10865_s24 + $0x128] sm:$0xf0]  ;;  %v7684_v4 = vld [vmem:[%s10865_s24 + $0x8] sm:$0xf] }
 0x105   : > { %v7801_v9 = vor.u32 %v10169_v1, %v7798_v3  ;;  %v7790_v1 = vld [vmem:[%s10865_s24 + $0x120] sm:$0xf0] }
 0x106   : > { %v1434_v25 = vpack.c.b16 %v1346_v10, %v1346_v10  ;;  %1597 = vmatpush.bf16.msrb.mxu2 %v7677_v11  ;;  %v10155_v10 = vld [vmem:[%s10865_s24 + $0x5c] sm:$0xf0]  ;;  %v10144_v11 = vld [vmem:[%s10865_s24 + $0xc] sm:$0xf] }
 0x107   : > { %v7685_v15 = vor.u32 %v10155_v10, %v7684_v4  ;;  %v7689_v5 = vor.u32 %v10144_v11, %v7686_v14  ;;  %v7905_v4 = vor.u32 %v10193_v59, %v7902_v60  ;;  %v10182_v10 = vld [vmem:[%s10865_s24 + $0x134] sm:$0xf0]  ;;  %v10171_v11 = vld [vmem:[%s10865_s24 + $0xe4] sm:$0xf]  ;;  %v7814_v14 = vld [vmem:[%s10865_s24 + $0x138] sm:$0xf0] }
 0x108   : > { %v1534_v38 = vsel %vm1523_vm1, %v1434_v25, 0  ;;  %v7713_v25 = vor.u32 %v10147_v18, %v7710_v19  ;;  %v10157_v18 = vld [vmem:[%s10865_s24 + $0x6c] sm:$0xf0]  ;;  %v10146_v19 = vld [vmem:[%s10865_s24 + $0x1c] sm:$0xf] }
 0x109   : > { %1633 = vmatpush.bf16.msra.mxu3 %v1534_v38  ;;  %v367_v38 = vld [vmem:[%s10865_s24 + $0x240] sm:$0x11]  ;;  %v7806_v59 = vld [vmem:[%s10865_s24 + $0x130] sm:$0xf0] }
 0x10a   : > { %1620 = vmatpush.bf16.msra.mxu2 %v1531_v31  ;;  %v364_v31 = vld [vmem:[%s10865_s24 + $0x228] sm:$0x11]  ;;  %v1355_v39 = vunpack.c.l.b16 %v367_v38 }
 0x10e   : > { %1621 = vmatpush.bf16.msra.mxu2 %v7861_v43 }
 0x112   : > { %v10858_v12 = vpop.f32.mrf.mxu0  ;;  %v10867_v13 = vpop.f32.mrf.mxu1  ;;  %1622 = vmatpush.bf16.msra.mxu2 %v7773_v58  ;;  %v10204_v58 = vld [vmem:[%s10865_s24 + $0x1e4] sm:$0xf0] }
 0x113   : > { %v7901_v3 = vor.u32 %v10204_v58, %v7900_v56  ;;  %v10170_v58 = vld [vmem:[%s10865_s24 + $0xdc] sm:$0xf] }
 0x116   : > { %1623 = vmatpush.bf16.msra.mxu2 %v7685_v15  ;;  %v369_v15 = vld [vmem:[%s10865_s24 + $0x250] sm:$0x11] }
 0x11a   : > { %v1013_v27 = vpop.f32.mrf.mxu0  ;;  %v1026_v29 = vpop.f32.mrf.mxu1 }
 0x11b   : > { %v10871_v20 = vpop.f32.mrf.mxu2  ;;  %v10873_v28 = vpop.f32.mrf.mxu3  ;;  %v999_v27 = vadd.f32 %v10856_v8, %v986_v63  ;;  %v1439_v8 = vpack.c.b16 %v1351_v34, %v1351_v34 }
 0x11d   : > { %v1012_v32 = vadd.f32 %v10858_v12, %v999_v27  ;;  %v1549_v42 = vsel %vm1523_vm1, %v1439_v8, 0  ;;  %v7862_v12 = vld [vmem:[%s10865_s24 + $0x1c0] sm:$0xf0]  ;;  %v1350_v8 = vunpack.c.h.b16 %v364_v31 }
 0x11e   : > { %1698 = vmatpush.bf16.msrb.mxu0 %v1549_v42  ;;  %v7865_v45 = vor.u32 %v10188_v41, %v7862_v12 }
 0x11f   : > { %v1438_v37 = vpack.c.b16 %v1350_v8, %v1350_v8 }
 0x120   : > { %1634 = vmatpush.bf16.msra.mxu3 %v7865_v45 }
 0x121   : > { %v1546_v47 = vsel %vm1523_vm1, %v1438_v37, 0  ;;  %v7892_v37 = vld [vmem:[%s10865_s24 + $0x188] sm:$0xf] }
 0x122   : > { %1699 = vmatpush.bf16.msrb.mxu0 %v7885_v52 }
 0x123   : > { %v1039_v48 = vpop.f32.mrf.mxu2  ;;  %v1052_v50 = vpop.f32.mrf.mxu3 }
 0x124   : > { %v10191_v48 = vld [vmem:[%s10865_s24 + $0x184] sm:$0xf]  ;;  %v1025_v50 = vadd.f32 %v10867_v13, %v1012_v32  ;;  %1635 = vmatpush.bf16.msra.mxu3 %v7777_v0  ;;  %v1349_v32 = vunpack.c.l.b16 %v364_v31  ;;  %v10168_v0 = vld [vmem:[%s10865_s24 + $0xcc] sm:$0xf]  ;;  %v1360_v31 = vunpack.c.h.b16 %v369_v15 }
 0x125   : > { %v7889_v53 = vor.u32 %v10191_v48, %v7886_v49  ;;  %v7876_v49 = vld [vmem:[%s10865_s24 + $0x178] sm:$0xf] }
 0x126   : > { %v1038_v13 = vadd.f32 %v10871_v20, %v1025_v50  ;;  %v7708_v20 = vld [vmem:[%s10865_s24 + $0x20] sm:$0xf]  ;;  %1700 = vmatpush.bf16.msrb.mxu0 %v7797_v7  ;;  %v1437_v42 = vpack.c.b16 %v1349_v32, %v1349_v32  ;;  %v10201_v50 = vld [vmem:[%s10865_s24 + $0x1cc] sm:$0xf0]  ;;  %v366_v7 = vld [vmem:[%s10865_s24 + $0x238] sm:$0x11] }
 0x127   : > { %1712 = vmatpush.bf16.msrb.mxu1 %v7889_v53  ;;  %v7709_v24 = vor.u32 %v10158_v16, %v7708_v20  ;;  %v7878_v53 = vld [vmem:[%s10865_s24 + $0x1d0] sm:$0xf0]  ;;  %v7700_v20 = vld [vmem:[%s10865_s24 + $0x18] sm:$0xf]  ;;  %v7726_v32 = vld [vmem:[%s10865_s24 + $0x88] sm:$0xf0] }
 0x128   : > { %v1051_v23 = vadd.f32 %v10873_v28, %v1038_v13  ;;  %1636 = vmatpush.bf16.msra.mxu3 %v7689_v5  ;;  %v1543_v45 = vsel %vm1523_vm1, %v1437_v42, 0  ;;  %v7877_v13 = vor.u32 %v10201_v50, %v7876_v49  ;;  %v7793_v5 = vor.u32 %v10168_v0, %v7790_v1  ;;  %v7916_v50 = vld [vmem:[%s10865_s24 + $0x1a0] sm:$0xf]  ;;  %v10173_v0 = vld [vmem:[%s10865_s24 + $0xf4] sm:$0xf] }
 0x129   : > { %v7701_v8 = vor.u32 %v10157_v18, %v7700_v20  ;;  %v1448_v42 = vpack.c.b16 %v1360_v31, %v1360_v31  ;;  %v7830_v1 = vld [vmem:[%s10865_s24 + $0x148] sm:$0xf0]  ;;  %v7740_v18 = vld [vmem:[%s10865_s24 + $0x40] sm:$0xf] }
 0x12a   : > { %1701 = vmatpush.bf16.msrb.mxu0 %v7709_v24  ;;  %v1353_v24 = vunpack.c.l.b16 %v366_v7 }
 0x12b   : > { %1713 = vmatpush.bf16.msrb.mxu1 %v7801_v9  ;;  %v7812_v9 = vld [vmem:[%s10865_s24 + $0xe0] sm:$0xf]  ;;  %v1576_v49 = vsel %vm1523_vm1, %v1448_v42, 0 }
 0x12f   : > { %1714 = vmatpush.bf16.msrb.mxu1 %v7713_v25  ;;  %v1354_v25 = vunpack.c.h.b16 %v366_v7 }
 0x132   : > { %v10903_v17 = vpop.f32.mrf.mxu0  ;;  %v10909_v29 = vpop.f32.mrf.mxu1 }
 0x133   : > { %v1064_v26 = vadd.f32 %v10903_v17, %v1051_v23  ;;  %v1356_v17 = vunpack.c.h.b16 %v367_v38  ;;  %v7702_v23 = vld [vmem:[%s10865_s24 + $0x70] sm:$0xf0] }
 0x134   : > { %v10149_v38 = vld [vmem:[%s10865_s24 + $0x34] sm:$0xf] }
 0x135   : > { %v1077_v34 = vadd.f32 %v10909_v29, %v1064_v26  ;;  %v1443_v29 = vpack.c.b16 %v1355_v39, %v1355_v39  ;;  %v1444_v12 = vpack.c.b16 %v1356_v17, %v1356_v17  ;;  %v7813_v26 = vor.u32 %v10182_v10, %v7812_v9  ;;  %v10159_v10 = vld [vmem:[%s10865_s24 + $0x7c] sm:$0xf0] }
 0x136   : > { %v1442_v39 = vpack.c.b16 %v1354_v25, %v1354_v25  ;;  %v7809_v9 = vor.u32 %v10170_v58, %v7806_v59  ;;  %v10151_v25 = vld [vmem:[%s10865_s24 + $0x44] sm:$0xf]  ;;  %v7846_v59 = vld [vmem:[%s10865_s24 + $0x158] sm:$0xf0] }
 0x137   : > { %v1561_v54 = vsel %vm1523_vm1, %v1443_v29, 0  ;;  %v1564_v55 = vsel %vm1523_vm1, %v1444_v12, 0  ;;  %v10192_v29 = vld [vmem:[%s10865_s24 + $0x18c] sm:$0xf]  ;;  %v7894_v12 = vld [vmem:[%s10865_s24 + $0x1e0] sm:$0xf0] }
 0x138   : > { %v7897_v56 = vor.u32 %v10192_v29, %v7894_v12  ;;  %v10208_v29 = vld [vmem:[%s10865_s24 + $0x204] sm:$0xf0]  ;;  %v10197_v12 = vld [vmem:[%s10865_s24 + $0x1b4] sm:$0xf]  ;;  %v10175_v58 = vld [vmem:[%s10865_s24 + $0x104] sm:$0xf] }
 0x13a   : > { %v1089_v51 = vpop.f32.mrf.mxu2  ;;  %v1065_v57 = vpop.f32.mrf.mxu0 }
 0x13b   : > { %v1102_v62 = vpop.f32.mrf.mxu3  ;;  %v1078_v63 = vpop.f32.mrf.mxu1  ;;  %v1090_v35 = vadd.f32 %v1089_v51, %v1077_v34  ;;  %v10190_v51 = vld [vmem:[%s10865_s24 + $0x17c] sm:$0xf]  ;;  %v10160_v34 = vld [vmem:[%s10865_s24 + $0x84] sm:$0xf0] }
 0x13c   : > { %v10179_v63 = vld [vmem:[%s10865_s24 + $0x11c] sm:$0xf0] }
 0x13d   : > { %v1103_v28 = vadd.f32 %v1102_v62, %v1090_v35  ;;  %v7881_v62 = vor.u32 %v10190_v51, %v7878_v53  ;;  %v7789_v16 = vor.u32 %v10179_v63, %v7788_v61  ;;  %v1359_v35 = vunpack.c.l.b16 %v369_v15  ;;  %v10206_v51 = vld [vmem:[%s10865_s24 + $0x1f4] sm:$0xf0]  ;;  %v7918_v53 = vld [vmem:[%s10865_s24 + $0x1f8] sm:$0xf0]  ;;  %v10184_v63 = vld [vmem:[%s10865_s24 + $0x144] sm:$0xf0] }
 0x13e   : > { %v7917_v60 = vor.u32 %v10206_v51, %v7916_v50  ;;  %v10183_v50 = vld [vmem:[%s10865_s24 + $0x13c] sm:$0xf0]  ;;  %v10172_v51 = vld [vmem:[%s10865_s24 + $0xec] sm:$0xf] }
 0x142   : > { %v1091_v27 = vpop.f32.mrf.mxu2 }
 0x143   : > { %v1104_v30 = vpop.f32.mrf.mxu3  ;;  %v7817_v27 = vor.u32 %v10171_v11, %v7814_v14  ;;  %v10148_v11 = vld [vmem:[%s10865_s24 + $0x2c] sm:$0xf]  ;;  %v7718_v14 = vld [vmem:[%s10865_s24 + $0x80] sm:$0xf0] }
 0x144   : > { %v7724_v30 = vld [vmem:[%s10865_s24 + $0x30] sm:$0xf] }
 0x145   : > { %v7725_v17 = vor.u32 %v10160_v34, %v7724_v30  ;;  %v7721_v30 = vor.u32 %v10148_v11, %v7718_v14  ;;  %v10153_v11 = vld [vmem:[%s10865_s24 + $0x54] sm:$0xf]  ;;  %v7758_v14 = vld [vmem:[%s10865_s24 + $0xa8] sm:$0xf0] }
 0x152   : > { %v1115_v36 = vpop.f32.mrf.mxu0  ;;  %v1128_v41 = vpop.f32.mrf.mxu1 }
 0x153   : > { %v1116_v40 = vadd.f32 %v1115_v36, %v1103_v28  ;;  %v7705_v28 = vor.u32 %v10146_v19, %v7702_v23  ;;  %v1441_v36 = vpack.c.b16 %v1353_v24, %v1353_v24  ;;  %v10162_v19 = vld [vmem:[%s10865_s24 + $0x94] sm:$0xf0] }
 0x154   : > { %v7741_v31 = vor.u32 %v10162_v19, %v7740_v18 }
 0x155   : > { %v1129_v43 = vadd.f32 %v1128_v41, %v1116_v40  ;;  %v7729_v40 = vor.u32 %v10149_v38, %v7726_v32  ;;  %v1447_v41 = vpack.c.b16 %v1359_v35, %v1359_v35 }
 0x157   : > { %v1132_v44 = vmul.f32 0.25, %v1129_v43  ;;  %v10203_v43 = vld [vmem:[%s10865_s24 + $0x1dc] sm:$0xf0] }
 0x159   : > { %v10949_v48 = vpack.c.bf16 %v1132_v44, %v1132_v44  ;;  %v1555_v44 = vsel %vm1523_vm1, %v1441_v36, 0  ;;  %v10205_v36 = vld [vmem:[%s10865_s24 + $0x1ec] sm:$0xf0] }
 0x15a   : > { %v1117_v52 = vpop.f32.mrf.mxu0  ;;  %v1130_v57 = vpop.f32.mrf.mxu1 }
 0x15b   : > { %7938 = vmatmul.msk.bf16.vlgmr.msrb.gmra.mxu2 %vm1519_vm2, %v10949_v48  ;;  %7939 = vmatmul.msk.bf16.vlgmr.msrb.gmra.mxu3 %vm1519_vm2, %v10949_v48  ;;  %v10195_v52 = vld [vmem:[%s10865_s24 + $0x1a4] sm:$0xf]  ;;  %v10181_v57 = vld [vmem:[%s10865_s24 + $0x12c] sm:$0xf0] }
 0x15c   : > { %7942 = vmatmul.msk.bf16.vlgmr.msra.gmra.mxu0 %vm1519_vm2, %v10949_v48  ;;  %7943 = vmatmul.msk.bf16.vlgmr.msra.gmra.mxu1 %vm1519_vm2, %v10949_v48  ;;  %v7921_v61 = vor.u32 %v10195_v52, %v7918_v53  ;;  %v7822_v52 = vld [vmem:[%s10865_s24 + $0x140] sm:$0xf0]  ;;  %v370_v53 = vld [vmem:[%s10865_s24 + $0x258] sm:$0x11] }
 0x15d   : > { %1672 = vmatpush.bf16.msrb.mxu2 %v1543_v45  ;;  %1685 = vmatpush.bf16.msrb.mxu3 %v1546_v47  ;;  %v1558_v45 = vsel %vm1523_vm1, %v1442_v39, 0  ;;  %v1573_v47 = vsel %vm1523_vm1, %v1447_v41, 0  ;;  %v10194_v39 = vld [vmem:[%s10865_s24 + $0x19c] sm:$0xf] }
 0x15e   : > { %1750 = vmatpush.bf16.msra.mxu0 %v1561_v54  ;;  %1763 = vmatpush.bf16.msra.mxu1 %v1564_v55  ;;  %v7804_v54 = vld [vmem:[%s10865_s24 + $0xd8] sm:$0xf]  ;;  %v7893_v55 = vor.u32 %v10203_v43, %v7892_v37  ;;  %v7932_v43 = vld [vmem:[%s10865_s24 + $0x1b0] sm:$0xf] }
 0x15f   : > { %v7805_v7 = vor.u32 %v10181_v57, %v7804_v54  ;;  %v7933_v54 = vor.u32 %v10208_v29, %v7932_v43  ;;  %v10186_v57 = vld [vmem:[%s10865_s24 + $0x154] sm:$0xf0]  ;;  %v8302_v43 = vld [vmem:[%s10660_s17 + $0x428] sm:$0xf0] }
 0x161   : > { %1673 = vmatpush.bf16.msrb.mxu2 %v7877_v13  ;;  %1686 = vmatpush.bf16.msrb.mxu3 %v7881_v62  ;;  %v368_v13 = vld [vmem:[%s10865_s24 + $0x248] sm:$0x11]  ;;  %v7828_v62 = vld [vmem:[%s10865_s24 + $0xf0] sm:$0xf] }
 0x162   : > { %1751 = vmatpush.bf16.msra.mxu0 %v7901_v3  ;;  %1764 = vmatpush.bf16.msra.mxu1 %v7905_v4  ;;  %v371_v3 = vld [vmem:[%s10865_s24 + $0x260] sm:$0x11]  ;;  %v7716_v4 = vld [vmem:[%s10865_s24 + $0x28] sm:$0xf]  ;;  %v1357_v15 = vunpack.c.l.b16 %v368_v13  ;;  %v1358_v20 = vunpack.c.h.b16 %v368_v13  ;;  %v7732_v13 = vld [vmem:[%s10865_s24 + $0x38] sm:$0xf] }
 0x163   : > { %v1363_v23 = vunpack.c.l.b16 %v371_v3  ;;  %v1364_v24 = vunpack.c.h.b16 %v371_v3  ;;  %v7734_v3 = vld [vmem:[%s10865_s24 + $0x90] sm:$0xf0] }
 0x164   : > { %v1445_v34 = vpack.c.b16 %v1357_v15, %v1357_v15  ;;  %v1446_v35 = vpack.c.b16 %v1358_v20, %v1358_v20  ;;  %v8027_v15 = vld [vmem:[%s10660_s17 + $0x480] sm:$0x11] }
 0x165   : > { %1674 = vmatpush.bf16.msrb.mxu2 %v7789_v16  ;;  %1687 = vmatpush.bf16.msrb.mxu3 %v7793_v5  ;;  %v7829_v16 = vor.u32 %v10184_v63, %v7828_v62  ;;  %v7833_v5 = vor.u32 %v10173_v0, %v7830_v1  ;;  %v1451_v32 = vpack.c.b16 %v1363_v23, %v1363_v23  ;;  %v10161_v62 = vld [vmem:[%s10865_s24 + $0x8c] sm:$0xf0]  ;;  %v10150_v63 = vld [vmem:[%s10865_s24 + $0x3c] sm:$0xf]  ;;  %v1361_v0 = vunpack.c.l.b16 %v370_v53 }
 0x166   : > { %1752 = vmatpush.bf16.msra.mxu0 %v7813_v26  ;;  %1765 = vmatpush.bf16.msra.mxu1 %v7817_v27  ;;  %v7742_v26 = vld [vmem:[%s10865_s24 + $0x98] sm:$0xf0]  ;;  %v7717_v27 = vor.u32 %v10159_v10, %v7716_v4  ;;  %v1570_v41 = vsel %vm1523_vm1, %v1446_v35, 0  ;;  %v1362_v1 = vunpack.c.h.b16 %v370_v53  ;;  %v10164_v10 = vld [vmem:[%s10865_s24 + $0xa4] sm:$0xf0]  ;;  %v7733_v20 = vor.u32 %v10161_v62, %v7732_v13 }
 0x167   : > { %v7745_v38 = vor.u32 %v10151_v25, %v7742_v26  ;;  %v1585_v42 = vsel %vm1523_vm1, %v1451_v32, 0  ;;  %v7761_v23 = vor.u32 %v10153_v11, %v7758_v14  ;;  %v2338_v25 = vunpack.c.h.b16 %v8027_v15  ;;  %v10196_v35 = vld [vmem:[%s10865_s24 + $0x1ac] sm:$0xf]  ;;  %v10210_v14 = vld [vmem:[%s10660_s17 + $0x274] sm:$0xf] }
 0x168   : > { %v1450_v18 = vpack.c.b16 %v1362_v1, %v1362_v1  ;;  %v8292_v1 = vld [vmem:[%s10660_s17 + $0x3c8] sm:$0xf] }
 0x169   : > { %1675 = vmatpush.bf16.msrb.mxu2 %v7701_v8  ;;  %1688 = vmatpush.bf16.msrb.mxu3 %v7705_v28  ;;  %v1452_v8 = vpack.c.b16 %v1364_v24, %v1364_v24  ;;  %v7908_v28 = vld [vmem:[%s10865_s24 + $0x198] sm:$0xf]  ;;  %v2337_v24 = vunpack.c.l.b16 %v8027_v15  ;;  %v2426_v32 = vpack.c.b16 %v2338_v25, %v2338_v25  ;;  %v8126_v15 = vld [vmem:[%s10660_s17 + $0x2c8] sm:$0xf0] }
 0x16a   : > { %1753 = vmatpush.bf16.msra.mxu0 %v7725_v17  ;;  %1766 = vmatpush.bf16.msra.mxu1 %v7729_v40  ;;  %v7910_v17 = vld [vmem:[%s10865_s24 + $0x1f0] sm:$0xf0]  ;;  %v1567_v40 = vsel %vm1523_vm1, %v1445_v34, 0  ;;  %v10207_v34 = vld [vmem:[%s10865_s24 + $0x1fc] sm:$0xf0] }
 0x16b   : > { %7940 = vmatmul.msk.bf16.vlgmr.msra.gmra.mxu2 %vm1519_vm2, %v10949_v48  ;;  %7941 = vmatmul.msk.bf16.vlgmr.msra.gmra.mxu3 %vm1519_vm2, %v10949_v48  ;;  %v1588_v37 = vsel %vm1523_vm1, %v1452_v8, 0  ;;  %v8204_v25 = vld [vmem:[%s10660_s17 + $0x318] sm:$0xf] }
 0x16c   : > { %7946 = vmatmul.msk.bf16.vlgmr.msrb.gmra.mxu0 %vm1519_vm2, %v10949_v48  ;;  %7947 = vmatmul.msk.bf16.vlgmr.msrb.gmra.mxu1 %vm1519_vm2, %v10949_v48 }
 0x16d   : > { %1724 = vmatpush.bf16.msra.mxu2 %v1555_v44  ;;  %1737 = vmatpush.bf16.msra.mxu3 %v1558_v45  ;;  %v7934_v44 = vld [vmem:[%s10865_s24 + $0x208] sm:$0xf0]  ;;  %v7909_v45 = vor.u32 %v10205_v36, %v7908_v28  ;;  %v7836_v36 = vld [vmem:[%s10865_s24 + $0xf8] sm:$0xf] }
 0x16e   : > { %1802 = vmatpush.bf16.msrb.mxu0 %v1573_v47  ;;  %1815 = vmatpush.bf16.msrb.mxu1 %v1576_v49  ;;  %v7913_v47 = vor.u32 %v10194_v39, %v7910_v17  ;;  %v7820_v49 = vld [vmem:[%s10865_s24 + $0xe8] sm:$0xf]  ;;  %v10185_v39 = vld [vmem:[%s10865_s24 + $0x14c] sm:$0xf0]  ;;  %v10174_v17 = vld [vmem:[%s10865_s24 + $0xfc] sm:$0xf] }
 0x16f   : > { %v7837_v29 = vor.u32 %v10185_v39, %v7836_v36 }
 0x171   : > { %1725 = vmatpush.bf16.msra.mxu2 %v7893_v55  ;;  %1738 = vmatpush.bf16.msra.mxu3 %v7897_v56  ;;  %v7937_v55 = vor.u32 %v10197_v12, %v7934_v44  ;;  %v7844_v56 = vld [vmem:[%s10865_s24 + $0x100] sm:$0xf]  ;;  %v7748_v44 = vld [vmem:[%s10865_s24 + $0x48] sm:$0xf] }
 0x172   : > { %1803 = vmatpush.bf16.msrb.mxu0 %v7917_v60  ;;  %1816 = vmatpush.bf16.msrb.mxu1 %v7921_v61  ;;  %v7821_v60 = vor.u32 %v10183_v50, %v7820_v49  ;;  %v7825_v61 = vor.u32 %v10172_v51, %v7822_v52  ;;  %v7845_v4 = vor.u32 %v10186_v57, %v7844_v56  ;;  %v7750_v49 = vld [vmem:[%s10865_s24 + $0xa0] sm:$0xf0]  ;;  %v8026_v50 = vld [vmem:[%s10660_s17 + $0x478] sm:$0x11]  ;;  %v8212_v57 = vld [vmem:[%s10660_s17 + $0x320] sm:$0xf] }
 0x173   : > { %v2336_v56 = vunpack.c.h.b16 %v8026_v50 }
 0x175   : > { %1726 = vmatpush.bf16.msra.mxu2 %v7805_v7  ;;  %1739 = vmatpush.bf16.msra.mxu3 %v7809_v9  ;;  %v7849_v7 = vor.u32 %v10175_v58, %v7846_v59  ;;  %v7756_v9 = vld [vmem:[%s10865_s24 + $0x50] sm:$0xf]  ;;  %v10243_v58 = vld [vmem:[%s10660_s17 + $0x374] sm:$0xf0]  ;;  %v10232_v59 = vld [vmem:[%s10660_s17 + $0x324] sm:$0xf]  ;;  %v2424_v13 = vpack.c.b16 %v2336_v56, %v2336_v56 }
 0x176   : > { %1804 = vmatpush.bf16.msrb.mxu0 %v7829_v16  ;;  %1817 = vmatpush.bf16.msrb.mxu1 %v7833_v5  ;;  %v7737_v16 = vor.u32 %v10150_v63, %v7734_v3  ;;  %v1449_v5 = vpack.c.b16 %v1361_v0, %v1361_v0  ;;  %v7757_v19 = vor.u32 %v10164_v10, %v7756_v9  ;;  %v8029_v0 = vld [vmem:[%s10660_s17 + $0x490] sm:$0x11]  ;;  %v10264_v3 = vld [vmem:[%s10660_s17 + $0x41c] sm:$0xf0]  ;;  %v10221_v10 = vld [vmem:[%s10660_s17 + $0x2c4] sm:$0xf0] }
 0x177   : > { %v8213_v62 = vor.u32 %v10243_v58, %v8212_v57  ;;  %v8124_v9 = vld [vmem:[%s10660_s17 + $0x270] sm:$0xf]  ;;  %v2341_v11 = vunpack.c.l.b16 %v8029_v0 }
 0x178   : > { %v1579_v26 = vsel %vm1523_vm1, %v1449_v5, 0 }
 0x179   : > { %1727 = vmatpush.bf16.msra.mxu2 %v7717_v27  ;;  %1740 = vmatpush.bf16.msra.mxu3 %v7721_v30  ;;  %v1582_v27 = vsel %vm1523_vm1, %v1450_v18, 0  ;;  %v7924_v30 = vld [vmem:[%s10865_s24 + $0x1a8] sm:$0xf]  ;;  %v8125_v18 = vor.u32 %v10221_v10, %v8124_v9  ;;  %v8142_v9 = vld [vmem:[%s10660_s17 + $0x2d8] sm:$0xf0] }
 0x17a   : > { %1805 = vmatpush.bf16.msrb.mxu0 %v7741_v31  ;;  %1818 = vmatpush.bf16.msrb.mxu1 %v7745_v38  ;;  %v7926_v31 = vld [vmem:[%s10865_s24 + $0x200] sm:$0xf0]  ;;  %v2425_v38 = vpack.c.b16 %v2337_v24, %v2337_v24  ;;  %v7925_v8 = vor.u32 %v10207_v34, %v7924_v30  ;;  %v8206_v30 = vld [vmem:[%s10660_s17 + $0x370] sm:$0xf0]  ;;  %v8316_v34 = vld [vmem:[%s10660_s17 + $0x3e0] sm:$0xf] }
 0x17b   : > { %7944 = vmatmul.msk.bf16.vlgmr.msrb.gmra.mxu2 %vm1519_vm2, %v10949_v48  ;;  %7945 = vmatmul.msk.bf16.vlgmr.msrb.gmra.mxu3 %vm1519_vm2, %v10949_v48  ;;  %v7929_v28 = vor.u32 %v10196_v35, %v7926_v31  ;;  %v10267_v35 = vld [vmem:[%s10660_s17 + $0x434] sm:$0xf0]  ;;  %v10256_v31 = vld [vmem:[%s10660_s17 + $0x3e4] sm:$0xf] }
 0x17c   : > { %7950 = vmatmul.msk.bf16.vlgmr.msra.gmra.mxu0 %vm1519_vm2, %v10949_v48  ;;  %7951 = vmatmul.msk.bf16.vlgmr.msra.gmra.mxu1 %vm1519_vm2, %v10949_v48  ;;  %v8317_v36 = vor.u32 %v10267_v35, %v8316_v34  ;;  %v8332_v34 = vld [vmem:[%s10660_s17 + $0x3f0] sm:$0xf]  ;;  %v10269_v35 = vld [vmem:[%s10660_s17 + $0x444] sm:$0xf0] }
 0x17d   : > { %1776 = vmatpush.bf16.msrb.mxu2 %v1567_v40  ;;  %1789 = vmatpush.bf16.msrb.mxu3 %v1570_v41  ;;  %v7838_v40 = vld [vmem:[%s10865_s24 + $0x150] sm:$0xf0]  ;;  %v8300_v41 = vld [vmem:[%s10660_s17 + $0x3d0] sm:$0xf] }
 0x17e   : > { %1854 = vmatpush.bf16.msra.mxu0 %v1585_v42  ;;  %1867 = vmatpush.bf16.msra.mxu1 %v1588_v37  ;;  %v10265_v42 = vld [vmem:[%s10660_s17 + $0x424] sm:$0xf0]  ;;  %v10254_v37 = vld [vmem:[%s10660_s17 + $0x3d4] sm:$0xf]  ;;  %v7841_v12 = vor.u32 %v10174_v17, %v7838_v40  ;;  %v10220_v40 = vld [vmem:[%s10660_s17 + $0x2bc] sm:$0xf0] }
 0x17f   : > { %v8301_v51 = vor.u32 %v10265_v42, %v8300_v41  ;;  %v8305_v52 = vor.u32 %v10254_v37, %v8302_v43  ;;  %v8116_v17 = vld [vmem:[%s10660_s17 + $0x268] sm:$0xf]  ;;  %v10209_v41 = vld [vmem:[%s10660_s17 + $0x26c] sm:$0xf]  ;;  %v8118_v37 = vld [vmem:[%s10660_s17 + $0x2c0] sm:$0xf0] }
 0x180   : > { %v2037_v42 = vld.sshfl [vmem:[#allocation1 + $0x10] sm:$0xff pattern:$0x73625140]  ;;  %v2035_v43 = vld.sshfl [vmem:[#allocation1] sm:$0xff pattern:$0x73625140] }
 0x181   : > { %1777 = vmatpush.bf16.msrb.mxu2 %v7909_v45  ;;  %1790 = vmatpush.bf16.msrb.mxu3 %v7913_v47  ;;  %v10163_v45 = vld [vmem:[%s10865_s24 + $0x9c] sm:$0xf0]  ;;  %v10152_v47 = vld [vmem:[%s10865_s24 + $0x4c] sm:$0xf] }
 0x182   : > { %1855 = vmatpush.bf16.msra.mxu0 %v7933_v54  ;;  %1868 = vmatpush.bf16.msra.mxu1 %v7937_v55  ;;  %v7749_v53 = vor.u32 %v10163_v45, %v7748_v44  ;;  %v7753_v54 = vor.u32 %v10152_v47, %v7750_v49  ;;  %v2335_v55 = vunpack.c.l.b16 %v8026_v50  ;;  %v2036_v45 = vld.sshfl [vmem:[#allocation1 + $0x8] sm:$0xff pattern:$0x73625140]  ;;  %v8228_v47 = vld [vmem:[%s10660_s17 + $0x330] sm:$0xf] }
 0x183   : > { %v10245_v50 = vld [vmem:[%s10660_s17 + $0x384] sm:$0xf0] }
 0x184   : > { %v8229_v57 = vor.u32 %v10245_v50, %v8228_v47  ;;  %v8246_v47 = vld [vmem:[%s10660_s17 + $0x398] sm:$0xf0] }
 0x185   : > { %1778 = vmatpush.bf16.msrb.mxu2 %v7821_v60  ;;  %1791 = vmatpush.bf16.msrb.mxu3 %v7825_v61  ;;  %v8214_v60 = vld [vmem:[%s10660_s17 + $0x378] sm:$0xf0]  ;;  %v2423_v61 = vpack.c.b16 %v2335_v55, %v2335_v55 }
 0x186   : > { %1856 = vmatpush.bf16.msra.mxu0 %v7845_v4  ;;  %1869 = vmatpush.bf16.msra.mxu1 %v7849_v7  ;;  %v8217_v63 = vor.u32 %v10232_v59, %v8214_v60  ;;  %v10253_v4 = vld [vmem:[%s10660_s17 + $0x3cc] sm:$0xf]  ;;  %v8294_v7 = vld [vmem:[%s10660_s17 + $0x420] sm:$0xf0]  ;;  %v8308_v59 = vld [vmem:[%s10660_s17 + $0x3d8] sm:$0xf] }
 0x187   : > { %v8297_v5 = vor.u32 %v10253_v4, %v8294_v7  ;;  %v10266_v60 = vld [vmem:[%s10660_s17 + $0x42c] sm:$0xf0]  ;;  %v10212_v7 = vld [vmem:[%s10660_s17 + $0x284] sm:$0xf] }
 0x189   : > { %1779 = vmatpush.bf16.msrb.mxu2 %v7733_v20  ;;  %1792 = vmatpush.bf16.msrb.mxu3 %v7737_v16  ;;  %v2342_v20 = vunpack.c.h.b16 %v8029_v0  ;;  %v8293_v16 = vor.u32 %v10264_v3, %v8292_v1  ;;  %v8140_v0 = vld [vmem:[%s10660_s17 + $0x280] sm:$0xf]  ;;  %v10223_v3 = vld [vmem:[%s10660_s17 + $0x2d4] sm:$0xf0] }
 0x18a   : > { %1857 = vmatpush.bf16.msra.mxu0 %v7757_v19  ;;  %1870 = vmatpush.bf16.msra.mxu1 %v7761_v23  ;;  %v8129_v19 = vor.u32 %v10210_v14, %v8126_v15  ;;  %v2429_v23 = vpack.c.b16 %v2341_v11, %v2341_v11  ;;  %v8031_v1 = vld [vmem:[%s10660_s17 + $0x4a0] sm:$0x11]  ;;  %v8309_v11 = vor.u32 %v10266_v60, %v8308_v59  ;;  %v10257_v59 = vld [vmem:[%s10660_s17 + $0x3ec] sm:$0xf] }
 0x18b   : > { %7948 = vmatmul.msk.bf16.vlgmr.msra.gmra.mxu2 %vm1519_vm2, %v10949_v48  ;;  %7949 = vmatmul.msk.bf16.vlgmr.msra.gmra.mxu3 %vm1519_vm2, %v10949_v48  ;;  %v2430_v24 = vpack.c.b16 %v2342_v20, %v2342_v20  ;;  %v2345_v4 = vunpack.c.l.b16 %v8031_v1  ;;  %v2346_v10 = vunpack.c.h.b16 %v8031_v1  ;;  %v8141_v15 = vor.u32 %v10223_v3, %v8140_v0  ;;  %v8326_v60 = vld [vmem:[%s10660_s17 + $0x440] sm:$0xf0]  ;;  %v10214_v0 = vld [vmem:[%s10660_s17 + $0x294] sm:$0xf]  ;;  %v8158_v1 = vld [vmem:[%s10660_s17 + $0x2e8] sm:$0xf0] }
 0x18c   : > { %7954 = vmatmul.msk.bf16.vlgmr.msrb.gmra.mxu0 %vm1519_vm2, %v10949_v48  ;;  %7955 = vmatmul.msk.bf16.vlgmr.msrb.gmra.mxu1 %vm1519_vm2, %v10949_v48  ;;  %v8145_v20 = vor.u32 %v10212_v7, %v8142_v9  ;;  %v8329_v7 = vor.u32 %v10257_v59, %v8326_v60  ;;  %v8340_v59 = vld [vmem:[%s10660_s17 + $0x3f8] sm:$0xf] }
 0x18d   : > { %1828 = vmatpush.bf16.msra.mxu2 %v1579_v26  ;;  %1841 = vmatpush.bf16.msra.mxu3 %v1582_v27  ;;  %v10242_v26 = vld [vmem:[%s10660_s17 + $0x36c] sm:$0xf0]  ;;  %v10231_v27 = vld [vmem:[%s10660_s17 + $0x31c] sm:$0xf] }
 0x18e   : > { %2574 = vmatpush.bf16.xpose.msrb.mxu0 %v2425_v38  ;;  %2587 = vmatpush.bf16.xpose.msrb.mxu1 %v2426_v32  ;;  %v8318_v38 = vld [vmem:[%s10660_s17 + $0x438] sm:$0xf0]  ;;  %v8205_v32 = vor.u32 %v10242_v26, %v8204_v25  ;;  %v2041_v25 = vld.sshfl [vmem:[#allocation1 + $0x30] sm:$0xff pattern:$0x73625140] }
 0x18f   : > { %v8321_v39 = vor.u32 %v10256_v31, %v8318_v38  ;;  %v2042_v26 = vld.sshfl [vmem:[#allocation1 + $0x38] sm:$0xff pattern:$0x73625140]  ;;  %v10258_v31 = vld [vmem:[%s10660_s17 + $0x3f4] sm:$0xf] }
 0x190   : > { %v8334_v38 = vld [vmem:[%s10660_s17 + $0x448] sm:$0xf0] }
 0x191   : > { %1829 = vmatpush.bf16.msra.mxu2 %v7925_v8  ;;  %1842 = vmatpush.bf16.msra.mxu3 %v7929_v28  ;;  %v8209_v8 = vor.u32 %v10231_v27, %v8206_v30  ;;  %v8028_v28 = vld [vmem:[%s10660_s17 + $0x488] sm:$0x11]  ;;  %v8222_v30 = vld [vmem:[%s10660_s17 + $0x380] sm:$0xf0] }
 0x192   : > { %v2340_v44 = vunpack.c.h.b16 %v8028_v28  ;;  %v10233_v27 = vld [vmem:[%s10660_s17 + $0x32c] sm:$0xf] }
 0x194   : > { %v2428_v56 = vpack.c.b16 %v2340_v44, %v2340_v44  ;;  %v8244_v44 = vld [vmem:[%s10660_s17 + $0x340] sm:$0xf] }
 0x195   : > { %1830 = vmatpush.bf16.msra.mxu2 %v7837_v29  ;;  %1843 = vmatpush.bf16.msra.mxu3 %v7841_v12  ;;  %v2065_v29 = vshrl.u32 %v2037_v42, 16  ;;  %v2339_v12 = vunpack.c.l.b16 %v8028_v28  ;;  %v2073_v28 = vshrl.u32 %v2041_v25, 16  ;;  %v10222_v42 = vld [vmem:[%s10660_s17 + $0x2cc] sm:$0xf0] }
 0x196   : > { %2575 = vmatpush.bf16.xpose.msrb.mxu0 %v8301_v51  ;;  %2588 = vmatpush.bf16.xpose.msrb.mxu1 %v8305_v52  ;;  %v10234_v51 = vld [vmem:[%s10660_s17 + $0x334] sm:$0xf]  ;;  %v8230_v52 = vld [vmem:[%s10660_s17 + $0x388] sm:$0xf0] }
 0x197   : > { %v2427_v55 = vpack.c.b16 %v2339_v12, %v2339_v12  ;;  %v8233_v58 = vor.u32 %v10234_v51, %v8230_v52 }
 0x199   : > { %1831 = vmatpush.bf16.msra.mxu2 %v7749_v53  ;;  %1844 = vmatpush.bf16.msra.mxu3 %v7753_v54  ;;  %v8117_v53 = vor.u32 %v10220_v40, %v8116_v17  ;;  %v8121_v54 = vor.u32 %v10209_v41, %v8118_v37  ;;  %v8333_v17 = vor.u32 %v10269_v35, %v8332_v34  ;;  %v8132_v41 = vld [vmem:[%s10660_s17 + $0x278] sm:$0xf]  ;;  %v10211_v37 = vld [vmem:[%s10660_s17 + $0x27c] sm:$0xf]  ;;  %v10260_v34 = vld [vmem:[%s10660_s17 + $0x404] sm:$0xf] }
 0x19a   : > { %v8337_v40 = vor.u32 %v10258_v31, %v8334_v38  ;;  %v8350_v35 = vld [vmem:[%s10660_s17 + $0x458] sm:$0xf0] }
 0x19b   : > { %7952 = vmatmul.msk.bf16.vlgmr.msrb.gmra.mxu2 %vm1519_vm2, %v10949_v48  ;;  %7953 = vmatmul.msk.bf16.vlgmr.msrb.gmra.mxu3 %vm1519_vm2, %v10949_v48 }
 0x19c   : > { %7958 = vmatmul.msk.bf16.vlgmr.msra.gmra.mxu0 %vm1519_vm2, %v10949_v48  ;;  %7959 = vmatmul.msk.bf16.vlgmr.msra.gmra.mxu1 %vm1519_vm2, %v10949_v48 }
 0x19d   : > { %2548 = vmatpush.bf16.xpose.msrb.mxu2 %v2423_v61  ;;  %2561 = vmatpush.bf16.xpose.msrb.mxu3 %v2424_v13  ;;  %v10255_v61 = vld [vmem:[%s10660_s17 + $0x3dc] sm:$0xf]  ;;  %v8310_v13 = vld [vmem:[%s10660_s17 + $0x430] sm:$0xf0] }
 0x19e   : > { %2576 = vmatpush.bf16.xpose.msrb.mxu0 %v8213_v62  ;;  %2589 = vmatpush.bf16.xpose.msrb.mxu1 %v8217_v63  ;;  %v2061_v62 = vshrl.u32 %v2035_v43, 16  ;;  %v2063_v63 = vshrl.u32 %v2036_v45, 16  ;;  %v8313_v14 = vor.u32 %v10255_v61, %v8310_v13  ;;  %v8134_v43 = vld [vmem:[%s10660_s17 + $0x2d0] sm:$0xf0]  ;;  %v10247_v45 = vld [vmem:[%s10660_s17 + $0x394] sm:$0xf0] }
 0x19f   : > { %v8137_v50 = vor.u32 %v10211_v37, %v8134_v43  ;;  %v8156_v61 = vld [vmem:[%s10660_s17 + $0x290] sm:$0xf]  ;;  %v10213_v37 = vld [vmem:[%s10660_s17 + $0x28c] sm:$0xf]  ;;  %v8150_v43 = vld [vmem:[%s10660_s17 + $0x2e0] sm:$0xf0] }
 0x1a0   : > { %v8033_v13 = vld [vmem:[%s10660_s17 + $0x4b0] sm:$0x11] }
 0x1a1   : > { %v2350_v3 = vunpack.c.h.b16 %v8033_v13 }
 0x1a5   : > { %2549 = vmatpush.bf16.xpose.msrb.mxu2 %v8293_v16  ;;  %2562 = vmatpush.bf16.xpose.msrb.mxu3 %v8297_v5  ;;  %v2433_v16 = vpack.c.b16 %v2345_v4, %v2345_v4  ;;  %v2434_v5 = vpack.c.b16 %v2346_v10, %v2346_v10  ;;  %v8161_v10 = vor.u32 %v10214_v0, %v8158_v1  ;;  %v8342_v1 = vld [vmem:[%s10660_s17 + $0x450] sm:$0xf0] }
 0x1a6   : > { %2577 = vmatpush.bf16.xpose.msrb.mxu0 %v8125_v18  ;;  %2590 = vmatpush.bf16.xpose.msrb.mxu1 %v8129_v19  ;;  %v8220_v18 = vld [vmem:[%s10660_s17 + $0x328] sm:$0xf]  ;;  %v10244_v19 = vld [vmem:[%s10660_s17 + $0x37c] sm:$0xf0] }
 0x1ab   : > { %7956 = vmatmul.msk.bf16.vlgmr.msra.gmra.mxu2 %vm1519_vm2, %v10949_v48  ;;  %7957 = vmatmul.msk.bf16.vlgmr.msra.gmra.mxu3 %vm1519_vm2, %v10949_v48  ;;  %v2038_v48 = vld.sshfl [vmem:[#allocation1 + $0x18] sm:$0xff pattern:$0x73625140] }
 0x1ac   : > { %v2067_v49 = vshrl.u32 %v2038_v48, 16  ;;  %2043 = vst [vmem:[#allocation1] ss:$4 sm:$0xff] %v10729_v33  ;;  %v10236_v48 = vld [vmem:[%s10660_s17 + $0x344] sm:$0xf] }
 0x1ad   : > { %2550 = vmatpush.bf16.xpose.msrb.mxu2 %v8205_v32  ;;  %2563 = vmatpush.bf16.xpose.msrb.mxu3 %v8209_v8  ;;  %v8221_v32 = vor.u32 %v10244_v19, %v8220_v18  ;;  %v8225_v8 = vor.u32 %v10233_v27, %v8222_v30  ;;  %v8348_v27 = vld [vmem:[%s10660_s17 + $0x400] sm:$0xf]  ;;  %v10271_v30 = vld [vmem:[%s10660_s17 + $0x454] sm:$0xf0] }
 0x1ae   : > { %2626 = vmatpush.bf16.xpose.msra.mxu0 %v2429_v23  ;;  %2639 = vmatpush.bf16.xpose.msra.mxu1 %v2430_v24  ;;  %v11144_v23 = vld.sshfl [vmem:[#allocation1 + $0x20] sm:$0xff pattern:$0x73625140]  ;;  %v11146_v24 = vld.sshfl [vmem:[#allocation1 + $0x28] sm:$0xff pattern:$0x73625140] }
 0x1af   : > { %2578 = vmatmul.bf16.vlgmr.msrb.gmra.mxu0 %v2065_v29  ;;  %2591 = vmatmul.bf16.vlgmr.msrb.gmra.mxu1 %v2067_v49  ;;  %2044 = vst [vmem:[#allocation1 + $0x20] ss:$4 sm:$0xff] %v10759_v21  ;;  %v8133_v49 = vor.u32 %v10222_v42, %v8132_v41  ;;  %v8148_v41 = vld [vmem:[%s10660_s17 + $0x288] sm:$0xf]  ;;  %v10224_v42 = vld [vmem:[%s10660_s17 + $0x2dc] sm:$0xf0] }
 0x1b3   : > { %v2047_v18 = vld.sshfl [vmem:[#allocation1 + $0x10] sm:$0xff pattern:$0x73625140]  ;;  %v2048_v19 = vld.sshfl [vmem:[#allocation1 + $0x18] sm:$0xff pattern:$0x73625140] }
 0x1b5   : > { %2551 = vmatpush.bf16.xpose.msrb.mxu2 %v8117_v53  ;;  %2564 = vmatpush.bf16.xpose.msrb.mxu3 %v8121_v54  ;;  %v8245_v53 = vor.u32 %v10247_v45, %v8244_v44  ;;  %v8249_v54 = vor.u32 %v10236_v48, %v8246_v47  ;;  %v8260_v48 = vld [vmem:[%s10660_s17 + $0x350] sm:$0xf]  ;;  %v10249_v47 = vld [vmem:[%s10660_s17 + $0x3a4] sm:$0xf0] }
 0x1b6   : > { %2627 = vmatpush.bf16.xpose.msra.mxu0 %v8317_v36  ;;  %2640 = vmatpush.bf16.xpose.msra.mxu1 %v8321_v39  ;;  %v2075_v36 = vshrl.u32 %v2042_v26, 16  ;;  %v8030_v39 = vld [vmem:[%s10660_s17 + $0x498] sm:$0x11] }
 0x1b7   : > { %v2343_v29 = vunpack.c.l.b16 %v8030_v39  ;;  %v2344_v12 = vunpack.c.h.b16 %v8030_v39  ;;  %v8353_v39 = vor.u32 %v10260_v34, %v8350_v35  ;;  %v11226_v34 = vld.sshfl [vmem:[#allocation1 + $0x20] sm:$0xff pattern:$0x73625140]  ;;  %v11228_v35 = vld.sshfl [vmem:[#allocation1 + $0x28] sm:$0xff pattern:$0x73625140] }
 0x1b9   : > { %v2431_v51 = vpack.c.b16 %v2343_v29, %v2343_v29  ;;  %v2432_v52 = vpack.c.b16 %v2344_v12, %v2344_v12 }
 0x1bc   : > { %2552 = vmatmul.bf16.vlgmr.msrb.gmra.mxu2 %v2061_v62  ;;  %2565 = vmatmul.bf16.vlgmr.msrb.gmra.mxu3 %v2063_v63  ;;  %v10225_v62 = vld [vmem:[%s10660_s17 + $0x2e4] sm:$0xf0]  ;;  %v2349_v63 = vunpack.c.l.b16 %v8033_v13  ;;  %v10270_v13 = vld [vmem:[%s10660_s17 + $0x44c] sm:$0xf0] }
 0x1bd   : > { %2600 = vmatpush.bf16.xpose.msra.mxu2 %v2427_v55  ;;  %2613 = vmatpush.bf16.xpose.msra.mxu3 %v2428_v56  ;;  %v8324_v55 = vld [vmem:[%s10660_s17 + $0x3e8] sm:$0xf]  ;;  %v2069_v56 = vshrl.u32 %v11144_v23, 16  ;;  %v8157_v9 = vor.u32 %v10225_v62, %v8156_v61  ;;  %v10235_v23 = vld [vmem:[%s10660_s17 + $0x33c] sm:$0xf] }
 0x1be   : > { %2628 = vmatpush.bf16.xpose.msra.mxu0 %v8229_v57  ;;  %2641 = vmatpush.bf16.xpose.msra.mxu1 %v8233_v58  ;;  %v2071_v57 = vshrl.u32 %v11146_v24, 16  ;;  %v10268_v58 = vld [vmem:[%s10660_s17 + $0x43c] sm:$0xf0]  ;;  %v8238_v24 = vld [vmem:[%s10660_s17 + $0x390] sm:$0xf0] }
 0x1bf   : > { %v8325_v4 = vor.u32 %v10268_v58, %v8324_v55  ;;  %v8241_v38 = vor.u32 %v10235_v23, %v8238_v24  ;;  %v8261_v55 = vor.u32 %v10249_v47, %v8260_v48  ;;  %v10259_v62 = vld [vmem:[%s10660_s17 + $0x3fc] sm:$0xf] }
 0x1c0   : > { %v8034_v47 = vld [vmem:[%s10660_s17 + $0x4b8] sm:$0x11] }
 0x1c5   : > { %2601 = vmatpush.bf16.xpose.msra.mxu2 %v8309_v11  ;;  %2614 = vmatpush.bf16.xpose.msra.mxu3 %v8313_v14  ;;  %v2437_v11 = vpack.c.b16 %v2349_v63, %v2349_v63  ;;  %v2438_v14 = vpack.c.b16 %v2350_v3, %v2350_v3  ;;  %v8172_v3 = vld [vmem:[%s10660_s17 + $0x2a0] sm:$0xf] }
 0x1c6   : > { %2629 = vmatpush.bf16.xpose.msra.mxu0 %v8141_v15  ;;  %2642 = vmatpush.bf16.xpose.msra.mxu1 %v8145_v20  ;;  %v8236_v15 = vld [vmem:[%s10660_s17 + $0x338] sm:$0xf]  ;;  %v10246_v20 = vld [vmem:[%s10660_s17 + $0x38c] sm:$0xf0] }
 0x1c7   : > { %v8237_v31 = vor.u32 %v10246_v20, %v8236_v15  ;;  %v8341_v15 = vor.u32 %v10270_v13, %v8340_v59  ;;  %v8345_v20 = vor.u32 %v10259_v62, %v8342_v1  ;;  %v8276_v59 = vld [vmem:[%s10660_s17 + $0x360] sm:$0xf]  ;;  %v8278_v13 = vld [vmem:[%s10660_s17 + $0x3b8] sm:$0xf0] }
 0x1cd   : > { %2602 = vmatpush.bf16.xpose.msra.mxu2 %v8221_v32  ;;  %2615 = vmatpush.bf16.xpose.msra.mxu3 %v8225_v8  ;;  %v2081_v32 = vshrl.u32 %v2047_v18, 16  ;;  %v2083_v8 = vshrl.u32 %v2048_v19, 16 }
 0x1ce   : > { %2678 = vmatpush.bf16.xpose.msrb.mxu0 %v2433_v16  ;;  %2691 = vmatpush.bf16.xpose.msrb.mxu1 %v2434_v5  ;;  %v11177_v16 = vld.sshfl [vmem:[#allocation1] sm:$0xff pattern:$0x73625140]  ;;  %v11179_v5 = vld.sshfl [vmem:[#allocation1 + $0x8] sm:$0xff pattern:$0x73625140] }
 0x1cf   : > { %2630 = vmatmul.bf16.vlgmr.msra.gmra.mxu0 %v2073_v28  ;;  %2643 = vmatmul.bf16.vlgmr.msra.gmra.mxu1 %v2075_v36  ;;  %2053 = vst [vmem:[#allocation1] ss:$4 sm:$0xff] %v10786_v6  ;;  %v8032_v28 = vld [vmem:[%s10660_s17 + $0x4a8] sm:$0x11]  ;;  %v8349_v36 = vor.u32 %v10271_v30, %v8348_v27  ;;  %v2077_v60 = vshrl.u32 %v11177_v16, 16  ;;  %v2079_v61 = vshrl.u32 %v11179_v5, 16 }
 0x1d0   : > { %v2347_v29 = vunpack.c.l.b16 %v8032_v28  ;;  %v2348_v12 = vunpack.c.h.b16 %v8032_v28  ;;  %v8252_v27 = vld [vmem:[%s10660_s17 + $0x348] sm:$0xf]  ;;  %v10248_v30 = vld [vmem:[%s10660_s17 + $0x39c] sm:$0xf0]  ;;  %v10237_v28 = vld [vmem:[%s10660_s17 + $0x34c] sm:$0xf] }
 0x1d5   : > { %2603 = vmatpush.bf16.xpose.msra.mxu2 %v8133_v49  ;;  %2616 = vmatpush.bf16.xpose.msra.mxu3 %v8137_v50  ;;  %v10238_v49 = vld [vmem:[%s10660_s17 + $0x354] sm:$0xf]  ;;  %v8262_v50 = vld [vmem:[%s10660_s17 + $0x3a8] sm:$0xf0] }
 0x1d6   : > { %2679 = vmatpush.bf16.xpose.msrb.mxu0 %v8333_v17  ;;  %2692 = vmatpush.bf16.xpose.msrb.mxu1 %v8337_v40 }
 0x1d9   : > { %v11184_v25 = vpop.f32.mrf.mxu0  ;;  %v11186_v26 = vpop.f32.mrf.mxu1 }
 0x1dc   : > { %2604 = vmatmul.bf16.vlgmr.msra.gmra.mxu2 %v2069_v56  ;;  %2617 = vmatmul.bf16.vlgmr.msra.gmra.mxu3 %v2071_v57  ;;  %v8265_v56 = vor.u32 %v10238_v49, %v8262_v50 }
 0x1dd   : > { %2652 = vmatpush.bf16.xpose.msrb.mxu2 %v2431_v51  ;;  %2665 = vmatpush.bf16.xpose.msrb.mxu3 %v2432_v52  ;;  %v8149_v51 = vor.u32 %v10224_v42, %v8148_v41  ;;  %v8153_v52 = vor.u32 %v10213_v37, %v8150_v43  ;;  %v10273_v41 = vld [vmem:[%s10660_s17 + $0x464] sm:$0xf0]  ;;  %v10262_v42 = vld [vmem:[%s10660_s17 + $0x414] sm:$0xf]  ;;  %v8366_v37 = vld [vmem:[%s10660_s17 + $0x468] sm:$0xf0]  ;;  %v8253_v43 = vor.u32 %v10248_v30, %v8252_v27 }
 0x1de   : > { %2680 = vmatpush.bf16.xpose.msrb.mxu0 %v8245_v53  ;;  %2693 = vmatpush.bf16.xpose.msrb.mxu1 %v8249_v54  ;;  %v11193_v17 = vpop.f32.mrf.mxu2  ;;  %v11195_v40 = vpop.f32.mrf.mxu3  ;;  %v2435_v53 = vpack.c.b16 %v2347_v29, %v2347_v29  ;;  %v2436_v54 = vpack.c.b16 %v2348_v12, %v2348_v12  ;;  %v8369_v50 = vor.u32 %v10262_v42, %v8366_v37  ;;  %v8358_v27 = vld [vmem:[%s10660_s17 + $0x460] sm:$0xf0]  ;;  %v8188_v30 = vld [vmem:[%s10660_s17 + $0x2b0] sm:$0xf] }
 0x1df   : > { %v10250_v42 = vld [vmem:[%s10660_s17 + $0x3ac] sm:$0xf0]  ;;  %v2055_v37 = vld.sshfl [vmem:[#allocation1] sm:$0xff pattern:$0x73625140] }
 0x1e1   : > { %v1653_v44 = vpop.f32.mrf.mxu0  ;;  %v1666_v45 = vpop.f32.mrf.mxu1 }
 0x1e5   : > { %2653 = vmatpush.bf16.xpose.msrb.mxu2 %v8325_v4  ;;  %2666 = vmatpush.bf16.xpose.msrb.mxu3 %v8329_v7  ;;  %v8035_v4 = vld [vmem:[%s10660_s17 + $0x4c0] sm:$0x11]  ;;  %v10227_v7 = vld [vmem:[%s10660_s17 + $0x2f4] sm:$0xf0] }
 0x1e6   : > { %2681 = vmatpush.bf16.xpose.msrb.mxu0 %v8157_v9  ;;  %2694 = vmatpush.bf16.xpose.msrb.mxu1 %v8161_v10  ;;  %v1601_v57 = vpop.f32.mrf.mxu2  ;;  %v1614_v58 = vpop.f32.mrf.mxu3  ;;  %v2353_v9 = vunpack.c.l.b16 %v8035_v4  ;;  %v10216_v10 = vld [vmem:[%s10660_s17 + $0x2a4] sm:$0xf]  ;;  %v8173_v16 = vor.u32 %v10227_v7, %v8172_v3 }
 0x1e7   : > { %v2351_v57 = vunpack.c.l.b16 %v8034_v47  ;;  %v2352_v58 = vunpack.c.h.b16 %v8034_v47  ;;  %v8270_v47 = vld [vmem:[%s10660_s17 + $0x3b0] sm:$0xf0] }
 0x1e8   : > { %v2441_v23 = vpack.c.b16 %v2353_v9, %v2353_v9 }
 0x1e9   : > { %v11210_v63 = vpop.f32.mrf.mxu0  ;;  %v11212_v0 = vpop.f32.mrf.mxu1  ;;  %v2439_v3 = vpack.c.b16 %v2351_v57, %v2351_v57 }
 0x1ed   : > { %2654 = vmatpush.bf16.xpose.msrb.mxu2 %v8237_v31  ;;  %2667 = vmatpush.bf16.xpose.msrb.mxu3 %v8241_v38  ;;  %v2051_v31 = vld.sshfl [vmem:[#allocation1 + $0x30] sm:$0xff pattern:$0x73625140]  ;;  %v2052_v38 = vld.sshfl [vmem:[#allocation1 + $0x38] sm:$0xff pattern:$0x73625140] }
 0x1ee   : > { %2730 = vmatpush.bf16.xpose.msra.mxu0 %v2437_v11  ;;  %2743 = vmatpush.bf16.xpose.msra.mxu1 %v2438_v14  ;;  %v8174_v11 = vld [vmem:[%s10660_s17 + $0x2f8] sm:$0xf0]  ;;  %v2354_v14 = vunpack.c.h.b16 %v8035_v4  ;;  %v11220_v18 = vpop.f32.mrf.mxu2  ;;  %v11222_v19 = vpop.f32.mrf.mxu3  ;;  %2054 = vst [vmem:[#allocation1 + $0x20] ss:$4 sm:$0xff] %v10825_v2  ;;  %v2089_v12 = vshrl.u32 %v2051_v31, 16  ;;  %v2091_v44 = vshrl.u32 %v2052_v38, 16  ;;  %v2440_v4 = vpack.c.b16 %v2352_v58, %v2352_v58 }
 0x1ef   : > { %2682 = vmatmul.bf16.vlgmr.msrb.gmra.mxu0 %v2081_v32  ;;  %2695 = vmatmul.bf16.vlgmr.msrb.gmra.mxu1 %v2083_v8  ;;  %v8177_v5 = vor.u32 %v10216_v10, %v8174_v11  ;;  %v10229_v31 = vld [vmem:[%s10660_s17 + $0x304] sm:$0xf0]  ;;  %v10218_v38 = vld [vmem:[%s10660_s17 + $0x2b4] sm:$0xf] }
 0x1f0   : > { %v2442_v24 = vpack.c.b16 %v2354_v14, %v2354_v14 }
 0x1f1   : > { %v1705_v32 = vpop.f32.mrf.mxu0  ;;  %v1718_v8 = vpop.f32.mrf.mxu1 }
 0x1f2   : > { %v8190_v32 = vld [vmem:[%s10660_s17 + $0x308] sm:$0xf0] }
 0x1f5   : > { %2655 = vmatpush.bf16.xpose.msrb.mxu2 %v8149_v51  ;;  %2668 = vmatpush.bf16.xpose.msrb.mxu3 %v8153_v52  ;;  %v8164_v51 = vld [vmem:[%s10660_s17 + $0x298] sm:$0xf] }
 0x1f6   : > { %2731 = vmatpush.bf16.xpose.msra.mxu0 %v8349_v36  ;;  %2744 = vmatpush.bf16.xpose.msra.mxu1 %v8353_v39  ;;  %v8254_v36 = vld [vmem:[%s10660_s17 + $0x3a0] sm:$0xf0]  ;;  %v8364_v39 = vld [vmem:[%s10660_s17 + $0x410] sm:$0xf]  ;;  %v1627_v45 = vpop.f32.mrf.mxu2  ;;  %v1640_v48 = vpop.f32.mrf.mxu3 }
 0x1f7   : > { %v8257_v29 = vor.u32 %v10237_v28, %v8254_v36  ;;  %v8365_v49 = vor.u32 %v10273_v41, %v8364_v39  ;;  %v8268_v41 = vld [vmem:[%s10660_s17 + $0x358] sm:$0xf]  ;;  %v10239_v48 = vld [vmem:[%s10660_s17 + $0x35c] sm:$0xf] }
 0x1f8   : > { %v2058_v45 = vld.sshfl [vmem:[#allocation1 + $0x18] sm:$0xff pattern:$0x73625140] }
 0x1f9   : > { %v11239_v52 = vpop.f32.mrf.mxu0  ;;  %v2099_v57 = vshrl.u32 %v2058_v45, 16 }
 0x1fc   : > { %2656 = vmatmul.bf16.vlgmr.msrb.gmra.mxu2 %v2077_v60  ;;  %2669 = vmatmul.bf16.vlgmr.msrb.gmra.mxu3 %v2079_v61  ;;  %v10251_v60 = vld [vmem:[%s10660_s17 + $0x3b4] sm:$0xf0]  ;;  %v10240_v61 = vld [vmem:[%s10660_s17 + $0x364] sm:$0xf] }
 0x1fd   : > { %2704 = vmatpush.bf16.xpose.msra.mxu2 %v2435_v53  ;;  %2717 = vmatpush.bf16.xpose.msra.mxu3 %v2436_v54  ;;  %v11241_v53 = vpop.f32.mrf.mxu1  ;;  %v10226_v54 = vld [vmem:[%s10660_s17 + $0x2ec] sm:$0xf0]  ;;  %v8277_v10 = vor.u32 %v10251_v60, %v8276_v59  ;;  %v8281_v11 = vor.u32 %v10240_v61, %v8278_v13  ;;  %v8180_v61 = vld [vmem:[%s10660_s17 + $0x2a8] sm:$0xf]  ;;  %v10228_v13 = vld [vmem:[%s10660_s17 + $0x2fc] sm:$0xf0] }
 0x1fe   : > { %2732 = vmatpush.bf16.xpose.msra.mxu0 %v8261_v55  ;;  %2745 = vmatpush.bf16.xpose.msra.mxu1 %v8265_v56  ;;  %v10215_v55 = vld [vmem:[%s10660_s17 + $0x29c] sm:$0xf]  ;;  %v8166_v56 = vld [vmem:[%s10660_s17 + $0x2f0] sm:$0xf0]  ;;  %v8165_v62 = vor.u32 %v10226_v54, %v8164_v51  ;;  %v11250_v7 = vpop.f32.mrf.mxu2  ;;  %v11252_v9 = vpop.f32.mrf.mxu3  ;;  %v8273_v51 = vor.u32 %v10239_v48, %v8270_v47 }
 0x1ff   : > { %v8169_v1 = vor.u32 %v10215_v55, %v8166_v56 }
 0x201   : > { %v1757_v14 = vpop.f32.mrf.mxu0 }
 0x205   : > { %2705 = vmatpush.bf16.xpose.msra.mxu2 %v8341_v15  ;;  %2718 = vmatpush.bf16.xpose.msra.mxu3 %v8345_v20  ;;  %v1770_v15 = vpop.f32.mrf.mxu1  ;;  %v2085_v20 = vshrl.u32 %v11226_v34, 16  ;;  %v8189_v34 = vor.u32 %v10229_v31, %v8188_v30 }
 0x206   : > { %2733 = vmatpush.bf16.xpose.msra.mxu0 %v8173_v16  ;;  %2746 = vmatpush.bf16.xpose.msra.mxu1 %v8177_v5  ;;  %v2087_v16 = vshrl.u32 %v11228_v35, 16  ;;  %v8356_v5 = vld [vmem:[%s10660_s17 + $0x408] sm:$0xf]  ;;  %v1679_v36 = vpop.f32.mrf.mxu2  ;;  %v1692_v39 = vpop.f32.mrf.mxu3  ;;  %v8193_v35 = vor.u32 %v10218_v38, %v8190_v32  ;;  %v8372_v38 = vld [vmem:[%s10660_s17 + $0x418] sm:$0xf] }
 0x207   : > { %v10274_v32 = vld [vmem:[%s10660_s17 + $0x46c] sm:$0xf0] }
 0x20d   : > { %2706 = vmatpush.bf16.xpose.msra.mxu2 %v8253_v43  ;;  %2719 = vmatpush.bf16.xpose.msra.mxu3 %v8257_v29  ;;  %v2056_v43 = vld.sshfl [vmem:[#allocation1 + $0x8] sm:$0xff pattern:$0x73625140]  ;;  %v11266_v29 = vpop.f32.mrf.mxu0 }
 0x20e   : > { %2782 = vmatpush.bf16.xpose.msrb.mxu0 %v2441_v23  ;;  %2795 = vmatpush.bf16.xpose.msrb.mxu1 %v2442_v24  ;;  %v10272_v23 = vld [vmem:[%s10660_s17 + $0x45c] sm:$0xf0]  ;;  %v10261_v24 = vld [vmem:[%s10660_s17 + $0x40c] sm:$0xf]  ;;  %v11274_v54 = vpop.f32.mrf.mxu2  ;;  %v11276_v55 = vpop.f32.mrf.mxu3  ;;  %v2095_v36 = vshrl.u32 %v2056_v43, 16 }
 0x20f   : > { %2734 = vmatmul.bf16.vlgmr.msra.gmra.mxu0 %v2089_v12  ;;  %2747 = vmatmul.bf16.vlgmr.msra.gmra.mxu1 %v2091_v44  ;;  %v8357_v8 = vor.u32 %v10272_v23, %v8356_v5  ;;  %v8361_v28 = vor.u32 %v10261_v24, %v8358_v27  ;;  %v11268_v12 = vpop.f32.mrf.mxu1  ;;  %v2057_v44 = vld.sshfl [vmem:[#allocation1 + $0x10] sm:$0xff pattern:$0x73625140]  ;;  %12633 = vst [vmem:[#allocation2_spill] sm:$0xff] %v11274_v54  ;;  %v10263_v24 = vld [vmem:[%s10660_s17 + $0x41c] sm:$0xf] }
 0x210   : > { %3728 = vst [vmem:[#allocation1] ss:$4 sm:$0xff] %v10679_v22  ;;  %v2097_v56 = vshrl.u32 %v2057_v44, 16  ;;  %v2060_v5 = vld.sshfl [vmem:[#allocation1 + $0x28] sm:$0xff pattern:$0x73625140] }
 0x211   : > { %12634 = vst [vmem:[#allocation3_spill] sm:$0xff] %v11276_v55  ;;  %v8374_v27 = vld [vmem:[%s10660_s17 + $0x470] sm:$0xf0]  ;;  %v8286_v44 = vld [vmem:[%s10660_s17 + $0x3c0] sm:$0xf0] }
 0x212   : > { %v10252_v43 = vld [vmem:[%s10660_s17 + $0x3bc] sm:$0xf0] }
 0x215   : > { %2707 = vmatpush.bf16.xpose.msra.mxu2 %v8165_v62  ;;  %2720 = vmatpush.bf16.xpose.msra.mxu3 %v8169_v1  ;;  %v1809_v59 = vpop.f32.mrf.mxu0  ;;  %v10217_v62 = vld [vmem:[%s10660_s17 + $0x2ac] sm:$0xf]  ;;  %v8182_v1 = vld [vmem:[%s10660_s17 + $0x300] sm:$0xf0] }
 0x216   : > { %2783 = vmatpush.bf16.xpose.msrb.mxu0 %v8365_v49  ;;  %2796 = vmatpush.bf16.xpose.msrb.mxu1 %v8369_v50  ;;  %v8036_v49 = vld [vmem:[%s10660_s17 + $0x4c8] sm:$0x11]  ;;  %v8269_v50 = vor.u32 %v10250_v42, %v8268_v41  ;;  %v1731_v14 = vpop.f32.mrf.mxu2  ;;  %v1744_v15 = vpop.f32.mrf.mxu3  ;;  %v8196_v59 = vld [vmem:[%s10660_s17 + $0x2b8] sm:$0xf] }
 0x217   : > { %v2356_v58 = vunpack.c.h.b16 %v8036_v49  ;;  %v1822_v60 = vpop.f32.mrf.mxu1  ;;  %v10241_v42 = vld [vmem:[%s10660_s17 + $0x36c] sm:$0xf]  ;;  %v2103_v14 = vshrl.u32 %v2060_v5, 16 }
 0x218   : > { %v8289_v47 = vor.u32 %v10241_v42, %v8286_v44  ;;  %v10230_v60 = vld [vmem:[%s10660_s17 + $0x30c] sm:$0xf0] }
 0x21c   : > { %2708 = vmatmul.bf16.vlgmr.msra.gmra.mxu2 %v2085_v20  ;;  %2721 = vmatmul.bf16.vlgmr.msra.gmra.mxu3 %v2087_v16  ;;  %v2059_v16 = vld.sshfl [vmem:[#allocation1 + $0x20] sm:$0xff pattern:$0x73625140] }
 0x21d   : > { %2756 = vmatpush.bf16.xpose.msrb.mxu2 %v2439_v3  ;;  %2769 = vmatpush.bf16.xpose.msrb.mxu3 %v2440_v4  ;;  %v2355_v3 = vunpack.c.l.b16 %v8036_v49  ;;  %v2444_v4 = vpack.c.b16 %v2356_v58, %v2356_v58  ;;  %3730 = vst [vmem:[#allocation1 + $0x20] ss:$4 sm:$0xff] %v10699_v46  ;;  %v11286_v30 = vpop.f32.mrf.mxu0  ;;  %v8198_v58 = vld [vmem:[%s10660_s17 + $0x310] sm:$0xf0] }
 0x21e   : > { %2784 = vmatpush.bf16.xpose.msrb.mxu0 %v8277_v10  ;;  %2797 = vmatpush.bf16.xpose.msrb.mxu1 %v8281_v11  ;;  %v8181_v10 = vor.u32 %v10228_v13, %v8180_v61  ;;  %v8185_v11 = vor.u32 %v10217_v62, %v8182_v1  ;;  %12635 = vst [vmem:[#allocation4_spill] sm:$0xff] %v11286_v30  ;;  %v11292_v39 = vpop.f32.mrf.mxu2 }
 0x21f   : > { %v2443_v20 = vpack.c.b16 %v2355_v3, %v2355_v3  ;;  %v2542_v23 = vsel %vm831_vm0, %v2444_v4, 0  ;;  %v11288_v31 = vpop.f32.mrf.mxu1  ;;  %12637 = vst [vmem:[#allocation6_spill] sm:$0xff] %v11292_v39  ;;  %v8197_v3 = vor.u32 %v10230_v60, %v8196_v59 }
 0x220   : > { %12636 = vst [vmem:[#allocation5_spill] sm:$0xff] %v11288_v31 }
 0x225   : > { %2757 = vmatpush.bf16.xpose.msrb.mxu2 %v8357_v8  ;;  %2770 = vmatpush.bf16.xpose.msrb.mxu3 %v8361_v28  ;;  %v8377_v8 = vor.u32 %v10263_v24, %v8374_v27  ;;  %v2093_v28 = vshrl.u32 %v2055_v37, 16  ;;  %v1861_v45 = vpop.f32.mrf.mxu0  ;;  %v8284_v37 = vld [vmem:[%s10660_s17 + $0x368] sm:$0xf] }
 0x226   : > { %2785 = vmatpush.bf16.xpose.msrb.mxu0 %v8189_v34  ;;  %2798 = vmatpush.bf16.xpose.msrb.mxu1 %v8193_v35  ;;  %v11294_v34 = vpop.f32.mrf.mxu3  ;;  %v8373_v35 = vor.u32 %v10274_v32, %v8372_v38  ;;  %v1783_v49 = vpop.f32.mrf.mxu2 }
 0x227   : > { %12638 = vst [vmem:[#allocation7_spill] sm:$0xff] %v11294_v34  ;;  %v2539_v41 = vsel %vm831_vm0, %v8377_v8, 0  ;;  %v1874_v48 = vpop.f32.mrf.mxu1 }
 0x22d   : > { %2758 = vmatpush.bf16.xpose.msrb.mxu2 %v8269_v50  ;;  %2771 = vmatpush.bf16.xpose.msrb.mxu3 %v8273_v51  ;;  %v8285_v51 = vor.u32 %v10252_v43, %v8284_v37  ;;  %v2579_v13 = vpop.f32.mrf.mxu0 }
 0x22e   : > { %2786 = vmatmul.bf16.vlgmr.msrb.gmra.mxu0 %v2097_v56  ;;  %2799 = vmatmul.bf16.vlgmr.msrb.gmra.mxu1 %v2099_v57  ;;  %v1796_v50 = vpop.f32.mrf.mxu3  ;;  %v2536_v56 = vsel %vm831_vm0, %v8289_v47, 0  ;;  %v10219_v57 = vld [vmem:[%s10660_s17 + $0x2bc] sm:$0xf]  ;;  %v11306_v62 = vpop.f32.mrf.mxu2 }
 0x22f   : > { %v8201_v61 = vor.u32 %v10219_v57, %v8198_v58  ;;  %12639 = vst [vmem:[#allocation8_spill] sm:$0xff] %v11306_v62 }
 0x231   : > { %v2533_v4 = vsel %vm831_vm0, %v8201_v61, 0 }
 0x235   : > { %2759 = vmatpush.bf16.xpose.msrb.mxu2 %v8181_v10  ;;  %2772 = vmatpush.bf16.xpose.msrb.mxu3 %v8185_v11  ;;  %v2592_v10 = vpop.f32.mrf.mxu1  ;;  %v2101_v11 = vshrl.u32 %v2059_v16, 16  ;;  %v2581_v15 = vpop.f32.mrf.mxu0 }
 0x236   : > { %v11308_v1 = vpop.f32.mrf.mxu3 }
 0x237   : > { %12640 = vst [vmem:[#allocation9_spill] sm:$0xff] %v11308_v1  ;;  %v8975_v1 = vld [vmem:[%s10660_s17 + $0x618] sm:$0xf0] }
 0x23c   : > { %2760 = vmatmul.bf16.vlgmr.msrb.gmra.mxu2 %v2093_v28  ;;  %2773 = vmatmul.bf16.vlgmr.msrb.gmra.mxu3 %v2095_v36 }
 0x23d   : > { %2808 = vmatpush.bf16.xpose.msra.mxu2 %v2443_v20  ;;  %2821 = vmatpush.bf16.xpose.msra.mxu3 %v2542_v23  ;;  %v1835_v20 = vpop.f32.mrf.mxu2  ;;  %v2594_v24 = vpop.f32.mrf.mxu1 }
 0x23e   : > { %v1848_v23 = vpop.f32.mrf.mxu3 }
 0x245   : > { %2809 = vmatpush.bf16.xpose.msra.mxu2 %v8373_v35  ;;  %2822 = vmatpush.bf16.xpose.msra.mxu3 %v2539_v41  ;;  %v2553_v27 = vpop.f32.mrf.mxu2 }
 0x246   : > { %v2566_v38 = vpop.f32.mrf.mxu3 }
 0x247   : > { %v2567_v32 = vadd.f32 %v2566_v38, %v2553_v27  ;;  %v8103_v38 = vld [vmem:[%s10865_s24 + $0x478] sm:$0x11] }
 0x249   : > { %v2580_v8 = vadd.f32 %v2579_v13, %v2567_v32  ;;  %v8105_v32 = vld [vmem:[%s10865_s24 + $0x488] sm:$0x11] }
 0x24b   : > { %v2593_v28 = vadd.f32 %v2592_v10, %v2580_v8  ;;  %v3041_v8 = vunpack.c.l.b16 %v8103_v38 }
 0x24c   : > { %v2631_v36 = vpop.f32.mrf.mxu0  ;;  %v2644_v35 = vpop.f32.mrf.mxu1 }
 0x24d   : > { %2810 = vmatpush.bf16.xpose.msra.mxu2 %v8285_v51  ;;  %2823 = vmatpush.bf16.xpose.msra.mxu3 %v2536_v56  ;;  %v2555_v41 = vpop.f32.mrf.mxu2 }
 0x24e   : > { %v2568_v42 = vpop.f32.mrf.mxu3  ;;  %v8557_v41 = vld [vmem:[%s10865_s24 + $0x3c8] sm:$0xf] }
 0x24f   : > { %v10330_v42 = vld [vmem:[%s10865_s24 + $0x41c] sm:$0xf0] }
 0x254   : > { %v2633_v44 = vpop.f32.mrf.mxu0  ;;  %v2646_v45 = vpop.f32.mrf.mxu1 }
 0x255   : > { %2811 = vmatpush.bf16.xpose.msra.mxu2 %v8197_v3  ;;  %2824 = vmatpush.bf16.xpose.msra.mxu3 %v2533_v4  ;;  %v3129_v44 = vpack.c.b16 %v3041_v8, %v3041_v8  ;;  %v10308_v8 = vld [vmem:[%s10865_s24 + $0x36c] sm:$0xf0] }
 0x25c   : > { %2812 = vmatmul.bf16.vlgmr.msra.gmra.mxu2 %v2101_v11  ;;  %8378 = vmatmul.msk.bf16.vlgmr.msra.gmra.mxu3 %vm831_vm0, %v2103_v14 }
 0x25f   : > { %v2605_v16 = vpop.f32.mrf.mxu2  ;;  %v2618_v5 = vpop.f32.mrf.mxu3 }
 0x260   : > { %v2606_v48 = vadd.f32 %v2605_v16, %v2593_v28  ;;  %v3042_v28 = vunpack.c.h.b16 %v8103_v38 }
 0x262   : > { %v2619_v37 = vadd.f32 %v2618_v5, %v2606_v48  ;;  %v3130_v45 = vpack.c.b16 %v3042_v28, %v3042_v28  ;;  %v10319_v48 = vld [vmem:[%s10865_s24 + $0x3cc] sm:$0xf]  ;;  %v10297_v28 = vld [vmem:[%s10865_s24 + $0x31c] sm:$0xf] }
 0x264   : > { %v2632_v43 = vadd.f32 %v2631_v36, %v2619_v37  ;;  %v3045_v36 = vunpack.c.l.b16 %v8105_v32  ;;  %v8559_v37 = vld [vmem:[%s10865_s24 + $0x420] sm:$0xf0] }
 0x266   : > { %v2645_v50 = vadd.f32 %v2644_v35, %v2632_v43  ;;  %v3046_v35 = vunpack.c.h.b16 %v8105_v32  ;;  %v3133_v16 = vpack.c.b16 %v3045_v36, %v3045_v36  ;;  %v8573_v43 = vld [vmem:[%s10865_s24 + $0x3d8] sm:$0xf] }
 0x267   : > { %v2607_v51 = vpop.f32.mrf.mxu2  ;;  %v2620_v56 = vpop.f32.mrf.mxu3  ;;  %v8469_v32 = vld [vmem:[%s10865_s24 + $0x318] sm:$0xf] }
 0x268   : > { %v3134_v5 = vpack.c.b16 %v3046_v35, %v3046_v35  ;;  %v10321_v51 = vld [vmem:[%s10865_s24 + $0x3dc] sm:$0xf]  ;;  %v8575_v56 = vld [vmem:[%s10865_s24 + $0x430] sm:$0xf0]  ;;  %v8470_v36 = vor.u32 %v10308_v8, %v8469_v32 }
 0x269   : > { %v8471_v35 = vld [vmem:[%s10865_s24 + $0x370] sm:$0xf0]  ;;  %v8107_v32 = vld [vmem:[%s10865_s24 + $0x498] sm:$0x11] }
 0x26c   : > { %v2683_v47 = vpop.f32.mrf.mxu0  ;;  %v2696_v49 = vpop.f32.mrf.mxu1 }
 0x274   : > { %v2685_v57 = vpop.f32.mrf.mxu0  ;;  %v2698_v58 = vpop.f32.mrf.mxu1 }
 0x275   : > { %v3221_v57 = vsel %vm1523_vm1, %v3129_v44, 0  ;;  %v3224_v58 = vsel %vm1523_vm1, %v3130_v45, 0  ;;  %v8474_v44 = vor.u32 %v10297_v28, %v8471_v35  ;;  %v3049_v28 = vunpack.c.l.b16 %v8107_v32 }
 0x276   : > { %3290 = vmatpush.bf16.msra.mxu0 %v3221_v57  ;;  %3303 = vmatpush.bf16.msra.mxu1 %v3224_v58 }
 0x27f   : > { %v2657_v59 = vpop.f32.mrf.mxu2  ;;  %v2670_v60 = vpop.f32.mrf.mxu3 }
 0x280   : > { %v2658_v61 = vadd.f32 %v2657_v59, %v2645_v50  ;;  %v10332_v50 = vld [vmem:[%s10865_s24 + $0x42c] sm:$0xf0]  ;;  %v3233_v59 = vsel %vm1523_vm1, %v3133_v16, 0  ;;  %v10299_v16 = vld [vmem:[%s10865_s24 + $0x32c] sm:$0xf] }
 0x281   : > { %3342 = vmatpush.bf16.msrb.mxu2 %v3233_v59 }
 0x282   : > { %v2671_v13 = vadd.f32 %v2670_v60, %v2658_v61  ;;  %v3236_v60 = vsel %vm1523_vm1, %v3134_v5, 0  ;;  %v8558_v61 = vor.u32 %v10330_v42, %v8557_v41  ;;  %v8485_v41 = vld [vmem:[%s10865_s24 + $0x328] sm:$0xf]  ;;  %v10310_v42 = vld [vmem:[%s10865_s24 + $0x37c] sm:$0xf0] }
 0x283   : > { %3355 = vmatpush.bf16.msrb.mxu3 %v3236_v60  ;;  %v8486_v45 = vor.u32 %v10310_v42, %v8485_v41  ;;  %v8487_v5 = vld [vmem:[%s10865_s24 + $0x380] sm:$0xf0]  ;;  %v3137_v42 = vpack.c.b16 %v3049_v28, %v3049_v28 }
 0x284   : > { %v2684_v3 = vadd.f32 %v2683_v47, %v2671_v13  ;;  %v8562_v13 = vor.u32 %v10319_v48, %v8559_v37  ;;  %3291 = vmatpush.bf16.msra.mxu0 %v8558_v61  ;;  %v8490_v48 = vor.u32 %v10299_v16, %v8487_v5  ;;  %v8104_v37 = vld [vmem:[%s10865_s24 + $0x480] sm:$0x11]  ;;  %v8397_v61 = vld [vmem:[%s10865_s24 + $0x278] sm:$0xf] }
 0x285   : > { %v3044_v57 = vunpack.c.h.b16 %v8104_v37  ;;  %v8383_v60 = vld [vmem:[%s10865_s24 + $0x2c0] sm:$0xf0]  ;;  %v3245_v16 = vsel %vm1523_vm1, %v3137_v42, 0  ;;  %v8389_v42 = vld [vmem:[%s10865_s24 + $0x270] sm:$0xf] }
 0x286   : > { %v11316_v11 = vadd.f32 %v2696_v49, %v2684_v3  ;;  %3304 = vmatpush.bf16.msra.mxu1 %v8562_v13  ;;  %v10288_v13 = vld [vmem:[%s10865_s24 + $0x2cc] sm:$0xf0] }
 0x287   : > { %v2659_v14 = vpop.f32.mrf.mxu2  ;;  %v2672_v15 = vpop.f32.mrf.mxu3 }
 0x288   : > { %v8574_v15 = vor.u32 %v10332_v50, %v8573_v43  ;;  %3292 = vmatpush.bf16.msra.mxu0 %v8470_v36  ;;  %v8381_v43 = vld [vmem:[%s10865_s24 + $0x268] sm:$0xf]  ;;  %v10286_v50 = vld [vmem:[%s10865_s24 + $0x2bc] sm:$0xf0]  ;;  %v3050_v36 = vunpack.c.h.b16 %v8107_v32  ;;  %v10312_v32 = vld [vmem:[%s10865_s24 + $0x38c] sm:$0xf0] }
 0x289   : > { %v8382_v59 = vor.u32 %v10286_v50, %v8381_v43  ;;  %v10320_v50 = vld [vmem:[%s10865_s24 + $0x3d4] sm:$0xf] }
 0x28a   : > { %3343 = vmatpush.bf16.msrb.mxu2 %v8574_v15  ;;  %3305 = vmatpush.bf16.msra.mxu1 %v8474_v44  ;;  %v10277_v15 = vld [vmem:[%s10865_s24 + $0x27c] sm:$0xf]  ;;  %v3138_v44 = vpack.c.b16 %v3050_v36, %v3050_v36 }
 0x28c   : > { %v11312_v4 = vpop.f32.mrf.mxu0  ;;  %v11314_v10 = vpop.f32.mrf.mxu1  ;;  %3293 = vmatpush.bf16.msra.mxu0 %v8382_v59  ;;  %v3248_v5 = vsel %vm1523_vm1, %v3138_v44, 0  ;;  %v8591_v59 = vld [vmem:[%s10865_s24 + $0x440] sm:$0xf0] }
 0x28e   : > { %3344 = vmatpush.bf16.msrb.mxu2 %v8486_v45 }
 0x294   : > { %v2737_v20 = vpop.f32.mrf.mxu0  ;;  %v2750_v23 = vpop.f32.mrf.mxu1 }
 0x295   : > { %v8578_v20 = vor.u32 %v10321_v51, %v8575_v56  ;;  %v10275_v51 = vld [vmem:[%s10865_s24 + $0x26c] sm:$0xf]  ;;  %v3043_v56 = vunpack.c.l.b16 %v8104_v37  ;;  %v10331_v37 = vld [vmem:[%s10865_s24 + $0x424] sm:$0xf0] }
 0x297   : > { %3356 = vmatpush.bf16.msrb.mxu3 %v8578_v20  ;;  %v8399_v20 = vld [vmem:[%s10865_s24 + $0x2d0] sm:$0xf0] }
 0x298   : > { %v8402_v8 = vor.u32 %v10277_v15, %v8399_v20  ;;  %v10298_v15 = vld [vmem:[%s10865_s24 + $0x324] sm:$0xf] }
 0x29b   : > { %3357 = vmatpush.bf16.msrb.mxu3 %v8490_v48  ;;  %v8565_v48 = vld [vmem:[%s10865_s24 + $0x3d0] sm:$0xf] }
 0x29c   : > { %v8566_v43 = vor.u32 %v10331_v37, %v8565_v48 }
 0x29f   : > { %v11318_v24 = vpop.f32.mrf.mxu2  ;;  %v11320_v27 = vpop.f32.mrf.mxu3  ;;  %3358 = vmatpush.bf16.msrb.mxu3 %v8402_v8 }
 0x2a0   : > { %v2710_v58 = vadd.f32 %v11318_v24, %v11316_v11 }
 0x2a2   : > { %v2723_v45 = vadd.f32 %v11320_v27, %v2710_v58  ;;  %v10323_v58 = vld [vmem:[%s10865_s24 + $0x3ec] sm:$0xf] }
 0x2a3   : > { %3407 = vmatpush.bf16.msra.mxu3 %v3248_v5  ;;  %v8391_v5 = vld [vmem:[%s10865_s24 + $0x2c8] sm:$0xf0] }
 0x2a7   : > { %v2711_v3 = vpop.f32.mrf.mxu2  ;;  %v2724_v14 = vpop.f32.mrf.mxu3 }
 0x2a8   : > { %v8386_v3 = vor.u32 %v10275_v51, %v8383_v60  ;;  %v8398_v14 = vor.u32 %v10288_v13, %v8397_v61  ;;  %v8567_v51 = vld [vmem:[%s10865_s24 + $0x428] sm:$0xf0]  ;;  %v2736_v60 = vadd.f32 %v11312_v4, %v2723_v45  ;;  %v8594_v13 = vor.u32 %v10323_v58, %v8591_v59  ;;  %v10287_v45 = vld [vmem:[%s10865_s24 + $0x2c4] sm:$0xf0] }
 0x2a9   : > { %v8570_v27 = vor.u32 %v10320_v50, %v8567_v51  ;;  %v8390_v37 = vor.u32 %v10287_v45, %v8389_v42  ;;  %v10290_v50 = vld [vmem:[%s10865_s24 + $0x2dc] sm:$0xf0]  ;;  %v10322_v45 = vld [vmem:[%s10865_s24 + $0x3e4] sm:$0xf] }
 0x2aa   : > { %3306 = vmatpush.bf16.msra.mxu1 %v8386_v3  ;;  %3345 = vmatpush.bf16.msrb.mxu2 %v8398_v14  ;;  %v8477_v3 = vld [vmem:[%s10865_s24 + $0x320] sm:$0xf]  ;;  %v10309_v14 = vld [vmem:[%s10865_s24 + $0x374] sm:$0xf0]  ;;  %v2749_v48 = vadd.f32 %v11314_v10, %v2736_v60  ;;  %v8106_v60 = vld [vmem:[%s10865_s24 + $0x490] sm:$0x11] }
 0x2ab   : > { %v11329_v47 = vpop.f32.mrf.mxu0  ;;  %v11331_v49 = vpop.f32.mrf.mxu1  ;;  %v8478_v20 = vor.u32 %v10309_v14, %v8477_v3  ;;  %3408 = vmatpush.bf16.msra.mxu3 %v8594_v13  ;;  %v8109_v13 = vld [vmem:[%s10865_s24 + $0x4a8] sm:$0x11]  ;;  %v3047_v3 = vunpack.c.l.b16 %v8106_v60  ;;  %v3048_v14 = vunpack.c.h.b16 %v8106_v60  ;;  %v8581_v42 = vld [vmem:[%s10865_s24 + $0x3e0] sm:$0xf] }
 0x2ac   : > { %v8495_v60 = vld [vmem:[%s10865_s24 + $0x388] sm:$0xf0] }
 0x2ae   : > { %3394 = vmatpush.bf16.msra.mxu2 %v3245_v16  ;;  %v10276_v16 = vld [vmem:[%s10865_s24 + $0x274] sm:$0xf] }
 0x2af   : > { %v8394_v51 = vor.u32 %v10276_v16, %v8391_v5 }
 0x2b3   : > { %v2789_v23 = vpop.f32.mrf.mxu0  ;;  %v2802_v38 = vpop.f32.mrf.mxu1 }
 0x2b4   : > { %v3131_v23 = vpack.c.b16 %v3043_v56, %v3043_v56  ;;  %v3132_v38 = vpack.c.b16 %v3044_v57, %v3044_v57  ;;  %v8589_v56 = vld [vmem:[%s10865_s24 + $0x3e8] sm:$0xf]  ;;  %v10334_v57 = vld [vmem:[%s10865_s24 + $0x43c] sm:$0xf0] }
 0x2b5   : > { %v8590_v61 = vor.u32 %v10334_v57, %v8589_v56  ;;  %v10279_v56 = vld [vmem:[%s10865_s24 + $0x28c] sm:$0xf] }
 0x2b6   : > { %v3227_v24 = vsel %vm1523_vm1, %v3131_v23, 0  ;;  %v3230_v41 = vsel %vm1523_vm1, %v3132_v38, 0  ;;  %v8479_v23 = vld [vmem:[%s10865_s24 + $0x378] sm:$0xf0]  ;;  %v8501_v38 = vld [vmem:[%s10865_s24 + $0x338] sm:$0xf] }
 0x2b7   : > { %3316 = vmatpush.bf16.msrb.mxu0 %v3227_v24  ;;  %3329 = vmatpush.bf16.msrb.mxu1 %v3230_v41  ;;  %v8482_v28 = vor.u32 %v10298_v15, %v8479_v23  ;;  %v8502_v36 = vor.u32 %v10312_v32, %v8501_v38  ;;  %v10301_v24 = vld [vmem:[%s10865_s24 + $0x33c] sm:$0xf]  ;;  %v8503_v41 = vld [vmem:[%s10865_s24 + $0x390] sm:$0xf0]  ;;  %v3053_v23 = vunpack.c.l.b16 %v8109_v13  ;;  %v3054_v38 = vunpack.c.h.b16 %v8109_v13 }
 0x2b8   : > { %3395 = vmatpush.bf16.msra.mxu2 %v8590_v61  ;;  %v8506_v44 = vor.u32 %v10301_v24, %v8503_v41 }
 0x2ba   : > { %3409 = vmatpush.bf16.msra.mxu3 %v8506_v44  ;;  %v10333_v44 = vld [vmem:[%s10865_s24 + $0x434] sm:$0xf0] }
 0x2bb   : > { %3317 = vmatpush.bf16.msrb.mxu0 %v8566_v43  ;;  %3330 = vmatpush.bf16.msrb.mxu1 %v8570_v27  ;;  %v8413_v43 = vld [vmem:[%s10865_s24 + $0x288] sm:$0xf]  ;;  %v8415_v27 = vld [vmem:[%s10865_s24 + $0x2e0] sm:$0xf0] }
 0x2bc   : > { %3396 = vmatpush.bf16.msra.mxu2 %v8502_v36  ;;  %v8414_v58 = vor.u32 %v10290_v50, %v8413_v43  ;;  %v8418_v59 = vor.u32 %v10279_v56, %v8415_v27  ;;  %v8605_v50 = vld [vmem:[%s10865_s24 + $0x3f8] sm:$0xf]  ;;  %v10325_v56 = vld [vmem:[%s10865_s24 + $0x3fc] sm:$0xf]  ;;  %v8607_v27 = vld [vmem:[%s10865_s24 + $0x450] sm:$0xf0] }
 0x2be   : > { %3410 = vmatpush.bf16.msra.mxu3 %v8418_v59 }
 0x2bf   : > { %v2761_v35 = vpop.f32.mrf.mxu2  ;;  %v11360_v11 = vpop.f32.mrf.mxu3  ;;  %3318 = vmatpush.bf16.msrb.mxu0 %v8478_v20  ;;  %3331 = vmatpush.bf16.msrb.mxu1 %v8482_v28  ;;  %v3142_v28 = vpack.c.b16 %v3054_v38, %v3054_v38  ;;  %v8111_v38 = vld [vmem:[%s10865_s24 + $0x4b8] sm:$0x11] }
 0x2c0   : > { %v2762_v57 = vadd.f32 %v2761_v35, %v2749_v48  ;;  %3397 = vmatpush.bf16.msra.mxu2 %v8414_v58  ;;  %v8583_v48 = vld [vmem:[%s10865_s24 + $0x438] sm:$0xf0]  ;;  %v8582_v58 = vor.u32 %v10333_v44, %v8581_v42  ;;  %v8429_v44 = vld [vmem:[%s10865_s24 + $0x298] sm:$0xf] }
 0x2c1   : > { %v3260_v43 = vsel %vm1523_vm1, %v3142_v28, 0  ;;  %v8586_v59 = vor.u32 %v10322_v45, %v8583_v48  ;;  %v8407_v28 = vld [vmem:[%s10865_s24 + $0x2d8] sm:$0xf0]  ;;  %v10292_v45 = vld [vmem:[%s10865_s24 + $0x2ec] sm:$0xf0] }
 0x2c2   : > { %v2775_v61 = vadd.f32 %v11360_v11, %v2762_v57  ;;  %v3135_v11 = vpack.c.b16 %v3047_v3, %v3047_v3  ;;  %v8493_v57 = vld [vmem:[%s10865_s24 + $0x330] sm:$0xf]  ;;  %v8610_v3 = vor.u32 %v10325_v56, %v8607_v27  ;;  %v10281_v48 = vld [vmem:[%s10865_s24 + $0x29c] sm:$0xf]  ;;  %v8430_v27 = vor.u32 %v10292_v45, %v8429_v44  ;;  %v8533_v44 = vld [vmem:[%s10865_s24 + $0x358] sm:$0xf] }
 0x2c3   : > { %3319 = vmatpush.bf16.msrb.mxu0 %v8390_v37  ;;  %3332 = vmatpush.bf16.msrb.mxu1 %v8394_v51  ;;  %v10336_v51 = vld [vmem:[%s10865_s24 + $0x44c] sm:$0xf0] }
 0x2c4   : > { %v2788_v10 = vadd.f32 %v11329_v47, %v2775_v61  ;;  %v3141_v47 = vpack.c.b16 %v3053_v23, %v3053_v23  ;;  %v3239_v24 = vsel %vm1523_vm1, %v3135_v11, 0  ;;  %v10311_v61 = vld [vmem:[%s10865_s24 + $0x384] sm:$0xf0]  ;;  %v8606_v13 = vor.u32 %v10336_v51, %v8605_v50  ;;  %v8519_v23 = vld [vmem:[%s10865_s24 + $0x3a0] sm:$0xf0] }
 0x2c5   : > { %v8494_v11 = vor.u32 %v10311_v61, %v8493_v57  ;;  %v8597_v61 = vld [vmem:[%s10865_s24 + $0x3f0] sm:$0xf] }
 0x2c6   : > { %v2801_v15 = vadd.f32 %v11331_v49, %v2788_v10  ;;  %v3257_v37 = vsel %vm1523_vm1, %v3141_v47, 0  ;;  %v10300_v10 = vld [vmem:[%s10865_s24 + $0x334] sm:$0xf]  ;;  %v10278_v47 = vld [vmem:[%s10865_s24 + $0x284] sm:$0xf] }
 0x2c7   : > { %v2763_v8 = vpop.f32.mrf.mxu2  ;;  %v2776_v4 = vpop.f32.mrf.mxu3  ;;  %v8410_v50 = vor.u32 %v10278_v47, %v8407_v28  ;;  %v10313_v47 = vld [vmem:[%s10865_s24 + $0x394] sm:$0xf0]  ;;  %v10302_v28 = vld [vmem:[%s10865_s24 + $0x344] sm:$0xf]  ;;  %v10316_v45 = vld [vmem:[%s10865_s24 + $0x3ac] sm:$0xf0] }
 0x2c8   : > { %v3136_v8 = vpack.c.b16 %v3048_v14, %v3048_v14  ;;  %v8108_v14 = vld [vmem:[%s10865_s24 + $0x4a0] sm:$0x11] }
 0x2ca   : > { %v3242_v49 = vsel %vm1523_vm1, %v3136_v8, 0  ;;  %v8498_v8 = vor.u32 %v10300_v10, %v8495_v60  ;;  %v10335_v10 = vld [vmem:[%s10865_s24 + $0x444] sm:$0xf0]  ;;  %v10324_v60 = vld [vmem:[%s10865_s24 + $0x3f4] sm:$0xf] }
 0x2df   : > { %v2813_v35 = vpop.f32.mrf.mxu2  ;;  %v2826_v20 = vpop.f32.mrf.mxu3 }
 0x2e0   : > { %v2814_v32 = vadd.f32 %v2813_v35, %v2801_v15  ;;  %v8517_v15 = vld [vmem:[%s10865_s24 + $0x348] sm:$0xf]  ;;  %v10314_v35 = vld [vmem:[%s10865_s24 + $0x39c] sm:$0xf0] }
 0x2e2   : > { %v2827_v4 = vadd.f32 %v2826_v20, %v2814_v32  ;;  %v10303_v20 = vld [vmem:[%s10865_s24 + $0x34c] sm:$0xf]  ;;  %v8405_v32 = vld [vmem:[%s10865_s24 + $0x280] sm:$0xf] }
 0x2e3   : > { %v8522_v42 = vor.u32 %v10303_v20, %v8519_v23  ;;  %v8621_v20 = vld [vmem:[%s10865_s24 + $0x408] sm:$0xf]  ;;  %v10338_v23 = vld [vmem:[%s10865_s24 + $0x45c] sm:$0xf0] }
 0x2e4   : > { %v2830_v36 = vmul.f32 0.25, %v2827_v4  ;;  %v10289_v4 = vld [vmem:[%s10865_s24 + $0x2d4] sm:$0xf0] }
 0x2e6   : > { %v11400_v41 = vpack.c.bf16 %v2830_v36, %v2830_v36  ;;  %v3051_v36 = vunpack.c.l.b16 %v8108_v14 }
 0x2e7   : > { %v2815_v16 = vpop.f32.mrf.mxu2  ;;  %v2828_v5 = vpop.f32.mrf.mxu3 }
 0x2e8   : > { %8643 = vmatmul.msk.bf16.vlgmr.msra.gmra.mxu0 %vm1519_vm2, %v11400_v41  ;;  %8644 = vmatmul.msk.bf16.vlgmr.msra.gmra.mxu1 %vm1519_vm2, %v11400_v41  ;;  %v3057_v16 = vunpack.c.l.b16 %v8111_v38  ;;  %v3058_v5 = vunpack.c.h.b16 %v8111_v38  ;;  %v3139_v51 = vpack.c.b16 %v3051_v36, %v3051_v36  ;;  %v10327_v38 = vld [vmem:[%s10865_s24 + $0x40c] sm:$0xf]  ;;  %v8511_v36 = vld [vmem:[%s10865_s24 + $0x398] sm:$0xf0] }
 0x2e9   : > { %8647 = vmatmul.msk.bf16.vlgmr.msrb.gmra.mxu2 %vm1519_vm2, %v11400_v41  ;;  %8648 = vmatmul.msk.bf16.vlgmr.msrb.gmra.mxu3 %vm1519_vm2, %v11400_v41 }
 0x2ea   : > { %3368 = vmatpush.bf16.msra.mxu0 %v3239_v24  ;;  %3381 = vmatpush.bf16.msra.mxu1 %v3242_v49  ;;  %v3052_v24 = vunpack.c.h.b16 %v8108_v14  ;;  %v8518_v49 = vor.u32 %v10314_v35, %v8517_v15 }
 0x2eb   : > { %3446 = vmatpush.bf16.msrb.mxu2 %v3257_v37  ;;  %3459 = vmatpush.bf16.msrb.mxu3 %v3260_v43  ;;  %v8431_v37 = vld [vmem:[%s10865_s24 + $0x2f0] sm:$0xf0]  ;;  %v8406_v43 = vor.u32 %v10289_v4, %v8405_v32  ;;  %v8623_v32 = vld [vmem:[%s10865_s24 + $0x460] sm:$0xf0] }
 0x2ec   : > { %v3140_v56 = vpack.c.b16 %v3052_v24, %v3052_v24  ;;  %v8434_v57 = vor.u32 %v10281_v48, %v8431_v37  ;;  %v8622_v24 = vor.u32 %v10338_v23, %v8621_v20  ;;  %v8113_v48 = vld [vmem:[%s10865_s24 + $0x4c8] sm:$0x11]  ;;  %v8421_v37 = vld [vmem:[%s10865_s24 + $0x290] sm:$0xf] }
 0x2ee   : > { %3369 = vmatpush.bf16.msra.mxu0 %v8582_v58  ;;  %3382 = vmatpush.bf16.msra.mxu1 %v8586_v59  ;;  %v3145_v58 = vpack.c.b16 %v3057_v16, %v3057_v16  ;;  %v3146_v59 = vpack.c.b16 %v3058_v5, %v3058_v5  ;;  %v3254_v14 = vsel %vm1523_vm1, %v3140_v56, 0  ;;  %v10305_v16 = vld [vmem:[%s10865_s24 + $0x35c] sm:$0xf]  ;;  %v8535_v5 = vld [vmem:[%s10865_s24 + $0x3b0] sm:$0xf0] }
 0x2ef   : > { %3447 = vmatpush.bf16.msrb.mxu2 %v8606_v13  ;;  %3460 = vmatpush.bf16.msrb.mxu3 %v8610_v3  ;;  %v8599_v13 = vld [vmem:[%s10865_s24 + $0x448] sm:$0xf0]  ;;  %v3251_v3 = vsel %vm1523_vm1, %v3139_v51, 0  ;;  %v10291_v51 = vld [vmem:[%s10865_s24 + $0x2e4] sm:$0xf0] }
 0x2f0   : > { %v3269_v15 = vsel %vm1523_vm1, %v3145_v58, 0  ;;  %v3272_v35 = vsel %vm1523_vm1, %v3146_v59, 0  ;;  %v8602_v4 = vor.u32 %v10324_v60, %v8599_v13  ;;  %v10280_v56 = vld [vmem:[%s10865_s24 + $0x294] sm:$0xf]  ;;  %v8534_v59 = vor.u32 %v10316_v45, %v8533_v44  ;;  %v10294_v60 = vld [vmem:[%s10865_s24 + $0x2fc] sm:$0xf0] }
 0x2f1   : > { %v3061_v13 = vunpack.c.l.b16 %v8113_v48 }
 0x2f2   : > { %3370 = vmatpush.bf16.msra.mxu0 %v8494_v11  ;;  %3383 = vmatpush.bf16.msra.mxu1 %v8498_v8  ;;  %v8509_v11 = vld [vmem:[%s10865_s24 + $0x340] sm:$0xf]  ;;  %v8598_v8 = vor.u32 %v10335_v10, %v8597_v61  ;;  %v8538_v61 = vor.u32 %v10305_v16, %v8535_v5  ;;  %v8445_v10 = vld [vmem:[%s10865_s24 + $0x2a8] sm:$0xf]  ;;  %v8637_v16 = vld [vmem:[%s10865_s24 + $0x418] sm:$0xf] }
 0x2f3   : > { %3448 = vmatpush.bf16.msrb.mxu2 %v8518_v49  ;;  %3461 = vmatpush.bf16.msrb.mxu3 %v8522_v42  ;;  %v8626_v49 = vor.u32 %v10327_v38, %v8623_v32  ;;  %v8110_v42 = vld [vmem:[%s10865_s24 + $0x4b0] sm:$0x11]  ;;  %v8446_v32 = vor.u32 %v10294_v60, %v8445_v10  ;;  %v8549_v10 = vld [vmem:[%s10865_s24 + $0x368] sm:$0xf]  ;;  %v10318_v60 = vld [vmem:[%s10865_s24 + $0x3bc] sm:$0xf0] }
 0x2f4   : > { %v3056_v58 = vunpack.c.h.b16 %v8110_v42  ;;  %v10340_v5 = vld [vmem:[%s10865_s24 + $0x46c] sm:$0xf0] }
 0x2f6   : > { %3371 = vmatpush.bf16.msra.mxu0 %v8406_v43  ;;  %3384 = vmatpush.bf16.msra.mxu1 %v8410_v50  ;;  %v8510_v43 = vor.u32 %v10313_v47, %v8509_v11  ;;  %v8514_v50 = vor.u32 %v10302_v28, %v8511_v36  ;;  %v3144_v38 = vpack.c.b16 %v3056_v58, %v3056_v58  ;;  %v8613_v47 = vld [vmem:[%s10865_s24 + $0x400] sm:$0xf]  ;;  %v10337_v28 = vld [vmem:[%s10865_s24 + $0x454] sm:$0xf0]  ;;  %v10326_v36 = vld [vmem:[%s10865_s24 + $0x404] sm:$0xf] }
 0x2f7   : > { %3449 = vmatpush.bf16.msrb.mxu2 %v8430_v27  ;;  %3462 = vmatpush.bf16.msrb.mxu3 %v8434_v57  ;;  %v8423_v27 = vld [vmem:[%s10865_s24 + $0x2e8] sm:$0xf0]  ;;  %v3055_v57 = vunpack.c.l.b16 %v8110_v42  ;;  %v8112_v58 = vld [vmem:[%s10865_s24 + $0x4c0] sm:$0x11] }
 0x2f8   : > { %8645 = vmatmul.msk.bf16.vlgmr.msrb.gmra.mxu0 %vm1519_vm2, %v11400_v41  ;;  %8646 = vmatmul.msk.bf16.vlgmr.msrb.gmra.mxu1 %vm1519_vm2, %v11400_v41  ;;  %v8426_v20 = vor.u32 %v10280_v56, %v8423_v27  ;;  %v3266_v42 = vsel %vm1523_vm1, %v3144_v38, 0  ;;  %v10315_v56 = vld [vmem:[%s10865_s24 + $0x3a4] sm:$0xf0]  ;;  %v10304_v27 = vld [vmem:[%s10865_s24 + $0x354] sm:$0xf]  ;;  %v3059_v38 = vunpack.c.l.b16 %v8112_v58 }
 0x2f9   : > { %8651 = vmatmul.msk.bf16.vlgmr.msra.gmra.mxu2 %vm1519_vm2, %v11400_v41  ;;  %8652 = vmatmul.msk.bf16.vlgmr.msra.gmra.mxu3 %vm1519_vm2, %v11400_v41  ;;  %v3143_v23 = vpack.c.b16 %v3055_v57, %v3055_v57  ;;  %v8527_v57 = vld [vmem:[%s10865_s24 + $0x3a8] sm:$0xf0] }
 0x2fa   : > { %3420 = vmatpush.bf16.msrb.mxu0 %v3251_v3  ;;  %3433 = vmatpush.bf16.msrb.mxu1 %v3254_v14  ;;  %v3062_v3 = vunpack.c.h.b16 %v8113_v48  ;;  %v10283_v14 = vld [vmem:[%s10865_s24 + $0x2ac] sm:$0xf]  ;;  %v10329_v48 = vld [vmem:[%s10865_s24 + $0x41c] sm:$0xf] }
 0x2fb   : > { %3498 = vmatpush.bf16.msra.mxu2 %v3269_v15  ;;  %3511 = vmatpush.bf16.msra.mxu3 %v3272_v35  ;;  %v8447_v15 = vld [vmem:[%s10865_s24 + $0x300] sm:$0xf0]  ;;  %v8422_v35 = vor.u32 %v10291_v51, %v8421_v37  ;;  %v8639_v37 = vld [vmem:[%s10865_s24 + $0x470] sm:$0xf0]  ;;  %v8525_v51 = vld [vmem:[%s10865_s24 + $0x350] sm:$0xf] }
 0x2fc   : > { %v8450_v11 = vor.u32 %v10283_v14, %v8447_v15  ;;  %v8526_v14 = vor.u32 %v10315_v56, %v8525_v51  ;;  %v8530_v15 = vor.u32 %v10304_v27, %v8527_v57  ;;  %v8629_v56 = vld [vmem:[%s10865_s24 + $0x410] sm:$0xf]  ;;  %v10339_v27 = vld [vmem:[%s10865_s24 + $0x464] sm:$0xf0]  ;;  %v10328_v57 = vld [vmem:[%s10865_s24 + $0x414] sm:$0xf] }
 0x2fe   : > { %3421 = vmatpush.bf16.msrb.mxu0 %v8598_v8  ;;  %3434 = vmatpush.bf16.msrb.mxu1 %v8602_v4  ;;  %v3149_v8 = vpack.c.b16 %v3061_v13, %v3061_v13  ;;  %v3150_v4 = vpack.c.b16 %v3062_v3, %v3062_v3  ;;  %v10307_v13 = vld [vmem:[%s10865_s24 + $0x36c] sm:$0xf]  ;;  %v8551_v3 = vld [vmem:[%s10865_s24 + $0x3c0] sm:$0xf0] }
 0x2ff   : > { %3499 = vmatpush.bf16.msra.mxu2 %v8622_v24  ;;  %3512 = vmatpush.bf16.msra.mxu3 %v8626_v49  ;;  %v8615_v24 = vld [vmem:[%s10865_s24 + $0x458] sm:$0xf0]  ;;  %v3263_v49 = vsel %vm1523_vm1, %v3143_v23, 0  ;;  %v10282_v23 = vld [vmem:[%s10865_s24 + $0x2a4] sm:$0xf] }
 0x300   : > { %v3281_v44 = vsel %vm1523_vm1, %v3149_v8, 0  ;;  %v3284_v45 = vsel %vm1523_vm1, %v3150_v4, 0  ;;  %v8550_v8 = vor.u32 %v10318_v60, %v8549_v10  ;;  %v8554_v4 = vor.u32 %v10307_v13, %v8551_v3  ;;  %v8541_v13 = vld [vmem:[%s10865_s24 + $0x360] sm:$0xf]  ;;  %v10317_v3 = vld [vmem:[%s10865_s24 + $0x3b4] sm:$0xf0] }
 0x301   : > { %v8630_v10 = vor.u32 %v10339_v27, %v8629_v56 }
 0x302   : > { %3422 = vmatpush.bf16.msrb.mxu0 %v8510_v43  ;;  %3435 = vmatpush.bf16.msrb.mxu1 %v8514_v50  ;;  %v8614_v43 = vor.u32 %v10337_v28, %v8613_v47  ;;  %v8618_v50 = vor.u32 %v10326_v36, %v8615_v24  ;;  %v8461_v47 = vld [vmem:[%s10865_s24 + $0x2b8] sm:$0xf]  ;;  %v10296_v28 = vld [vmem:[%s10865_s24 + $0x30c] sm:$0xf0]  ;;  %v10285_v36 = vld [vmem:[%s10865_s24 + $0x2bc] sm:$0xf] }
 0x303   : > { %3500 = vmatpush.bf16.msra.mxu2 %v8534_v59  ;;  %3513 = vmatpush.bf16.msra.mxu3 %v8538_v61  ;;  %v8638_v59 = vor.u32 %v10340_v5, %v8637_v16  ;;  %v8642_v61 = vor.u32 %v10329_v48, %v8639_v37  ;;  %v8463_v24 = vld [vmem:[%s10865_s24 + $0x310] sm:$0xf0]  ;;  %v8462_v5 = vor.u32 %v10296_v28, %v8461_v47  ;;  %v8455_v28 = vld [vmem:[%s10865_s24 + $0x308] sm:$0xf0] }
 0x304   : > { %v8466_v48 = vor.u32 %v10285_v36, %v8463_v24  ;;  %v10284_v47 = vld [vmem:[%s10865_s24 + $0x2b4] sm:$0xf]  ;;  %v8731_v36 = vld [vmem:[%s10660_s17 + $0x6e0] sm:$0x11] }
 0x306   : > { %3423 = vmatpush.bf16.msrb.mxu0 %v8422_v35  ;;  %3436 = vmatpush.bf16.msrb.mxu1 %v8426_v20  ;;  %v8437_v35 = vld [vmem:[%s10865_s24 + $0x2a0] sm:$0xf]  ;;  %v10293_v20 = vld [vmem:[%s10865_s24 + $0x2f4] sm:$0xf0] }
 0x307   : > { %3501 = vmatpush.bf16.msra.mxu2 %v8446_v32  ;;  %3514 = vmatpush.bf16.msra.mxu3 %v8450_v11  ;;  %v3060_v32 = vunpack.c.h.b16 %v8112_v58  ;;  %v8439_v11 = vld [vmem:[%s10865_s24 + $0x2f8] sm:$0xf0]  ;;  %v8631_v58 = vld [vmem:[%s10865_s24 + $0x468] sm:$0xf0] }
 0x308   : > { %8649 = vmatmul.msk.bf16.vlgmr.msra.gmra.mxu0 %vm1519_vm2, %v11400_v41  ;;  %8650 = vmatmul.msk.bf16.vlgmr.msra.gmra.mxu1 %vm1519_vm2, %v11400_v41  ;;  %v8634_v60 = vor.u32 %v10328_v57, %v8631_v58  ;;  %v8734_v57 = vld [vmem:[%s10660_s17 + $0x6f8] sm:$0x11]  ;;  %v8997_v58 = vld [vmem:[%s10660_s17 + $0x630] sm:$0xf] }
 0x309   : > { %8655 = vmatmul.msk.bf16.vlgmr.msrb.gmra.mxu2 %vm1519_vm2, %v11400_v41  ;;  %8656 = vmatmul.msk.bf16.vlgmr.msrb.gmra.mxu3 %vm1519_vm2, %v11400_v41  ;;  %v3148_v16 = vpack.c.b16 %v3060_v32, %v3060_v32  ;;  %v8542_v32 = vor.u32 %v10317_v3, %v8541_v13  ;;  %v10353_v13 = vld [vmem:[%s10660_s17 + $0x52c] sm:$0xf0]  ;;  %v4037_v3 = vunpack.c.l.b16 %v8734_v57 }
 0x30a   : > { %3472 = vmatpush.bf16.msra.mxu0 %v3263_v49  ;;  %3485 = vmatpush.bf16.msra.mxu1 %v3266_v42  ;;  %v8732_v49 = vld [vmem:[%s10660_s17 + $0x6e8] sm:$0x11]  ;;  %v8438_v42 = vor.u32 %v10293_v20, %v8437_v35  ;;  %v9005_v35 = vld [vmem:[%s10660_s17 + $0x638] sm:$0xf]  ;;  %v10397_v20 = vld [vmem:[%s10660_s17 + $0x68c] sm:$0xf0] }
 0x30b   : > { %3550 = vmatpush.bf16.msrb.mxu2 %v3281_v44  ;;  %3563 = vmatpush.bf16.msrb.mxu3 %v3284_v45  ;;  %v8442_v44 = vor.u32 %v10282_v23, %v8439_v11  ;;  %v3147_v45 = vpack.c.b16 %v3059_v38, %v3059_v38  ;;  %v4033_v37 = vunpack.c.l.b16 %v8732_v49  ;;  %v3278_v51 = vsel %vm1523_vm1, %v3148_v16, 0  ;;  %v10386_v23 = vld [vmem:[%s10660_s17 + $0x63c] sm:$0xf]  ;;  %v9007_v38 = vld [vmem:[%s10660_s17 + $0x690] sm:$0xf0] }
 0x30c   : > { %v9006_v24 = vor.u32 %v10397_v20, %v9005_v35  ;;  %v4032_v16 = vunpack.c.h.b16 %v8731_v36  ;;  %v4038_v35 = vunpack.c.h.b16 %v8734_v57 }
 0x30e   : > { %3473 = vmatpush.bf16.msra.mxu0 %v8614_v43  ;;  %3486 = vmatpush.bf16.msra.mxu1 %v8618_v50  ;;  %v4034_v43 = vunpack.c.h.b16 %v8732_v49  ;;  %v3275_v50 = vsel %vm1523_vm1, %v3147_v45, 0  ;;  %v9010_v49 = vor.u32 %v10386_v23, %v9007_v38  ;;  %v4031_v45 = vunpack.c.l.b16 %v8731_v36  ;;  %v11564_v36 = vld.sshfl [vmem:[#allocation1 + $0x8] sm:$0xff pattern:$0x73625140] }
 0x30f   : > { %3551 = vmatpush.bf16.msrb.mxu2 %v8638_v59  ;;  %3564 = vmatpush.bf16.msrb.mxu3 %v8642_v61  ;;  %v4121_v59 = vpack.c.b16 %v4033_v37, %v4033_v37  ;;  %v10364_v37 = vld [vmem:[%s10660_s17 + $0x58c] sm:$0xf] }
 0x310   : > { %v4122_v61 = vpack.c.b16 %v4034_v43, %v4034_v43  ;;  %v8919_v43 = vld [vmem:[%s10660_s17 + $0x5e0] sm:$0xf0] }
 0x311   : > { %v8922_v27 = vor.u32 %v10364_v37, %v8919_v43 }
 0x312   : > { %3474 = vmatpush.bf16.msra.mxu0 %v8526_v14  ;;  %3487 = vmatpush.bf16.msra.mxu1 %v8530_v15  ;;  %v10306_v14 = vld [vmem:[%s10865_s24 + $0x364] sm:$0xf]  ;;  %v8543_v15 = vld [vmem:[%s10865_s24 + $0x3b8] sm:$0xf0] }
 0x313   : > { %3552 = vmatpush.bf16.msrb.mxu2 %v8550_v8  ;;  %3565 = vmatpush.bf16.msrb.mxu3 %v8554_v4  ;;  %v8546_v11 = vor.u32 %v10306_v14, %v8543_v15  ;;  %v8453_v8 = vld [vmem:[%s10865_s24 + $0x2b0] sm:$0xf]  ;;  %v10295_v4 = vld [vmem:[%s10865_s24 + $0x304] sm:$0xf0]  ;;  %v10342_v14 = vld [vmem:[%s10660_s17 + $0x4dc] sm:$0xf] }
 0x314   : > { %v8831_v15 = vld [vmem:[%s10660_s17 + $0x530] sm:$0xf0] }
 0x316   : > { %3475 = vmatpush.bf16.msra.mxu0 %v8438_v42  ;;  %3488 = vmatpush.bf16.msra.mxu1 %v8442_v44  ;;  %v8454_v42 = vor.u32 %v10295_v4, %v8453_v8  ;;  %v8458_v44 = vor.u32 %v10284_v47, %v8455_v28  ;;  %v4126_v8 = vpack.c.b16 %v4038_v35, %v4038_v35  ;;  %v3735_v4 = vld.sshfl [vmem:[#allocation1 + $0x10] sm:$0xff pattern:$0x73625140]  ;;  %v11562_v47 = vld.sshfl [vmem:[#allocation1] sm:$0xff pattern:$0x73625140] }
 0x317   : > { %3553 = vmatpush.bf16.msrb.mxu2 %v8462_v5  ;;  %3566 = vmatpush.bf16.msrb.mxu3 %v8466_v48  ;;  %v8917_v5 = vld [vmem:[%s10660_s17 + $0x588] sm:$0xf]  ;;  %v10375_v48 = vld [vmem:[%s10660_s17 + $0x5dc] sm:$0xf0] }
 0x318   : > { %8653 = vmatmul.msk.bf16.vlgmr.msrb.gmra.mxu0 %vm1519_vm2, %v11400_v41  ;;  %8654 = vmatmul.msk.bf16.vlgmr.msrb.gmra.mxu1 %vm1519_vm2, %v11400_v41  ;;  %v8918_v56 = vor.u32 %v10375_v48, %v8917_v5  ;;  %v3737_v28 = vld.sshfl [vmem:[#allocation1 + $0x18] sm:$0xff pattern:$0x73625140]  ;;  %v10388_v5 = vld [vmem:[%s10660_s17 + $0x64c] sm:$0xf] }
 0x319   : > { %8659 = vmatmul.msk.bf16.vlgmr.msra.gmra.mxu2 %vm1519_vm2, %v11400_v41  ;;  %8660 = vmatmul.msk.bf16.vlgmr.msra.gmra.mxu3 %vm1519_vm2, %v11400_v41  ;;  %3747 = vst [vmem:[#allocation1] ss:$4 sm:$0xff] %v10729_v33  ;;  %v9023_v48 = vld [vmem:[%s10660_s17 + $0x6a0] sm:$0xf0] }
 0x31a   : > { %3524 = vmatpush.bf16.msrb.mxu0 %v3275_v50  ;;  %3537 = vmatpush.bf16.msrb.mxu1 %v3278_v51  ;;  %v4119_v50 = vpack.c.b16 %v4031_v45, %v4031_v45  ;;  %v4120_v51 = vpack.c.b16 %v4032_v16, %v4032_v16  ;;  %v9021_v45 = vld [vmem:[%s10660_s17 + $0x648] sm:$0xf]  ;;  %v10399_v16 = vld [vmem:[%s10660_s17 + $0x69c] sm:$0xf0]  ;;  %v9026_v57 = vor.u32 %v10388_v5, %v9023_v48  ;;  %v3779_v5 = vrot.slane %v11562_v47, 1 }
 0x31b   : > { %4270 = vmatpush.bf16.xpose.msra.mxu2 %v4121_v59  ;;  %4283 = vmatpush.bf16.xpose.msra.mxu3 %v4122_v61  ;;  %v10396_v59 = vld [vmem:[%s10660_s17 + $0x684] sm:$0xf0]  ;;  %v10385_v61 = vld [vmem:[%s10660_s17 + $0x634] sm:$0xf]  ;;  %v3780_v48 = vrot.slane %v11564_v36, 1 }
 0x31c   : > { %v8998_v20 = vor.u32 %v10396_v59, %v8997_v58  ;;  %v8821_v58 = vld [vmem:[%s10660_s17 + $0x4d0] sm:$0xf]  ;;  %v10352_v59 = vld [vmem:[%s10660_s17 + $0x524] sm:$0xf0] }
 0x31d   : > { %v8822_v35 = vor.u32 %v10352_v59, %v8821_v58 }
 0x31e   : > { %3525 = vmatpush.bf16.msrb.mxu0 %v8630_v10  ;;  %3538 = vmatpush.bf16.msrb.mxu1 %v8634_v60  ;;  %v8999_v10 = vld [vmem:[%s10660_s17 + $0x688] sm:$0xf0]  ;;  %v8829_v60 = vld [vmem:[%s10660_s17 + $0x4d8] sm:$0xf] }
 0x31f   : > { %v9002_v23 = vor.u32 %v10385_v61, %v8999_v10  ;;  %v8830_v38 = vor.u32 %v10353_v13, %v8829_v60  ;;  %v10341_v61 = vld [vmem:[%s10660_s17 + $0x4d4] sm:$0xf]  ;;  %v8823_v10 = vld [vmem:[%s10660_s17 + $0x528] sm:$0xf0] }
 0x322   : > { %3526 = vmatpush.bf16.msrb.mxu0 %v8542_v32  ;;  %3539 = vmatpush.bf16.msrb.mxu1 %v8546_v11  ;;  %v8834_v32 = vor.u32 %v10342_v14, %v8831_v15  ;;  %v4125_v11 = vpack.c.b16 %v4037_v3, %v4037_v3  ;;  %v10377_v3 = vld [vmem:[%s10660_s17 + $0x5ec] sm:$0xf0]  ;;  %v10366_v14 = vld [vmem:[%s10660_s17 + $0x59c] sm:$0xf]  ;;  %v8935_v15 = vld [vmem:[%s10660_s17 + $0x5f0] sm:$0xf0] }
 0x323   : > { %4271 = vmatpush.bf16.xpose.msra.mxu2 %v9006_v24  ;;  %4284 = vmatpush.bf16.xpose.msra.mxu3 %v9010_v49  ;;  %v8909_v24 = vld [vmem:[%s10660_s17 + $0x580] sm:$0xf]  ;;  %v10374_v49 = vld [vmem:[%s10660_s17 + $0x5d4] sm:$0xf0] }
 0x324   : > { %v8910_v37 = vor.u32 %v10374_v49, %v8909_v24  ;;  %v11590_v24 = vld.sshfl [vmem:[#allocation1 + $0x28] sm:$0xff pattern:$0x73625140] }
 0x325   : > { %v8736_v49 = vld [vmem:[%s10660_s17 + $0x708] sm:$0x11] }
 0x326   : > { %3527 = vmatpush.bf16.msrb.mxu0 %v8454_v42  ;;  %3540 = vmatpush.bf16.msrb.mxu1 %v8458_v44  ;;  %v10363_v42 = vld [vmem:[%s10660_s17 + $0x584] sm:$0xf]  ;;  %v8911_v44 = vld [vmem:[%s10660_s17 + $0x5d8] sm:$0xf0] }
 0x327   : > { %v8914_v43 = vor.u32 %v10363_v42, %v8911_v44  ;;  %v9013_v42 = vld [vmem:[%s10660_s17 + $0x640] sm:$0xf]  ;;  %v10398_v44 = vld [vmem:[%s10660_s17 + $0x694] sm:$0xf0] }
 0x328   : > { %8657 = vmatmul.msk.bf16.vlgmr.msra.gmra.mxu0 %vm1519_vm2, %v11400_v41  ;;  %8658 = vmatmul.msk.bf16.vlgmr.msra.gmra.mxu1 %vm1519_vm2, %v11400_v41 }
 0x329   : > { %8663 = vmatmul.msk.bf16.vlgmr.msrb.gmra.mxu2 %vm1519_vm2, %v11400_v41  ;;  %8664 = vmatmul.msk.bf16.vlgmr.msrb.gmra.mxu3 %vm1519_vm2, %v11400_v41 }
 0x32a   : > { %4244 = vmatpush.bf16.xpose.msra.mxu0 %v4119_v50  ;;  %4257 = vmatpush.bf16.xpose.msra.mxu1 %v4120_v51  ;;  %v3781_v50 = vrot.slane %v3735_v4, 1  ;;  %v3782_v51 = vrot.slane %v3737_v28, 1  ;;  %v11588_v4 = vld.sshfl [vmem:[#allocation1 + $0x20] sm:$0xff pattern:$0x73625140] }
 0x32b   : > { %4272 = vmatpush.bf16.xpose.msra.mxu2 %v8918_v56  ;;  %4285 = vmatpush.bf16.xpose.msra.mxu3 %v8922_v27  ;;  %v8733_v56 = vld [vmem:[%s10660_s17 + $0x6f0] sm:$0x11]  ;;  %v9022_v27 = vor.u32 %v10399_v16, %v9021_v45  ;;  %v3745_v28 = vld.sshfl [vmem:[#allocation1 + $0x38] sm:$0xff pattern:$0x73625140] }
 0x32c   : > { %v4035_v60 = vunpack.c.l.b16 %v8733_v56  ;;  %v4036_v13 = vunpack.c.h.b16 %v8733_v56  ;;  %v10387_v45 = vld [vmem:[%s10660_s17 + $0x644] sm:$0xf]  ;;  %v9015_v16 = vld [vmem:[%s10660_s17 + $0x698] sm:$0xf0] }
 0x32d   : > { %v8847_v56 = vld [vmem:[%s10660_s17 + $0x540] sm:$0xf0]  ;;  %v9018_v58 = vor.u32 %v10387_v45, %v9015_v16  ;;  %v10354_v45 = vld [vmem:[%s10660_s17 + $0x534] sm:$0xf0] }
 0x32e   : > { %v10343_v16 = vld [vmem:[%s10660_s17 + $0x4e4] sm:$0xf] }
 0x332   : > { %4245 = vmatpush.bf16.xpose.msra.mxu0 %v8998_v20  ;;  %4258 = vmatpush.bf16.xpose.msra.mxu1 %v9002_v23  ;;  %v8826_v20 = vor.u32 %v10341_v61, %v8823_v10  ;;  %v4123_v23 = vpack.c.b16 %v4035_v60, %v4035_v60  ;;  %v8925_v10 = vld [vmem:[%s10660_s17 + $0x590] sm:$0xf]  ;;  %v10376_v60 = vld [vmem:[%s10660_s17 + $0x5e4] sm:$0xf0] }
 0x333   : > { %4273 = vmatpush.bf16.xpose.msra.mxu2 %v8830_v38  ;;  %4286 = vmatpush.bf16.xpose.msra.mxu3 %v8834_v32  ;;  %v4124_v38 = vpack.c.b16 %v4036_v13, %v4036_v13  ;;  %v10365_v13 = vld [vmem:[%s10660_s17 + $0x594] sm:$0xf] }
 0x338   : > { %8661 = vmatmul.msk.bf16.vlgmr.msrb.gmra.mxu0 %vm1519_vm2, %v11400_v41  ;;  %8662 = vmatmul.msk.bf16.vlgmr.msrb.gmra.mxu1 %vm1519_vm2, %v11400_v41  ;;  %v8933_v41 = vld [vmem:[%s10660_s17 + $0x598] sm:$0xf] }
 0x339   : > { %v8934_v32 = vor.u32 %v10377_v3, %v8933_v41  ;;  %v8927_v41 = vld [vmem:[%s10660_s17 + $0x5e8] sm:$0xf0]  ;;  %v9037_v3 = vld [vmem:[%s10660_s17 + $0x658] sm:$0xf] }
 0x33a   : > { %4246 = vmatpush.bf16.xpose.msra.mxu0 %v8910_v37  ;;  %4259 = vmatpush.bf16.xpose.msra.mxu1 %v8914_v43  ;;  %v8845_v37 = vld [vmem:[%s10660_s17 + $0x4e8] sm:$0xf]  ;;  %v10355_v43 = vld [vmem:[%s10660_s17 + $0x53c] sm:$0xf0] }
 0x33b   : > { %4322 = vmatpush.bf16.xpose.msrb.mxu2 %v4125_v11  ;;  %4335 = vmatpush.bf16.xpose.msrb.mxu3 %v4126_v8  ;;  %v8938_v11 = vor.u32 %v10366_v14, %v8935_v15  ;;  %v3743_v8 = vld.sshfl [vmem:[#allocation1 + $0x30] sm:$0xff pattern:$0x73625140]  ;;  %v8846_v59 = vor.u32 %v10355_v43, %v8845_v37  ;;  %v10390_v15 = vld [vmem:[%s10660_s17 + $0x65c] sm:$0xf] }
 0x33c   : > { %4274 = vmatmul.bf16.vlgmr.msra.gmra.mxu2 %v3781_v50  ;;  %4287 = vmatmul.bf16.vlgmr.msra.gmra.mxu3 %v3782_v51  ;;  %3748 = vst [vmem:[#allocation1 + $0x20] ss:$4 sm:$0xff] %v10759_v21  ;;  %v4041_v50 = vunpack.c.l.b16 %v8736_v49  ;;  %v10344_v51 = vld [vmem:[%s10660_s17 + $0x4ec] sm:$0xf]  ;;  %v10401_v14 = vld [vmem:[%s10660_s17 + $0x6ac] sm:$0xf0] }
 0x33d   : > { %v8850_v61 = vor.u32 %v10344_v51, %v8847_v56  ;;  %v10368_v43 = vld [vmem:[%s10660_s17 + $0x5ac] sm:$0xf] }
 0x33e   : > { %v4129_v47 = vpack.c.b16 %v4041_v50, %v4041_v50  ;;  %v8951_v50 = vld [vmem:[%s10660_s17 + $0x600] sm:$0xf0] }
 0x342   : > { %4247 = vmatpush.bf16.xpose.msra.mxu0 %v8822_v35  ;;  %4260 = vmatpush.bf16.xpose.msra.mxu1 %v8826_v20  ;;  %v9039_v35 = vld [vmem:[%s10660_s17 + $0x6b0] sm:$0xf0]  ;;  %v8926_v20 = vor.u32 %v10376_v60, %v8925_v10  ;;  %v11627_v10 = vld.sshfl [vmem:[#allocation1 + $0x8] sm:$0xff pattern:$0x73625140] }
 0x343   : > { %4323 = vmatpush.bf16.xpose.msrb.mxu2 %v9022_v27  ;;  %4336 = vmatpush.bf16.xpose.msrb.mxu3 %v9026_v57  ;;  %v4042_v27 = vunpack.c.h.b16 %v8736_v49  ;;  %v9014_v57 = vor.u32 %v10398_v44, %v9013_v42  ;;  %v9038_v49 = vor.u32 %v10401_v14, %v9037_v3  ;;  %v9042_v42 = vor.u32 %v10390_v15, %v9039_v35  ;;  %v8837_v44 = vld [vmem:[%s10660_s17 + $0x4e0] sm:$0xf]  ;;  %v8738_v60 = vld [vmem:[%s10660_s17 + $0x718] sm:$0x11]  ;;  %v9029_v3 = vld [vmem:[%s10660_s17 + $0x650] sm:$0xf] }
 0x344   : > { %v8838_v51 = vor.u32 %v10354_v45, %v8837_v44  ;;  %v10400_v14 = vld [vmem:[%s10660_s17 + $0x6a4] sm:$0xf0]  ;;  %v10389_v15 = vld [vmem:[%s10660_s17 + $0x654] sm:$0xf]  ;;  %v9031_v35 = vld [vmem:[%s10660_s17 + $0x6a8] sm:$0xf0] }
 0x345   : > { %v4130_v36 = vpack.c.b16 %v4042_v27, %v4042_v27 }
 0x349   : > { %4248 = vmatmul.bf16.vlgmr.msra.gmra.mxu0 %v3779_v5  ;;  %4261 = vmatmul.bf16.vlgmr.msra.gmra.mxu1 %v3780_v48  ;;  %v8839_v5 = vld [vmem:[%s10660_s17 + $0x538] sm:$0xf0] }
 0x34a   : > { %4296 = vmatpush.bf16.xpose.msrb.mxu0 %v4123_v23  ;;  %4309 = vmatpush.bf16.xpose.msrb.mxu1 %v4124_v38  ;;  %v8930_v23 = vor.u32 %v10365_v13, %v8927_v41  ;;  %v3785_v38 = vrot.slane %v3743_v8, 1  ;;  %v8949_v8 = vld [vmem:[%s10660_s17 + $0x5a8] sm:$0xf]  ;;  %v8842_v56 = vor.u32 %v10343_v16, %v8839_v5  ;;  %v3783_v13 = vrot.slane %v11588_v4, 1  ;;  %v8941_v5 = vld [vmem:[%s10660_s17 + $0x5a0] sm:$0xf] }
 0x34b   : > { %4324 = vmatpush.bf16.xpose.msrb.mxu2 %v8934_v32  ;;  %4337 = vmatpush.bf16.xpose.msrb.mxu3 %v8938_v11  ;;  %v3786_v32 = vrot.slane %v3745_v28, 1  ;;  %v8735_v11 = vld [vmem:[%s10660_s17 + $0x700] sm:$0x11]  ;;  %v3784_v41 = vrot.slane %v11590_v24, 1  ;;  %v9034_v4 = vor.u32 %v10389_v15, %v9031_v35  ;;  %v8853_v35 = vld [vmem:[%s10660_s17 + $0x4f0] sm:$0xf] }
 0x34c   : > { %v4039_v48 = vunpack.c.l.b16 %v8735_v11  ;;  %v4040_v37 = vunpack.c.h.b16 %v8735_v11  ;;  %v10379_v28 = vld [vmem:[%s10660_s17 + $0x5fc] sm:$0xf0]  ;;  %v8863_v11 = vld [vmem:[%s10660_s17 + $0x550] sm:$0xf0] }
 0x34e   : > { %v4127_v27 = vpack.c.b16 %v4039_v48, %v4039_v48 }
 0x352   : > { %4297 = vmatpush.bf16.xpose.msrb.mxu0 %v9014_v57  ;;  %4310 = vmatpush.bf16.xpose.msrb.mxu1 %v9018_v58  ;;  %v4128_v57 = vpack.c.b16 %v4040_v37, %v4040_v37  ;;  %v8950_v58 = vor.u32 %v10379_v28, %v8949_v8  ;;  %v10378_v8 = vld [vmem:[%s10660_s17 + $0x5f4] sm:$0xf0]  ;;  %v10367_v28 = vld [vmem:[%s10660_s17 + $0x5a4] sm:$0xf] }
 0x353   : > { %4325 = vmatpush.bf16.xpose.msrb.mxu2 %v8846_v59  ;;  %4338 = vmatpush.bf16.xpose.msrb.mxu3 %v8850_v61  ;;  %v8954_v59 = vor.u32 %v10368_v43, %v8951_v50  ;;  %v11621_v61 = vld.sshfl [vmem:[#allocation1 + $0x10] sm:$0xff pattern:$0x73625140]  ;;  %v8943_v43 = vld [vmem:[%s10660_s17 + $0x5f8] sm:$0xf0] }
 0x354   : > { %v9053_v50 = vld [vmem:[%s10660_s17 + $0x668] sm:$0xf] }
 0x35a   : > { %4298 = vmatpush.bf16.xpose.msrb.mxu0 %v8926_v20  ;;  %4311 = vmatpush.bf16.xpose.msrb.mxu1 %v8930_v23  ;;  %v8861_v20 = vld [vmem:[%s10660_s17 + $0x4f8] sm:$0xf]  ;;  %v10357_v23 = vld [vmem:[%s10660_s17 + $0x54c] sm:$0xf0] }
 0x35b   : > { %4374 = vmatpush.bf16.xpose.msra.mxu2 %v4129_v47  ;;  %4387 = vmatpush.bf16.xpose.msra.mxu3 %v4130_v36  ;;  %v11623_v47 = vld.sshfl [vmem:[#allocation1] sm:$0xff pattern:$0x73625140]  ;;  %v11625_v36 = vld.sshfl [vmem:[#allocation1 + $0x18] sm:$0xff pattern:$0x73625140]  ;;  %v8862_v44 = vor.u32 %v10357_v23, %v8861_v20 }
 0x35c   : > { %4326 = vmatmul.bf16.vlgmr.msrb.gmra.mxu2 %v3785_v38  ;;  %4339 = vmatmul.bf16.vlgmr.msrb.gmra.mxu3 %v3786_v32  ;;  %3765 = vst [vmem:[#allocation1] ss:$4 sm:$0xff] %v10786_v6  ;;  %v4045_v38 = vunpack.c.l.b16 %v8738_v60  ;;  %v10346_v32 = vld [vmem:[%s10660_s17 + $0x4fc] sm:$0xf] }
 0x35d   : > { %v8866_v24 = vor.u32 %v10346_v32, %v8863_v11  ;;  %v8855_v32 = vld [vmem:[%s10660_s17 + $0x548] sm:$0xf0] }
 0x35e   : > { %v4133_v45 = vpack.c.b16 %v4045_v38, %v4045_v38  ;;  %v10356_v38 = vld [vmem:[%s10660_s17 + $0x544] sm:$0xf0] }
 0x362   : > { %4299 = vmatpush.bf16.xpose.msrb.mxu0 %v8838_v51  ;;  %4312 = vmatpush.bf16.xpose.msrb.mxu1 %v8842_v56  ;;  %v10403_v51 = vld [vmem:[%s10660_s17 + $0x6bc] sm:$0xf0]  ;;  %v10392_v56 = vld [vmem:[%s10660_s17 + $0x66c] sm:$0xf] }
 0x363   : > { %4375 = vmatpush.bf16.xpose.msra.mxu2 %v9038_v49  ;;  %4388 = vmatpush.bf16.xpose.msra.mxu3 %v9042_v42  ;;  %v4046_v49 = vunpack.c.h.b16 %v8738_v60  ;;  %v9030_v42 = vor.u32 %v10400_v14, %v9029_v3  ;;  %v3790_v60 = vrot.slane %v11625_v36, 1 }
 0x365   : > { %v4134_v16 = vpack.c.b16 %v4046_v49, %v4046_v49  ;;  %v11642_v48 = vpop.f32.mrf.mxu0  ;;  %v11644_v37 = vpop.f32.mrf.mxu1  ;;  %v8965_v49 = vld [vmem:[%s10660_s17 + $0x5b8] sm:$0xf] }
 0x369   : > { %4300 = vmatmul.bf16.vlgmr.msrb.gmra.mxu0 %v3783_v13  ;;  %4313 = vmatmul.bf16.vlgmr.msrb.gmra.mxu1 %v3784_v41  ;;  %v8737_v13 = vld [vmem:[%s10660_s17 + $0x710] sm:$0x11]  ;;  %v9054_v41 = vor.u32 %v10403_v51, %v9053_v50  ;;  %v11670_v50 = vld.sshfl [vmem:[#allocation1 + $0x20] sm:$0xff pattern:$0x73625140] }
 0x36a   : > { %4348 = vmatpush.bf16.xpose.msra.mxu0 %v4127_v27  ;;  %4361 = vmatpush.bf16.xpose.msra.mxu1 %v4128_v57  ;;  %v9055_v27 = vld [vmem:[%s10660_s17 + $0x6c0] sm:$0xf0]  ;;  %v8942_v57 = vor.u32 %v10378_v8, %v8941_v5  ;;  %v4043_v36 = vunpack.c.l.b16 %v8737_v13  ;;  %v4044_v11 = vunpack.c.h.b16 %v8737_v13  ;;  %v11672_v51 = vld.sshfl [vmem:[#allocation1 + $0x38] sm:$0xff pattern:$0x73625140]  ;;  %v3787_v13 = vrot.slane %v11623_v47, 1 }
 0x36b   : > { %4376 = vmatpush.bf16.xpose.msra.mxu2 %v8950_v58  ;;  %4389 = vmatpush.bf16.xpose.msra.mxu3 %v8954_v59  ;;  %v8946_v58 = vor.u32 %v10367_v28, %v8943_v43  ;;  %v3789_v59 = vrot.slane %v11621_v61, 1  ;;  %v9058_v3 = vor.u32 %v10392_v56, %v9055_v27  ;;  %v10345_v61 = vld [vmem:[%s10660_s17 + $0x4f4] sm:$0xf]  ;;  %v11674_v56 = vld.sshfl [vmem:[#allocation1 + $0x28] sm:$0xff pattern:$0x73625140] }
 0x36c   : > { %v11656_v14 = vpop.f32.mrf.mxu2  ;;  %v11658_v15 = vpop.f32.mrf.mxu3  ;;  %v4132_v5 = vpack.c.b16 %v4044_v11, %v4044_v11  ;;  %v11668_v43 = vld.sshfl [vmem:[#allocation1 + $0x30] sm:$0xff pattern:$0x73625140]  ;;  %v8879_v11 = vld [vmem:[%s10660_s17 + $0x560] sm:$0xf0] }
 0x36d   : > { %v3297_v20 = vpop.f32.mrf.mxu0  ;;  %v3310_v23 = vpop.f32.mrf.mxu1  ;;  %3766 = vst [vmem:[#allocation1 + $0x20] ss:$4 sm:$0xff] %v10825_v2 }
 0x36e   : > { %v10391_v20 = vld [vmem:[%s10660_s17 + $0x664] sm:$0xf]  ;;  %v9047_v23 = vld [vmem:[%s10660_s17 + $0x6b8] sm:$0xf0] }
 0x372   : > { %4349 = vmatpush.bf16.xpose.msra.mxu0 %v9030_v42  ;;  %4362 = vmatpush.bf16.xpose.msra.mxu1 %v9034_v4  ;;  %v10381_v42 = vld [vmem:[%s10660_s17 + $0x60c] sm:$0xf0]  ;;  %v10370_v4 = vld [vmem:[%s10660_s17 + $0x5bc] sm:$0xf] }
 0x373   : > { %4377 = vmatpush.bf16.xpose.msra.mxu2 %v8862_v44  ;;  %4390 = vmatpush.bf16.xpose.msra.mxu3 %v8866_v24  ;;  %v8967_v44 = vld [vmem:[%s10660_s17 + $0x610] sm:$0xf0]  ;;  %v8854_v24 = vor.u32 %v10356_v38, %v8853_v35  ;;  %v8966_v8 = vor.u32 %v10381_v42, %v8965_v49  ;;  %v10402_v35 = vld [vmem:[%s10660_s17 + $0x6b4] sm:$0xf0]  ;;  %v8877_v38 = vld [vmem:[%s10660_s17 + $0x508] sm:$0xf] }
 0x374   : > { %v8970_v28 = vor.u32 %v10370_v4, %v8967_v44  ;;  %v3349_v27 = vpop.f32.mrf.mxu2  ;;  %v9050_v4 = vor.u32 %v10391_v20, %v9047_v23 }
 0x375   : > { %v10380_v27 = vld [vmem:[%s10660_s17 + $0x604] sm:$0xf0] }
 0x37a   : > { %4350 = vmatpush.bf16.xpose.msra.mxu0 %v8942_v57  ;;  %4363 = vmatpush.bf16.xpose.msra.mxu1 %v8946_v58  ;;  %v3362_v57 = vpop.f32.mrf.mxu3  ;;  %v8740_v58 = vld [vmem:[%s10660_s17 + $0x728] sm:$0x11] }
 0x37b   : > { %4426 = vmatpush.bf16.xpose.msrb.mxu2 %v4133_v45  ;;  %4439 = vmatpush.bf16.xpose.msrb.mxu3 %v4134_v16  ;;  %v8858_v45 = vor.u32 %v10345_v61, %v8855_v32  ;;  %v4131_v16 = vpack.c.b16 %v4043_v36, %v4043_v36  ;;  %v10359_v61 = vld [vmem:[%s10660_s17 + $0x55c] sm:$0xf0]  ;;  %v4049_v32 = vunpack.c.l.b16 %v8740_v58  ;;  %v10348_v36 = vld [vmem:[%s10660_s17 + $0x50c] sm:$0xf]  ;;  %v4050_v49 = vunpack.c.h.b16 %v8740_v58  ;;  %v10369_v57 = vld [vmem:[%s10660_s17 + $0x5b4] sm:$0xf] }
 0x37c   : > { %4378 = vmatmul.bf16.vlgmr.msra.gmra.mxu2 %v3789_v59  ;;  %4391 = vmatmul.bf16.vlgmr.msra.gmra.mxu3 %v3790_v60  ;;  %v11678_v59 = vpop.f32.mrf.mxu0  ;;  %v11680_v60 = vpop.f32.mrf.mxu1  ;;  %v8878_v47 = vor.u32 %v10359_v61, %v8877_v38  ;;  %v8959_v58 = vld [vmem:[%s10660_s17 + $0x608] sm:$0xf0]  ;;  %v3793_v38 = vrot.slane %v11668_v43, 1  ;;  %v3794_v61 = vrot.slane %v11672_v51, 1  ;;  %v10347_v43 = vld [vmem:[%s10660_s17 + $0x504] sm:$0xf] }
 0x37d   : > { %v4137_v44 = vpack.c.b16 %v4049_v32, %v4049_v32  ;;  %v8962_v23 = vor.u32 %v10369_v57, %v8959_v58  ;;  %v8739_v32 = vld [vmem:[%s10660_s17 + $0x720] sm:$0x11] }
 0x37e   : > { %v4047_v51 = vunpack.c.l.b16 %v8739_v32  ;;  %v8983_v57 = vld [vmem:[%s10660_s17 + $0x620] sm:$0xf0] }
 0x382   : > { %4351 = vmatpush.bf16.xpose.msra.mxu0 %v8854_v24  ;;  %4364 = vmatpush.bf16.xpose.msra.mxu1 %v8858_v45  ;;  %v4138_v24 = vpack.c.b16 %v4050_v49, %v4050_v49  ;;  %v11692_v45 = vpop.f32.mrf.mxu2 }
 0x383   : > { %4427 = vmatpush.bf16.xpose.msrb.mxu2 %v9054_v41  ;;  %4440 = vmatpush.bf16.xpose.msrb.mxu3 %v9058_v3  ;;  %v3788_v41 = vrot.slane %v11627_v10, 1  ;;  %v9045_v3 = vld [vmem:[%s10660_s17 + $0x660] sm:$0xf]  ;;  %v8882_v10 = vor.u32 %v10348_v36, %v8879_v11 }
 0x384   : > { %v9046_v42 = vor.u32 %v10402_v35, %v9045_v3  ;;  %v10394_v3 = vld [vmem:[%s10660_s17 + $0x67c] sm:$0xf]  ;;  %v9071_v35 = vld [vmem:[%s10660_s17 + $0x6d0] sm:$0xf0] }
 0x385   : > { %v9074_v11 = vor.u32 %v10394_v3, %v9071_v35 }
 0x389   : > { %4352 = vmatmul.bf16.vlgmr.msra.gmra.mxu0 %v3787_v13  ;;  %4365 = vmatmul.bf16.vlgmr.msra.gmra.mxu1 %v3788_v41  ;;  %v9069_v13 = vld [vmem:[%s10660_s17 + $0x678] sm:$0xf]  ;;  %v10405_v41 = vld [vmem:[%s10660_s17 + $0x6cc] sm:$0xf0] }
 0x38a   : > { %4400 = vmatpush.bf16.xpose.msrb.mxu0 %v4131_v16  ;;  %4413 = vmatpush.bf16.xpose.msrb.mxu1 %v4132_v5  ;;  %v11694_v16 = vpop.f32.mrf.mxu3  ;;  %v3323_v5 = vpop.f32.mrf.mxu0  ;;  %v9070_v36 = vor.u32 %v10405_v41, %v9069_v13  ;;  %v4135_v41 = vpack.c.b16 %v4047_v51, %v4047_v51  ;;  %v10393_v51 = vld [vmem:[%s10660_s17 + $0x674] sm:$0xf] }
 0x38b   : > { %4428 = vmatpush.bf16.xpose.msrb.mxu2 %v8966_v8  ;;  %4441 = vmatpush.bf16.xpose.msrb.mxu3 %v8970_v28  ;;  %v3336_v8 = vpop.f32.mrf.mxu1  ;;  %v8957_v28 = vld [vmem:[%s10660_s17 + $0x5b0] sm:$0xf]  ;;  %v3401_v49 = vpop.f32.mrf.mxu2  ;;  %v4048_v5 = vunpack.c.h.b16 %v8739_v32  ;;  %v3773_v32 = vld.sshfl [vmem:[#allocation1 + $0x18] sm:$0xff pattern:$0x73625140] }
 0x38c   : > { %v8958_v20 = vor.u32 %v10380_v27, %v8957_v28  ;;  %v8981_v8 = vld [vmem:[%s10660_s17 + $0x5c8] sm:$0xf]  ;;  %v10383_v28 = vld [vmem:[%s10660_s17 + $0x61c] sm:$0xf0]  ;;  %v10372_v27 = vld [vmem:[%s10660_s17 + $0x5cc] sm:$0xf] }
 0x38d   : > { %v4136_v3 = vpack.c.b16 %v4048_v5, %v4048_v5  ;;  %v8982_v35 = vor.u32 %v10383_v28, %v8981_v8  ;;  %v11719_v49 = vld.sshfl [vmem:[#allocation1] sm:$0xff pattern:$0x73625140]  ;;  %v9063_v5 = vld [vmem:[%s10660_s17 + $0x6c8] sm:$0xf0] }
 0x38e   : > { %v8893_v8 = vld [vmem:[%s10660_s17 + $0x518] sm:$0xf]  ;;  %v10361_v28 = vld [vmem:[%s10660_s17 + $0x56c] sm:$0xf0] }
 0x392   : > { %4401 = vmatpush.bf16.xpose.msrb.mxu0 %v9046_v42  ;;  %4414 = vmatpush.bf16.xpose.msrb.mxu1 %v9050_v4  ;;  %v3414_v42 = vpop.f32.mrf.mxu3  ;;  %v11707_v4 = vpop.f32.mrf.mxu0 }
 0x393   : > { %4429 = vmatpush.bf16.xpose.msrb.mxu2 %v8878_v47  ;;  %4442 = vmatpush.bf16.xpose.msrb.mxu3 %v8882_v10  ;;  %v11709_v47 = vpop.f32.mrf.mxu1  ;;  %v8869_v10 = vld [vmem:[%s10660_s17 + $0x500] sm:$0xf] }
 0x39a   : > { %4402 = vmatpush.bf16.xpose.msrb.mxu0 %v8958_v20  ;;  %4415 = vmatpush.bf16.xpose.msrb.mxu1 %v8962_v23  ;;  %v8986_v20 = vor.u32 %v10372_v27, %v8983_v57  ;;  %v3771_v23 = vld.sshfl [vmem:[#allocation1 + $0x10] sm:$0xff pattern:$0x73625140]  ;;  %v10350_v27 = vld [vmem:[%s10660_s17 + $0x51c] sm:$0xf] }
 0x39b   : > { %4478 = vmatpush.bf16.xpose.msra.mxu2 %v4137_v44  ;;  %4491 = vmatpush.bf16.xpose.msra.mxu3 %v4138_v24  ;;  %v10358_v44 = vld [vmem:[%s10660_s17 + $0x554] sm:$0xf0]  ;;  %v8871_v24 = vld [vmem:[%s10660_s17 + $0x558] sm:$0xf0]  ;;  %v3388_v42 = vpop.f32.mrf.mxu1  ;;  %v8895_v57 = vld [vmem:[%s10660_s17 + $0x570] sm:$0xf0] }
 0x39c   : > { %4430 = vmatmul.bf16.vlgmr.msrb.gmra.mxu2 %v3793_v38  ;;  %4443 = vmatmul.bf16.vlgmr.msrb.gmra.mxu3 %v3794_v61  ;;  %v8870_v58 = vor.u32 %v10358_v44, %v8869_v10  ;;  %v8874_v13 = vor.u32 %v10347_v43, %v8871_v24  ;;  %v11721_v38 = vpop.f32.mrf.mxu2  ;;  %v11723_v61 = vpop.f32.mrf.mxu3  ;;  %v3791_v10 = vrot.slane %v11670_v50, 1  ;;  %v3792_v44 = vrot.slane %v11674_v56, 1  ;;  %v9061_v43 = vld [vmem:[%s10660_s17 + $0x670] sm:$0xf]  ;;  %v10404_v24 = vld [vmem:[%s10660_s17 + $0x6c4] sm:$0xf0] }
 0x39d   : > { %v8898_v50 = vor.u32 %v10350_v27, %v8895_v57  ;;  %v10371_v42 = vld [vmem:[%s10660_s17 + $0x5c4] sm:$0xf] }
 0x3a2   : > { %4403 = vmatpush.bf16.xpose.msrb.mxu0 %v8870_v58  ;;  %4416 = vmatpush.bf16.xpose.msrb.mxu1 %v8874_v13  ;;  %v9066_v58 = vor.u32 %v10393_v51, %v9063_v5  ;;  %v8894_v13 = vor.u32 %v10361_v28, %v8893_v8  ;;  %v3798_v51 = vrot.slane %v3773_v32, 1 }
 0x3a3   : > { %4479 = vmatpush.bf16.xpose.msra.mxu2 %v9070_v36  ;;  %4492 = vmatpush.bf16.xpose.msra.mxu3 %v9074_v11  ;;  %v11725_v36 = vld.sshfl [vmem:[#allocation1 + $0x8] sm:$0xff pattern:$0x73625140]  ;;  %v3375_v11 = vpop.f32.mrf.mxu0 }
 0x3a4   : > { %5424 = vst [vmem:[#allocation1] ss:$4 sm:$0xff] %v10679_v22  ;;  %v9062_v22 = vor.u32 %v10404_v24, %v9061_v43  ;;  %v3453_v56 = vpop.f32.mrf.mxu2  ;;  %v10382_v11 = vld [vmem:[%s10660_s17 + $0x614] sm:$0xf0]  ;;  %v8978_v24 = vor.u32 %v10371_v42, %v8975_v1 }
 0x3a5   : > { %v8887_v56 = vld [vmem:[%s10660_s17 + $0x568] sm:$0xf0] }
 0x3a9   : > { %4404 = vmatmul.bf16.vlgmr.msrb.gmra.mxu0 %v3791_v10  ;;  %4417 = vmatmul.bf16.vlgmr.msrb.gmra.mxu1 %v3792_v44  ;;  %v8741_v10 = vld [vmem:[%s10660_s17 + $0x730] sm:$0x11]  ;;  %v3797_v44 = vrot.slane %v3771_v23, 1 }
 0x3aa   : > { %4452 = vmatpush.bf16.xpose.msra.mxu0 %v4135_v41  ;;  %4465 = vmatpush.bf16.xpose.msra.mxu1 %v4136_v3  ;;  %v3466_v41 = vpop.f32.mrf.mxu3  ;;  %v4052_v28 = vunpack.c.h.b16 %v8741_v10 }
 0x3ab   : > { %4480 = vmatpush.bf16.xpose.msra.mxu2 %v8982_v35  ;;  %4493 = vmatpush.bf16.xpose.msra.mxu3 %v8986_v20  ;;  %v11738_v3 = vpop.f32.mrf.mxu0  ;;  %v11740_v35 = vpop.f32.mrf.mxu1  ;;  %v8973_v20 = vld [vmem:[%s10660_s17 + $0x5c0] sm:$0xf] }
 0x3ac   : > { %v8974_v43 = vor.u32 %v10382_v11, %v8973_v20  ;;  %v11747_v5 = vpop.f32.mrf.mxu2  ;;  %v4140_v1 = vpack.c.b16 %v4052_v28, %v4052_v28  ;;  %v3775_v20 = vld.sshfl [vmem:[#allocation1 + $0x20] sm:$0xff pattern:$0x73625140]  ;;  %v3777_v11 = vld.sshfl [vmem:[#allocation1 + $0x28] sm:$0xff pattern:$0x73625140] }
 0x3ad   : > { %5426 = vst [vmem:[#allocation1 + $0x20] ss:$4 sm:$0xff] %v10699_v46  ;;  %v9077_v28 = vld [vmem:[%s10660_s17 + $0x680] sm:$0xf]  ;;  %v3796_v46 = vrot.slane %v11725_v36, 1 }
 0x3ae   : > { %v10384_v36 = vld [vmem:[%s10660_s17 + $0x624] sm:$0xf0] }
 0x3b2   : > { %4453 = vmatpush.bf16.xpose.msra.mxu0 %v9062_v22  ;;  %4466 = vmatpush.bf16.xpose.msra.mxu1 %v9066_v58  ;;  %v11749_v8 = vpop.f32.mrf.mxu3  ;;  %v8885_v22 = vld [vmem:[%s10660_s17 + $0x510] sm:$0xf]  ;;  %v10360_v58 = vld [vmem:[%s10660_s17 + $0x564] sm:$0xf0] }
 0x3b3   : > { %4481 = vmatpush.bf16.xpose.msra.mxu2 %v8894_v13  ;;  %4494 = vmatpush.bf16.xpose.msra.mxu3 %v8898_v50  ;;  %v3427_v27 = vpop.f32.mrf.mxu0  ;;  %v3440_v57 = vpop.f32.mrf.mxu1  ;;  %v10349_v13 = vld [vmem:[%s10660_s17 + $0x514] sm:$0xf]  ;;  %v4051_v50 = vunpack.c.l.b16 %v8741_v10  ;;  %v8886_v23 = vor.u32 %v10360_v58, %v8885_v22  ;;  %v3795_v58 = vrot.slane %v11719_v49, 1  ;;  %v8989_v49 = vld [vmem:[%s10660_s17 + $0x5d0] sm:$0xf] }
 0x3b4   : > { %v8890_v32 = vor.u32 %v10349_v13, %v8887_v56  ;;  %v3505_v42 = vpop.f32.mrf.mxu2  ;;  %v10406_v57 = vld [vmem:[%s10660_s17 + $0x6d4] sm:$0xf0] }
 0x3b5   : > { %v4139_v41 = vpack.c.b16 %v4051_v50, %v4051_v50  ;;  %v9078_v13 = vor.u32 %v10406_v57, %v9077_v28  ;;  %v8991_v42 = vld [vmem:[%s10660_s17 + $0x628] sm:$0xf0] }
 0x3ba   : > { %4454 = vmatpush.bf16.xpose.msra.mxu0 %v8974_v43  ;;  %4467 = vmatpush.bf16.xpose.msra.mxu1 %v8978_v24  ;;  %v3518_v43 = vpop.f32.mrf.mxu3  ;;  %v4238_v24 = vsel %vm831_vm0, %v4140_v1, 0 }
 0x3bb   : > { %4482 = vmatmul.bf16.vlgmr.msra.gmra.mxu2 %v3797_v44  ;;  %4495 = vmatmul.bf16.vlgmr.msra.gmra.mxu3 %v3798_v51  ;;  %v11757_v27 = vpop.f32.mrf.mxu0  ;;  %v11759_v10 = vpop.f32.mrf.mxu1  ;;  %v10395_v44 = vld [vmem:[%s10660_s17 + $0x684] sm:$0xf]  ;;  %v9079_v51 = vld [vmem:[%s10660_s17 + $0x6d8] sm:$0xf0] }
 0x3bc   : > { %12641 = vst [vmem:[#allocation10_spill] sm:$0xff] %v11757_v27  ;;  %v9082_v22 = vor.u32 %v10395_v44, %v9079_v51  ;;  %v11767_v56 = vpop.f32.mrf.mxu2  ;;  %v8812_v27 = vld [vmem:[%s10865_s24 + $0x700] sm:$0x11] }
 0x3bd   : > { %12642 = vst [vmem:[#allocation11_spill] sm:$0xff] %v11759_v10  ;;  %v4746_v55 = vunpack.c.h.b16 %v8812_v27 }
 0x3be   : > { %12643 = vst [vmem:[#allocation12_spill] sm:$0xff] %v11767_v56  ;;  %v4235_v1 = vsel %vm831_vm0, %v9082_v22, 0  ;;  %v4745_v56 = vunpack.c.l.b16 %v8812_v27 }
 0x3c0   : > { %v4833_v27 = vpack.c.b16 %v4745_v56, %v4745_v56  ;;  %v9272_v56 = vld [vmem:[%s10865_s24 + $0x690] sm:$0xf0] }
 0x3c2   : > { %4455 = vmatpush.bf16.xpose.msra.mxu0 %v8886_v23  ;;  %4468 = vmatpush.bf16.xpose.msra.mxu1 %v8890_v32  ;;  %v11769_v50 = vpop.f32.mrf.mxu3 }
 0x3c3   : > { %12644 = vst [vmem:[#allocation13_spill] sm:$0xff] %v11769_v50  ;;  %v3479_v23 = vpop.f32.mrf.mxu0  ;;  %v3492_v32 = vpop.f32.mrf.mxu1 }
 0x3c4   : > { %v3557_v44 = vpop.f32.mrf.mxu2  ;;  %v8901_v23 = vld [vmem:[%s10660_s17 + $0x520] sm:$0xf] }
 0x3c5   : > { %v3800_v44 = vrot.slane %v3777_v11, 1 }
 0x3c9   : > { %4456 = vmatmul.bf16.vlgmr.msra.gmra.mxu0 %v3795_v58  ;;  %4469 = vmatmul.bf16.vlgmr.msra.gmra.mxu1 %v3796_v46  ;;  %v10351_v58 = vld [vmem:[%s10660_s17 + $0x524] sm:$0xf]  ;;  %v8903_v46 = vld [vmem:[%s10660_s17 + $0x578] sm:$0xf0] }
 0x3ca   : > { %4504 = vmatpush.bf16.xpose.msrb.mxu0 %v4139_v41  ;;  %4517 = vmatpush.bf16.xpose.msrb.mxu1 %v4238_v24  ;;  %v10373_v41 = vld [vmem:[%s10660_s17 + $0x5d4] sm:$0xf]  ;;  %v8990_v24 = vor.u32 %v10384_v36, %v8989_v49  ;;  %v3570_v51 = vpop.f32.mrf.mxu3  ;;  %v8906_v32 = vor.u32 %v10351_v58, %v8903_v46 }
 0x3cb   : > { %v8994_v43 = vor.u32 %v10373_v41, %v8991_v42  ;;  %v11777_v57 = vpop.f32.mrf.mxu0  ;;  %v11779_v22 = vpop.f32.mrf.mxu1 }
 0x3cc   : > { %12645 = vst [vmem:[#allocation14_spill] sm:$0xff] %v11777_v57  ;;  %v4229_v62 = vsel %vm831_vm0, %v8906_v32, 0  ;;  %v4275_v49 = vpop.f32.mrf.mxu2 }
 0x3cd   : > { %v4232_v28 = vsel %vm831_vm0, %v8994_v43, 0  ;;  %12646 = vst [vmem:[#allocation15_spill] sm:$0xff] %v11779_v22  ;;  %v3799_v43 = vrot.slane %v3775_v20, 1 }
 0x3d2   : > { %4505 = vmatpush.bf16.xpose.msrb.mxu0 %v9078_v13  ;;  %4518 = vmatpush.bf16.xpose.msrb.mxu1 %v4235_v1  ;;  %v10362_v13 = vld [vmem:[%s10660_s17 + $0x574] sm:$0xf0]  ;;  %v4288_v36 = vpop.f32.mrf.mxu3 }
 0x3d3   : > { %v8902_v1 = vor.u32 %v10362_v13, %v8901_v23  ;;  %v3531_v41 = vpop.f32.mrf.mxu0  ;;  %v3544_v42 = vpop.f32.mrf.mxu1 }
 0x3d4   : > { %v4277_v22 = vpop.f32.mrf.mxu2 }
 0x3da   : > { %4506 = vmatpush.bf16.xpose.msrb.mxu0 %v8990_v24  ;;  %4519 = vmatpush.bf16.xpose.msrb.mxu1 %v4232_v28  ;;  %v4290_v57 = vpop.f32.mrf.mxu3 }
 0x3db   : > { %v4249_v51 = vpop.f32.mrf.mxu0  ;;  %v4262_v24 = vpop.f32.mrf.mxu1 }
 0x3dc   : > { %v4263_v28 = vadd.f32 %v4262_v24, %v4249_v51 }
 0x3de   : > { %v4276_v58 = vadd.f32 %v4275_v49, %v4263_v28 }
 0x3df   : > { %v4327_v32 = vpop.f32.mrf.mxu2 }
 0x3e0   : > { %v4289_v46 = vadd.f32 %v4288_v36, %v4276_v58 }
 0x3e2   : > { %4507 = vmatpush.bf16.xpose.msrb.mxu0 %v8902_v1  ;;  %4520 = vmatpush.bf16.xpose.msrb.mxu1 %v4229_v62  ;;  %v4340_v41 = vpop.f32.mrf.mxu3 }
 0x3e3   : > { %v4251_v23 = vpop.f32.mrf.mxu0  ;;  %v4264_v13 = vpop.f32.mrf.mxu1 }
 0x3e7   : > { %v4329_v62 = vpop.f32.mrf.mxu2 }
 0x3e9   : > { %4508 = vmatmul.bf16.vlgmr.msrb.gmra.mxu0 %v3799_v43  ;;  %9083 = vmatmul.msk.bf16.vlgmr.msrb.gmra.mxu1 %vm831_vm0, %v3800_v44 }
 0x3ea   : > { %v4342_v20 = vpop.f32.mrf.mxu3 }
 0x3eb   : > { %v4301_v42 = vpop.f32.mrf.mxu0  ;;  %v4314_v34 = vpop.f32.mrf.mxu1 }
 0x3ec   : > { %v4302_v1 = vadd.f32 %v4301_v42, %v4289_v46 }
 0x3ee   : > { %v4315_v11 = vadd.f32 %v4314_v34, %v4302_v1  ;;  %v8810_v1 = vld [vmem:[%s10865_s24 + $0x6f0] sm:$0x11] }
 0x3f0   : > { %v4328_v43 = vadd.f32 %v4327_v32, %v4315_v11  ;;  %v4741_v11 = vunpack.c.l.b16 %v8810_v1 }
 0x3f2   : > { %v4341_v39 = vadd.f32 %v4340_v41, %v4328_v43  ;;  %v4742_v43 = vunpack.c.h.b16 %v8810_v1 }
 0x3f3   : > { %v4303_v44 = vpop.f32.mrf.mxu0  ;;  %v4316_v31 = vpop.f32.mrf.mxu1 }
 0x3f4   : > { %v9262_v44 = vld [vmem:[%s10865_s24 + $0x630] sm:$0xf] }
 0x3ff   : > { %v4379_v30 = vpop.f32.mrf.mxu2  ;;  %v4392_v51 = vpop.f32.mrf.mxu3 }
 0x406   : > { %v4353_v22 = vpop.f32.mrf.mxu0  ;;  %v4366_v57 = vpop.f32.mrf.mxu1 }
 0x407   : > { %v4354_v49 = vadd.f32 %v4353_v22, %v4341_v39  ;;  %v4381_v36 = vpop.f32.mrf.mxu2  ;;  %v4394_v24 = vpop.f32.mrf.mxu3 }
 0x408   : > { %v4830_v36 = vpack.c.b16 %v4742_v43, %v4742_v43  ;;  %v10451_v24 = vld [vmem:[%s10865_s24 + $0x634] sm:$0xf] }
 0x409   : > { %v4367_v28 = vadd.f32 %v4366_v57, %v4354_v49  ;;  %v4829_v49 = vpack.c.b16 %v4741_v11, %v4741_v11 }
 0x40a   : > { %v4932_v1 = vsel %vm1523_vm1, %v4830_v36, 0 }
 0x40b   : > { %v4380_v58 = vadd.f32 %v4379_v30, %v4367_v28  ;;  %v8808_v30 = vld [vmem:[%s10865_s24 + $0x6e0] sm:$0x11]  ;;  %v9264_v28 = vld [vmem:[%s10865_s24 + $0x688] sm:$0xf0]  ;;  %5051 = vmatpush.bf16.msra.mxu1 %v4932_v1 }
 0x40c   : > { %v4737_v62 = vunpack.c.l.b16 %v8808_v30  ;;  %v4738_v20 = vunpack.c.h.b16 %v8808_v30  ;;  %v4929_v30 = vsel %vm1523_vm1, %v4829_v49, 0  ;;  %v9174_v49 = vld [vmem:[%s10865_s24 + $0x580] sm:$0xf] }
 0x40d   : > { %v11787_v46 = vadd.f32 %v4392_v51, %v4380_v58  ;;  %v10462_v51 = vld [vmem:[%s10865_s24 + $0x684] sm:$0xf0]  ;;  %v9278_v58 = vld [vmem:[%s10865_s24 + $0x640] sm:$0xf]  ;;  %5038 = vmatpush.bf16.msra.mxu0 %v4929_v30  ;;  %v9192_v30 = vld [vmem:[%s10865_s24 + $0x5e8] sm:$0xf0] }
 0x40e   : > { %v4355_v34 = vpop.f32.mrf.mxu0  ;;  %v4368_v23 = vpop.f32.mrf.mxu1  ;;  %v4825_v22 = vpack.c.b16 %v4737_v62, %v4737_v62  ;;  %v4826_v57 = vpack.c.b16 %v4738_v20, %v4738_v20  ;;  %v9263_v62 = vor.u32 %v10462_v51, %v9262_v44  ;;  %v9267_v20 = vor.u32 %v10451_v24, %v9264_v28  ;;  %v10429_v44 = vld [vmem:[%s10865_s24 + $0x584] sm:$0xf]  ;;  %v9176_v28 = vld [vmem:[%s10865_s24 + $0x5d8] sm:$0xf0] }
 0x40f   : > { %v10464_v34 = vld [vmem:[%s10865_s24 + $0x694] sm:$0xf0]  ;;  %v10453_v23 = vld [vmem:[%s10865_s24 + $0x644] sm:$0xf] }
 0x410   : > { %v4920_v10 = vsel %vm1523_vm1, %v4826_v57, 0 }
 0x411   : > { %4999 = vmatpush.bf16.msrb.mxu3 %v4920_v10  ;;  %v10440_v10 = vld [vmem:[%s10865_s24 + $0x5d4] sm:$0xf0] }
 0x412   : > { %v9175_v24 = vor.u32 %v10440_v10, %v9174_v49 }
 0x415   : > { %5000 = vmatpush.bf16.msrb.mxu3 %v9267_v20  ;;  %v9086_v20 = vld [vmem:[%s10865_s24 + $0x4d0] sm:$0xf] }
 0x41f   : > { %v11789_v13 = vpop.f32.mrf.mxu2  ;;  %v11791_v31 = vpop.f32.mrf.mxu3 }
 0x426   : > { %v11793_v32 = vpop.f32.mrf.mxu0  ;;  %v11795_v41 = vpop.f32.mrf.mxu1 }
 0x427   : > { %v4433_v39 = vpop.f32.mrf.mxu2  ;;  %v4446_v42 = vpop.f32.mrf.mxu3  ;;  %v4406_v49 = vadd.f32 %v11793_v32, %v11787_v46 }
 0x428   : > { %v9280_v39 = vld [vmem:[%s10865_s24 + $0x698] sm:$0xf0]  ;;  %v4917_v42 = vsel %vm1523_vm1, %v4825_v22, 0  ;;  %v9279_v22 = vor.u32 %v10464_v34, %v9278_v58  ;;  %v9190_v58 = vld [vmem:[%s10865_s24 + $0x590] sm:$0xf] }
 0x429   : > { %4986 = vmatpush.bf16.msrb.mxu2 %v4917_v42  ;;  %v9283_v57 = vor.u32 %v10453_v23, %v9280_v39  ;;  %v10442_v34 = vld [vmem:[%s10865_s24 + $0x5e4] sm:$0xf0]  ;;  %v9179_v23 = vor.u32 %v10429_v44, %v9176_v28  ;;  %v10431_v42 = vld [vmem:[%s10865_s24 + $0x594] sm:$0xf]  ;;  %v9088_v44 = vld [vmem:[%s10865_s24 + $0x528] sm:$0xf0] }
 0x42a   : > { %5039 = vmatpush.bf16.msra.mxu0 %v9279_v22  ;;  %v9191_v39 = vor.u32 %v10442_v34, %v9190_v58  ;;  %v9195_v1 = vor.u32 %v10431_v42, %v9192_v30  ;;  %v9102_v28 = vld [vmem:[%s10865_s24 + $0x4e0] sm:$0xf]  ;;  %v10409_v42 = vld [vmem:[%s10865_s24 + $0x4e4] sm:$0xf] }
 0x42b   : > { %5052 = vmatpush.bf16.msra.mxu1 %v9283_v57  ;;  %5001 = vmatpush.bf16.msrb.mxu3 %v9179_v23  ;;  %v9104_v23 = vld [vmem:[%s10865_s24 + $0x538] sm:$0xf0] }
 0x42c   : > { %v9107_v50 = vor.u32 %v10409_v42, %v9104_v23 }
 0x42d   : > { %4987 = vmatpush.bf16.msrb.mxu2 %v9263_v62  ;;  %v8809_v62 = vld [vmem:[%s10865_s24 + $0x6e8] sm:$0x11] }
 0x42e   : > { %v4407_v11 = vpop.f32.mrf.mxu0  ;;  %v4420_v43 = vpop.f32.mrf.mxu1  ;;  %5040 = vmatpush.bf16.msra.mxu0 %v9191_v39  ;;  %v4739_v22 = vunpack.c.l.b16 %v8809_v62  ;;  %v4740_v57 = vunpack.c.h.b16 %v8809_v62 }
 0x42f   : > { %v10418_v11 = vld [vmem:[%s10865_s24 + $0x524] sm:$0xf0]  ;;  %v10407_v43 = vld [vmem:[%s10865_s24 + $0x4d4] sm:$0xf]  ;;  %5053 = vmatpush.bf16.msra.mxu1 %v9195_v1 }
 0x430   : > { %v9087_v10 = vor.u32 %v10418_v11, %v9086_v20  ;;  %v9091_v58 = vor.u32 %v10407_v43, %v9088_v44  ;;  %v4827_v30 = vpack.c.b16 %v4739_v22, %v4739_v22  ;;  %v4828_v39 = vpack.c.b16 %v4740_v57, %v4740_v57  ;;  %v10463_v44 = vld [vmem:[%s10865_s24 + $0x68c] sm:$0xf0] }
 0x431   : > { %4988 = vmatpush.bf16.msrb.mxu2 %v9175_v24  ;;  %v10420_v24 = vld [vmem:[%s10865_s24 + $0x534] sm:$0xf0]  ;;  %v4834_v11 = vpack.c.b16 %v4746_v55, %v4746_v55  ;;  %v4419_v43 = vadd.f32 %v11795_v41, %v4406_v49  ;;  %v4941_v22 = vsel %vm1523_vm1, %v4833_v27, 0  ;;  %v9294_v55 = vld [vmem:[%s10865_s24 + $0x650] sm:$0xf] }
 0x432   : > { %v9103_v34 = vor.u32 %v10420_v24, %v9102_v28  ;;  %5002 = vmatpush.bf16.msrb.mxu3 %v9091_v58  ;;  %v4923_v46 = vsel %vm1523_vm1, %v4827_v30, 0  ;;  %v4926_v32 = vsel %vm1523_vm1, %v4828_v39, 0  ;;  %v10452_v28 = vld [vmem:[%s10865_s24 + $0x63c] sm:$0xf]  ;;  %v10466_v49 = vld [vmem:[%s10865_s24 + $0x6a4] sm:$0xf0] }
 0x433   : > { %5054 = vmatpush.bf16.msra.mxu1 %v9107_v50  ;;  %v4944_v57 = vsel %vm1523_vm1, %v4834_v11, 0  ;;  %v9275_v41 = vor.u32 %v10452_v28, %v9272_v56  ;;  %v10455_v24 = vld [vmem:[%s10865_s24 + $0x654] sm:$0xf]  ;;  %v9296_v58 = vld [vmem:[%s10865_s24 + $0x6a8] sm:$0xf0]  ;;  %v9295_v42 = vor.u32 %v10466_v49, %v9294_v55 }
 0x434   : > { %5041 = vmatpush.bf16.msra.mxu0 %v9103_v34  ;;  %v4432_v34 = vadd.f32 %v11789_v13, %v4419_v43  ;;  %v9299_v23 = vor.u32 %v10455_v24, %v9296_v58  ;;  %v9182_v30 = vld [vmem:[%s10865_s24 + $0x588] sm:$0xf]  ;;  %v10441_v39 = vld [vmem:[%s10865_s24 + $0x5dc] sm:$0xf0]  ;;  %v10444_v27 = vld [vmem:[%s10865_s24 + $0x5f4] sm:$0xf0] }
 0x435   : > { %4989 = vmatpush.bf16.msrb.mxu2 %v9087_v10  ;;  %v9270_v10 = vld [vmem:[%s10865_s24 + $0x638] sm:$0xf]  ;;  %v10419_v28 = vld [vmem:[%s10865_s24 + $0x52c] sm:$0xf0]  ;;  %v10408_v56 = vld [vmem:[%s10865_s24 + $0x4dc] sm:$0xf] }
 0x436   : > { %5025 = vmatpush.bf16.msra.mxu3 %v4926_v32  ;;  %v9271_v50 = vor.u32 %v10463_v44, %v9270_v10  ;;  %v9183_v32 = vor.u32 %v10441_v39, %v9182_v30  ;;  %v9208_v10 = vld [vmem:[%s10865_s24 + $0x5f8] sm:$0xf0]  ;;  %v9094_v44 = vld [vmem:[%s10865_s24 + $0x4d8] sm:$0xf]  ;;  %v9096_v55 = vld [vmem:[%s10865_s24 + $0x530] sm:$0xf0] }
 0x437   : > { %5103 = vmatpush.bf16.msrb.mxu1 %v4944_v57  ;;  %v10433_v57 = vld [vmem:[%s10865_s24 + $0x5a4] sm:$0xf]  ;;  %v9095_v49 = vor.u32 %v10419_v28, %v9094_v44  ;;  %v9118_v24 = vld [vmem:[%s10865_s24 + $0x4f0] sm:$0xf]  ;;  %v10422_v58 = vld [vmem:[%s10865_s24 + $0x544] sm:$0xf0] }
 0x438   : > { %5090 = vmatpush.bf16.msrb.mxu0 %v4941_v22  ;;  %v9120_v30 = vld [vmem:[%s10865_s24 + $0x548] sm:$0xf0] }
 0x439   : > { %5012 = vmatpush.bf16.msra.mxu2 %v4923_v46  ;;  %v10430_v46 = vld [vmem:[%s10865_s24 + $0x58c] sm:$0xf] }
 0x43a   : > { %5026 = vmatpush.bf16.msra.mxu3 %v9275_v41  ;;  %v4445_v41 = vadd.f32 %v11791_v31, %v4432_v34  ;;  %v8811_v34 = vld [vmem:[%s10865_s24 + $0x6f8] sm:$0x11] }
 0x43b   : > { %5104 = vmatpush.bf16.msrb.mxu1 %v9299_v23  ;;  %v10411_v23 = vld [vmem:[%s10865_s24 + $0x4f4] sm:$0xf] }
 0x43c   : > { %5091 = vmatpush.bf16.msrb.mxu0 %v9295_v42  ;;  %v9099_v42 = vor.u32 %v10408_v56, %v9096_v55 }
 0x43d   : > { %5013 = vmatpush.bf16.msra.mxu2 %v9271_v50  ;;  %v9211_v50 = vor.u32 %v10433_v57, %v9208_v10 }
 0x43e   : > { %v11814_v51 = vpop.f32.mrf.mxu2  ;;  %v11816_v36 = vpop.f32.mrf.mxu3 }
 0x43f   : > { %5105 = vmatpush.bf16.msrb.mxu1 %v9211_v50 }
 0x441   : > { %5014 = vmatpush.bf16.msra.mxu2 %v9183_v32  ;;  %v8814_v32 = vld [vmem:[%s10865_s24 + $0x710] sm:$0x11] }
 0x442   : > { %v4750_v57 = vunpack.c.h.b16 %v8814_v32 }
 0x444   : > { %v4838_v28 = vpack.c.b16 %v4750_v57, %v4750_v57 }
 0x445   : > { %5015 = vmatpush.bf16.msra.mxu2 %v9095_v49  ;;  %v9286_v49 = vld [vmem:[%s10865_s24 + $0x648] sm:$0xf] }
 0x446   : > { %v4457_v62 = vpop.f32.mrf.mxu0  ;;  %v11835_v54 = vpop.f32.mrf.mxu1 }
 0x447   : > { %v4485_v1 = vpop.f32.mrf.mxu2  ;;  %v4498_v20 = vpop.f32.mrf.mxu3  ;;  %v4458_v39 = vadd.f32 %v4457_v62, %v4445_v41 }
 0x448   : > { %v9184_v1 = vld [vmem:[%s10865_s24 + $0x5e0] sm:$0xf0]  ;;  %v9206_v20 = vld [vmem:[%s10865_s24 + $0x5a0] sm:$0xf] }
 0x449   : > { %v9187_v43 = vor.u32 %v10430_v46, %v9184_v1  ;;  %v9207_v22 = vor.u32 %v10444_v27, %v9206_v20  ;;  %v9119_v46 = vor.u32 %v10422_v58, %v9118_v24  ;;  %v9123_v1 = vor.u32 %v10411_v23, %v9120_v30  ;;  %v10465_v24 = vld [vmem:[%s10865_s24 + $0x69c] sm:$0xf0]  ;;  %v10454_v58 = vld [vmem:[%s10865_s24 + $0x64c] sm:$0xf]  ;;  %v9288_v30 = vld [vmem:[%s10865_s24 + $0x6a0] sm:$0xf0] }
 0x44a   : > { %v4471_v20 = vadd.f32 %v11835_v54, %v4458_v39  ;;  %v4743_v27 = vunpack.c.l.b16 %v8811_v34 }
 0x44b   : > { %5027 = vmatpush.bf16.msra.mxu3 %v9187_v43  ;;  %5092 = vmatpush.bf16.msrb.mxu0 %v9207_v22  ;;  %v4749_v22 = vunpack.c.l.b16 %v8814_v32  ;;  %v9198_v32 = vld [vmem:[%s10865_s24 + $0x598] sm:$0xf] }
 0x44c   : > { %5106 = vmatpush.bf16.msrb.mxu1 %v9123_v1  ;;  %v4484_v31 = vadd.f32 %v11814_v51, %v4471_v20  ;;  %v4831_v54 = vpack.c.b16 %v4743_v27, %v4743_v27  ;;  %v9310_v1 = vld [vmem:[%s10865_s24 + $0x660] sm:$0xf]  ;;  %v10468_v20 = vld [vmem:[%s10865_s24 + $0x6b4] sm:$0xf0]  ;;  %v9287_v27 = vor.u32 %v10465_v24, %v9286_v49  ;;  %v10410_v24 = vld [vmem:[%s10865_s24 + $0x4ec] sm:$0xf] }
 0x44d   : > { %v4837_v51 = vpack.c.b16 %v4749_v22, %v4749_v22  ;;  %v9311_v22 = vor.u32 %v10468_v20, %v9310_v1  ;;  %v10421_v49 = vld [vmem:[%s10865_s24 + $0x53c] sm:$0xf0]  ;;  %v10424_v1 = vld [vmem:[%s10865_s24 + $0x554] sm:$0xf0] }
 0x44e   : > { %v4459_v11 = vpop.f32.mrf.mxu0  ;;  %v4472_v13 = vpop.f32.mrf.mxu1  ;;  %v4935_v55 = vsel %vm1523_vm1, %v4831_v54, 0  ;;  %v9222_v54 = vld [vmem:[%s10865_s24 + $0x5b0] sm:$0xf] }
 0x44f   : > { %5028 = vmatpush.bf16.msra.mxu3 %v9099_v42  ;;  %5093 = vmatpush.bf16.msrb.mxu0 %v9119_v46  ;;  %v4744_v11 = vunpack.c.h.b16 %v8811_v34  ;;  %v4497_v13 = vadd.f32 %v11816_v36, %v4484_v31  ;;  %v4953_v39 = vsel %vm1523_vm1, %v4837_v51, 0  ;;  %v4956_v46 = vsel %vm1523_vm1, %v4838_v28, 0  ;;  %v10457_v31 = vld [vmem:[%s10865_s24 + $0x664] sm:$0xf]  ;;  %v9312_v34 = vld [vmem:[%s10865_s24 + $0x6b8] sm:$0xf0] }
 0x450   : > { %v9315_v57 = vor.u32 %v10457_v31, %v9312_v34  ;;  %v9224_v51 = vld [vmem:[%s10865_s24 + $0x608] sm:$0xf0]  ;;  %v8816_v28 = vld [vmem:[%s10865_s24 + $0x720] sm:$0x11] }
 0x451   : > { %v4832_v44 = vpack.c.b16 %v4744_v11, %v4744_v11  ;;  %v9291_v11 = vor.u32 %v10454_v58, %v9288_v30  ;;  %v9112_v58 = vld [vmem:[%s10865_s24 + $0x540] sm:$0xf0]  ;;  %v4753_v20 = vunpack.c.l.b16 %v8816_v28  ;;  %v4754_v31 = vunpack.c.h.b16 %v8816_v28 }
 0x452   : > { %v10413_v34 = vld [vmem:[%s10865_s24 + $0x504] sm:$0xf] }
 0x453   : > { %v4938_v36 = vsel %vm1523_vm1, %v4832_v44, 0  ;;  %v10446_v44 = vld [vmem:[%s10865_s24 + $0x604] sm:$0xf0] }
 0x454   : > { %v9223_v30 = vor.u32 %v10446_v44, %v9222_v54  ;;  %v9302_v54 = vld [vmem:[%s10865_s24 + $0x658] sm:$0xf]  ;;  %v10467_v44 = vld [vmem:[%s10865_s24 + $0x6ac] sm:$0xf0] }
 0x466   : > { %v4509_v62 = vpop.f32.mrf.mxu0  ;;  %v4522_v43 = vpop.f32.mrf.mxu1 }
 0x467   : > { %v4510_v10 = vadd.f32 %v4509_v62, %v4497_v13  ;;  %v10443_v13 = vld [vmem:[%s10865_s24 + $0x5ec] sm:$0xf0]  ;;  %v10432_v62 = vld [vmem:[%s10865_s24 + $0x59c] sm:$0xf] }
 0x469   : > { %v4523_v50 = vadd.f32 %v4522_v43, %v4510_v10  ;;  %v9200_v43 = vld [vmem:[%s10865_s24 + $0x5f0] sm:$0xf0]  ;;  %v8813_v10 = vld [vmem:[%s10865_s24 + $0x708] sm:$0x11] }
 0x46b   : > { %v4526_v56 = vmul.f32 0.25, %v4523_v50  ;;  %v10435_v50 = vld [vmem:[%s10865_s24 + $0x5b4] sm:$0xf] }
 0x46d   : > { %v11875_v41 = vpack.c.bf16 %v4526_v56, %v4526_v56  ;;  %v9110_v56 = vld [vmem:[%s10865_s24 + $0x4e8] sm:$0xf] }
 0x46e   : > { %v4511_v42 = vpop.f32.mrf.mxu0  ;;  %v4524_v23 = vpop.f32.mrf.mxu1 }
 0x46f   : > { %9348 = vmatmul.msk.bf16.vlgmr.msrb.gmra.mxu2 %vm1519_vm2, %v11875_v41  ;;  %9349 = vmatmul.msk.bf16.vlgmr.msrb.gmra.mxu3 %vm1519_vm2, %v11875_v41  ;;  %v4747_v42 = vunpack.c.l.b16 %v8813_v10  ;;  %v4748_v23 = vunpack.c.h.b16 %v8813_v10  ;;  %v4842_v10 = vpack.c.b16 %v4754_v31, %v4754_v31 }
 0x470   : > { %9352 = vmatmul.msk.bf16.vlgmr.msra.gmra.mxu0 %vm1519_vm2, %v11875_v41  ;;  %9353 = vmatmul.msk.bf16.vlgmr.msra.gmra.mxu1 %vm1519_vm2, %v11875_v41 }
 0x471   : > { %5064 = vmatpush.bf16.msrb.mxu2 %v4935_v55  ;;  %5077 = vmatpush.bf16.msrb.mxu3 %v4938_v36  ;;  %v9199_v55 = vor.u32 %v10443_v13, %v9198_v32  ;;  %v9203_v36 = vor.u32 %v10432_v62, %v9200_v43  ;;  %v9111_v32 = vor.u32 %v10421_v49, %v9110_v56  ;;  %v9326_v49 = vld [vmem:[%s10865_s24 + $0x670] sm:$0xf] }
 0x472   : > { %5142 = vmatpush.bf16.msra.mxu0 %v4953_v39  ;;  %5155 = vmatpush.bf16.msra.mxu1 %v4956_v46  ;;  %v9227_v39 = vor.u32 %v10435_v50, %v9224_v51  ;;  %v9134_v46 = vld [vmem:[%s10865_s24 + $0x500] sm:$0xf]  ;;  %v4835_v13 = vpack.c.b16 %v4747_v42, %v4747_v42  ;;  %v4836_v62 = vpack.c.b16 %v4748_v23, %v4748_v23  ;;  %v10456_v50 = vld [vmem:[%s10865_s24 + $0x65c] sm:$0xf]  ;;  %v9304_v51 = vld [vmem:[%s10865_s24 + $0x6b0] sm:$0xf0] }
 0x473   : > { %v9135_v43 = vor.u32 %v10424_v1, %v9134_v46  ;;  %v9328_v42 = vld [vmem:[%s10865_s24 + $0x6c8] sm:$0xf0]  ;;  %v9214_v23 = vld [vmem:[%s10865_s24 + $0x5a8] sm:$0xf]  ;;  %v10445_v46 = vld [vmem:[%s10865_s24 + $0x5fc] sm:$0xf0] }
 0x474   : > { %v4947_v28 = vsel %vm1523_vm1, %v4835_v13, 0  ;;  %v4950_v56 = vsel %vm1523_vm1, %v4836_v62, 0  ;;  %v10434_v1 = vld [vmem:[%s10865_s24 + $0x5ac] sm:$0xf]  ;;  %v10437_v13 = vld [vmem:[%s10865_s24 + $0x5c4] sm:$0xf] }
 0x475   : > { %5065 = vmatpush.bf16.msrb.mxu2 %v9287_v27  ;;  %5078 = vmatpush.bf16.msrb.mxu3 %v9291_v11  ;;  %v9136_v27 = vld [vmem:[%s10865_s24 + $0x558] sm:$0xf0]  ;;  %v9115_v11 = vor.u32 %v10410_v24, %v9112_v58  ;;  %v10470_v24 = vld [vmem:[%s10865_s24 + $0x6c4] sm:$0xf0]  ;;  %v10459_v58 = vld [vmem:[%s10865_s24 + $0x674] sm:$0xf] }
 0x476   : > { %5143 = vmatpush.bf16.msra.mxu0 %v9311_v22  ;;  %5156 = vmatpush.bf16.msra.mxu1 %v9315_v57  ;;  %v9139_v22 = vor.u32 %v10413_v34, %v9136_v27  ;;  %v4841_v57 = vpack.c.b16 %v4753_v20, %v4753_v20  ;;  %v9216_v20 = vld [vmem:[%s10865_s24 + $0x600] sm:$0xf0]  ;;  %v9327_v31 = vor.u32 %v10470_v24, %v9326_v49  ;;  %v8815_v27 = vld [vmem:[%s10865_s24 + $0x718] sm:$0x11]  ;;  %v10426_v49 = vld [vmem:[%s10865_s24 + $0x564] sm:$0xf0] }
 0x477   : > { %v9331_v34 = vor.u32 %v10459_v58, %v9328_v42  ;;  %v9240_v62 = vld [vmem:[%s10865_s24 + $0x618] sm:$0xf0]  ;;  %v10415_v42 = vld [vmem:[%s10865_s24 + $0x514] sm:$0xf] }
 0x479   : > { %5066 = vmatpush.bf16.msrb.mxu2 %v9199_v55  ;;  %5079 = vmatpush.bf16.msrb.mxu3 %v9203_v36  ;;  %v4965_v55 = vsel %vm1523_vm1, %v4841_v57, 0  ;;  %v4968_v36 = vsel %vm1523_vm1, %v4842_v10, 0  ;;  %v9215_v57 = vor.u32 %v10445_v46, %v9214_v23  ;;  %v9219_v10 = vor.u32 %v10434_v1, %v9216_v20 }
 0x47a   : > { %5144 = vmatpush.bf16.msra.mxu0 %v9223_v30  ;;  %5157 = vmatpush.bf16.msra.mxu1 %v9227_v39  ;;  %v9303_v30 = vor.u32 %v10467_v44, %v9302_v54  ;;  %v9307_v39 = vor.u32 %v10456_v50, %v9304_v51  ;;  %v10423_v54 = vld [vmem:[%s10865_s24 + $0x54c] sm:$0xf0]  ;;  %v10412_v44 = vld [vmem:[%s10865_s24 + $0x4fc] sm:$0xf]  ;;  %v9128_v50 = vld [vmem:[%s10865_s24 + $0x550] sm:$0xf0]  ;;  %v4751_v51 = vunpack.c.l.b16 %v8815_v27 }
 0x47c   : > { %v4839_v46 = vpack.c.b16 %v4751_v51, %v4751_v51  ;;  %v9344_v51 = vld [vmem:[%s10865_s24 + $0x6d8] sm:$0xf0] }
 0x47d   : > { %5067 = vmatpush.bf16.msrb.mxu2 %v9111_v32  ;;  %5080 = vmatpush.bf16.msrb.mxu3 %v9115_v11  ;;  %v9238_v32 = vld [vmem:[%s10865_s24 + $0x5c0] sm:$0xf]  ;;  %v10448_v11 = vld [vmem:[%s10865_s24 + $0x614] sm:$0xf0] }
 0x47e   : > { %5145 = vmatpush.bf16.msra.mxu0 %v9135_v43  ;;  %5158 = vmatpush.bf16.msra.mxu1 %v9139_v22  ;;  %v8818_v43 = vld [vmem:[%s10865_s24 + $0x730] sm:$0x11]  ;;  %v9126_v22 = vld [vmem:[%s10865_s24 + $0x4f8] sm:$0xf] }
 0x47f   : > { %9350 = vmatmul.msk.bf16.vlgmr.msra.gmra.mxu2 %vm1519_vm2, %v11875_v41  ;;  %9351 = vmatmul.msk.bf16.vlgmr.msra.gmra.mxu3 %vm1519_vm2, %v11875_v41  ;;  %v4757_v24 = vunpack.c.l.b16 %v8818_v43  ;;  %v4758_v58 = vunpack.c.h.b16 %v8818_v43  ;;  %v9127_v23 = vor.u32 %v10423_v54, %v9126_v22  ;;  %v4959_v43 = vsel %vm1523_vm1, %v4839_v46, 0  ;;  %v9342_v54 = vld [vmem:[%s10865_s24 + $0x680] sm:$0xf]  ;;  %v10439_v46 = vld [vmem:[%s10865_s24 + $0x5d4] sm:$0xf] }
 0x480   : > { %9356 = vmatmul.msk.bf16.vlgmr.msrb.gmra.mxu0 %vm1519_vm2, %v11875_v41  ;;  %9357 = vmatmul.msk.bf16.vlgmr.msrb.gmra.mxu1 %vm1519_vm2, %v11875_v41 }
 0x481   : > { %5116 = vmatpush.bf16.msra.mxu2 %v4947_v28  ;;  %5129 = vmatpush.bf16.msra.mxu3 %v4950_v56  ;;  %v4752_v28 = vunpack.c.h.b16 %v8815_v27  ;;  %v9239_v56 = vor.u32 %v10448_v11, %v9238_v32  ;;  %v4846_v27 = vpack.c.b16 %v4758_v58, %v4758_v58  ;;  %v9318_v32 = vld [vmem:[%s10865_s24 + $0x668] sm:$0xf]  ;;  %v10469_v11 = vld [vmem:[%s10865_s24 + $0x6bc] sm:$0xf0] }
 0x482   : > { %5194 = vmatpush.bf16.msrb.mxu0 %v4965_v55  ;;  %5207 = vmatpush.bf16.msrb.mxu1 %v4968_v36  ;;  %v9243_v55 = vor.u32 %v10437_v13, %v9240_v62  ;;  %v9150_v36 = vld [vmem:[%s10865_s24 + $0x510] sm:$0xf]  ;;  %v10458_v13 = vld [vmem:[%s10865_s24 + $0x66c] sm:$0xf]  ;;  %v9320_v62 = vld [vmem:[%s10865_s24 + $0x6c0] sm:$0xf0] }
 0x483   : > { %v4840_v1 = vpack.c.b16 %v4752_v28, %v4752_v28  ;;  %v9151_v20 = vor.u32 %v10426_v49, %v9150_v36  ;;  %v9319_v28 = vor.u32 %v10469_v11, %v9318_v32  ;;  %v10447_v36 = vld [vmem:[%s10865_s24 + $0x60c] sm:$0xf0]  ;;  %v10436_v49 = vld [vmem:[%s10865_s24 + $0x5bc] sm:$0xf]  ;;  %v8817_v58 = vld [vmem:[%s10865_s24 + $0x728] sm:$0x11] }
 0x484   : > { %v10414_v32 = vld [vmem:[%s10865_s24 + $0x50c] sm:$0xf]  ;;  %v4755_v11 = vunpack.c.l.b16 %v8817_v58 }
 0x485   : > { %5117 = vmatpush.bf16.msra.mxu2 %v9303_v30  ;;  %5130 = vmatpush.bf16.msra.mxu3 %v9307_v39  ;;  %v9152_v30 = vld [vmem:[%s10865_s24 + $0x568] sm:$0xf0]  ;;  %v9131_v39 = vor.u32 %v10412_v44, %v9128_v50  ;;  %v4962_v22 = vsel %vm1523_vm1, %v4840_v1, 0  ;;  %v10472_v44 = vld [vmem:[%s10865_s24 + $0x6d4] sm:$0xf0] }
 0x486   : > { %5195 = vmatpush.bf16.msrb.mxu0 %v9327_v31  ;;  %5208 = vmatpush.bf16.msrb.mxu1 %v9331_v34  ;;  %v9155_v31 = vor.u32 %v10415_v42, %v9152_v30  ;;  %v4845_v34 = vpack.c.b16 %v4757_v24, %v4757_v24  ;;  %v10461_v50 = vld [vmem:[%s10865_s24 + $0x684] sm:$0xf]  ;;  %v9232_v24 = vld [vmem:[%s10865_s24 + $0x610] sm:$0xf0]  ;;  %v9343_v42 = vor.u32 %v10472_v44, %v9342_v54  ;;  %v9256_v1 = vld [vmem:[%s10865_s24 + $0x628] sm:$0xf0] }
 0x487   : > { %v9347_v30 = vor.u32 %v10461_v50, %v9344_v51  ;;  %v10417_v54 = vld [vmem:[%s10865_s24 + $0x524] sm:$0xf]  ;;  %v9168_v44 = vld [vmem:[%s10865_s24 + $0x578] sm:$0xf0]  ;;  %v9437_v50 = vld [vmem:[%s10660_s17 + $0x950] sm:$0x11] }
 0x489   : > { %5118 = vmatpush.bf16.msra.mxu2 %v9215_v57  ;;  %5131 = vmatpush.bf16.msra.mxu3 %v9219_v10  ;;  %v4977_v57 = vsel %vm1523_vm1, %v4845_v34, 0  ;;  %v4980_v10 = vsel %vm1523_vm1, %v4846_v27, 0  ;;  %v9142_v34 = vld [vmem:[%s10865_s24 + $0x508] sm:$0xf]  ;;  %v10425_v27 = vld [vmem:[%s10865_s24 + $0x55c] sm:$0xf0] }
 0x48a   : > { %5196 = vmatpush.bf16.msrb.mxu0 %v9239_v56  ;;  %5209 = vmatpush.bf16.msrb.mxu1 %v9243_v55  ;;  %v9323_v56 = vor.u32 %v10458_v13, %v9320_v62  ;;  %v9230_v55 = vld [vmem:[%s10865_s24 + $0x5b8] sm:$0xf]  ;;  %v4756_v13 = vunpack.c.h.b16 %v8817_v58  ;;  %v9144_v62 = vld [vmem:[%s10865_s24 + $0x560] sm:$0xf0]  ;;  %v9143_v51 = vor.u32 %v10425_v27, %v9142_v34  ;;  %v5752_v58 = vunpack.c.h.b16 %v9437_v50 }
 0x48d   : > { %5119 = vmatpush.bf16.msra.mxu2 %v9127_v23  ;;  %5132 = vmatpush.bf16.msra.mxu3 %v9131_v39  ;;  %v9254_v23 = vld [vmem:[%s10865_s24 + $0x5d0] sm:$0xf]  ;;  %v10450_v39 = vld [vmem:[%s10865_s24 + $0x624] sm:$0xf0] }
 0x48e   : > { %5197 = vmatpush.bf16.msrb.mxu0 %v9151_v20  ;;  %5210 = vmatpush.bf16.msrb.mxu1 %v9155_v31  ;;  %v9231_v20 = vor.u32 %v10447_v36, %v9230_v55  ;;  %v9235_v31 = vor.u32 %v10436_v49, %v9232_v24  ;;  %v4844_v55 = vpack.c.b16 %v4756_v13, %v4756_v13  ;;  %v5751_v24 = vunpack.c.l.b16 %v9437_v50  ;;  %v10438_v13 = vld [vmem:[%s10865_s24 + $0x5cc] sm:$0xf]  ;;  %v9158_v50 = vld [vmem:[%s10865_s24 + $0x518] sm:$0xf] }
 0x48f   : > { %9354 = vmatmul.msk.bf16.vlgmr.msrb.gmra.mxu2 %vm1519_vm2, %v11875_v41  ;;  %9355 = vmatmul.msk.bf16.vlgmr.msrb.gmra.mxu3 %vm1519_vm2, %v11875_v41  ;;  %v9171_v49 = vor.u32 %v10417_v54, %v9168_v44 }
 0x490   : > { %9360 = vmatmul.msk.bf16.vlgmr.msra.gmra.mxu0 %vm1519_vm2, %v11875_v41  ;;  %9361 = vmatmul.msk.bf16.vlgmr.msra.gmra.mxu1 %vm1519_vm2, %v11875_v41 }
 0x491   : > { %5168 = vmatpush.bf16.msrb.mxu2 %v4959_v43  ;;  %5181 = vmatpush.bf16.msrb.mxu3 %v4962_v22  ;;  %v9255_v43 = vor.u32 %v10450_v39, %v9254_v23  ;;  %v9259_v22 = vor.u32 %v10439_v46, %v9256_v1  ;;  %v9334_v23 = vld [vmem:[%s10865_s24 + $0x678] sm:$0xf]  ;;  %v10471_v39 = vld [vmem:[%s10865_s24 + $0x6cc] sm:$0xf0]  ;;  %v10460_v46 = vld [vmem:[%s10865_s24 + $0x67c] sm:$0xf] }
 0x492   : > { %5246 = vmatpush.bf16.msra.mxu0 %v4977_v57  ;;  %5259 = vmatpush.bf16.msra.mxu1 %v4980_v10  ;;  %v9166_v57 = vld [vmem:[%s10865_s24 + $0x520] sm:$0xf]  ;;  %v10428_v10 = vld [vmem:[%s10865_s24 + $0x574] sm:$0xf0]  ;;  %v9336_v1 = vld [vmem:[%s10865_s24 + $0x6d0] sm:$0xf0]  ;;  %v9335_v34 = vor.u32 %v10471_v39, %v9334_v23 }
 0x493   : > { %v9167_v36 = vor.u32 %v10428_v10, %v9166_v57  ;;  %v9339_v27 = vor.u32 %v10460_v46, %v9336_v1  ;;  %v10518_v57 = vld [vmem:[%s10660_s17 + $0x8a4] sm:$0xf]  ;;  %v9712_v10 = vld [vmem:[%s10660_s17 + $0x8f8] sm:$0xf0]  ;;  %v9622_v23 = vld [vmem:[%s10660_s17 + $0x7f0] sm:$0xf] }
 0x494   : > { %v10507_v39 = vld [vmem:[%s10660_s17 + $0x844] sm:$0xf0]  ;;  %v10496_v46 = vld [vmem:[%s10660_s17 + $0x7f4] sm:$0xf]  ;;  %v9624_v1 = vld [vmem:[%s10660_s17 + $0x848] sm:$0xf0] }
 0x495   : > { %5169 = vmatpush.bf16.msrb.mxu2 %v9319_v28  ;;  %5182 = vmatpush.bf16.msrb.mxu3 %v9323_v56  ;;  %v9147_v28 = vor.u32 %v10414_v32, %v9144_v62  ;;  %v4843_v56 = vpack.c.b16 %v4755_v11, %v4755_v11  ;;  %v9246_v32 = vld [vmem:[%s10865_s24 + $0x5c8] sm:$0xf]  ;;  %v10449_v11 = vld [vmem:[%s10865_s24 + $0x61c] sm:$0xf0]  ;;  %v9248_v62 = vld [vmem:[%s10865_s24 + $0x620] sm:$0xf0] }
 0x496   : > { %5247 = vmatpush.bf16.msra.mxu0 %v9343_v42  ;;  %5260 = vmatpush.bf16.msra.mxu1 %v9347_v30  ;;  %v4974_v30 = vsel %vm1523_vm1, %v4844_v55, 0  ;;  %v9247_v54 = vor.u32 %v10449_v11, %v9246_v32  ;;  %v9251_v44 = vor.u32 %v10438_v13, %v9248_v62  ;;  %v9436_v55 = vld [vmem:[%s10660_s17 + $0x948] sm:$0x11]  ;;  %v9439_v32 = vld [vmem:[%s10660_s17 + $0x960] sm:$0x11] }
 0x497   : > { %v4971_v42 = vsel %vm1523_vm1, %v4843_v56, 0  ;;  %v9160_v56 = vld [vmem:[%s10865_s24 + $0x570] sm:$0xf0]  ;;  %v9702_v11 = vld [vmem:[%s10660_s17 + $0x898] sm:$0xf] }
 0x498   : > { %v10528_v13 = vld [vmem:[%s10660_s17 + $0x8ec] sm:$0xf0]  ;;  %v10517_v62 = vld [vmem:[%s10660_s17 + $0x89c] sm:$0xf] }
 0x499   : > { %5170 = vmatpush.bf16.msrb.mxu2 %v9231_v20  ;;  %5183 = vmatpush.bf16.msrb.mxu3 %v9235_v31  ;;  %v5839_v20 = vpack.c.b16 %v5751_v24, %v5751_v24  ;;  %v5840_v31 = vpack.c.b16 %v5752_v58, %v5752_v58 }
 0x49a   : > { %5248 = vmatpush.bf16.msra.mxu0 %v9255_v43  ;;  %5261 = vmatpush.bf16.msra.mxu1 %v9259_v22  ;;  %v9710_v43 = vld [vmem:[%s10660_s17 + $0x8a0] sm:$0xf]  ;;  %v10529_v22 = vld [vmem:[%s10660_s17 + $0x8f4] sm:$0xf0] }
 0x49d   : > { %5171 = vmatpush.bf16.msrb.mxu2 %v9143_v51  ;;  %5184 = vmatpush.bf16.msrb.mxu3 %v9147_v28  ;;  %v10427_v51 = vld [vmem:[%s10865_s24 + $0x56c] sm:$0xf0]  ;;  %v10416_v28 = vld [vmem:[%s10865_s24 + $0x51c] sm:$0xf] }
 0x49e   : > { %5249 = vmatpush.bf16.msra.mxu0 %v9167_v36  ;;  %5262 = vmatpush.bf16.msra.mxu1 %v9171_v49  ;;  %v9711_v36 = vor.u32 %v10529_v22, %v9710_v43  ;;  %v9715_v49 = vor.u32 %v10518_v57, %v9712_v10  ;;  %v9159_v24 = vor.u32 %v10427_v51, %v9158_v50  ;;  %v9704_v43 = vld [vmem:[%s10660_s17 + $0x8f0] sm:$0xf0]  ;;  %v9534_v22 = vld [vmem:[%s10660_s17 + $0x740] sm:$0xf]  ;;  %v10485_v57 = vld [vmem:[%s10660_s17 + $0x794] sm:$0xf0]  ;;  %v5755_v10 = vunpack.c.l.b16 %v9439_v32 }
 0x49f   : > { %9358 = vmatmul.msk.bf16.vlgmr.msra.gmra.mxu2 %vm1519_vm2, %v11875_v41  ;;  %9359 = vmatmul.msk.bf16.vlgmr.msra.gmra.mxu3 %vm1519_vm2, %v11875_v41  ;;  %v9163_v58 = vor.u32 %v10416_v28, %v9160_v56  ;;  %v5756_v50 = vunpack.c.h.b16 %v9439_v32  ;;  %v9703_v51 = vor.u32 %v10528_v13, %v9702_v11  ;;  %v9707_v28 = vor.u32 %v10517_v62, %v9704_v43  ;;  %v9526_v62 = vld [vmem:[%s10660_s17 + $0x738] sm:$0xf]  ;;  %v10484_v43 = vld [vmem:[%s10660_s17 + $0x78c] sm:$0xf0] }
 0x4a0   : > { %9364 = vmatmul.msk.bf16.vlgmr.msrb.gmra.mxu0 %vm1519_vm2, %v11875_v41  ;;  %9365 = vmatmul.msk.bf16.vlgmr.msrb.gmra.mxu1 %vm1519_vm2, %v11875_v41  ;;  %v9535_v56 = vor.u32 %v10485_v57, %v9534_v22  ;;  %v5427_v22 = vld.sshfl [vmem:[#allocation1] sm:$0xff pattern:$0x73625140]  ;;  %v5430_v57 = vld.sshfl [vmem:[#allocation1 + $0x18] sm:$0xff pattern:$0x73625140] }
 0x4a1   : > { %5220 = vmatpush.bf16.msra.mxu2 %v4971_v42  ;;  %5233 = vmatpush.bf16.msra.mxu3 %v4974_v30  ;;  %v5749_v42 = vunpack.c.l.b16 %v9436_v55  ;;  %v5750_v30 = vunpack.c.h.b16 %v9436_v55 }
 0x4a2   : > { %5988 = vmatpush.bf16.xpose.msrb.mxu0 %v5839_v20  ;;  %6001 = vmatpush.bf16.xpose.msrb.mxu1 %v5840_v31 }
 0x4a3   : > { %v5837_v20 = vpack.c.b16 %v5749_v42, %v5749_v42  ;;  %v5838_v31 = vpack.c.b16 %v5750_v30, %v5750_v30  ;;  %v10495_v42 = vld [vmem:[%s10660_s17 + $0x7ec] sm:$0xf]  ;;  %v9616_v30 = vld [vmem:[%s10660_s17 + $0x840] sm:$0xf0] }
 0x4a5   : > { %5221 = vmatpush.bf16.msra.mxu2 %v9335_v34  ;;  %5234 = vmatpush.bf16.msra.mxu3 %v9339_v27  ;;  %v9623_v34 = vor.u32 %v10507_v39, %v9622_v23  ;;  %v9627_v27 = vor.u32 %v10496_v46, %v9624_v1  ;;  %v9726_v23 = vld [vmem:[%s10660_s17 + $0x8b0] sm:$0xf]  ;;  %v10531_v39 = vld [vmem:[%s10660_s17 + $0x904] sm:$0xf0]  ;;  %v10520_v46 = vld [vmem:[%s10660_s17 + $0x8b4] sm:$0xf] }
 0x4a6   : > { %v9728_v1 = vld [vmem:[%s10660_s17 + $0x908] sm:$0xf0]  ;;  %v9727_v32 = vor.u32 %v10531_v39, %v9726_v23  ;;  %v5453_v39 = vshrl.u32 %v5427_v22, 16 }
 0x4a7   : > { %v9731_v11 = vor.u32 %v10520_v46, %v9728_v1 }
 0x4a9   : > { %5222 = vmatpush.bf16.msra.mxu2 %v9247_v54  ;;  %5235 = vmatpush.bf16.msra.mxu3 %v9251_v44  ;;  %v10474_v54 = vld [vmem:[%s10660_s17 + $0x744] sm:$0xf]  ;;  %v9536_v44 = vld [vmem:[%s10660_s17 + $0x798] sm:$0xf0] }
 0x4aa   : > { %5989 = vmatpush.bf16.xpose.msrb.mxu0 %v9711_v36  ;;  %6002 = vmatpush.bf16.xpose.msrb.mxu1 %v9715_v49  ;;  %v9539_v55 = vor.u32 %v10474_v54, %v9536_v44  ;;  %v5843_v36 = vpack.c.b16 %v5755_v10, %v5755_v10  ;;  %v5844_v49 = vpack.c.b16 %v5756_v50, %v5756_v50  ;;  %v5428_v10 = vld.sshfl [vmem:[#allocation1 + $0x8] sm:$0xff pattern:$0x73625140]  ;;  %v5462_v44 = vshrl.u32 %v5430_v57, 16  ;;  %v10473_v50 = vld [vmem:[%s10660_s17 + $0x73c] sm:$0xf] }
 0x4ab   : > { %v10476_v57 = vld [vmem:[%s10660_s17 + $0x754] sm:$0xf] }
 0x4ad   : > { %5223 = vmatpush.bf16.msra.mxu2 %v9159_v24  ;;  %5236 = vmatpush.bf16.msra.mxu3 %v9163_v58  ;;  %v9614_v24 = vld [vmem:[%s10660_s17 + $0x7e8] sm:$0xf]  ;;  %v10506_v58 = vld [vmem:[%s10660_s17 + $0x83c] sm:$0xf0] }
 0x4af   : > { %9362 = vmatmul.msk.bf16.vlgmr.msrb.gmra.mxu2 %vm1519_vm2, %v11875_v41  ;;  %9363 = vmatmul.msk.bf16.vlgmr.msrb.gmra.mxu3 %vm1519_vm2, %v11875_v41 }
 0x4b0   : > { %9368 = vmatmul.msk.bf16.vlgmr.msra.gmra.mxu0 %vm1519_vm2, %v11875_v41  ;;  %9369 = vmatmul.msk.bf16.vlgmr.msra.gmra.mxu1 %vm1519_vm2, %v11875_v41 }
 0x4b1   : > { %5962 = vmatpush.bf16.xpose.msrb.mxu2 %v5837_v20  ;;  %5975 = vmatpush.bf16.xpose.msrb.mxu3 %v5838_v31  ;;  %v9615_v20 = vor.u32 %v10506_v58, %v9614_v24  ;;  %v9619_v31 = vor.u32 %v10495_v42, %v9616_v30  ;;  %v9640_v24 = vld [vmem:[%s10660_s17 + $0x858] sm:$0xf0]  ;;  %v9527_v58 = vor.u32 %v10484_v43, %v9526_v62  ;;  %v9550_v62 = vld [vmem:[%s10660_s17 + $0x750] sm:$0xf]  ;;  %v10487_v43 = vld [vmem:[%s10660_s17 + $0x7a4] sm:$0xf0] }
 0x4b2   : > { %5990 = vmatpush.bf16.xpose.msrb.mxu0 %v9623_v34  ;;  %6003 = vmatpush.bf16.xpose.msrb.mxu1 %v9627_v27  ;;  %v5429_v34 = vld.sshfl [vmem:[#allocation1 + $0x10] sm:$0xff pattern:$0x73625140]  ;;  %v9438_v27 = vld [vmem:[%s10660_s17 + $0x958] sm:$0x11] }
 0x4b3   : > { %v5459_v13 = vshrl.u32 %v5429_v34, 16  ;;  %5435 = vst [vmem:[#allocation1] ss:$4 sm:$0xff] %v10729_v33  ;;  %v5456_v33 = vshrl.u32 %v5428_v10, 16  ;;  %v10519_v34 = vld [vmem:[%s10660_s17 + $0x8ac] sm:$0xf] }
 0x4b4   : > { %v9552_v10 = vld [vmem:[%s10660_s17 + $0x7a8] sm:$0xf0] }
 0x4b5   : > { %v5461_v54 = vrot.slane %v5459_v13, 1  ;;  %v5458_v13 = vrot.slane %v5456_v33, 1 }
 0x4b9   : > { %5963 = vmatpush.bf16.xpose.msrb.mxu2 %v9703_v51  ;;  %5976 = vmatpush.bf16.xpose.msrb.mxu3 %v9707_v28  ;;  %v9528_v51 = vld [vmem:[%s10660_s17 + $0x790] sm:$0xf0]  ;;  %v5754_v28 = vunpack.c.h.b16 %v9438_v27 }
 0x4ba   : > { %5991 = vmatpush.bf16.xpose.msrb.mxu0 %v9535_v56  ;;  %6004 = vmatpush.bf16.xpose.msrb.mxu1 %v9539_v55  ;;  %v9638_v56 = vld [vmem:[%s10660_s17 + $0x800] sm:$0xf]  ;;  %v5464_v55 = vrot.slane %v5462_v44, 1  ;;  %v9531_v42 = vor.u32 %v10473_v50, %v9528_v51  ;;  %v9551_v51 = vor.u32 %v10487_v43, %v9550_v62  ;;  %v9542_v43 = vld [vmem:[%s10660_s17 + $0x748] sm:$0xf] }
 0x4bb   : > { %v5842_v23 = vpack.c.b16 %v5754_v28, %v5754_v28  ;;  %v5431_v28 = vld.sshfl [vmem:[#allocation1 + $0x20] sm:$0xff pattern:$0x73625140] }
 0x4bf   : > { %9366 = vmatmul.msk.bf16.vlgmr.msra.gmra.mxu2 %vm1519_vm2, %v11875_v41  ;;  %9367 = vmatmul.msk.bf16.vlgmr.msra.gmra.mxu3 %vm1519_vm2, %v11875_v41  ;;  %v5753_v41 = vunpack.c.l.b16 %v9438_v27  ;;  %v9441_v27 = vld [vmem:[%s10660_s17 + $0x970] sm:$0x11] }
 0x4c0   : > { %v5759_v22 = vunpack.c.l.b16 %v9441_v27 }
 0x4c1   : > { %5964 = vmatpush.bf16.xpose.msrb.mxu2 %v9615_v20  ;;  %5977 = vmatpush.bf16.xpose.msrb.mxu3 %v9619_v31  ;;  %v5841_v30 = vpack.c.b16 %v5753_v41, %v5753_v41  ;;  %v9718_v20 = vld [vmem:[%s10660_s17 + $0x8a8] sm:$0xf]  ;;  %v10530_v31 = vld [vmem:[%s10660_s17 + $0x8fc] sm:$0xf0]  ;;  %v9555_v41 = vor.u32 %v10476_v57, %v9552_v10  ;;  %v10475_v57 = vld [vmem:[%s10660_s17 + $0x74c] sm:$0xf] }
 0x4c2   : > { %6040 = vmatpush.bf16.xpose.msra.mxu0 %v5843_v36  ;;  %6053 = vmatpush.bf16.xpose.msra.mxu1 %v5844_v49  ;;  %v10509_v36 = vld [vmem:[%s10660_s17 + $0x854] sm:$0xf0]  ;;  %v10498_v49 = vld [vmem:[%s10660_s17 + $0x804] sm:$0xf]  ;;  %v9719_v44 = vor.u32 %v10530_v31, %v9718_v20  ;;  %v9744_v31 = vld [vmem:[%s10660_s17 + $0x918] sm:$0xf0] }
 0x4c3   : > { %5992 = vmatmul.bf16.vlgmr.msrb.gmra.mxu0 %v5461_v54  ;;  %6005 = vmatmul.bf16.vlgmr.msrb.gmra.mxu1 %v5464_v55  ;;  %v9639_v46 = vor.u32 %v10509_v36, %v9638_v56  ;;  %v9643_v1 = vor.u32 %v10498_v49, %v9640_v24  ;;  %v5760_v54 = vunpack.c.h.b16 %v9441_v27  ;;  %v5847_v56 = vpack.c.b16 %v5759_v22, %v5759_v22  ;;  %v5433_v36 = vld.sshfl [vmem:[#allocation1 + $0x30] sm:$0xff pattern:$0x73625140]  ;;  %v5432_v49 = vld.sshfl [vmem:[#allocation1 + $0x28] sm:$0xff pattern:$0x73625140] }
 0x4c4   : > { %v5434_v24 = vld.sshfl [vmem:[#allocation1 + $0x38] sm:$0xff pattern:$0x73625140]  ;;  %v10522_v20 = vld [vmem:[%s10660_s17 + $0x8c4] sm:$0xf] }
 0x4c5   : > { %v5848_v55 = vpack.c.b16 %v5760_v54, %v5760_v54  ;;  %5436 = vst [vmem:[#allocation1 + $0x20] ss:$4 sm:$0xff] %v10759_v21  ;;  %v5474_v33 = vshrl.u32 %v5434_v24, 16  ;;  %v9747_v62 = vor.u32 %v10522_v20, %v9744_v31  ;;  %v10486_v22 = vld [vmem:[%s10660_s17 + $0x79c] sm:$0xf0] }
 0x4c6   : > { %v9544_v10 = vld [vmem:[%s10660_s17 + $0x7a0] sm:$0xf0] }
 0x4c7   : > { %v9443_v20 = vld [vmem:[%s10660_s17 + $0x980] sm:$0x11] }
 0x4c9   : > { %5965 = vmatpush.bf16.xpose.msrb.mxu2 %v9527_v58  ;;  %5978 = vmatpush.bf16.xpose.msrb.mxu3 %v9531_v42  ;;  %v9630_v58 = vld [vmem:[%s10660_s17 + $0x7f8] sm:$0xf]  ;;  %v10508_v42 = vld [vmem:[%s10660_s17 + $0x84c] sm:$0xf0] }
 0x4ca   : > { %6041 = vmatpush.bf16.xpose.msra.mxu0 %v9727_v32  ;;  %6054 = vmatpush.bf16.xpose.msra.mxu1 %v9731_v11  ;;  %v9720_v32 = vld [vmem:[%s10660_s17 + $0x900] sm:$0xf0]  ;;  %v5455_v11 = vrot.slane %v5453_v39, 1  ;;  %v5471_v39 = vshrl.u32 %v5433_v36, 16  ;;  %v9547_v36 = vor.u32 %v10475_v57, %v9544_v10  ;;  %v7012_v57 = vrot.slane %v11656_v14, 7 }
 0x4cb   : > { %v9723_v50 = vor.u32 %v10519_v34, %v9720_v32  ;;  %v9631_v34 = vor.u32 %v10508_v42, %v9630_v58  ;;  %v5476_v32 = vrot.slane %v5474_v33, 1  ;;  %v5465_v42 = vshrl.u32 %v5431_v28, 16  ;;  %v9734_v33 = vld [vmem:[%s10660_s17 + $0x8b8] sm:$0xf]  ;;  %v9566_v28 = vld [vmem:[%s10660_s17 + $0x760] sm:$0xf] }
 0x4cc   : > { %v5473_v21 = vrot.slane %v5471_v39, 1  ;;  %v7013_v10 = vrot.slane %v11658_v15, 7  ;;  %v9646_v14 = vld [vmem:[%s10660_s17 + $0x808] sm:$0xf]  ;;  %v10510_v15 = vld [vmem:[%s10660_s17 + $0x85c] sm:$0xf0] }
 0x4cd   : > { %v5467_v31 = vrot.slane %v5465_v42, 1 }
 0x4d0   : > { %5966 = vmatmul.bf16.vlgmr.msrb.gmra.mxu2 %v5455_v11  ;;  %5979 = vmatmul.bf16.vlgmr.msrb.gmra.mxu3 %v5458_v13  ;;  %v9440_v11 = vld [vmem:[%s10660_s17 + $0x968] sm:$0x11] }
 0x4d1   : > { %6014 = vmatpush.bf16.xpose.msra.mxu2 %v5841_v30  ;;  %6027 = vmatpush.bf16.xpose.msra.mxu3 %v5842_v23  ;;  %v10497_v30 = vld [vmem:[%s10660_s17 + $0x7fc] sm:$0xf]  ;;  %v9632_v23 = vld [vmem:[%s10660_s17 + $0x850] sm:$0xf0]  ;;  %v5757_v54 = vunpack.c.l.b16 %v9440_v11 }
 0x4d2   : > { %6042 = vmatpush.bf16.xpose.msra.mxu0 %v9639_v46  ;;  %6055 = vmatpush.bf16.xpose.msra.mxu1 %v9643_v1  ;;  %v9742_v46 = vld [vmem:[%s10660_s17 + $0x8c0] sm:$0xf]  ;;  %v10533_v1 = vld [vmem:[%s10660_s17 + $0x914] sm:$0xf0]  ;;  %v9635_v27 = vor.u32 %v10497_v30, %v9632_v23  ;;  %v5468_v30 = vshrl.u32 %v5432_v49, 16 }
 0x4d3   : > { %v9743_v13 = vor.u32 %v10533_v1, %v9742_v46  ;;  %v5845_v24 = vpack.c.b16 %v5757_v54, %v5757_v54  ;;  %v10532_v46 = vld [vmem:[%s10660_s17 + $0x90c] sm:$0xf0]  ;;  %v10521_v1 = vld [vmem:[%s10660_s17 + $0x8bc] sm:$0xf]  ;;  %v10489_v49 = vld [vmem:[%s10660_s17 + $0x7b4] sm:$0xf0] }
 0x4d4   : > { %v9567_v54 = vor.u32 %v10489_v49, %v9566_v28 }
 0x4d9   : > { %6015 = vmatpush.bf16.xpose.msra.mxu2 %v9719_v44  ;;  %6028 = vmatpush.bf16.xpose.msra.mxu3 %v9723_v50  ;;  %v5758_v44 = vunpack.c.h.b16 %v9440_v11  ;;  %v9654_v50 = vld [vmem:[%s10660_s17 + $0x810] sm:$0xf]  ;;  %v9568_v11 = vld [vmem:[%s10660_s17 + $0x7b8] sm:$0xf0] }
 0x4da   : > { %6043 = vmatpush.bf16.xpose.msra.mxu0 %v9551_v51  ;;  %6056 = vmatpush.bf16.xpose.msra.mxu1 %v9555_v41  ;;  %v10511_v51 = vld [vmem:[%s10660_s17 + $0x864] sm:$0xf0]  ;;  %v10500_v41 = vld [vmem:[%s10660_s17 + $0x814] sm:$0xf] }
 0x4db   : > { %v5846_v58 = vpack.c.b16 %v5758_v44, %v5758_v44  ;;  %v9655_v23 = vor.u32 %v10511_v51, %v9654_v50  ;;  %v12098_v50 = vld.sshfl [vmem:[#allocation1] sm:$0xff pattern:$0x73625140] }
 0x4e1   : > { %6016 = vmatpush.bf16.xpose.msra.mxu2 %v9631_v34  ;;  %6029 = vmatpush.bf16.xpose.msra.mxu3 %v9635_v27  ;;  %v5470_v34 = vrot.slane %v5468_v30, 1  ;;  %v9736_v27 = vld [vmem:[%s10660_s17 + $0x910] sm:$0xf0]  ;;  %v7009_v30 = vrot.slane %v11644_v37, 7  ;;  %v9647_v37 = vor.u32 %v10510_v15, %v9646_v14 }
 0x4e2   : > { %6092 = vmatpush.bf16.xpose.msrb.mxu0 %v5847_v56  ;;  %6105 = vmatpush.bf16.xpose.msrb.mxu1 %v5848_v55  ;;  %v9656_v56 = vld [vmem:[%s10660_s17 + $0x868] sm:$0xf0]  ;;  %v9543_v55 = vor.u32 %v10486_v22, %v9542_v43  ;;  %v9735_v43 = vor.u32 %v10532_v46, %v9734_v33  ;;  %v9739_v22 = vor.u32 %v10521_v1, %v9736_v27  ;;  %v9758_v33 = vld [vmem:[%s10660_s17 + $0x8d0] sm:$0xf]  ;;  %v10535_v46 = vld [vmem:[%s10660_s17 + $0x924] sm:$0xf0] }
 0x4e3   : > { %6044 = vmatmul.bf16.vlgmr.msra.gmra.mxu0 %v5473_v21  ;;  %6057 = vmatmul.bf16.vlgmr.msra.gmra.mxu1 %v5476_v32  ;;  %v9659_v39 = vor.u32 %v10500_v41, %v9656_v56  ;;  %v5763_v21 = vunpack.c.l.b16 %v9443_v20  ;;  %v10478_v32 = vld [vmem:[%s10660_s17 + $0x764] sm:$0xf]  ;;  %v5439_v56 = vld.sshfl [vmem:[#allocation1 + $0x10] sm:$0xff pattern:$0x73625140]  ;;  %v7189_v27 = vsel %vm1523_vm1, %v11186_v26, %v7013_v10 }
 0x4e4   : > { %v9571_v44 = vor.u32 %v10478_v32, %v9568_v11 }
 0x4e5   : > { %v5851_v51 = vpack.c.b16 %v5763_v21, %v5763_v21 }
 0x4e9   : > { %6017 = vmatpush.bf16.xpose.msra.mxu2 %v9543_v55  ;;  %6030 = vmatpush.bf16.xpose.msra.mxu3 %v9547_v36  ;;  %v5440_v55 = vld.sshfl [vmem:[#allocation1 + $0x18] sm:$0xff pattern:$0x73625140]  ;;  %v10499_v36 = vld [vmem:[%s10660_s17 + $0x80c] sm:$0xf] }
 0x4ea   : > { %6093 = vmatpush.bf16.xpose.msrb.mxu0 %v9743_v13  ;;  %6106 = vmatpush.bf16.xpose.msrb.mxu1 %v9747_v62  ;;  %v5764_v13 = vunpack.c.h.b16 %v9443_v20  ;;  %v7008_v62 = vrot.slane %v11642_v48, 7  ;;  %v12100_v48 = vld.sshfl [vmem:[#allocation1 + $0x8] sm:$0xff pattern:$0x73625140]  ;;  %v5486_v42 = vshrl.u32 %v5440_v55, 16 }
 0x4eb   : > { %5445 = vst [vmem:[#allocation1] ss:$4 sm:$0xff] %v10786_v6  ;;  %v10524_v20 = vld [vmem:[%s10660_s17 + $0x8d4] sm:$0xf] }
 0x4ec   : > { %v5852_v41 = vpack.c.b16 %v5764_v13, %v5764_v13  ;;  %v5488_v11 = vrot.slane %v5486_v42, 1  ;;  %v9442_v13 = vld [vmem:[%s10660_s17 + $0x978] sm:$0x11]  ;;  %v9560_v55 = vld [vmem:[%s10660_s17 + $0x7b0] sm:$0xf0] }
 0x4ed   : > { %v5761_v14 = vunpack.c.l.b16 %v9442_v13  ;;  %v5762_v15 = vunpack.c.h.b16 %v9442_v13  ;;  %v10502_v42 = vld [vmem:[%s10660_s17 + $0x824] sm:$0xf]  ;;  %v10523_v13 = vld [vmem:[%s10660_s17 + $0x8cc] sm:$0xf] }
 0x4f0   : > { %6018 = vmatmul.bf16.vlgmr.msra.gmra.mxu2 %v5467_v31  ;;  %6031 = vmatmul.bf16.vlgmr.msra.gmra.mxu3 %v5470_v34  ;;  %v9760_v31 = vld [vmem:[%s10660_s17 + $0x928] sm:$0xf0]  ;;  %v7188_v34 = vsel %vm1523_vm1, %v11184_v25, %v7012_v57 }
 0x4f1   : > { %6066 = vmatpush.bf16.xpose.msrb.mxu2 %v5845_v24  ;;  %6079 = vmatpush.bf16.xpose.msrb.mxu3 %v5846_v58  ;;  %v9648_v24 = vld [vmem:[%s10660_s17 + $0x860] sm:$0xf0]  ;;  %v5483_v58 = vshrl.u32 %v5439_v56, 16  ;;  %v9763_v25 = vor.u32 %v10524_v20, %v9760_v31  ;;  %v10477_v56 = vld [vmem:[%s10660_s17 + $0x75c] sm:$0xf] }
 0x4f2   : > { %6094 = vmatpush.bf16.xpose.msrb.mxu0 %v9655_v23  ;;  %6107 = vmatpush.bf16.xpose.msrb.mxu1 %v9659_v39  ;;  %v5043_v23 = vpop.f32.mrf.mxu0  ;;  %v5056_v39 = vpop.f32.mrf.mxu1  ;;  %v9651_v28 = vor.u32 %v10499_v36, %v9648_v24 }
 0x4f3   : > { %v7078_v1 = vrot.slane %v5043_v23, 6  ;;  %v7079_v6 = vrot.slane %v5056_v39, 6  ;;  %v5485_v32 = vrot.slane %v5483_v58, 1  ;;  %v5004_v57 = vpop.f32.mrf.mxu3  ;;  %v10513_v58 = vld [vmem:[%s10660_s17 + $0x874] sm:$0xf0]  ;;  %v9563_v39 = vor.u32 %v10477_v56, %v9560_v55 }
 0x4f4   : > { %v7075_v10 = vrot.slane %v5004_v57, 6  ;;  %v9752_v57 = vld [vmem:[%s10660_s17 + $0x920] sm:$0xf0]  ;;  %v7010_v56 = vrot.slane %v11678_v59, 7  ;;  %v7011_v55 = vrot.slane %v11680_v60, 7 }
 0x4f5   : > { %v12117_v49 = vsel %vm7206_vm3, %v7188_v34, %v7078_v1  ;;  %v12120_v21 = vsel %vm7206_vm3, %v7189_v27, %v7079_v6  ;;  %v5477_v1 = vshrl.u32 %v12098_v50, 16  ;;  %v5480_v6 = vshrl.u32 %v12100_v48, 16 }
 0x4f7   : > { %v5479_v50 = vrot.slane %v5477_v1, 1  ;;  %v5482_v48 = vrot.slane %v5480_v6, 1  ;;  %v10512_v1 = vld [vmem:[%s10660_s17 + $0x86c] sm:$0xf0]  ;;  %v10501_v6 = vld [vmem:[%s10660_s17 + $0x81c] sm:$0xf] }
 0x4f9   : > { %6067 = vmatpush.bf16.xpose.msrb.mxu2 %v9735_v43  ;;  %6080 = vmatpush.bf16.xpose.msrb.mxu3 %v9739_v22  ;;  %v9759_v43 = vor.u32 %v10535_v46, %v9758_v33  ;;  %v4991_v22 = vpop.f32.mrf.mxu2  ;;  %v5849_v33 = vpack.c.b16 %v5761_v14, %v5761_v14  ;;  %v5850_v46 = vpack.c.b16 %v5762_v15, %v5762_v15 }
 0x4fa   : > { %6095 = vmatpush.bf16.xpose.msrb.mxu0 %v9567_v54  ;;  %6108 = vmatpush.bf16.xpose.msrb.mxu1 %v9571_v44  ;;  %v7074_v26 = vrot.slane %v4991_v22, 6  ;;  %v9558_v54 = vld [vmem:[%s10660_s17 + $0x758] sm:$0xf]  ;;  %v7184_v44 = vsel %vm1523_vm1, %v11193_v17, %v7008_v62  ;;  %v5045_v17 = vpop.f32.mrf.mxu0  ;;  %v5058_v62 = vpop.f32.mrf.mxu1 }
 0x4fb   : > { %v5006_v27 = vpop.f32.mrf.mxu3 }
 0x4fc   : > { %v12132_v36 = vsel %vm7206_vm3, %v7184_v44, %v7074_v26  ;;  %v10480_v44 = vld [vmem:[%s10660_s17 + $0x774] sm:$0xf]  ;;  %v12175_v27 = vld.sshfl [vmem:[#allocation1 + $0x28] sm:$0xff pattern:$0x73625140] }
 0x501   : > { %6068 = vmatpush.bf16.xpose.msrb.mxu2 %v9647_v37  ;;  %6081 = vmatpush.bf16.xpose.msrb.mxu3 %v9651_v28  ;;  %v4993_v34 = vpop.f32.mrf.mxu2  ;;  %v7016_v37 = vrot.slane %v11692_v45, 7  ;;  %v7017_v28 = vrot.slane %v11694_v16, 7  ;;  %v9582_v45 = vld [vmem:[%s10660_s17 + $0x770] sm:$0xf]  ;;  %v10491_v16 = vld [vmem:[%s10660_s17 + $0x7c4] sm:$0xf0] }
 0x502   : > { %6144 = vmatpush.bf16.xpose.msra.mxu0 %v5851_v51  ;;  %6157 = vmatpush.bf16.xpose.msra.mxu1 %v5852_v41  ;;  %v7185_v51 = vsel %vm1523_vm1, %v11195_v40, %v7009_v30  ;;  %v10488_v41 = vld [vmem:[%s10660_s17 + $0x7ac] sm:$0xf0]  ;;  %v9670_v40 = vld [vmem:[%s10660_s17 + $0x820] sm:$0xf]  ;;  %v9672_v30 = vld [vmem:[%s10660_s17 + $0x878] sm:$0xf0]  ;;  %v5108_v22 = vpop.f32.mrf.mxu1  ;;  %v9583_v59 = vor.u32 %v10491_v16, %v9582_v45  ;;  %v7187_v34 = vsel %vm1523_vm1, %v11222_v19, %v7011_v55 }
 0x503   : > { %6096 = vmatmul.bf16.vlgmr.msrb.gmra.mxu0 %v5485_v32  ;;  %6109 = vmatmul.bf16.vlgmr.msrb.gmra.mxu1 %v5488_v11  ;;  %v12135_v24 = vsel %vm7206_vm3, %v7185_v51, %v7075_v10  ;;  %v9559_v23 = vor.u32 %v10488_v41, %v9558_v54  ;;  %v9671_v20 = vor.u32 %v10513_v58, %v9670_v40  ;;  %v9750_v32 = vld [vmem:[%s10660_s17 + $0x8c8] sm:$0xf]  ;;  %v10534_v11 = vld [vmem:[%s10660_s17 + $0x91c] sm:$0xf0]  ;;  %v7083_v10 = vrot.slane %v5108_v22, 6 }
 0x504   : > { %v9675_v31 = vor.u32 %v10502_v42, %v9672_v30  ;;  %v9584_v51 = vld [vmem:[%s10660_s17 + $0x7c8] sm:$0xf0]  ;;  %v7192_v14 = vsel %vm1523_vm1, %v11210_v63, %v7016_v37  ;;  %v7193_v15 = vsel %vm1523_vm1, %v11212_v0, %v7017_v28  ;;  %v9751_v40 = vor.u32 %v10534_v11, %v9750_v32  ;;  %v5030_v30 = vpop.f32.mrf.mxu3  ;;  %v5443_v0 = vld.sshfl [vmem:[#allocation1 + $0x30] sm:$0xff pattern:$0x73625140] }
 0x505   : > { %v12164_v62 = vsel %vm7206_vm3, %v7193_v15, %v7083_v10  ;;  %v9755_v58 = vor.u32 %v10523_v13, %v9752_v57  ;;  %v9587_v42 = vor.u32 %v10480_v44, %v9584_v51  ;;  %v5444_v37 = vld.sshfl [vmem:[#allocation1 + $0x38] sm:$0xff pattern:$0x73625140]  ;;  %v5495_v19 = vshrl.u32 %v5443_v0, 16  ;;  %v9774_v13 = vld [vmem:[%s10660_s17 + $0x8e0] sm:$0xf] }
 0x506   : > { %v9776_v22 = vld [vmem:[%s10660_s17 + $0x938] sm:$0xf0]  ;;  %v9444_v44 = vld [vmem:[%s10660_s17 + $0x988] sm:$0x11] }
 0x507   : > { %v5497_v16 = vrot.slane %v5495_v19, 1  ;;  %v9574_v55 = vld [vmem:[%s10660_s17 + $0x768] sm:$0xf] }
 0x509   : > { %6069 = vmatpush.bf16.xpose.msrb.mxu2 %v9559_v23  ;;  %6082 = vmatpush.bf16.xpose.msrb.mxu3 %v9563_v39  ;;  %v5017_v60 = vpop.f32.mrf.mxu2 }
 0x50a   : > { %6145 = vmatpush.bf16.xpose.msra.mxu0 %v9759_v43  ;;  %6158 = vmatpush.bf16.xpose.msra.mxu1 %v9763_v25  ;;  %v9445_v43 = vld [vmem:[%s10660_s17 + $0x990] sm:$0x11]  ;;  %v5095_v25 = vpop.f32.mrf.mxu0  ;;  %v7076_v39 = vrot.slane %v5017_v60, 6  ;;  %v5766_v60 = vunpack.c.h.b16 %v9444_v44 }
 0x50b   : > { %v7082_v26 = vrot.slane %v5095_v25, 6  ;;  %v5767_v54 = vunpack.c.l.b16 %v9445_v43  ;;  %v5768_v41 = vunpack.c.h.b16 %v9445_v43  ;;  %v10537_v43 = vld [vmem:[%s10660_s17 + $0x934] sm:$0xf0]  ;;  %v10526_v25 = vld [vmem:[%s10660_s17 + $0x8e4] sm:$0xf] }
 0x50c   : > { %v9775_v51 = vor.u32 %v10537_v43, %v9774_v13 }
 0x50d   : > { %v12161_v17 = vsel %vm7206_vm3, %v7192_v14, %v7082_v26  ;;  %v5855_v63 = vpack.c.b16 %v5767_v54, %v5767_v54  ;;  %v5856_v23 = vpack.c.b16 %v5768_v41, %v5768_v41  ;;  %v5032_v54 = vpop.f32.mrf.mxu3  ;;  %v9779_v41 = vor.u32 %v10526_v25, %v9776_v22 }
 0x50e   : > { %v9598_v54 = vld [vmem:[%s10660_s17 + $0x780] sm:$0xf] }
 0x510   : > { %6070 = vmatmul.bf16.vlgmr.msrb.gmra.mxu2 %v5479_v50  ;;  %6083 = vmatmul.bf16.vlgmr.msrb.gmra.mxu3 %v5482_v48  ;;  %v9664_v50 = vld [vmem:[%s10660_s17 + $0x870] sm:$0xf0]  ;;  %v5498_v48 = vshrl.u32 %v5444_v37, 16  ;;  %v5854_v37 = vpack.c.b16 %v5766_v60, %v5766_v60  ;;  %v5450_v60 = vld.sshfl [vmem:[#allocation1 + $0x18] sm:$0xff pattern:$0x73625140] }
 0x511   : > { %6118 = vmatpush.bf16.xpose.msra.mxu2 %v5849_v33  ;;  %6131 = vmatpush.bf16.xpose.msra.mxu3 %v5850_v46  ;;  %v7077_v33 = vrot.slane %v5030_v30, 6  ;;  %v9662_v46 = vld [vmem:[%s10660_s17 + $0x818] sm:$0xf]  ;;  %v9667_v45 = vor.u32 %v10501_v6, %v9664_v50  ;;  %v5019_v10 = vpop.f32.mrf.mxu2 }
 0x512   : > { %6146 = vmatpush.bf16.xpose.msra.mxu0 %v9671_v20  ;;  %6159 = vmatpush.bf16.xpose.msra.mxu1 %v9675_v31  ;;  %v12169_v20 = vld.sshfl [vmem:[#allocation1 + $0x20] sm:$0xff pattern:$0x73625140]  ;;  %v7186_v31 = vsel %vm1523_vm1, %v11220_v18, %v7010_v56  ;;  %v5097_v11 = vpop.f32.mrf.mxu0  ;;  %v5110_v18 = vpop.f32.mrf.mxu1  ;;  %v9663_v57 = vor.u32 %v10512_v1, %v9662_v46  ;;  %v5500_v26 = vrot.slane %v5498_v48, 1  ;;  %v7021_v56 = vrot.slane %v11723_v61, 7 }
 0x513   : > { %v12178_v28 = vsel %vm7206_vm3, %v7186_v31, %v7076_v39  ;;  %v12181_v32 = vsel %vm7206_vm3, %v7187_v34, %v7077_v33  ;;  %5446 = vst [vmem:[#allocation1 + $0x20] ss:$4 sm:$0xff] %v10825_v2  ;;  %v7020_v2 = vrot.slane %v11721_v38, 7  ;;  %v7014_v38 = vrot.slane %v11707_v4, 7  ;;  %v10515_v33 = vld [vmem:[%s10660_s17 + $0x884] sm:$0xf0] }
 0x514   : > { %v7015_v61 = vrot.slane %v11709_v47, 7  ;;  %v7197_v39 = vsel %vm1523_vm1, %v11241_v53, %v7021_v56  ;;  %v10504_v46 = vld [vmem:[%s10660_s17 + $0x834] sm:$0xf]  ;;  %v9688_v1 = vld [vmem:[%s10660_s17 + $0x888] sm:$0xf0]  ;;  %v5492_v53 = vshrl.u32 %v12175_v27, 16 }
 0x515   : > { %v7196_v0 = vsel %vm1523_vm1, %v11239_v52, %v7020_v2  ;;  %v5082_v18 = vpop.f32.mrf.mxu3  ;;  %v5489_v52 = vshrl.u32 %v12169_v20, 16  ;;  %v9691_v19 = vor.u32 %v10504_v46, %v9688_v1  ;;  %v7190_v43 = vsel %vm1523_vm1, %v11250_v7, %v7014_v38  ;;  %v9766_v7 = vld [vmem:[%s10660_s17 + $0x8d8] sm:$0xf]  ;;  %v9768_v10 = vld [vmem:[%s10660_s17 + $0x930] sm:$0xf0] }
 0x516   : > { %v7081_v13 = vrot.slane %v5082_v18, 6  ;;  %v7191_v25 = vsel %vm1523_vm1, %v11252_v9, %v7015_v61  ;;  %v5510_v46 = vshrl.u32 %v5450_v60, 16 }
 0x517   : > { %v5491_v9 = vrot.slane %v5489_v52, 1 }
 0x518   : > { %v12222_v27 = vsel %vm7206_vm3, %v7191_v25, %v7081_v13 }
 0x519   : > { %6119 = vmatpush.bf16.xpose.msra.mxu2 %v9751_v40  ;;  %6132 = vmatpush.bf16.xpose.msra.mxu3 %v9755_v58  ;;  %v10490_v40 = vld [vmem:[%s10660_s17 + $0x7bc] sm:$0xf0]  ;;  %v10479_v58 = vld [vmem:[%s10660_s17 + $0x76c] sm:$0xf]  ;;  %v5069_v11 = vpop.f32.mrf.mxu2 }
 0x51a   : > { %6147 = vmatpush.bf16.xpose.msra.mxu0 %v9583_v59  ;;  %6160 = vmatpush.bf16.xpose.msra.mxu1 %v9587_v42  ;;  %v5147_v14 = vpop.f32.mrf.mxu0  ;;  %v5160_v15 = vpop.f32.mrf.mxu1  ;;  %v9576_v59 = vld [vmem:[%s10660_s17 + $0x7c0] sm:$0xf0]  ;;  %v5765_v42 = vunpack.c.l.b16 %v9444_v44  ;;  %v9575_v47 = vor.u32 %v10490_v40, %v9574_v55  ;;  %v7080_v48 = vrot.slane %v5069_v11, 6  ;;  %v10493_v44 = vld [vmem:[%s10660_s17 + $0x7d4] sm:$0xf0] }
 0x51b   : > { %v7086_v30 = vrot.slane %v5147_v14, 6  ;;  %v9579_v31 = vor.u32 %v10479_v58, %v9576_v59  ;;  %v7024_v58 = vrot.slane %v11747_v5, 7  ;;  %v7025_v59 = vrot.slane %v11749_v8, 7  ;;  %v9446_v11 = vld [vmem:[%s10660_s17 + $0x998] sm:$0x11] }
 0x51c   : > { %v5853_v34 = vpack.c.b16 %v5765_v42, %v5765_v42  ;;  %v12219_v20 = vsel %vm7206_vm3, %v7190_v43, %v7080_v48  ;;  %v5449_v42 = vld.sshfl [vmem:[#allocation1 + $0x10] sm:$0xff pattern:$0x73625140]  ;;  %v12647_v48 = vld [vmem:[#allocation2_spill] sm:$0xff] }
 0x51d   : > { %v12207_v6 = vsel %vm7206_vm3, %v7196_v0, %v7086_v30  ;;  %v5084_v14 = vpop.f32.mrf.mxu3  ;;  %v9678_v30 = vld [vmem:[%s10660_s17 + $0x828] sm:$0xf]  ;;  %v5507_v5 = vshrl.u32 %v5449_v42, 16  ;;  %v7200_v8 = vsel %vm1523_vm1, %v11266_v29, %v7024_v58  ;;  %v7201_v1 = vsel %vm1523_vm1, %v11268_v12, %v7025_v59  ;;  %v12648_v43 = vld [vmem:[#allocation3_spill] sm:$0xff]  ;;  %v12650_v59 = vld [vmem:[#allocation13_spill] sm:$0xff] }
 0x51e   : > { %v5512_v12 = vrot.slane %v5510_v46, 1  ;;  %v7029_v42 = vrot.slane %v12650_v59, 7 }
 0x521   : > { %6120 = vmatpush.bf16.xpose.msra.mxu2 %v9663_v57  ;;  %6133 = vmatpush.bf16.xpose.msra.mxu3 %v9667_v45  ;;  %v10536_v45 = vld [vmem:[%s10660_s17 + $0x92c] sm:$0xf0]  ;;  %v5071_v55 = vpop.f32.mrf.mxu2 }
 0x522   : > { %6196 = vmatpush.bf16.xpose.msrb.mxu0 %v5855_v63  ;;  %6209 = vmatpush.bf16.xpose.msrb.mxu1 %v5856_v23  ;;  %v7087_v63 = vrot.slane %v5160_v15, 6  ;;  %v9686_v23 = vld [vmem:[%s10660_s17 + $0x830] sm:$0xf]  ;;  %v5149_v22 = vpop.f32.mrf.mxu0  ;;  %v5162_v57 = vpop.f32.mrf.mxu1  ;;  %v9767_v2 = vor.u32 %v10536_v45, %v9766_v7  ;;  %v9599_v15 = vor.u32 %v10493_v44, %v9598_v54  ;;  %v5769_v54 = vunpack.c.l.b16 %v9446_v11 }
 0x523   : > { %6148 = vmatmul.bf16.vlgmr.msra.gmra.mxu0 %v5497_v16  ;;  %6161 = vmatmul.bf16.vlgmr.msra.gmra.mxu1 %v5500_v26  ;;  %v9687_v50 = vor.u32 %v10515_v33, %v9686_v23  ;;  %v10525_v16 = vld [vmem:[%s10660_s17 + $0x8dc] sm:$0xf]  ;;  %v5494_v26 = vrot.slane %v5492_v53, 1  ;;  %v10503_v23 = vld [vmem:[%s10660_s17 + $0x82c] sm:$0xf] }
 0x524   : > { %v12210_v4 = vsel %vm7206_vm3, %v7197_v39, %v7087_v63  ;;  %v9771_v56 = vor.u32 %v10525_v16, %v9768_v10  ;;  %v10514_v63 = vld [vmem:[%s10660_s17 + $0x87c] sm:$0xf0]  ;;  %v9680_v33 = vld [vmem:[%s10660_s17 + $0x880] sm:$0xf0]  ;;  %v9590_v16 = vld [vmem:[%s10660_s17 + $0x778] sm:$0xf] }
 0x525   : > { %v9679_v18 = vor.u32 %v10514_v63, %v9678_v30  ;;  %v9683_v52 = vor.u32 %v10503_v23, %v9680_v33  ;;  %v5134_v29 = vpop.f32.mrf.mxu3  ;;  %v9592_v10 = vld [vmem:[%s10660_s17 + $0x7d0] sm:$0xf0]  ;;  %v10527_v30 = vld [vmem:[%s10660_s17 + $0x8ec] sm:$0xf]  ;;  %v9784_v63 = vld [vmem:[%s10660_s17 + $0x940] sm:$0xf0] }
 0x529   : > { %6121 = vmatpush.bf16.xpose.msra.mxu2 %v9575_v47  ;;  %6134 = vmatpush.bf16.xpose.msra.mxu3 %v9579_v31  ;;  %v7018_v47 = vrot.slane %v11738_v3, 7  ;;  %v7019_v31 = vrot.slane %v11740_v35, 7  ;;  %v5121_v53 = vpop.f32.mrf.mxu2  ;;  %v5770_v35 = vunpack.c.h.b16 %v9446_v11  ;;  %v12654_v11 = vld [vmem:[#allocation5_spill] sm:$0xff] }
 0x52a   : > { %6197 = vmatpush.bf16.xpose.msrb.mxu0 %v9775_v51  ;;  %6210 = vmatpush.bf16.xpose.msrb.mxu1 %v9779_v41  ;;  %v10482_v51 = vld [vmem:[%s10660_s17 + $0x784] sm:$0xf]  ;;  %v9600_v41 = vld [vmem:[%s10660_s17 + $0x7d8] sm:$0xf0]  ;;  %v5199_v38 = vpop.f32.mrf.mxu0  ;;  %v5212_v61 = vpop.f32.mrf.mxu1  ;;  %v7084_v3 = vrot.slane %v5121_v53, 6 }
 0x52b   : > { %v9603_v40 = vor.u32 %v10482_v51, %v9600_v41  ;;  %v7090_v0 = vrot.slane %v5199_v38, 6  ;;  %v7091_v39 = vrot.slane %v5212_v61, 6  ;;  %v7194_v13 = vsel %vm1523_vm1, %v12647_v48, %v7018_v47  ;;  %v12653_v47 = vld [vmem:[#allocation4_spill] sm:$0xff]  ;;  %v10538_v53 = vld [vmem:[%s10660_s17 + $0x93c] sm:$0xf0] }
 0x52c   : > { %v7195_v25 = vsel %vm1523_vm1, %v12648_v43, %v7019_v31  ;;  %v12256_v22 = vsel %vm7206_vm3, %v7194_v13, %v7084_v3  ;;  %v5858_v44 = vpack.c.b16 %v5770_v35, %v5770_v35 }
 0x52d   : > { %v5136_v14 = vpop.f32.mrf.mxu3 }
 0x52e   : > { %v5956_v60 = vsel %vm831_vm0, %v5858_v44, 0 }
 0x530   : > { %6122 = vmatmul.bf16.vlgmr.msra.gmra.mxu2 %v5491_v9  ;;  %6135 = vmatmul.bf16.vlgmr.msra.gmra.mxu3 %v5494_v26  ;;  %v10492_v9 = vld [vmem:[%s10660_s17 + $0x7cc] sm:$0xf0]  ;;  %v10481_v26 = vld [vmem:[%s10660_s17 + $0x77c] sm:$0xf] }
 0x531   : > { %6170 = vmatpush.bf16.xpose.msrb.mxu2 %v5853_v34  ;;  %6183 = vmatpush.bf16.xpose.msrb.mxu3 %v5854_v37  ;;  %v12245_v34 = vsel %vm7206_vm3, %v7200_v8, %v7090_v0  ;;  %v12248_v37 = vsel %vm7206_vm3, %v7201_v1, %v7091_v39  ;;  %v9591_v51 = vor.u32 %v10492_v9, %v9590_v16  ;;  %v5123_v55 = vpop.f32.mrf.mxu2  ;;  %v12651_v39 = vld [vmem:[#allocation10_spill] sm:$0xff]  ;;  %v12652_v8 = vld [vmem:[#allocation11_spill] sm:$0xff] }
 0x532   : > { %6198 = vmatpush.bf16.xpose.msrb.mxu0 %v9687_v50  ;;  %6211 = vmatpush.bf16.xpose.msrb.mxu1 %v9691_v19  ;;  %v5509_v50 = vrot.slane %v5507_v5, 1  ;;  %v7085_v19 = vrot.slane %v5134_v29, 6  ;;  %v5201_v7 = vpop.f32.mrf.mxu0  ;;  %v5214_v45 = vpop.f32.mrf.mxu1  ;;  %v9595_v41 = vor.u32 %v10481_v26, %v9592_v10  ;;  %v7022_v33 = vrot.slane %v12651_v39, 7  ;;  %v12656_v9 = vld [vmem:[#allocation7_spill] sm:$0xff]  ;;  %v10505_v10 = vld [vmem:[%s10660_s17 + $0x83c] sm:$0xf] }
 0x533   : > { %v7023_v1 = vrot.slane %v12652_v8, 7  ;;  %v9787_v29 = vor.u32 %v10527_v30, %v9784_v63  ;;  %v12655_v45 = vld [vmem:[#allocation6_spill] sm:$0xff]  ;;  %v10516_v55 = vld [vmem:[%s10660_s17 + $0x88c] sm:$0xf0] }
 0x534   : > { %v12259_v57 = vsel %vm7206_vm3, %v7195_v25, %v7085_v19  ;;  %v7198_v16 = vsel %vm1523_vm1, %v12655_v45, %v7022_v33  ;;  %v12657_v63 = vld [vmem:[#allocation14_spill] sm:$0xff] }
 0x535   : > { %v5186_v48 = vpop.f32.mrf.mxu3  ;;  %v5953_v7 = vsel %vm831_vm0, %v9787_v29, 0  ;;  %v7199_v26 = vsel %vm1523_vm1, %v12656_v9, %v7023_v1  ;;  %v5451_v1 = vld.sshfl [vmem:[#allocation1 + $0x20] sm:$0xff pattern:$0x73625140] }
 0x536   : > { %v7089_v25 = vrot.slane %v5186_v48, 6 }
 0x539   : > { %6171 = vmatpush.bf16.xpose.msrb.mxu2 %v9767_v2  ;;  %6184 = vmatpush.bf16.xpose.msrb.mxu3 %v9771_v56  ;;  %v5447_v2 = vld.sshfl [vmem:[#allocation1] sm:$0xff pattern:$0x73625140]  ;;  %v5448_v56 = vld.sshfl [vmem:[#allocation1 + $0x8] sm:$0xff pattern:$0x73625140]  ;;  %v5173_v35 = vpop.f32.mrf.mxu2 }
 0x53a   : > { %6199 = vmatpush.bf16.xpose.msrb.mxu0 %v9599_v15  ;;  %6212 = vmatpush.bf16.xpose.msrb.mxu1 %v9603_v40  ;;  %v5857_v15 = vpack.c.b16 %v5769_v54, %v5769_v54  ;;  %v12649_v40 = vld [vmem:[#allocation12_spill] sm:$0xff]  ;;  %v5501_v38 = vshrl.u32 %v5447_v2, 16  ;;  %v5504_v61 = vshrl.u32 %v5448_v56, 16  ;;  %v5251_v23 = vpop.f32.mrf.mxu0  ;;  %v5264_v0 = vpop.f32.mrf.mxu1  ;;  %v7088_v43 = vrot.slane %v5173_v35, 6  ;;  %v9696_v54 = vld [vmem:[%s10660_s17 + $0x890] sm:$0xf0] }
 0x53b   : > { %v7028_v58 = vrot.slane %v12649_v40, 7  ;;  %v7094_v5 = vrot.slane %v5251_v23, 6  ;;  %v7095_v46 = vrot.slane %v5264_v0, 6  ;;  %v9694_v56 = vld [vmem:[%s10660_s17 + $0x838] sm:$0xf]  ;;  %v9699_v14 = vor.u32 %v10505_v10, %v9696_v54  ;;  %v12658_v0 = vld [vmem:[#allocation15_spill] sm:$0xff] }
 0x53c   : > { %v5503_v3 = vrot.slane %v5501_v38, 1  ;;  %v5506_v19 = vrot.slane %v5504_v61, 1  ;;  %v12292_v44 = vsel %vm7206_vm3, %v7198_v16, %v7088_v43  ;;  %v9606_v38 = vld [vmem:[%s10660_s17 + $0x788] sm:$0xf]  ;;  %v10494_v61 = vld [vmem:[%s10660_s17 + $0x7dc] sm:$0xf0] }
 0x53d   : > { %v7204_v31 = vsel %vm1523_vm1, %v12653_v47, %v7028_v58  ;;  %v5188_v40 = vpop.f32.mrf.mxu3  ;;  %v9695_v58 = vor.u32 %v10516_v55, %v9694_v56  ;;  %v5950_v59 = vsel %vm831_vm0, %v9699_v14, 0  ;;  %v7026_v23 = vrot.slane %v12657_v63, 7  ;;  %v5452_v47 = vld.sshfl [vmem:[#allocation1 + $0x28] sm:$0xff pattern:$0x73625140] }
 0x53e   : > { %v7027_v39 = vrot.slane %v12658_v0, 7  ;;  %v9607_v8 = vor.u32 %v10494_v61, %v9606_v38  ;;  %v5516_v43 = vshrl.u32 %v5452_v47, 16 }
 0x541   : > { %6172 = vmatpush.bf16.xpose.msrb.mxu2 %v9679_v18  ;;  %6185 = vmatpush.bf16.xpose.msrb.mxu3 %v9683_v52  ;;  %v7205_v18 = vsel %vm1523_vm1, %v12654_v11, %v7029_v42  ;;  %v9782_v52 = vld [vmem:[%s10660_s17 + $0x8e8] sm:$0xf]  ;;  %v10483_v42 = vld [vmem:[%s10660_s17 + $0x78c] sm:$0xf] }
 0x542   : > { %6200 = vmatmul.bf16.vlgmr.msrb.gmra.mxu0 %v5509_v50  ;;  %6213 = vmatmul.bf16.vlgmr.msrb.gmra.mxu1 %v5512_v12  ;;  %v12279_v50 = vsel %vm7206_vm3, %v7204_v31, %v7094_v5  ;;  %v12282_v12 = vsel %vm7206_vm3, %v7205_v18, %v7095_v46  ;;  %v9783_v13 = vor.u32 %v10538_v53, %v9782_v52  ;;  %v5266_v2 = vpop.f32.mrf.mxu1  ;;  %v12659_v53 = vld [vmem:[#allocation8_spill] sm:$0xff] }
 0x543   : > { %v7202_v29 = vsel %vm1523_vm1, %v12659_v53, %v7026_v23 }
 0x545   : > { %v5238_v46 = vpop.f32.mrf.mxu3 }
 0x546   : > { %v7093_v11 = vrot.slane %v5238_v46, 6 }
 0x549   : > { %6173 = vmatpush.bf16.xpose.msrb.mxu2 %v9591_v51  ;;  %6186 = vmatpush.bf16.xpose.msrb.mxu3 %v9595_v41  ;;  %v12295_v51 = vsel %vm7206_vm3, %v7199_v26, %v7089_v25  ;;  %v5253_v41 = vpop.f32.mrf.mxu0 }
 0x54a   : > { %v6006_v52 = vpop.f32.mrf.mxu1 }
 0x54d   : > { %v5240_v9 = vpop.f32.mrf.mxu3 }
 0x550   : > { %6174 = vmatmul.bf16.vlgmr.msrb.gmra.mxu2 %v5503_v3  ;;  %6187 = vmatmul.bf16.vlgmr.msrb.gmra.mxu3 %v5506_v19  ;;  %v12660_v3 = vld [vmem:[#allocation9_spill] sm:$0xff] }
 0x551   : > { %6222 = vmatpush.bf16.xpose.msra.mxu2 %v5857_v15  ;;  %6235 = vmatpush.bf16.xpose.msra.mxu3 %v5956_v60  ;;  %v5175_v15 = vpop.f32.mrf.mxu2  ;;  %v9608_v60 = vld [vmem:[%s10660_s17 + $0x7e0] sm:$0xf0]  ;;  %v5993_v33 = vpop.f32.mrf.mxu0  ;;  %v7203_v19 = vsel %vm1523_vm1, %v12660_v3, %v7027_v39 }
 0x552   : > { %v9611_v30 = vor.u32 %v10483_v42, %v9608_v60  ;;  %v12315_v48 = vsel %vm7206_vm3, %v7203_v19, %v7093_v11  ;;  %v6008_v26 = vpop.f32.mrf.mxu1 }
 0x554   : > { %v5947_v18 = vsel %vm831_vm0, %v9611_v30, 0 }
 0x555   : > { %v5980_v54 = vpop.f32.mrf.mxu3 }
 0x559   : > { %6223 = vmatpush.bf16.xpose.msra.mxu2 %v9783_v13  ;;  %6236 = vmatpush.bf16.xpose.msra.mxu3 %v5953_v7  ;;  %v5225_v5 = vpop.f32.mrf.mxu2  ;;  %v5513_v13 = vshrl.u32 %v5451_v1, 16  ;;  %v5518_v7 = vrot.slane %v5516_v43, 1  ;;  %v5995_v45 = vpop.f32.mrf.mxu0 }
 0x55a   : > { %v7092_v31 = vrot.slane %v5225_v5, 6  ;;  %v9515_v45 = vld [vmem:[%s10865_s24 + $0x958] sm:$0x11] }
 0x55b   : > { %v5515_v25 = vrot.slane %v5513_v13, 1  ;;  %v6459_v26 = vunpack.c.l.b16 %v9515_v45 }
 0x55c   : > { %v12312_v35 = vsel %vm7206_vm3, %v7202_v29, %v7092_v31 }
 0x55d   : > { %v5982_v40 = vpop.f32.mrf.mxu3 }
 0x55e   : > { %v9969_v40 = vld [vmem:[%s10865_s24 + $0x8f0] sm:$0xf0] }
 0x560   : > { %v6058_v14 = vpop.f32.mrf.mxu1 }
 0x561   : > { %6224 = vmatpush.bf16.xpose.msra.mxu2 %v9695_v58  ;;  %6237 = vmatpush.bf16.xpose.msra.mxu3 %v5950_v59  ;;  %v5227_v16 = vpop.f32.mrf.mxu2  ;;  %v6045_v55 = vpop.f32.mrf.mxu0 }
 0x568   : > { %v6060_v59 = vpop.f32.mrf.mxu1 }
 0x569   : > { %6225 = vmatpush.bf16.xpose.msra.mxu2 %v9607_v8  ;;  %6238 = vmatpush.bf16.xpose.msra.mxu3 %v5947_v18  ;;  %v5967_v10 = vpop.f32.mrf.mxu2  ;;  %v6047_v58 = vpop.f32.mrf.mxu0 }
 0x56a   : > { %v5981_v41 = vadd.f32 %v5980_v54, %v5967_v10  ;;  %v6460_v10 = vunpack.c.h.b16 %v9515_v45  ;;  %v9967_v54 = vld [vmem:[%s10865_s24 + $0x898] sm:$0xf]  ;;  %v9983_v58 = vld [vmem:[%s10865_s24 + $0x8a8] sm:$0xf]  ;;  %v10574_v45 = vld [vmem:[%s10865_s24 + $0x84c] sm:$0xf0] }
 0x56c   : > { %v5994_v2 = vadd.f32 %v5993_v33, %v5981_v41  ;;  %v10594_v41 = vld [vmem:[%s10865_s24 + $0x8ec] sm:$0xf0] }
 0x56e   : > { %v6007_v56 = vadd.f32 %v6006_v52, %v5994_v2 }
 0x570   : > { %6226 = vmatmul.bf16.vlgmr.msra.gmra.mxu2 %v5515_v25  ;;  %9788 = vmatmul.msk.bf16.vlgmr.msra.gmra.mxu3 %vm831_vm0, %v5518_v7  ;;  %v9513_v7 = vld [vmem:[%s10865_s24 + $0x948] sm:$0x11] }
 0x571   : > { %v5969_v15 = vpop.f32.mrf.mxu2  ;;  %v6455_v16 = vunpack.c.l.b16 %v9513_v7  ;;  %v6456_v9 = vunpack.c.h.b16 %v9513_v7  ;;  %v9895_v7 = vld [vmem:[%s10865_s24 + $0x7f8] sm:$0xf] }
 0x572   : > { %v10583_v15 = vld [vmem:[%s10865_s24 + $0x89c] sm:$0xf] }
 0x573   : > { %v6032_v60 = vpop.f32.mrf.mxu3  ;;  %v6543_v2 = vpack.c.b16 %v6455_v16, %v6455_v16 }
 0x579   : > { %v6019_v42 = vpop.f32.mrf.mxu2 }
 0x57a   : > { %v6020_v38 = vadd.f32 %v6019_v42, %v6007_v56  ;;  %v6544_v56 = vpack.c.b16 %v6456_v9, %v6456_v9  ;;  %v9896_v9 = vor.u32 %v10574_v45, %v9895_v7 }
 0x57b   : > { %v6034_v5 = vpop.f32.mrf.mxu3 }
 0x57c   : > { %v6033_v61 = vadd.f32 %v6032_v60, %v6020_v38  ;;  %v10596_v60 = vld [vmem:[%s10865_s24 + $0x8fc] sm:$0xf0]  ;;  %v10585_v38 = vld [vmem:[%s10865_s24 + $0x8ac] sm:$0xf]  ;;  %v9972_v5 = vor.u32 %v10583_v15, %v9969_v40  ;;  %v9807_v15 = vld [vmem:[%s10865_s24 + $0x748] sm:$0xf] }
 0x57d   : > { %v10552_v40 = vld [vmem:[%s10865_s24 + $0x79c] sm:$0xf0] }
 0x57e   : > { %v6046_v30 = vadd.f32 %v6045_v55, %v6033_v61  ;;  %v6547_v55 = vpack.c.b16 %v6459_v26, %v6459_v26  ;;  %v9985_v61 = vld [vmem:[%s10865_s24 + $0x900] sm:$0xf0]  ;;  %v10563_v26 = vld [vmem:[%s10865_s24 + $0x7fc] sm:$0xf] }
 0x580   : > { %v6097_v63 = vpop.f32.mrf.mxu0  ;;  %v6110_v23 = vpop.f32.mrf.mxu1  ;;  %v6059_v0 = vadd.f32 %v6058_v14, %v6046_v30  ;;  %v6548_v14 = vpack.c.b16 %v6460_v10, %v6460_v10  ;;  %v6635_v30 = vsel %vm1523_vm1, %v6543_v2, 0  ;;  %v9897_v10 = vld [vmem:[%s10865_s24 + $0x850] sm:$0xf0]  ;;  %v10550_v2 = vld [vmem:[%s10865_s24 + $0x78c] sm:$0xf0] }
 0x581   : > { %v6021_v39 = vpop.f32.mrf.mxu2  ;;  %6704 = vmatpush.bf16.msra.mxu0 %v6635_v30  ;;  %v9809_v30 = vld [vmem:[%s10865_s24 + $0x7a0] sm:$0xf0] }
 0x582   : > { %v9968_v39 = vor.u32 %v10594_v41, %v9967_v54  ;;  %v9900_v54 = vor.u32 %v10563_v26, %v9897_v10  ;;  %v9791_v41 = vld [vmem:[%s10865_s24 + $0x738] sm:$0xf] }
 0x583   : > { %v9999_v10 = vld [vmem:[%s10865_s24 + $0x8b8] sm:$0xf] }
 0x585   : > { %6705 = vmatpush.bf16.msra.mxu0 %v9968_v39 }
 0x588   : > { %v6099_v46 = vpop.f32.mrf.mxu0  ;;  %v6112_v33 = vpop.f32.mrf.mxu1 }
 0x593   : > { %v6071_v8 = vpop.f32.mrf.mxu2  ;;  %v6084_v1 = vpop.f32.mrf.mxu3 }
 0x594   : > { %v6072_v47 = vadd.f32 %v6071_v8, %v6059_v0  ;;  %v6650_v0 = vsel %vm1523_vm1, %v6548_v14, 0  ;;  %v9984_v8 = vor.u32 %v10596_v60, %v9983_v58  ;;  %v9793_v14 = vld [vmem:[%s10865_s24 + $0x790] sm:$0xf0] }
 0x595   : > { %6769 = vmatpush.bf16.msrb.mxu3 %v6650_v0 }
 0x596   : > { %v6085_v31 = vadd.f32 %v6084_v1, %v6072_v47  ;;  %v9988_v1 = vor.u32 %v10585_v38, %v9985_v61  ;;  %v9808_v38 = vor.u32 %v10552_v40, %v9807_v15  ;;  %v10541_v61 = vld [vmem:[%s10865_s24 + $0x74c] sm:$0xf]  ;;  %v10573_v15 = vld [vmem:[%s10865_s24 + $0x844] sm:$0xf0] }
 0x598   : > { %v6098_v11 = vadd.f32 %v6097_v63, %v6085_v31  ;;  %v6638_v63 = vsel %vm1523_vm1, %v6544_v56, 0  ;;  %v10539_v56 = vld [vmem:[%s10865_s24 + $0x73c] sm:$0xf] }
 0x599   : > { %6717 = vmatpush.bf16.msra.mxu1 %v6638_v63  ;;  %6770 = vmatpush.bf16.msrb.mxu3 %v9988_v1  ;;  %v9796_v60 = vor.u32 %v10539_v56, %v9793_v14  ;;  %v9514_v63 = vld [vmem:[%s10865_s24 + $0x950] sm:$0x11] }
 0x59a   : > { %v12322_v53 = vadd.f32 %v6110_v23, %v6098_v11  ;;  %v6647_v23 = vsel %vm1523_vm1, %v6547_v55, 0  ;;  %v9879_v11 = vld [vmem:[%s10865_s24 + $0x7e8] sm:$0xf]  ;;  %v9792_v55 = vor.u32 %v10550_v2, %v9791_v41  ;;  %v6457_v0 = vunpack.c.l.b16 %v9514_v63  ;;  %v10587_v41 = vld [vmem:[%s10865_s24 + $0x8bc] sm:$0xf] }
 0x59b   : > { %v6073_v29 = vpop.f32.mrf.mxu2  ;;  %v6086_v3 = vpop.f32.mrf.mxu3  ;;  %6756 = vmatpush.bf16.msrb.mxu2 %v6647_v23  ;;  %v9812_v23 = vor.u32 %v10541_v61, %v9809_v30  ;;  %v6458_v39 = vunpack.c.h.b16 %v9514_v63  ;;  %v9887_v14 = vld [vmem:[%s10865_s24 + $0x7f0] sm:$0xf] }
 0x59c   : > { %v10572_v29 = vld [vmem:[%s10865_s24 + $0x83c] sm:$0xf0]  ;;  %v10561_v3 = vld [vmem:[%s10865_s24 + $0x7ec] sm:$0xf] }
 0x59d   : > { %6718 = vmatpush.bf16.msra.mxu1 %v9972_v5  ;;  %6771 = vmatpush.bf16.msrb.mxu3 %v9900_v54  ;;  %v9517_v5 = vld [vmem:[%s10865_s24 + $0x968] sm:$0x11]  ;;  %v10598_v54 = vld [vmem:[%s10865_s24 + $0x90c] sm:$0xf0] }
 0x59e   : > { %v6464_v1 = vunpack.c.h.b16 %v9517_v5  ;;  %v10000_v56 = vor.u32 %v10598_v54, %v9999_v10  ;;  %v9519_v10 = vld [vmem:[%s10865_s24 + $0x978] sm:$0x11] }
 0x59f   : > { %6757 = vmatpush.bf16.msrb.mxu2 %v9984_v8  ;;  %v6463_v8 = vunpack.c.l.b16 %v9517_v5 }
 0x5a0   : > { %v12318_v18 = vpop.f32.mrf.mxu0  ;;  %v12320_v52 = vpop.f32.mrf.mxu1 }
 0x5a1   : > { %6772 = vmatpush.bf16.msrb.mxu3 %v9812_v23  ;;  %v10576_v23 = vld [vmem:[%s10865_s24 + $0x85c] sm:$0xf0] }
 0x5a3   : > { %6758 = vmatpush.bf16.msrb.mxu2 %v9896_v9  ;;  %v9977_v9 = vld [vmem:[%s10865_s24 + $0x8f8] sm:$0xf0] }
 0x5a7   : > { %6759 = vmatpush.bf16.msrb.mxu2 %v9808_v38  ;;  %v9911_v38 = vld [vmem:[%s10865_s24 + $0x808] sm:$0xf] }
 0x5a8   : > { %v6151_v19 = vpop.f32.mrf.mxu0  ;;  %v6164_v13 = vpop.f32.mrf.mxu1  ;;  %v9912_v5 = vor.u32 %v10576_v23, %v9911_v38  ;;  %v9991_v23 = vld [vmem:[%s10865_s24 + $0x8b0] sm:$0xf] }
 0x5a9   : > { %v9880_v19 = vor.u32 %v10572_v29, %v9879_v11  ;;  %v9881_v13 = vld [vmem:[%s10865_s24 + $0x840] sm:$0xf0]  ;;  %v6552_v11 = vpack.c.b16 %v6464_v1, %v6464_v1  ;;  %v9799_v1 = vld [vmem:[%s10865_s24 + $0x740] sm:$0xf] }
 0x5aa   : > { %v9884_v16 = vor.u32 %v10561_v3, %v9881_v13  ;;  %v10595_v13 = vld [vmem:[%s10865_s24 + $0x8f4] sm:$0xf0] }
 0x5ab   : > { %6706 = vmatpush.bf16.msra.mxu0 %v9880_v19  ;;  %v9975_v19 = vld [vmem:[%s10865_s24 + $0x8a0] sm:$0xf] }
 0x5ac   : > { %6719 = vmatpush.bf16.msra.mxu1 %v9884_v16  ;;  %v9976_v45 = vor.u32 %v10595_v13, %v9975_v19  ;;  %v10584_v16 = vld [vmem:[%s10865_s24 + $0x8a4] sm:$0xf]  ;;  %v9825_v19 = vld [vmem:[%s10865_s24 + $0x7b0] sm:$0xf0] }
 0x5ad   : > { %v9980_v26 = vor.u32 %v10584_v16, %v9977_v9 }
 0x5af   : > { %6707 = vmatpush.bf16.msra.mxu0 %v9792_v55  ;;  %v10001_v55 = vld [vmem:[%s10865_s24 + $0x910] sm:$0xf0] }
 0x5b0   : > { %6720 = vmatpush.bf16.msra.mxu1 %v9796_v60  ;;  %v10004_v40 = vor.u32 %v10587_v41, %v10001_v55  ;;  %v9889_v60 = vld [vmem:[%s10865_s24 + $0x848] sm:$0xf0] }
 0x5b3   : > { %v12324_v43 = vpop.f32.mrf.mxu2  ;;  %v12326_v25 = vpop.f32.mrf.mxu3 }
 0x5b4   : > { %v6124_v58 = vadd.f32 %v12324_v43, %v12322_v53  ;;  %v6545_v53 = vpack.c.b16 %v6457_v0, %v6457_v0  ;;  %v6546_v43 = vpack.c.b16 %v6458_v39, %v6458_v39  ;;  %v10565_v0 = vld [vmem:[%s10865_s24 + $0x80c] sm:$0xf]  ;;  %v9913_v39 = vld [vmem:[%s10865_s24 + $0x860] sm:$0xf0] }
 0x5b6   : > { %v6641_v29 = vsel %vm1523_vm1, %v6545_v53, 0  ;;  %v6644_v3 = vsel %vm1523_vm1, %v6546_v43, 0  ;;  %v10551_v53 = vld [vmem:[%s10865_s24 + $0x794] sm:$0xf0]  ;;  %v10540_v43 = vld [vmem:[%s10865_s24 + $0x744] sm:$0xf] }
 0x5b7   : > { %6730 = vmatpush.bf16.msrb.mxu0 %v6641_v29  ;;  %6743 = vmatpush.bf16.msrb.mxu1 %v6644_v3  ;;  %v10554_v29 = vld [vmem:[%s10865_s24 + $0x7ac] sm:$0xf0]  ;;  %v10543_v3 = vld [vmem:[%s10865_s24 + $0x75c] sm:$0xf] }
 0x5b8   : > { %v9828_v16 = vor.u32 %v10543_v3, %v9825_v19  ;;  %v10575_v19 = vld [vmem:[%s10865_s24 + $0x854] sm:$0xf0] }
 0x5bb   : > { %v6125_v46 = vpop.f32.mrf.mxu2  ;;  %v6138_v33 = vpop.f32.mrf.mxu3  ;;  %6731 = vmatpush.bf16.msrb.mxu0 %v9976_v45  ;;  %6744 = vmatpush.bf16.msrb.mxu1 %v9980_v26  ;;  %v9516_v26 = vld [vmem:[%s10865_s24 + $0x960] sm:$0x11] }
 0x5bc   : > { %v6462_v54 = vunpack.c.h.b16 %v9516_v26 }
 0x5bf   : > { %v12335_v59 = vpop.f32.mrf.mxu0  ;;  %v12337_v42 = vpop.f32.mrf.mxu1 }
 0x5c7   : > { %v6203_v47 = vpop.f32.mrf.mxu0  ;;  %v6216_v31 = vpop.f32.mrf.mxu1 }
 0x5c8   : > { %v6137_v47 = vadd.f32 %v12326_v25, %v6124_v58  ;;  %v6551_v31 = vpack.c.b16 %v6463_v8, %v6463_v8  ;;  %v6662_v25 = vsel %vm1523_vm1, %v6552_v11, 0  ;;  %v10562_v58 = vld [vmem:[%s10865_s24 + $0x7f4] sm:$0xf]  ;;  %v9916_v8 = vor.u32 %v10565_v0, %v9913_v39  ;;  %v9823_v11 = vld [vmem:[%s10865_s24 + $0x758] sm:$0xf] }
 0x5c9   : > { %6821 = vmatpush.bf16.msra.mxu3 %v6662_v25  ;;  %v9892_v63 = vor.u32 %v10562_v58, %v9889_v60  ;;  %v9824_v45 = vor.u32 %v10554_v29, %v9823_v11  ;;  %v10597_v0 = vld [vmem:[%s10865_s24 + $0x904] sm:$0xf0]  ;;  %v9903_v11 = vld [vmem:[%s10865_s24 + $0x800] sm:$0xf] }
 0x5ca   : > { %v6659_v7 = vsel %vm1523_vm1, %v6551_v31, 0  ;;  %v6150_v2 = vadd.f32 %v12318_v18, %v6137_v47  ;;  %v9888_v18 = vor.u32 %v10573_v15, %v9887_v14  ;;  %v9801_v31 = vld [vmem:[%s10865_s24 + $0x798] sm:$0xf0]  ;;  %v9992_v29 = vor.u32 %v10597_v0, %v9991_v23 }
 0x5cb   : > { %6808 = vmatpush.bf16.msra.mxu2 %v6659_v7  ;;  %6745 = vmatpush.bf16.msrb.mxu1 %v9892_v63  ;;  %v9800_v7 = vor.u32 %v10551_v53, %v9799_v1  ;;  %v9804_v25 = vor.u32 %v10540_v43, %v9801_v31  ;;  %v9993_v1 = vld [vmem:[%s10865_s24 + $0x908] sm:$0xf0]  ;;  %v10015_v53 = vld [vmem:[%s10865_s24 + $0x8c8] sm:$0xf]  ;;  %v10600_v43 = vld [vmem:[%s10865_s24 + $0x91c] sm:$0xf0] }
 0x5cc   : > { %v6163_v47 = vadd.f32 %v12320_v52, %v6150_v2  ;;  %6732 = vmatpush.bf16.msrb.mxu0 %v9888_v18  ;;  %v6467_v2 = vunpack.c.l.b16 %v9519_v10  ;;  %v10017_v31 = vld [vmem:[%s10865_s24 + $0x920] sm:$0xf0] }
 0x5cd   : > { %6822 = vmatpush.bf16.msra.mxu3 %v10004_v40  ;;  %v6550_v40 = vpack.c.b16 %v6462_v54, %v6462_v54 }
 0x5cf   : > { %6809 = vmatpush.bf16.msra.mxu2 %v10000_v56  ;;  %6746 = vmatpush.bf16.msrb.mxu1 %v9804_v25  ;;  %v6468_v56 = vunpack.c.h.b16 %v9519_v10  ;;  %v10016_v25 = vor.u32 %v10600_v43, %v10015_v53  ;;  %v10567_v10 = vld [vmem:[%s10865_s24 + $0x81c] sm:$0xf] }
 0x5d0   : > { %6733 = vmatpush.bf16.msrb.mxu0 %v9800_v7  ;;  %v9518_v7 = vld [vmem:[%s10865_s24 + $0x970] sm:$0x11] }
 0x5d1   : > { %6823 = vmatpush.bf16.msra.mxu3 %v9916_v8  ;;  %v6556_v60 = vpack.c.b16 %v6468_v56, %v6468_v56  ;;  %v10586_v8 = vld [vmem:[%s10865_s24 + $0x8b4] sm:$0xf]  ;;  %v6465_v54 = vunpack.c.l.b16 %v9518_v7 }
 0x5d2   : > { %v9996_v3 = vor.u32 %v10586_v8, %v9993_v1 }
 0x5d3   : > { %v6175_v46 = vpop.f32.mrf.mxu2  ;;  %v12366_v33 = vpop.f32.mrf.mxu3  ;;  %6810 = vmatpush.bf16.msra.mxu2 %v9912_v5  ;;  %v6674_v63 = vsel %vm1523_vm1, %v6556_v60, 0  ;;  %v9817_v60 = vld [vmem:[%s10865_s24 + $0x7a8] sm:$0xf0]  ;;  %v6553_v23 = vpack.c.b16 %v6465_v54, %v6465_v54  ;;  %v9520_v54 = vld [vmem:[%s10865_s24 + $0x980] sm:$0x11] }
 0x5d4   : > { %v6176_v13 = vadd.f32 %v6175_v46, %v6163_v47  ;;  %v6461_v46 = vunpack.c.l.b16 %v9516_v26  ;;  %v10589_v47 = vld [vmem:[%s10865_s24 + $0x8cc] sm:$0xf]  ;;  %v10578_v26 = vld [vmem:[%s10865_s24 + $0x86c] sm:$0xf0] }
 0x5d5   : > { %6824 = vmatpush.bf16.msra.mxu3 %v9828_v16  ;;  %v9905_v16 = vld [vmem:[%s10865_s24 + $0x858] sm:$0xf0]  ;;  %v6665_v43 = vsel %vm1523_vm1, %v6553_v23, 0 }
 0x5d6   : > { %v6189_v9 = vadd.f32 %v12366_v33, %v6176_v13  ;;  %v6549_v33 = vpack.c.b16 %v6461_v46, %v6461_v46  ;;  %v10564_v13 = vld [vmem:[%s10865_s24 + $0x804] sm:$0xf]  ;;  %v9929_v46 = vld [vmem:[%s10865_s24 + $0x870] sm:$0xf0] }
 0x5d7   : > { %6811 = vmatpush.bf16.msra.mxu2 %v9824_v45  ;;  %v10020_v45 = vor.u32 %v10589_v47, %v10017_v31  ;;  %v9908_v56 = vor.u32 %v10564_v13, %v9905_v16  ;;  %v10009_v13 = vld [vmem:[%s10865_s24 + $0x918] sm:$0xf0]  ;;  %v10033_v16 = vld [vmem:[%s10865_s24 + $0x930] sm:$0xf0] }
 0x5d8   : > { %v6202_v52 = vadd.f32 %v12335_v59, %v6189_v9  ;;  %v6555_v59 = vpack.c.b16 %v6467_v2, %v6467_v2  ;;  %v9927_v9 = vld [vmem:[%s10865_s24 + $0x818] sm:$0xf]  ;;  %v9904_v2 = vor.u32 %v10575_v19, %v9903_v11  ;;  %v10588_v19 = vld [vmem:[%s10865_s24 + $0x8c4] sm:$0xf] }
 0x5da   : > { %v6215_v41 = vadd.f32 %v12337_v42, %v6202_v52  ;;  %v6653_v42 = vsel %vm1523_vm1, %v6549_v33, 0  ;;  %v6671_v18 = vsel %vm1523_vm1, %v6555_v59, 0  ;;  %v9521_v52 = vld [vmem:[%s10865_s24 + $0x988] sm:$0x11]  ;;  %v10542_v59 = vld [vmem:[%s10865_s24 + $0x754] sm:$0xf] }
 0x5db   : > { %v6177_v61 = vpop.f32.mrf.mxu2  ;;  %v6190_v30 = vpop.f32.mrf.mxu3  ;;  %v6472_v33 = vunpack.c.h.b16 %v9521_v52 }
 0x5dc   : > { %v6656_v61 = vsel %vm1523_vm1, %v6550_v40, 0  ;;  %v9928_v40 = vor.u32 %v10578_v26, %v9927_v9  ;;  %v9919_v9 = vld [vmem:[%s10865_s24 + $0x810] sm:$0xf]  ;;  %v10012_v26 = vor.u32 %v10588_v19, %v10009_v13 }
 0x5dd   : > { %v6560_v8 = vpack.c.b16 %v6472_v33, %v6472_v33  ;;  %v10569_v33 = vld [vmem:[%s10865_s24 + $0x82c] sm:$0xf] }
 0x5df   : > { %v6686_v11 = vsel %vm1523_vm1, %v6560_v8, 0  ;;  %v9855_v8 = vld [vmem:[%s10865_s24 + $0x778] sm:$0xf] }
 0x5f3   : > { %v6227_v55 = vpop.f32.mrf.mxu2  ;;  %v6240_v14 = vpop.f32.mrf.mxu3 }
 0x5f4   : > { %v6228_v15 = vadd.f32 %v6227_v55, %v6215_v41  ;;  %v6466_v41 = vunpack.c.h.b16 %v9518_v7  ;;  %v9815_v55 = vld [vmem:[%s10865_s24 + $0x750] sm:$0xf]  ;;  %v10031_v7 = vld [vmem:[%s10865_s24 + $0x8d8] sm:$0xf] }
 0x5f6   : > { %v6241_v58 = vadd.f32 %v6240_v14, %v6228_v15  ;;  %v10553_v14 = vld [vmem:[%s10865_s24 + $0x7a4] sm:$0xf0]  ;;  %v6471_v15 = vunpack.c.l.b16 %v9521_v52  ;;  %v6554_v0 = vpack.c.b16 %v6466_v41, %v6466_v41 }
 0x5f8   : > { %v6244_v38 = vmul.f32 0.25, %v6241_v58  ;;  %v9932_v58 = vor.u32 %v10567_v10, %v9929_v46  ;;  %v6668_v47 = vsel %vm1523_vm1, %v6554_v0, 0  ;;  %v10577_v10 = vld [vmem:[%s10865_s24 + $0x864] sm:$0xf0]  ;;  %v10566_v46 = vld [vmem:[%s10865_s24 + $0x814] sm:$0xf] }
 0x5fa   : > { %v12406_v30 = vpack.c.bf16 %v6244_v38, %v6244_v38  ;;  %v9839_v38 = vld [vmem:[%s10865_s24 + $0x768] sm:$0xf] }
 0x5fb   : > { %v6229_v39 = vpop.f32.mrf.mxu2  ;;  %v6242_v5 = vpop.f32.mrf.mxu3 }
 0x5fc   : > { %10053 = vmatmul.msk.bf16.vlgmr.msra.gmra.mxu0 %vm1519_vm2, %v12406_v30  ;;  %10054 = vmatmul.msk.bf16.vlgmr.msra.gmra.mxu1 %vm1519_vm2, %v12406_v30  ;;  %v9820_v39 = vor.u32 %v10542_v59, %v9817_v60  ;;  %v6559_v5 = vpack.c.b16 %v6471_v15, %v6471_v15  ;;  %v10580_v15 = vld [vmem:[%s10865_s24 + $0x87c] sm:$0xf0]  ;;  %v6470_v59 = vunpack.c.h.b16 %v9520_v54  ;;  %v9920_v60 = vor.u32 %v10577_v10, %v9919_v9  ;;  %v10590_v10 = vld [vmem:[%s10865_s24 + $0x8d4] sm:$0xf] }
 0x5fd   : > { %10057 = vmatmul.msk.bf16.vlgmr.msrb.gmra.mxu2 %vm1519_vm2, %v12406_v30  ;;  %10058 = vmatmul.msk.bf16.vlgmr.msrb.gmra.mxu3 %vm1519_vm2, %v12406_v30 }
 0x5fe   : > { %6782 = vmatpush.bf16.msra.mxu0 %v6653_v42  ;;  %6795 = vmatpush.bf16.msra.mxu1 %v6656_v61  ;;  %v10556_v42 = vld [vmem:[%s10865_s24 + $0x7bc] sm:$0xf0]  ;;  %v10545_v61 = vld [vmem:[%s10865_s24 + $0x76c] sm:$0xf]  ;;  %v6683_v31 = vsel %vm1523_vm1, %v6559_v5, 0 }
 0x5ff   : > { %6860 = vmatpush.bf16.msrb.mxu2 %v6671_v18  ;;  %6873 = vmatpush.bf16.msrb.mxu3 %v6674_v63  ;;  %v9841_v18 = vld [vmem:[%s10865_s24 + $0x7c0] sm:$0xf0]  ;;  %v9816_v63 = vor.u32 %v10553_v14, %v9815_v55  ;;  %v9840_v1 = vor.u32 %v10556_v42, %v9839_v38  ;;  %v9943_v55 = vld [vmem:[%s10865_s24 + $0x828] sm:$0xf]  ;;  %v9523_v14 = vld [vmem:[%s10865_s24 + $0x998] sm:$0x11] }
 0x600   : > { %v9844_v53 = vor.u32 %v10545_v61, %v9841_v18  ;;  %v9831_v42 = vld [vmem:[%s10865_s24 + $0x760] sm:$0xf]  ;;  %v10555_v61 = vld [vmem:[%s10865_s24 + $0x7b4] sm:$0xf0]  ;;  %v6475_v18 = vunpack.c.l.b16 %v9523_v14  ;;  %v9944_v23 = vor.u32 %v10580_v15, %v9943_v55  ;;  %v9833_v5 = vld [vmem:[%s10865_s24 + $0x7b8] sm:$0xf0] }
 0x601   : > { %v9935_v15 = vld [vmem:[%s10865_s24 + $0x820] sm:$0xf] }
 0x602   : > { %6783 = vmatpush.bf16.msra.mxu0 %v9992_v29  ;;  %6796 = vmatpush.bf16.msra.mxu1 %v9996_v3  ;;  %v10007_v29 = vld [vmem:[%s10865_s24 + $0x8c0] sm:$0xf]  ;;  %v10599_v3 = vld [vmem:[%s10865_s24 + $0x914] sm:$0xf0] }
 0x603   : > { %6861 = vmatpush.bf16.msrb.mxu2 %v10016_v25  ;;  %6874 = vmatpush.bf16.msrb.mxu3 %v10020_v45  ;;  %v10602_v25 = vld [vmem:[%s10865_s24 + $0x92c] sm:$0xf0]  ;;  %v10591_v45 = vld [vmem:[%s10865_s24 + $0x8dc] sm:$0xf]  ;;  %v10008_v52 = vor.u32 %v10599_v3, %v10007_v29  ;;  %v6563_v3 = vpack.c.b16 %v6475_v18, %v6475_v18 }
 0x604   : > { %v10032_v41 = vor.u32 %v10602_v25, %v10031_v7  ;;  %v10571_v18 = vld [vmem:[%s10865_s24 + $0x83c] sm:$0xf] }
 0x606   : > { %6784 = vmatpush.bf16.msra.mxu0 %v9904_v2  ;;  %6797 = vmatpush.bf16.msra.mxu1 %v9908_v56  ;;  %v10036_v2 = vor.u32 %v10591_v45, %v10033_v16  ;;  %v9921_v56 = vld [vmem:[%s10865_s24 + $0x868] sm:$0xf0]  ;;  %v6695_v16 = vsel %vm1523_vm1, %v6563_v3, 0 }
 0x607   : > { %6862 = vmatpush.bf16.msrb.mxu2 %v9928_v40  ;;  %6875 = vmatpush.bf16.msrb.mxu3 %v9932_v58  ;;  %v9945_v40 = vld [vmem:[%s10865_s24 + $0x880] sm:$0xf0]  ;;  %v6469_v58 = vunpack.c.l.b16 %v9520_v54  ;;  %v9924_v38 = vor.u32 %v10566_v46, %v9921_v56  ;;  %v10025_v46 = vld [vmem:[%s10865_s24 + $0x928] sm:$0xf0]  ;;  %v10047_v54 = vld [vmem:[%s10865_s24 + $0x8e8] sm:$0xf] }
 0x608   : > { %v9948_v0 = vor.u32 %v10569_v33, %v9945_v40  ;;  %v10049_v56 = vld [vmem:[%s10865_s24 + $0x940] sm:$0xf0]  ;;  %v10579_v33 = vld [vmem:[%s10865_s24 + $0x874] sm:$0xf0]  ;;  %v10549_v3 = vld [vmem:[%s10865_s24 + $0x78c] sm:$0xf] }
 0x609   : > { %v10568_v40 = vld [vmem:[%s10865_s24 + $0x824] sm:$0xf] }
 0x60a   : > { %6785 = vmatpush.bf16.msra.mxu0 %v9816_v63  ;;  %6798 = vmatpush.bf16.msra.mxu1 %v9820_v39  ;;  %v6476_v63 = vunpack.c.h.b16 %v9523_v14  ;;  %v10544_v39 = vld [vmem:[%s10865_s24 + $0x764] sm:$0xf]  ;;  %v10028_v14 = vor.u32 %v10590_v10, %v10025_v46  ;;  %v10039_v10 = vld [vmem:[%s10865_s24 + $0x8e0] sm:$0xf]  ;;  %v10603_v46 = vld [vmem:[%s10865_s24 + $0x934] sm:$0xf0] }
 0x60b   : > { %6863 = vmatpush.bf16.msrb.mxu2 %v9840_v1  ;;  %6876 = vmatpush.bf16.msrb.mxu3 %v9844_v53  ;;  %v10558_v1 = vld [vmem:[%s10865_s24 + $0x7cc] sm:$0xf0]  ;;  %v10547_v53 = vld [vmem:[%s10865_s24 + $0x77c] sm:$0xf]  ;;  %v9836_v29 = vor.u32 %v10544_v39, %v9833_v5  ;;  %v10557_v5 = vld [vmem:[%s10865_s24 + $0x7c4] sm:$0xf0] }
 0x60c   : > { %10055 = vmatmul.msk.bf16.vlgmr.msrb.gmra.mxu0 %vm1519_vm2, %v12406_v30  ;;  %10056 = vmatmul.msk.bf16.vlgmr.msrb.gmra.mxu1 %vm1519_vm2, %v12406_v30  ;;  %v6564_v19 = vpack.c.b16 %v6476_v63, %v6476_v63  ;;  %v9856_v13 = vor.u32 %v10558_v1, %v9855_v8  ;;  %v9961_v63 = vld [vmem:[%s10865_s24 + $0x890] sm:$0xf0]  ;;  %v9847_v39 = vld [vmem:[%s10865_s24 + $0x770] sm:$0xf] }
 0x60d   : > { %10061 = vmatmul.msk.bf16.vlgmr.msra.gmra.mxu2 %vm1519_vm2, %v12406_v30  ;;  %10062 = vmatmul.msk.bf16.vlgmr.msra.gmra.mxu3 %vm1519_vm2, %v12406_v30 }
 0x60e   : > { %6834 = vmatpush.bf16.msrb.mxu0 %v6665_v43  ;;  %6847 = vmatpush.bf16.msrb.mxu1 %v6668_v47  ;;  %v9857_v43 = vld [vmem:[%s10865_s24 + $0x7d0] sm:$0xf0]  ;;  %v9832_v47 = vor.u32 %v10555_v61, %v9831_v42  ;;  %v6698_v9 = vsel %vm1523_vm1, %v6564_v19, 0  ;;  %v10582_v61 = vld [vmem:[%s10865_s24 + $0x88c] sm:$0xf0] }
 0x60f   : > { %6912 = vmatpush.bf16.msra.mxu2 %v6683_v31  ;;  %6925 = vmatpush.bf16.msra.mxu3 %v6686_v11  ;;  %v6557_v31 = vpack.c.b16 %v6469_v58, %v6469_v58  ;;  %v6558_v11 = vpack.c.b16 %v6470_v59, %v6470_v59  ;;  %v9860_v7 = vor.u32 %v10547_v53, %v9857_v43  ;;  %v9522_v42 = vld [vmem:[%s10865_s24 + $0x990] sm:$0x11]  ;;  %v9873_v19 = vld [vmem:[%s10865_s24 + $0x7e0] sm:$0xf0] }
 0x610   : > { %v6473_v8 = vunpack.c.l.b16 %v9522_v42  ;;  %v6474_v1 = vunpack.c.h.b16 %v9522_v42  ;;  %v9964_v43 = vor.u32 %v10571_v18, %v9961_v63  ;;  %v9865_v42 = vld [vmem:[%s10865_s24 + $0x7d8] sm:$0xf0] }
 0x611   : > { %v6677_v25 = vsel %vm1523_vm1, %v6557_v31, 0  ;;  %v6680_v45 = vsel %vm1523_vm1, %v6558_v11, 0  ;;  %v9849_v31 = vld [vmem:[%s10865_s24 + $0x7c8] sm:$0xf0]  ;;  %v9871_v11 = vld [vmem:[%s10865_s24 + $0x788] sm:$0xf] }
 0x612   : > { %6835 = vmatpush.bf16.msrb.mxu0 %v10008_v52  ;;  %6848 = vmatpush.bf16.msrb.mxu1 %v10012_v26  ;;  %v10023_v52 = vld [vmem:[%s10865_s24 + $0x8d0] sm:$0xf]  ;;  %v10601_v26 = vld [vmem:[%s10865_s24 + $0x924] sm:$0xf0] }
 0x613   : > { %6913 = vmatpush.bf16.msra.mxu2 %v10032_v41  ;;  %6926 = vmatpush.bf16.msra.mxu3 %v10036_v2  ;;  %v10604_v41 = vld [vmem:[%s10865_s24 + $0x93c] sm:$0xf0]  ;;  %v10593_v2 = vld [vmem:[%s10865_s24 + $0x8ec] sm:$0xf]  ;;  %v10024_v55 = vor.u32 %v10601_v26, %v10023_v52 }
 0x614   : > { %v10048_v58 = vor.u32 %v10604_v41, %v10047_v54  ;;  %v10052_v59 = vor.u32 %v10593_v2, %v10049_v56  ;;  %v10592_v54 = vld [vmem:[%s10865_s24 + $0x8e4] sm:$0xf]  ;;  %v10041_v41 = vld [vmem:[%s10865_s24 + $0x938] sm:$0xf0]  ;;  %v10040_v2 = vor.u32 %v10603_v46, %v10039_v10 }
 0x615   : > { %v10044_v56 = vor.u32 %v10592_v54, %v10041_v41 }
 0x616   : > { %6836 = vmatpush.bf16.msrb.mxu0 %v9920_v60  ;;  %6849 = vmatpush.bf16.msrb.mxu1 %v9924_v38  ;;  %v9937_v60 = vld [vmem:[%s10865_s24 + $0x878] sm:$0xf0]  ;;  %v9959_v38 = vld [vmem:[%s10865_s24 + $0x838] sm:$0xf] }
 0x617   : > { %6914 = vmatpush.bf16.msra.mxu2 %v9944_v23  ;;  %6927 = vmatpush.bf16.msra.mxu3 %v9948_v0  ;;  %v9936_v23 = vor.u32 %v10579_v33, %v9935_v15  ;;  %v9940_v0 = vor.u32 %v10568_v40, %v9937_v60  ;;  %v9960_v53 = vor.u32 %v10582_v61, %v9959_v38  ;;  %v10570_v15 = vld [vmem:[%s10865_s24 + $0x834] sm:$0xf]  ;;  %v9953_v33 = vld [vmem:[%s10865_s24 + $0x888] sm:$0xf0]  ;;  %v10559_v60 = vld [vmem:[%s10865_s24 + $0x7d4] sm:$0xf0] }
 0x618   : > { %v10548_v38 = vld [vmem:[%s10865_s24 + $0x784] sm:$0xf] }
 0x619   : > { %v9868_v18 = vor.u32 %v10548_v38, %v9865_v42 }
 0x61a   : > { %6837 = vmatpush.bf16.msrb.mxu0 %v9832_v47  ;;  %6850 = vmatpush.bf16.msrb.mxu1 %v9836_v29  ;;  %v10546_v47 = vld [vmem:[%s10865_s24 + $0x774] sm:$0xf]  ;;  %v10560_v29 = vld [vmem:[%s10865_s24 + $0x7dc] sm:$0xf0] }
 0x61b   : > { %6915 = vmatpush.bf16.msra.mxu2 %v9856_v13  ;;  %6928 = vmatpush.bf16.msra.mxu3 %v9860_v7  ;;  %v9848_v13 = vor.u32 %v10557_v5, %v9847_v39  ;;  %v9852_v7 = vor.u32 %v10546_v47, %v9849_v31 }
 0x61c   : > { %10059 = vmatmul.msk.bf16.vlgmr.msra.gmra.mxu0 %vm1519_vm2, %v12406_v30  ;;  %10060 = vmatmul.msk.bf16.vlgmr.msra.gmra.mxu1 %vm1519_vm2, %v12406_v30 }
 0x61d   : > { %10065 = vmatmul.msk.bf16.vlgmr.msrb.gmra.mxu2 %vm1519_vm2, %v12406_v30  ;;  %10066 = vmatmul.msk.bf16.vlgmr.msrb.gmra.mxu3 %vm1519_vm2, %v12406_v30 }
 0x61e   : > { %6886 = vmatpush.bf16.msra.mxu0 %v6677_v25  ;;  %6899 = vmatpush.bf16.msra.mxu1 %v6680_v45  ;;  %v6561_v25 = vpack.c.b16 %v6473_v8, %v6473_v8  ;;  %v6562_v45 = vpack.c.b16 %v6474_v1, %v6474_v1 }
 0x61f   : > { %6964 = vmatpush.bf16.msrb.mxu2 %v6695_v16  ;;  %6977 = vmatpush.bf16.msrb.mxu3 %v6698_v9  ;;  %v9872_v16 = vor.u32 %v10560_v29, %v9871_v11  ;;  %v9876_v9 = vor.u32 %v10549_v3, %v9873_v19 }
 0x620   : > { %v6689_v52 = vsel %vm1523_vm1, %v6561_v25, 0  ;;  %v6692_v26 = vsel %vm1523_vm1, %v6562_v45, 0 }
 0x622   : > { %6887 = vmatpush.bf16.msra.mxu0 %v10024_v55  ;;  %6900 = vmatpush.bf16.msra.mxu1 %v10028_v14  ;;  %v9951_v55 = vld [vmem:[%s10865_s24 + $0x830] sm:$0xf]  ;;  %v10581_v14 = vld [vmem:[%s10865_s24 + $0x884] sm:$0xf0] }
 0x623   : > { %6965 = vmatpush.bf16.msrb.mxu2 %v10048_v58  ;;  %6978 = vmatpush.bf16.msrb.mxu3 %v10052_v59  ;;  %v9952_v40 = vor.u32 %v10581_v14, %v9951_v55  ;;  %v9956_v58 = vor.u32 %v10570_v15, %v9953_v33  ;;  %v9863_v59 = vld [vmem:[%s10865_s24 + $0x780] sm:$0xf] }
 0x624   : > { %v9864_v61 = vor.u32 %v10559_v60, %v9863_v59 }
 0x626   : > { %6888 = vmatpush.bf16.msra.mxu0 %v9936_v23  ;;  %6901 = vmatpush.bf16.msra.mxu1 %v9940_v0 }
 0x627   : > { %6966 = vmatpush.bf16.msrb.mxu2 %v9960_v53  ;;  %6979 = vmatpush.bf16.msrb.mxu3 %v9964_v43 }
 0x62a   : > { %6889 = vmatpush.bf16.msra.mxu0 %v9848_v13  ;;  %6902 = vmatpush.bf16.msra.mxu1 %v9852_v7 }
 0x62b   : > { %6967 = vmatpush.bf16.msrb.mxu2 %v9872_v16  ;;  %6980 = vmatpush.bf16.msrb.mxu3 %v9876_v9 }
 0x62c   : > { %10063 = vmatmul.msk.bf16.vlgmr.msrb.gmra.mxu0 %vm1519_vm2, %v12406_v30  ;;  %10064 = vmatmul.msk.bf16.vlgmr.msrb.gmra.mxu1 %vm1519_vm2, %v12406_v30 }
 0x62d   : > { %10069 = vmatmul.msk.bf16.vlgmr.msra.gmra.mxu2 %vm1519_vm2, %v12406_v30  ;;  %10070 = vmatmul.msk.bf16.vlgmr.msra.gmra.mxu3 %vm1519_vm2, %v12406_v30 }
 0x62e   : > { %6938 = vmatpush.bf16.msrb.mxu0 %v6689_v52  ;;  %6951 = vmatpush.bf16.msrb.mxu1 %v6692_v26 }
 0x632   : > { %6939 = vmatpush.bf16.msrb.mxu0 %v10040_v2  ;;  %6952 = vmatpush.bf16.msrb.mxu1 %v10044_v56 }
 0x636   : > { %6940 = vmatpush.bf16.msrb.mxu0 %v9952_v40  ;;  %6953 = vmatpush.bf16.msrb.mxu1 %v9956_v58 }
 0x63a   : > { %6941 = vmatpush.bf16.msrb.mxu0 %v9864_v61  ;;  %6954 = vmatpush.bf16.msrb.mxu1 %v9868_v18 }
 0x63c   : > { %10067 = vmatmul.msk.bf16.vlgmr.msra.gmra.mxu0 %vm1519_vm2, %v12406_v30  ;;  %10068 = vmatmul.msk.bf16.vlgmr.msra.gmra.mxu1 %vm1519_vm2, %v12406_v30 }
 0x63d   : > { %10073 = vmatmul.msk.bf16.vlgmr.msrb.gmra.mxu2 %vm1519_vm2, %v12406_v30  ;;  %10074 = vmatmul.msk.bf16.vlgmr.msrb.gmra.mxu3 %vm1519_vm2, %v12406_v30 }
 0x64c   : > { %10071 = vmatmul.msk.bf16.vlgmr.msrb.gmra.mxu0 %vm1519_vm2, %v12406_v30  ;;  %10072 = vmatmul.msk.bf16.vlgmr.msrb.gmra.mxu1 %vm1519_vm2, %v12406_v30 }
 0x679   : > { %v6709_v63 = vpop.f32.mrf.mxu0  ;;  %v6722_v23 = vpop.f32.mrf.mxu1 }
 0x67a   : > { %v7140_v0 = vrot.slane %v6709_v63, 5  ;;  %v7141_v39 = vrot.slane %v6722_v23, 5 }
 0x67c   : > { %v7231_v5 = vsel %vm7229_vm4, %v12135_v24, %v7141_v39  ;;  %v7230_v30 = vsel %vm7229_vm4, %v12132_v36, %v7140_v0 }
 0x67d   : > { %v7274_v8 = vrot.slane %v7231_v5, 4 }
 0x67f   : > { %v7286_v1 = vsel %vm7285_vm5, %v7230_v30, %v7274_v8 }
 0x680   : > { %7308 = vst [vmem:[%s12559_s28] sm:$0xff] %v7286_v1  ;;  %v6761_v53 = vpop.f32.mrf.mxu2  ;;  %v6774_v43 = vpop.f32.mrf.mxu3 }
 0x681   : > { %v7144_v47 = vrot.slane %v6761_v53, 5  ;;  %v7145_v31 = vrot.slane %v6774_v43, 5  ;;  %v6711_v24 = vpop.f32.mrf.mxu0  ;;  %v6724_v11 = vpop.f32.mrf.mxu1 }
 0x683   : > { %v7235_v29 = vsel %vm7229_vm4, %v12120_v21, %v7145_v31  ;;  %v7234_v19 = vsel %vm7229_vm4, %v12117_v49, %v7144_v47 }
 0x684   : > { %v7276_v3 = vrot.slane %v7235_v29, 4 }
 0x686   : > { %v7288_v13 = vsel %vm7285_vm5, %v7234_v19, %v7276_v3 }
 0x687   : > { %7310 = vst [vmem:[%s12559_s28 + $0x10] sm:$0xff] %v7288_v13 }
 0x688   : > { %v6763_v36 = vpop.f32.mrf.mxu2  ;;  %v6776_v7 = vpop.f32.mrf.mxu3 }
 0x689   : > { %v6735_v25 = vpop.f32.mrf.mxu0  ;;  %v6748_v45 = vpop.f32.mrf.mxu1 }
 0x68a   : > { %v7142_v16 = vrot.slane %v6735_v25, 5  ;;  %v7143_v9 = vrot.slane %v6748_v45, 5 }
 0x68c   : > { %v7233_v52 = vsel %vm7229_vm4, %v12181_v32, %v7143_v9  ;;  %v7232_v21 = vsel %vm7229_vm4, %v12178_v28, %v7142_v16 }
 0x68d   : > { %v7275_v26 = vrot.slane %v7233_v52, 4 }
 0x68f   : > { %v7287_v10 = vsel %vm7285_vm5, %v7232_v21, %v7275_v26 }
 0x690   : > { %7309 = vst [vmem:[%s12559_s28 + $0x8] sm:$0xff] %v7287_v10  ;;  %v6813_v49 = vpop.f32.mrf.mxu2  ;;  %v6826_v46 = vpop.f32.mrf.mxu3 }
 0x691   : > { %v7148_v54 = vrot.slane %v6813_v49, 5  ;;  %v7149_v41 = vrot.slane %v6826_v46, 5  ;;  %v6737_v2 = vpop.f32.mrf.mxu0  ;;  %v6750_v56 = vpop.f32.mrf.mxu1 }
 0x693   : > { %v7239_v55 = vsel %vm7229_vm4, %v12164_v62, %v7149_v41  ;;  %v7238_v32 = vsel %vm7229_vm4, %v12161_v17, %v7148_v54 }
 0x694   : > { %v7278_v14 = vrot.slane %v7239_v55, 4 }
 0x696   : > { %v7290_v15 = vsel %vm7285_vm5, %v7238_v32, %v7278_v14 }
 0x697   : > { %7312 = vst [vmem:[%s12559_s28 + $0x20] sm:$0xff] %v7290_v15 }
 0x698   : > { %v6815_v28 = vpop.f32.mrf.mxu2  ;;  %v6828_v33 = vpop.f32.mrf.mxu3 }
 0x699   : > { %v6787_v40 = vpop.f32.mrf.mxu0  ;;  %v6800_v58 = vpop.f32.mrf.mxu1 }
 0x69a   : > { %v7146_v59 = vrot.slane %v6787_v40, 5  ;;  %v7147_v60 = vrot.slane %v6800_v58, 5 }
 0x69c   : > { %v7237_v38 = vsel %vm7229_vm4, %v12222_v27, %v7147_v60  ;;  %v7236_v62 = vsel %vm7229_vm4, %v12219_v20, %v7146_v59 }
 0x69d   : > { %v7277_v42 = vrot.slane %v7237_v38, 4 }
 0x69f   : > { %v7289_v61 = vsel %vm7285_vm5, %v7236_v62, %v7277_v42 }
 0x6a0   : > { %7311 = vst [vmem:[%s12559_s28 + $0x18] sm:$0xff] %v7289_v61  ;;  %v6865_v17 = vpop.f32.mrf.mxu2  ;;  %v6878_v18 = vpop.f32.mrf.mxu3 }
 0x6a1   : > { %v7152_v63 = vrot.slane %v6865_v17, 5  ;;  %v7153_v23 = vrot.slane %v6878_v18, 5  ;;  %v6789_v0 = vpop.f32.mrf.mxu0  ;;  %v6802_v39 = vpop.f32.mrf.mxu1 }
 0x6a3   : > { %v7243_v5 = vsel %vm7229_vm4, %v12210_v4, %v7153_v23  ;;  %v7242_v27 = vsel %vm7229_vm4, %v12207_v6, %v7152_v63 }
 0x6a4   : > { %v7280_v8 = vrot.slane %v7243_v5, 4 }
 0x6a6   : > { %v7292_v30 = vsel %vm7285_vm5, %v7242_v27, %v7280_v8 }
 0x6a7   : > { %7314 = vst [vmem:[%s12559_s28 + $0x30] sm:$0xff] %v7292_v30 }
 0x6a8   : > { %v6867_v20 = vpop.f32.mrf.mxu2  ;;  %v6880_v1 = vpop.f32.mrf.mxu3 }
 0x6a9   : > { %v6839_v53 = vpop.f32.mrf.mxu0  ;;  %v6852_v43 = vpop.f32.mrf.mxu1 }
 0x6aa   : > { %v7150_v47 = vrot.slane %v6839_v53, 5  ;;  %v7151_v31 = vrot.slane %v6852_v43, 5 }
 0x6ac   : > { %v7241_v24 = vsel %vm7229_vm4, %v12259_v57, %v7151_v31  ;;  %v7240_v4 = vsel %vm7229_vm4, %v12256_v22, %v7150_v47 }
 0x6ad   : > { %v7279_v11 = vrot.slane %v7241_v24, 4 }
 0x6af   : > { %v7291_v29 = vsel %vm7285_vm5, %v7240_v4, %v7279_v11 }
 0x6b0   : > { %7313 = vst [vmem:[%s12559_s28 + $0x28] sm:$0xff] %v7291_v29  ;;  %v6917_v6 = vpop.f32.mrf.mxu2  ;;  %v6930_v3 = vpop.f32.mrf.mxu3 }
 0x6b1   : > { %v7156_v19 = vrot.slane %v6917_v6, 5  ;;  %v7157_v13 = vrot.slane %v6930_v3, 5  ;;  %v6841_v36 = vpop.f32.mrf.mxu0  ;;  %v6854_v7 = vpop.f32.mrf.mxu1 }
 0x6b3   : > { %v7247_v25 = vsel %vm7229_vm4, %v12248_v37, %v7157_v13  ;;  %v7246_v57 = vsel %vm7229_vm4, %v12245_v34, %v7156_v19 }
 0x6b4   : > { %v7282_v45 = vrot.slane %v7247_v25, 4 }
 0x6b6   : > { %v7294_v16 = vsel %vm7285_vm5, %v7246_v57, %v7282_v45 }
 0x6b7   : > { %7316 = vst [vmem:[%s12559_s28 + $0x40] sm:$0xff] %v7294_v16 }
 0x6b8   : > { %v6919_v22 = vpop.f32.mrf.mxu2  ;;  %v6932_v9 = vpop.f32.mrf.mxu3 }
 0x6b9   : > { %v6891_v52 = vpop.f32.mrf.mxu0  ;;  %v6904_v26 = vpop.f32.mrf.mxu1 }
 0x6ba   : > { %v7154_v21 = vrot.slane %v6891_v52, 5  ;;  %v7155_v10 = vrot.slane %v6904_v26, 5 }
 0x6bc   : > { %v7245_v49 = vsel %vm7229_vm4, %v12295_v51, %v7155_v10  ;;  %v7244_v37 = vsel %vm7229_vm4, %v12292_v44, %v7154_v21 }
 0x6bd   : > { %v7281_v46 = vrot.slane %v7245_v49, 4 }
 0x6bf   : > { %v7293_v54 = vsel %vm7285_vm5, %v7244_v37, %v7281_v46 }
 0x6c0   : > { %7315 = vst [vmem:[%s12559_s28 + $0x38] sm:$0xff] %v7293_v54  ;;  %v6969_v34 = vpop.f32.mrf.mxu2  ;;  %v6982_v41 = vpop.f32.mrf.mxu3 }
 0x6c1   : > { %v7160_v2 = vrot.slane %v6969_v34, 5  ;;  %v7161_v56 = vrot.slane %v6982_v41, 5  ;;  %v6893_v55 = vpop.f32.mrf.mxu0  ;;  %v6906_v14 = vpop.f32.mrf.mxu1 }
 0x6c3   : > { %v7251_v32 = vsel %vm7229_vm4, %v12282_v12, %v7161_v56  ;;  %v7250_v44 = vsel %vm7229_vm4, %v12279_v50, %v7160_v2 }
 0x6c4   : > { %v7284_v51 = vrot.slane %v7251_v32, 4 }
 0x6c6   : > { %v7296_v15 = vsel %vm7285_vm5, %v7250_v44, %v7284_v51 }
 0x6c7   : > { %7320 = vst.msk [vmem:[%s12559_s28 + $0x50] sm:$0xff] %vm7319_vm7, %v7296_v15 }
 0x6c8   : > { %v6971_v28 = vpop.f32.mrf.mxu2  ;;  %v6984_v33 = vpop.f32.mrf.mxu3 }
 0x6c9   : > { %v6943_v40 = vpop.f32.mrf.mxu0  ;;  %v6956_v58 = vpop.f32.mrf.mxu1 }
 0x6ca   : > { %v7158_v59 = vrot.slane %v6943_v40, 5  ;;  %v7159_v60 = vrot.slane %v6956_v58, 5 }
 0x6cc   : > { %v7249_v38 = vsel %vm7229_vm4, %v12315_v48, %v7159_v60  ;;  %v7248_v42 = vsel %vm7229_vm4, %v12312_v35, %v7158_v59 }
 0x6cd   : > { %v7283_v12 = vrot.slane %v7249_v38, 4 }
 0x6cf   : > { %v7295_v62 = vsel %vm7285_vm5, %v7248_v42, %v7283_v12 }
 0x6d0   : > { %7317 = vst [vmem:[%s12559_s28 + $0x48] sm:$0xff] %v7295_v62 }
 0x6d1   : > { %v6945_v50 = vpop.f32.mrf.mxu0  ;;  %v6958_v61 = vpop.f32.mrf.mxu1 }
 0x6d2 PF: > { %s13_s12 = sadd.s32 1, %s10622_s12  }
 0x6d3   : > { %p10_p4 = scmp.ge.s32.totalorder %s13_s12, 4  }
 0x6d5   :  { %12 = sbr.rel (!%p10_p4) target bundleno = 1 (0x1), region = 78 }

// kernel: mpacv_forward.5
= control target key start
LH: loop header
LB: loop body
LE: loop exit
PB: predicated region body
PF: predicated region fallthrough
CT: control target
= control target key end

     0   :  { %s2161_s9 = smov 0   ;;  %s2921_s0 = inlined_call_operand.vmem [shape: f32[8,300], index: 0, kind: input, shape index: {}]   ;;  %s2922_s1 = inlined_call_operand.vmem [shape: f32[16,300,338], index: 1, kind: input, shape index: {}]   ;;  %s2923_s2 = inlined_call_operand.vmem [shape: f32[64,338], index: 2, kind: output, shape index: {}]  }
   0x1 LB: > { %s1736_s10 = sadd.s32 4294967295, %s2143_s9   ;;  %p1740_p0 = scmp.ge.s32.totalorder %s2143_s9, 1  ;;  %s2143_s9 = sphi %s2161_s9, %s12_s9  }
   0x2   : > { %p114_p1 = scmp.lt.s32.totalorder %s2143_s9, 5 }
   0x4   : > { %p115_p2 = pnand %p1740_p0, %p114_p1 }
   0x5   : > { %s1741_s11 = sshll.u32 (!%p115_p2), %s1736_s10, 2  ;;  %s1743_s28 = sshll.u32 (!%p115_p2), %s1736_s10, 1 }
   0x6   : > { %118 = sbr.rel (%p115_p2) target bundleno = 673 (0x2a1), region = 28  ;;  %p139_p3 = scmp.lt.s32.totalorder (!%p115_p2), %s1741_s11, 15 }
   0x7   : > { %p146_p4 = scmp.lt.s32.totalorder (!%p115_p2), %s1743_s28, 7 }
   0xb   : > { %s2925_s11 = smov (!%p139_p3, %s1741_s11), 15  ;;  %vm273_vm0 = vcmask 1043456   ;;  %vm269_vm1 = vcmask 359424   ;;  %vm463_vm2 = vcmask 1040384   ;;  %vm467_vm3 = vcmask 663552   ;;  %s2927_s28 = smov (!%p146_p4, %s1743_s28), 7 }
   0xc   : > { %s2113_s12 = smul.u32 912, %s2925_s11  ;;  %vm1627_vm8 = vcmask 1041408   ;;  %vm1631_vm11 = vcmask 1042432   ;;  %vm1638_vm12 = vcmask 1044480   ;;  %vm1642_vm14 = vcmask 1045504  }
   0xd   : > { %vm1646_vm15 = vcmask 1046528   ;;  %s2114_s29 = smul.u32 24, %s2927_s28 }
   0xe   : > { %s2174_s15 = scalar_lea.vmem %s2922_s1, %s2113_s12 }
   0xf   : > { %v266_v0 = vld [vmem:[%s2174_s15 + $0x378] sm:$0xf]  ;;  %v201_v1 = vld [vmem:[%s2174_s15 + $0x170] sm:$0xff]  ;;  %v263_v2 = vld [vmem:[%s2174_s15 + $0x360] sm:$0xff]  ;;  %s2870_s4 = scalar_lea.vmem %s2923_s2, %s2114_s29 }
  0x10   : > { %1745 = vmatpush.msk.msra.mxu2 %vm273_vm0, %v266_v0  ;;  %343 = vmatpush.msra.mxu3 %v201_v1  ;;  %v198_v3 = vld [vmem:[%s2174_s15 + $0x158] sm:$0xff]  ;;  %v260_v4 = vld [vmem:[%s2174_s15 + $0x348] sm:$0xff]  ;;  %v195_v5 = vld [vmem:[%s2174_s15 + $0x140] sm:$0xff] }
  0x11   : > { %v200_v6 = vld [vmem:[%s2174_s15 + $0x168] sm:$0xff]  ;;  %v197_v8 = vld [vmem:[%s2174_s15 + $0x150] sm:$0xff]  ;;  %v194_v12 = vld [vmem:[%s2174_s15 + $0x138] sm:$0xff] }
  0x12   : > { %v248_v7 = vld [vmem:[%s2174_s15 + $0x2e8] sm:$0xff]  ;;  %334 = vmatpush.msra.mxu2 %v263_v2  ;;  %344 = vmatpush.msra.mxu3 %v198_v3  ;;  %v245_v9 = vld [vmem:[%s2174_s15 + $0x2d0] sm:$0xff]  ;;  %v242_v13 = vld [vmem:[%s2174_s15 + $0x2b8] sm:$0xff] }
  0x13   : > { %283 = vmatpush.msra.mxu0 %v200_v6  ;;  %303 = vmatpush.msra.mxu1 %v248_v7  ;;  %v257_v10 = vld [vmem:[%s2174_s15 + $0x330] sm:$0xff]  ;;  %v192_v11 = vld [vmem:[%s2174_s15 + $0x128] sm:$0xff]  ;;  %v254_v14 = vld [vmem:[%s2174_s15 + $0x318] sm:$0xff] }
  0x14   : > { %335 = vmatpush.msra.mxu2 %v260_v4  ;;  %345 = vmatpush.msra.mxu3 %v195_v5  ;;  %v189_v15 = vld [vmem:[%s2174_s15 + $0x110] sm:$0xff]  ;;  %v191_v16 = vld [vmem:[%s2174_s15 + $0x120] sm:$0xff]  ;;  %v186_v19 = vld [vmem:[%s2174_s15 + $0xf8] sm:$0xff] }
  0x15   : > { %284 = vmatpush.msra.mxu0 %v197_v8  ;;  %304 = vmatpush.msra.mxu1 %v245_v9  ;;  %v239_v17 = vld [vmem:[%s2174_s15 + $0x2a0] sm:$0xff]  ;;  %v249_v20 = vld [vmem:[%s2174_s15 + $0x2f0] sm:$0xff]  ;;  %v188_v21 = vld [vmem:[%s2174_s15 + $0x108] sm:$0xff] }
  0x16   : > { %336 = vmatpush.msra.mxu2 %v257_v10  ;;  %346 = vmatpush.msra.mxu3 %v192_v11  ;;  %v251_v18 = vld [vmem:[%s2174_s15 + $0x300] sm:$0xff]  ;;  %v236_v23 = vld [vmem:[%s2174_s15 + $0x288] sm:$0xff]  ;;  %v246_v24 = vld [vmem:[%s2174_s15 + $0x2d8] sm:$0xff] }
  0x17   : > { %285 = vmatpush.msra.mxu0 %v194_v12  ;;  %305 = vmatpush.msra.mxu1 %v242_v13  ;;  %v183_v22 = vld [vmem:[%s2174_s15 + $0xe0] sm:$0xff]  ;;  %v185_v25 = vld [vmem:[%s2174_s15 + $0xf0] sm:$0xff]  ;;  %v180_v26 = vld [vmem:[%s2174_s15 + $0xc8] sm:$0xff] }
  0x18   : > { %337 = vmatpush.msra.mxu2 %v254_v14  ;;  %347 = vmatpush.msra.mxu3 %v189_v15  ;;  %v233_v27 = vld [vmem:[%s2174_s15 + $0x270] sm:$0xff]  ;;  %v243_v28 = vld [vmem:[%s2174_s15 + $0x2c0] sm:$0xff]  ;;  %v182_v29 = vld [vmem:[%s2174_s15 + $0xd8] sm:$0xff] }
  0x19   : > { %286 = vmatpush.msra.mxu0 %v191_v16  ;;  %306 = vmatpush.msra.mxu1 %v239_v17  ;;  %v177_v30 = vld [vmem:[%s2174_s15 + $0xb0] sm:$0xff]  ;;  %v230_v31 = vld [vmem:[%s2174_s15 + $0x258] sm:$0xff]  ;;  %v240_v32 = vld [vmem:[%s2174_s15 + $0x2a8] sm:$0xff] }
  0x1a   : > { %338 = vmatpush.msra.mxu2 %v251_v18  ;;  %348 = vmatpush.msra.mxu3 %v186_v19  ;;  %v179_v33 = vld [vmem:[%s2174_s15 + $0xc0] sm:$0xff]  ;;  %v174_v34 = vld [vmem:[%s2174_s15 + $0x98] sm:$0xff]  ;;  %v237_v36 = vld [vmem:[%s2174_s15 + $0x290] sm:$0xff] }
  0x1b   : > { %287 = vmatpush.msra.mxu0 %v188_v21  ;;  %307 = vmatpush.msra.mxu1 %v236_v23  ;;  %v227_v35 = vld [vmem:[%s2174_s15 + $0x240] sm:$0xff]  ;;  %v176_v37 = vld [vmem:[%s2174_s15 + $0xa8] sm:$0xff]  ;;  %v234_v40 = vld [vmem:[%s2174_s15 + $0x278] sm:$0xff] }
  0x1c   : > { %363 = vmatpush.msrb.mxu2 %v249_v20  ;;  %349 = vmatpush.msra.mxu3 %v183_v22  ;;  %v171_v38 = vld [vmem:[%s2174_s15 + $0x80] sm:$0xff]  ;;  %v224_v39 = vld [vmem:[%s2174_s15 + $0x228] sm:$0xff]  ;;  %v173_v41 = vld [vmem:[%s2174_s15 + $0x90] sm:$0xff] }
  0x1d   : > { %288 = vmatpush.msra.mxu0 %v185_v25  ;;  %308 = vmatpush.msra.mxu1 %v233_v27  ;;  %v168_v42 = vld [vmem:[%s2174_s15 + $0x68] sm:$0xff]  ;;  %v221_v43 = vld [vmem:[%s2174_s15 + $0x210] sm:$0xff]  ;;  %v231_v44 = vld [vmem:[%s2174_s15 + $0x260] sm:$0xff] }
  0x1e   : > { %364 = vmatpush.msrb.mxu2 %v246_v24  ;;  %350 = vmatpush.msra.mxu3 %v180_v26  ;;  %v170_v45 = vld [vmem:[%s2174_s15 + $0x78] sm:$0xff]  ;;  %v165_v46 = vld [vmem:[%s2174_s15 + $0x50] sm:$0xff]  ;;  %v228_v48 = vld [vmem:[%s2174_s15 + $0x248] sm:$0xff] }
  0x1f   : > { %289 = vmatpush.msra.mxu0 %v182_v29  ;;  %309 = vmatpush.msra.mxu1 %v230_v31  ;;  %v218_v47 = vld [vmem:[%s2174_s15 + $0x1f8] sm:$0xff]  ;;  %v167_v49 = vld [vmem:[%s2174_s15 + $0x60] sm:$0xff]  ;;  %v225_v52 = vld [vmem:[%s2174_s15 + $0x230] sm:$0xff] }
  0x20   : > { %365 = vmatpush.msrb.mxu2 %v243_v28  ;;  %351 = vmatpush.msra.mxu3 %v177_v30  ;;  %v162_v50 = vld [vmem:[%s2174_s15 + $0x38] sm:$0xff]  ;;  %v215_v51 = vld [vmem:[%s2174_s15 + $0x1e0] sm:$0xff]  ;;  %v164_v53 = vld [vmem:[%s2174_s15 + $0x48] sm:$0xff] }
  0x21   : > { %290 = vmatpush.msra.mxu0 %v179_v33  ;;  %310 = vmatpush.msra.mxu1 %v227_v35  ;;  %v159_v54 = vld [vmem:[%s2174_s15 + $0x20] sm:$0xff]  ;;  %v212_v55 = vld [vmem:[%s2174_s15 + $0x1c8] sm:$0xff]  ;;  %v222_v56 = vld [vmem:[%s2174_s15 + $0x218] sm:$0xff] }
  0x22   : > { %366 = vmatpush.msrb.mxu2 %v240_v32  ;;  %352 = vmatpush.msra.mxu3 %v174_v34  ;;  %v161_v57 = vld [vmem:[%s2174_s15 + $0x30] sm:$0xff]  ;;  %v156_v58 = vld [vmem:[%s2174_s15 + $0x8] sm:$0xff]  ;;  %v219_v60 = vld [vmem:[%s2174_s15 + $0x200] sm:$0xff] }
  0x23   : > { %291 = vmatpush.msra.mxu0 %v176_v37  ;;  %311 = vmatpush.msra.mxu1 %v224_v39  ;;  %v209_v59 = vld [vmem:[%s2174_s15 + $0x1b0] sm:$0xff]  ;;  %v267_v61 = vld [vmem:[%s2174_s15 + $0x380] sm:$0xf]  ;;  %v158_v62 = vld [vmem:[%s2174_s15 + $0x18] sm:$0xff] }
  0x24   : > { %367 = vmatpush.msrb.mxu2 %v237_v36  ;;  %353 = vmatpush.msra.mxu3 %v171_v38  ;;  %v206_v63 = vld [vmem:[%s2174_s15 + $0x198] sm:$0xff]  ;;  %v216_v0 = vld [vmem:[%s2174_s15 + $0x1e8] sm:$0xff]  ;;  %v2247_v2 = vld [vmem:[%s2921_s0 + $0x10] sm:$0xff] }
  0x25   : > { %292 = vmatpush.msra.mxu0 %v173_v41  ;;  %312 = vmatpush.msra.mxu1 %v221_v43  ;;  %v264_v1 = vld [vmem:[%s2174_s15 + $0x368] sm:$0xff]  ;;  %v155_v3 = vld [vmem:[%s2174_s15] sm:$0xff]  ;;  %v213_v4 = vld [vmem:[%s2174_s15 + $0x1d0] sm:$0xff] }
  0x26   : > { %368 = vmatpush.msrb.mxu2 %v234_v40  ;;  %354 = vmatpush.msra.mxu3 %v168_v42  ;;  %v261_v5 = vld [vmem:[%s2174_s15 + $0x350] sm:$0xff]  ;;  %v203_v6 = vld [vmem:[%s2174_s15 + $0x180] sm:$0xff]  ;;  %v210_v8 = vld [vmem:[%s2174_s15 + $0x1b8] sm:$0xff] }
  0x27   : > { %293 = vmatpush.msra.mxu0 %v170_v45  ;;  %313 = vmatpush.msra.mxu1 %v218_v47  ;;  %v2256_v7 = vld [vmem:[%s2921_s0] sm:$0xff]  ;;  %v258_v9 = vld [vmem:[%s2174_s15 + $0x338] sm:$0xff]  ;;  %v268_v11 = vld [vmem:[%s2174_s15 + $0x388] sm:$0xf] }
  0x28   : > { %369 = vmatpush.msrb.mxu2 %v231_v44  ;;  %355 = vmatpush.msra.mxu3 %v165_v46  ;;  %v202_v10 = vld [vmem:[%s2174_s15 + $0x178] sm:$0xff]  ;;  %v207_v12 = vld [vmem:[%s2174_s15 + $0x1a0] sm:$0xff]  ;;  %v265_v15 = vld [vmem:[%s2174_s15 + $0x370] sm:$0xff] }
  0x29   : > { %294 = vmatpush.msra.mxu0 %v167_v49  ;;  %314 = vmatpush.msra.mxu1 %v215_v51  ;;  %v255_v13 = vld [vmem:[%s2174_s15 + $0x320] sm:$0xff]  ;;  %v204_v16 = vld [vmem:[%s2174_s15 + $0x188] sm:$0xff]  ;;  %v262_v19 = vld [vmem:[%s2174_s15 + $0x358] sm:$0xff] }
  0x2a   : > { %370 = vmatpush.msrb.mxu2 %v228_v48  ;;  %356 = vmatpush.msra.mxu3 %v162_v50  ;;  %v199_v14 = vld [vmem:[%s2174_s15 + $0x160] sm:$0xff]  ;;  %v252_v17 = vld [vmem:[%s2174_s15 + $0x308] sm:$0xff]  ;;  %v250_v21 = vld [vmem:[%s2174_s15 + $0x2f8] sm:$0xff] }
  0x2b   : > { %295 = vmatpush.msra.mxu0 %v164_v53  ;;  %315 = vmatpush.msra.mxu1 %v212_v55  ;;  %v196_v18 = vld [vmem:[%s2174_s15 + $0x148] sm:$0xff]  ;;  %v1796_v22 = vld [vmem:[%s2174_s15 + $0x4f8] sm:$0xff]  ;;  %v193_v23 = vld [vmem:[%s2174_s15 + $0x130] sm:$0xff] }
  0x2c   : > { %371 = vmatpush.msrb.mxu2 %v225_v52  ;;  %357 = vmatpush.msra.mxu3 %v159_v54  ;;  %v2277_v20 = vld [vmem:[%s2921_s0 + $0x8] sm:$0xff]  ;;  %v259_v24 = vld [vmem:[%s2174_s15 + $0x340] sm:$0xff]  ;;  %v190_v27 = vld [vmem:[%s2174_s15 + $0x118] sm:$0xff] }
  0x2d   : > { %296 = vmatpush.msra.mxu0 %v161_v57  ;;  %316 = vmatpush.msra.mxu1 %v209_v59  ;;  %v247_v25 = vld [vmem:[%s2174_s15 + $0x2e0] sm:$0xff]  ;;  %v256_v28 = vld [vmem:[%s2174_s15 + $0x328] sm:$0xff]  ;;  %v253_v32 = vld [vmem:[%s2174_s15 + $0x310] sm:$0xff] }
  0x2e   : > { %372 = vmatpush.msrb.mxu2 %v222_v56  ;;  %358 = vmatpush.msra.mxu3 %v156_v58  ;;  %v1793_v26 = vld [vmem:[%s2174_s15 + $0x4e0] sm:$0xff]  ;;  %v244_v29 = vld [vmem:[%s2174_s15 + $0x2c8] sm:$0xff]  ;;  %v241_v33 = vld [vmem:[%s2174_s15 + $0x2b0] sm:$0xff] }
  0x2f   : > { %297 = vmatpush.msra.mxu0 %v158_v62  ;;  %317 = vmatpush.msra.mxu1 %v206_v63  ;;  %v1790_v30 = vld [vmem:[%s2174_s15 + $0x4c8] sm:$0xff]  ;;  %v187_v31 = vld [vmem:[%s2174_s15 + $0x100] sm:$0xff]  ;;  %v1787_v34 = vld [vmem:[%s2174_s15 + $0x4b0] sm:$0xff] }
  0x30   : > { %373 = vmatpush.msrb.mxu2 %v219_v60  ;;  %1747 = vmatpush.msk.msrb.mxu3 %vm273_vm0, %v267_v61  ;;  %v1844_v35 = vld [vmem:[%s2174_s15 + $0x678] sm:$0xff]  ;;  %v184_v36 = vld [vmem:[%s2174_s15 + $0xe8] sm:$0xff]  ;;  %v1841_v39 = vld [vmem:[%s2174_s15 + $0x660] sm:$0xff] }
  0x31   : > { %1746 = vmatmul.msk.f32.vlgmr.msra.gmra.mxu2 %vm269_vm1, %v2247_v2  ;;  %298 = vmatpush.msra.mxu0 %v155_v3  ;;  %v238_v37 = vld [vmem:[%s2174_s15 + $0x298] sm:$0xff]  ;;  %v181_v40 = vld [vmem:[%s2174_s15 + $0xd0] sm:$0xff]  ;;  %v235_v41 = vld [vmem:[%s2174_s15 + $0x280] sm:$0xff] }
  0x32   : > { %374 = vmatpush.msrb.mxu2 %v216_v0  ;;  %394 = vmatpush.msrb.mxu3 %v264_v1  ;;  %v1784_v38 = vld [vmem:[%s2174_s15 + $0x498] sm:$0xff]  ;;  %v1781_v42 = vld [vmem:[%s2174_s15 + $0x480] sm:$0xff]  ;;  %v1838_v43 = vld [vmem:[%s2174_s15 + $0x648] sm:$0xff] }
  0x33   : > { %318 = vmatpush.msra.mxu1 %v203_v6  ;;  %359 = vmatmul.f32.vlgmr.msra.gmra.mxu3 %v2256_v7  ;;  %v178_v44 = vld [vmem:[%s2174_s15 + $0xb8] sm:$0xff]  ;;  %v232_v45 = vld [vmem:[%s2174_s15 + $0x268] sm:$0xff]  ;;  %v1835_v47 = vld [vmem:[%s2174_s15 + $0x630] sm:$0xff] }
  0x34   : > { %375 = vmatpush.msrb.mxu2 %v213_v4  ;;  %395 = vmatpush.msrb.mxu3 %v261_v5  ;;  %v1778_v46 = vld [vmem:[%s2174_s15 + $0x468] sm:$0xff]  ;;  %v175_v48 = vld [vmem:[%s2174_s15 + $0xa0] sm:$0xff]  ;;  %v229_v49 = vld [vmem:[%s2174_s15 + $0x250] sm:$0xff] }
  0x35   : > { %403 = vmatpush.msrb.mxu1 %v202_v10  ;;  %1749 = vmatpush.msk.msrb.mxu0 %vm273_vm0, %v268_v11  ;;  %v1775_v50 = vld [vmem:[%s2174_s15 + $0x450] sm:$0xff]  ;;  %v1832_v51 = vld [vmem:[%s2174_s15 + $0x618] sm:$0xff]  ;;  %v172_v52 = vld [vmem:[%s2174_s15 + $0x88] sm:$0xff] }
  0x36   : > { %376 = vmatpush.msrb.mxu2 %v210_v8  ;;  %396 = vmatpush.msrb.mxu3 %v258_v9  ;;  %v226_v53 = vld [vmem:[%s2174_s15 + $0x238] sm:$0xff]  ;;  %v1829_v55 = vld [vmem:[%s2174_s15 + $0x600] sm:$0xff]  ;;  %v169_v56 = vld [vmem:[%s2174_s15 + $0x70] sm:$0xff] }
  0x37   : > { %404 = vmatpush.msrb.mxu1 %v199_v14  ;;  %454 = vmatpush.msrb.mxu0 %v265_v15  ;;  %v1772_v54 = vld [vmem:[%s2174_s15 + $0x438] sm:$0xff]  ;;  %v223_v57 = vld [vmem:[%s2174_s15 + $0x220] sm:$0xff]  ;;  %v1826_v59 = vld [vmem:[%s2174_s15 + $0x5e8] sm:$0xff] }
  0x38   : > { %377 = vmatpush.msrb.mxu2 %v207_v12  ;;  %397 = vmatpush.msrb.mxu3 %v255_v13  ;;  %v1769_v58 = vld [vmem:[%s2174_s15 + $0x420] sm:$0xff]  ;;  %v166_v60 = vld [vmem:[%s2174_s15 + $0x58] sm:$0xff]  ;;  %v220_v61 = vld [vmem:[%s2174_s15 + $0x208] sm:$0xff] }
  0x39   : > { %405 = vmatpush.msrb.mxu1 %v196_v18  ;;  %455 = vmatpush.msrb.mxu0 %v262_v19  ;;  %v1766_v62 = vld [vmem:[%s2174_s15 + $0x408] sm:$0xff]  ;;  %v1823_v63 = vld [vmem:[%s2174_s15 + $0x5d0] sm:$0xff]  ;;  %v163_v0 = vld [vmem:[%s2174_s15 + $0x40] sm:$0xff] }
  0x3a   : > { %378 = vmatpush.msrb.mxu2 %v204_v16  ;;  %398 = vmatpush.msrb.mxu3 %v252_v17  ;;  %v217_v1 = vld [vmem:[%s2174_s15 + $0x1f0] sm:$0xff]  ;;  %v1820_v4 = vld [vmem:[%s2174_s15 + $0x5b8] sm:$0xff]  ;;  %v160_v5 = vld [vmem:[%s2174_s15 + $0x28] sm:$0xff] }
  0x3b   : > { %379 = vmatmul.f32.vlgmr.msrb.gmra.mxu2 %v2277_v20  ;;  %406 = vmatpush.msrb.mxu1 %v193_v23  ;;  %v1763_v3 = vld [vmem:[%s2174_s15 + $0x3f0] sm:$0xff]  ;;  %v214_v6 = vld [vmem:[%s2174_s15 + $0x1d8] sm:$0xff]  ;;  %v1817_v9 = vld [vmem:[%s2174_s15 + $0x5a0] sm:$0xff] }
  0x3c   : > { %423 = vmatpush.msra.mxu3 %v250_v21  ;;  %632 = vmatpush.msra.mxu2 %v1796_v22  ;;  %v1760_v8 = vld [vmem:[%s2174_s15 + $0x3d8] sm:$0xff]  ;;  %v157_v10 = vld [vmem:[%s2174_s15 + $0x10] sm:$0xff]  ;;  %v211_v11 = vld [vmem:[%s2174_s15 + $0x1c0] sm:$0xff] }
  0x3d   : > { %456 = vmatpush.msrb.mxu0 %v259_v24  ;;  %1748 = vmatmul.msk.f32.vlgmr.msrb.gmra.mxu3 %vm269_vm1, %v2247_v2  ;;  %v1757_v12 = vld [vmem:[%s2174_s15 + $0x3c0] sm:$0xff]  ;;  %v1814_v13 = vld [vmem:[%s2174_s15 + $0x588] sm:$0xff]  ;;  %v1811_v17 = vld [vmem:[%s2174_s15 + $0x570] sm:$0xff] }
  0x3e   : > { %424 = vmatpush.msra.mxu3 %v247_v25  ;;  %633 = vmatpush.msra.mxu2 %v1793_v26  ;;  %v1862_v14 = vld [vmem:[%s2174_s15 + $0x708] sm:$0xf]  ;;  %v1859_v18 = vld [vmem:[%s2174_s15 + $0x6f0] sm:$0xff]  ;;  %v1808_v22 = vld [vmem:[%s2174_s15 + $0x558] sm:$0xff] }
  0x3f   : > { %407 = vmatpush.msrb.mxu1 %v190_v27  ;;  %457 = vmatpush.msrb.mxu0 %v256_v28  ;;  %v208_v15 = vld [vmem:[%s2174_s15 + $0x1a8] sm:$0xff]  ;;  %v205_v19 = vld [vmem:[%s2174_s15 + $0x190] sm:$0xff]  ;;  %v1856_v23 = vld [vmem:[%s2174_s15 + $0x6d8] sm:$0xff] }
  0x40   : > { %425 = vmatpush.msra.mxu3 %v244_v29  ;;  %634 = vmatpush.msra.mxu2 %v1790_v30  ;;  %v1754_v16 = vld [vmem:[%s2174_s15 + $0x3a8] sm:$0xff]  ;;  %v1751_v21 = vld [vmem:[%s2174_s15 + $0x390] sm:$0xff]  ;;  %v1797_v25 = vld [vmem:[%s2174_s15 + $0x500] sm:$0xff] }
  0x41   : > { %408 = vmatpush.msrb.mxu1 %v187_v31  ;;  %458 = vmatpush.msrb.mxu0 %v253_v32  ;;  %v1863_v24 = vld [vmem:[%s2174_s15 + $0x710] sm:$0xf]  ;;  %v1805_v26 = vld [vmem:[%s2174_s15 + $0x540] sm:$0xff]  ;;  %v1860_v28 = vld [vmem:[%s2174_s15 + $0x6f8] sm:$0xff] }
  0x42   : > { %299 = vmatmul.f32.vlgmr.msra.gmra.mxu0 %v2256_v7  ;;  %319 = vmatmul.f32.vlgmr.msra.gmra.mxu1 %v2277_v20  ;;  %v1853_v27 = vld [vmem:[%s2174_s15 + $0x6c0] sm:$0xff]  ;;  %v1794_v29 = vld [vmem:[%s2174_s15 + $0x4e8] sm:$0xff] }
  0x43   : > { %426 = vmatpush.msra.mxu3 %v241_v33  ;;  %635 = vmatpush.msra.mxu2 %v1787_v34  ;;  %v1802_v30 = vld [vmem:[%s2174_s15 + $0x528] sm:$0xff]  ;;  %v1857_v32 = vld [vmem:[%s2174_s15 + $0x6e0] sm:$0xff]  ;;  %v1791_v33 = vld [vmem:[%s2174_s15 + $0x4d0] sm:$0xff] }
  0x44   : > { %652 = vmatpush.msra.mxu0 %v1844_v35  ;;  %409 = vmatpush.msrb.mxu1 %v184_v36  ;;  %v1850_v31 = vld [vmem:[%s2174_s15 + $0x6a8] sm:$0xff]  ;;  %v1799_v34 = vld [vmem:[%s2174_s15 + $0x510] sm:$0xff]  ;;  %v1788_v36 = vld [vmem:[%s2174_s15 + $0x4b8] sm:$0xff] }
  0x45   : > { %427 = vmatpush.msra.mxu3 %v238_v37  ;;  %636 = vmatpush.msra.mxu2 %v1784_v38  ;;  %v1847_v35 = vld [vmem:[%s2174_s15 + $0x690] sm:$0xff]  ;;  %v1845_v37 = vld [vmem:[%s2174_s15 + $0x680] sm:$0xff]  ;;  %v1854_v38 = vld [vmem:[%s2174_s15 + $0x6c8] sm:$0xff] }
  0x46   : > { %653 = vmatpush.msra.mxu0 %v1841_v39  ;;  %410 = vmatpush.msrb.mxu1 %v181_v40  ;;  %v1798_v39 = vld [vmem:[%s2174_s15 + $0x508] sm:$0xff]  ;;  %v1785_v40 = vld [vmem:[%s2174_s15 + $0x4a0] sm:$0xff] }
  0x47   : > { %428 = vmatpush.msra.mxu3 %v235_v41  ;;  %637 = vmatpush.msra.mxu2 %v1781_v42  ;;  %v1842_v41 = vld [vmem:[%s2174_s15 + $0x668] sm:$0xff]  ;;  %v1851_v42 = vld [vmem:[%s2174_s15 + $0x6b0] sm:$0xff] }
  0x48   : > { %654 = vmatpush.msra.mxu0 %v1838_v43  ;;  %411 = vmatpush.msrb.mxu1 %v178_v44  ;;  %v1795_v43 = vld [vmem:[%s2174_s15 + $0x4f0] sm:$0xff]  ;;  %v1782_v44 = vld [vmem:[%s2174_s15 + $0x488] sm:$0xff] }
  0x49   : > { %429 = vmatpush.msra.mxu3 %v232_v45  ;;  %638 = vmatpush.msra.mxu2 %v1778_v46  ;;  %v1839_v45 = vld [vmem:[%s2174_s15 + $0x650] sm:$0xff]  ;;  %v1848_v46 = vld [vmem:[%s2174_s15 + $0x698] sm:$0xff] }
  0x4a   : > { %655 = vmatpush.msra.mxu0 %v1835_v47  ;;  %412 = vmatpush.msrb.mxu1 %v175_v48  ;;  %v1792_v47 = vld [vmem:[%s2174_s15 + $0x4d8] sm:$0xff]  ;;  %v1846_v48 = vld [vmem:[%s2174_s15 + $0x688] sm:$0xff] }
  0x4b   : > { %430 = vmatpush.msra.mxu3 %v229_v49  ;;  %639 = vmatpush.msra.mxu2 %v1775_v50  ;;  %v1779_v49 = vld [vmem:[%s2174_s15 + $0x470] sm:$0xff]  ;;  %v1836_v50 = vld [vmem:[%s2174_s15 + $0x638] sm:$0xff] }
  0x4c   : > { %656 = vmatpush.msra.mxu0 %v1832_v51  ;;  %413 = vmatpush.msrb.mxu1 %v172_v52  ;;  %v1789_v51 = vld [vmem:[%s2174_s15 + $0x4c0] sm:$0xff]  ;;  %v1843_v52 = vld [vmem:[%s2174_s15 + $0x670] sm:$0xff] }
  0x4d   : > { %431 = vmatpush.msra.mxu3 %v226_v53  ;;  %640 = vmatpush.msra.mxu2 %v1772_v54  ;;  %v1776_v53 = vld [vmem:[%s2174_s15 + $0x458] sm:$0xff]  ;;  %v1833_v54 = vld [vmem:[%s2174_s15 + $0x620] sm:$0xff] }
  0x4e   : > { %657 = vmatpush.msra.mxu0 %v1829_v55  ;;  %414 = vmatpush.msrb.mxu1 %v169_v56  ;;  %v1786_v55 = vld [vmem:[%s2174_s15 + $0x4a8] sm:$0xff]  ;;  %v1840_v56 = vld [vmem:[%s2174_s15 + $0x658] sm:$0xff] }
  0x4f   : > { %432 = vmatpush.msra.mxu3 %v223_v57  ;;  %641 = vmatpush.msra.mxu2 %v1769_v58  ;;  %v1773_v57 = vld [vmem:[%s2174_s15 + $0x440] sm:$0xff]  ;;  %v1830_v58 = vld [vmem:[%s2174_s15 + $0x608] sm:$0xff] }
  0x50   : > { %658 = vmatpush.msra.mxu0 %v1826_v59  ;;  %415 = vmatpush.msrb.mxu1 %v166_v60  ;;  %v1783_v59 = vld [vmem:[%s2174_s15 + $0x490] sm:$0xff]  ;;  %v1837_v60 = vld [vmem:[%s2174_s15 + $0x640] sm:$0xff] }
  0x51   : > { %433 = vmatpush.msra.mxu3 %v220_v61  ;;  %642 = vmatpush.msra.mxu2 %v1766_v62  ;;  %v1770_v61 = vld [vmem:[%s2174_s15 + $0x428] sm:$0xff]  ;;  %v1827_v62 = vld [vmem:[%s2174_s15 + $0x5f0] sm:$0xff] }
  0x52   : > { %659 = vmatpush.msra.mxu0 %v1823_v63  ;;  %416 = vmatpush.msrb.mxu1 %v163_v0  ;;  %v1780_v63 = vld [vmem:[%s2174_s15 + $0x478] sm:$0xff]  ;;  %v1834_v0 = vld [vmem:[%s2174_s15 + $0x628] sm:$0xff] }
  0x53   : > { %434 = vmatpush.msra.mxu3 %v217_v1  ;;  %643 = vmatpush.msra.mxu2 %v1763_v3  ;;  %v1767_v1 = vld [vmem:[%s2174_s15 + $0x410] sm:$0xff]  ;;  %v1824_v3 = vld [vmem:[%s2174_s15 + $0x5d8] sm:$0xff] }
  0x54   : > { %660 = vmatpush.msra.mxu0 %v1820_v4  ;;  %417 = vmatpush.msrb.mxu1 %v160_v5  ;;  %v1777_v4 = vld [vmem:[%s2174_s15 + $0x460] sm:$0xff]  ;;  %v1831_v5 = vld [vmem:[%s2174_s15 + $0x610] sm:$0xff] }
  0x55   : > { %435 = vmatpush.msra.mxu3 %v214_v6  ;;  %644 = vmatpush.msra.mxu2 %v1760_v8  ;;  %v1764_v6 = vld [vmem:[%s2174_s15 + $0x3f8] sm:$0xff]  ;;  %v1821_v8 = vld [vmem:[%s2174_s15 + $0x5c0] sm:$0xff] }
  0x56   : > { %661 = vmatpush.msra.mxu0 %v1817_v9  ;;  %418 = vmatpush.msrb.mxu1 %v157_v10  ;;  %v1774_v9 = vld [vmem:[%s2174_s15 + $0x448] sm:$0xff]  ;;  %v1828_v10 = vld [vmem:[%s2174_s15 + $0x5f8] sm:$0xff] }
  0x57   : > { %436 = vmatpush.msra.mxu3 %v211_v11  ;;  %645 = vmatpush.msra.mxu2 %v1757_v12  ;;  %v1761_v11 = vld [vmem:[%s2174_s15 + $0x3e0] sm:$0xff]  ;;  %v1818_v12 = vld [vmem:[%s2174_s15 + $0x5a8] sm:$0xff] }
  0x58   : > { %662 = vmatpush.msra.mxu0 %v1814_v13  ;;  %1865 = vmatpush.msk.msra.mxu1 %vm273_vm0, %v1862_v14  ;;  %v1771_v13 = vld [vmem:[%s2174_s15 + $0x430] sm:$0xff]  ;;  %v1825_v14 = vld [vmem:[%s2174_s15 + $0x5e0] sm:$0xff] }
  0x59   : > { %437 = vmatpush.msra.mxu3 %v208_v15  ;;  %646 = vmatpush.msra.mxu2 %v1754_v16  ;;  %v1758_v15 = vld [vmem:[%s2174_s15 + $0x3c8] sm:$0xff]  ;;  %v1815_v16 = vld [vmem:[%s2174_s15 + $0x590] sm:$0xff] }
  0x5a   : > { %663 = vmatpush.msra.mxu0 %v1811_v17  ;;  %683 = vmatpush.msra.mxu1 %v1859_v18  ;;  %v1768_v17 = vld [vmem:[%s2174_s15 + $0x418] sm:$0xff]  ;;  %v1822_v18 = vld [vmem:[%s2174_s15 + $0x5c8] sm:$0xff] }
  0x5b   : > { %438 = vmatpush.msra.mxu3 %v205_v19  ;;  %647 = vmatpush.msra.mxu2 %v1751_v21  ;;  %v1755_v19 = vld [vmem:[%s2174_s15 + $0x3b0] sm:$0xff]  ;;  %v1812_v21 = vld [vmem:[%s2174_s15 + $0x578] sm:$0xff] }
  0x5c   : > { %664 = vmatpush.msra.mxu0 %v1808_v22  ;;  %684 = vmatpush.msra.mxu1 %v1856_v23  ;;  %v1765_v22 = vld [vmem:[%s2174_s15 + $0x400] sm:$0xff]  ;;  %v1819_v23 = vld [vmem:[%s2174_s15 + $0x5b0] sm:$0xff] }
  0x5d   : > { %439 = vmatmul.f32.vlgmr.msra.gmra.mxu3 %v2277_v20  ;;  %1867 = vmatpush.msk.msrb.mxu2 %vm273_vm0, %v1863_v24  ;;  %v1752_v24 = vld [vmem:[%s2174_s15 + $0x398] sm:$0xff] }
  0x5e   : > { %692 = vmatpush.msrb.mxu3 %v1797_v25  ;;  %665 = vmatpush.msra.mxu0 %v1805_v26  ;;  %v1809_v25 = vld [vmem:[%s2174_s15 + $0x560] sm:$0xff]  ;;  %v1762_v26 = vld [vmem:[%s2174_s15 + $0x3e8] sm:$0xff] }
  0x5f   : > { %685 = vmatpush.msra.mxu1 %v1853_v27  ;;  %743 = vmatpush.msrb.mxu2 %v1860_v28  ;;  %v1816_v27 = vld [vmem:[%s2174_s15 + $0x598] sm:$0xff] }
  0x60   : > { %693 = vmatpush.msrb.mxu3 %v1794_v29  ;;  %666 = vmatpush.msra.mxu0 %v1802_v30  ;;  %v1864_v28 = vld [vmem:[%s2174_s15 + $0x718] sm:$0xf]  ;;  %v1806_v29 = vld [vmem:[%s2174_s15 + $0x548] sm:$0xff]  ;;  %v1759_v30 = vld [vmem:[%s2174_s15 + $0x3d0] sm:$0xff] }
  0x61   : > { %686 = vmatpush.msra.mxu1 %v1850_v31  ;;  %744 = vmatpush.msrb.mxu2 %v1857_v32  ;;  %v1813_v31 = vld [vmem:[%s2174_s15 + $0x580] sm:$0xff] }
  0x62   : > { %694 = vmatpush.msrb.mxu3 %v1791_v33  ;;  %667 = vmatpush.msra.mxu0 %v1799_v34  ;;  %v1861_v32 = vld [vmem:[%s2174_s15 + $0x700] sm:$0xff]  ;;  %v1803_v33 = vld [vmem:[%s2174_s15 + $0x530] sm:$0xff]  ;;  %v1756_v34 = vld [vmem:[%s2174_s15 + $0x3b8] sm:$0xff] }
  0x63   : > { %687 = vmatpush.msra.mxu1 %v1847_v35  ;;  %1750 = vmatmul.msk.f32.vlgmr.msrb.gmra.mxu0 %vm269_vm1, %v2247_v2  ;;  %v1810_v35 = vld [vmem:[%s2174_s15 + $0x568] sm:$0xff] }
  0x64   : > { %419 = vmatmul.f32.vlgmr.msrb.gmra.mxu1 %v2256_v7  ;;  %695 = vmatpush.msrb.mxu3 %v1788_v36  ;;  %v1858_v36 = vld [vmem:[%s2174_s15 + $0x6e8] sm:$0xff] }
  0x65   : > { %712 = vmatpush.msrb.mxu1 %v1845_v37  ;;  %745 = vmatpush.msrb.mxu2 %v1854_v38  ;;  %v1800_v37 = vld [vmem:[%s2174_s15 + $0x518] sm:$0xff]  ;;  %v1753_v38 = vld [vmem:[%s2174_s15 + $0x3a0] sm:$0xff] }
  0x66   : > { %752 = vmatpush.msrb.mxu0 %v1798_v39  ;;  %696 = vmatpush.msrb.mxu3 %v1785_v40  ;;  %v1807_v39 = vld [vmem:[%s2174_s15 + $0x550] sm:$0xff] }
  0x67   : > { %713 = vmatpush.msrb.mxu1 %v1842_v41  ;;  %746 = vmatpush.msrb.mxu2 %v1851_v42  ;;  %v1855_v40 = vld [vmem:[%s2174_s15 + $0x6d0] sm:$0xff]  ;;  %v1916_v41 = vld [vmem:[%s2174_s15 + $0x888] sm:$0xff]  ;;  %v1982_v42 = vld [vmem:[%s2174_s15 + $0xa98] sm:$0xf] }
  0x68   : > { %753 = vmatpush.msrb.mxu0 %v1795_v43  ;;  %697 = vmatpush.msrb.mxu3 %v1782_v44  ;;  %v1804_v43 = vld [vmem:[%s2174_s15 + $0x538] sm:$0xff] }
  0x69   : > { %714 = vmatpush.msrb.mxu1 %v1839_v45  ;;  %747 = vmatpush.msrb.mxu2 %v1848_v46  ;;  %v1852_v44 = vld [vmem:[%s2174_s15 + $0x6b8] sm:$0xff]  ;;  %v1913_v45 = vld [vmem:[%s2174_s15 + $0x870] sm:$0xff]  ;;  %v1979_v46 = vld [vmem:[%s2174_s15 + $0xa80] sm:$0xff] }
  0x6a   : > { %754 = vmatpush.msrb.mxu0 %v1792_v47  ;;  %648 = vmatmul.f32.vlgmr.msra.gmra.mxu2 %v2256_v7  ;;  %v1801_v47 = vld [vmem:[%s2174_s15 + $0x520] sm:$0xff] }
  0x6b   : > { %772 = vmatpush.msra.mxu2 %v1846_v48  ;;  %698 = vmatpush.msrb.mxu3 %v1779_v49  ;;  %v1849_v48 = vld [vmem:[%s2174_s15 + $0x6a0] sm:$0xff]  ;;  %v1910_v49 = vld [vmem:[%s2174_s15 + $0x858] sm:$0xff] }
  0x6c   : > { %715 = vmatpush.msrb.mxu1 %v1836_v50  ;;  %755 = vmatpush.msrb.mxu0 %v1789_v51  ;;  %v1976_v50 = vld [vmem:[%s2174_s15 + $0xa68] sm:$0xff] }
  0x6d   : > { %773 = vmatpush.msra.mxu2 %v1843_v52  ;;  %699 = vmatpush.msrb.mxu3 %v1776_v53  ;;  %v1964_v51 = vld [vmem:[%s2174_s15 + $0xa08] sm:$0xff]  ;;  %v1917_v52 = vld [vmem:[%s2174_s15 + $0x890] sm:$0xff]  ;;  %v1907_v53 = vld [vmem:[%s2174_s15 + $0x840] sm:$0xff] }
  0x6e   : > { %716 = vmatpush.msrb.mxu1 %v1833_v54  ;;  %756 = vmatpush.msrb.mxu0 %v1786_v55  ;;  %v1973_v54 = vld [vmem:[%s2174_s15 + $0xa50] sm:$0xff]  ;;  %v1914_v55 = vld [vmem:[%s2174_s15 + $0x878] sm:$0xff] }
  0x6f   : > { %774 = vmatpush.msra.mxu2 %v1840_v56  ;;  %700 = vmatpush.msrb.mxu3 %v1773_v57  ;;  %v1961_v56 = vld [vmem:[%s2174_s15 + $0x9f0] sm:$0xff]  ;;  %v1904_v57 = vld [vmem:[%s2174_s15 + $0x828] sm:$0xff] }
  0x70   : > { %717 = vmatpush.msrb.mxu1 %v1830_v58  ;;  %757 = vmatpush.msrb.mxu0 %v1783_v59  ;;  %v1970_v58 = vld [vmem:[%s2174_s15 + $0xa38] sm:$0xff]  ;;  %v1911_v59 = vld [vmem:[%s2174_s15 + $0x860] sm:$0xff] }
  0x71   : > { %775 = vmatpush.msra.mxu2 %v1837_v60  ;;  %701 = vmatpush.msrb.mxu3 %v1770_v61  ;;  %v1958_v60 = vld [vmem:[%s2174_s15 + $0x9d8] sm:$0xff]  ;;  %v1901_v61 = vld [vmem:[%s2174_s15 + $0x810] sm:$0xff] }
  0x72   : > { %718 = vmatpush.msrb.mxu1 %v1827_v62  ;;  %758 = vmatpush.msrb.mxu0 %v1780_v63  ;;  %v1967_v62 = vld [vmem:[%s2174_s15 + $0xa20] sm:$0xff]  ;;  %v1908_v63 = vld [vmem:[%s2174_s15 + $0x848] sm:$0xff] }
  0x73   : > { %668 = vmatmul.f32.vlgmr.msra.gmra.mxu0 %v2277_v20  ;;  %776 = vmatpush.msra.mxu2 %v1834_v0  ;;  %v1955_v0 = vld [vmem:[%s2174_s15 + $0x9c0] sm:$0xff] }
  0x74   : > { %702 = vmatpush.msrb.mxu3 %v1767_v1  ;;  %719 = vmatpush.msrb.mxu1 %v1824_v3  ;;  %v1965_v1 = vld [vmem:[%s2174_s15 + $0xa10] sm:$0xff]  ;;  %v1898_v3 = vld [vmem:[%s2174_s15 + $0x7f8] sm:$0xff] }
  0x75   : > { %759 = vmatpush.msrb.mxu0 %v1777_v4  ;;  %1866 = vmatmul.msk.f32.vlgmr.msra.gmra.mxu1 %vm269_vm1, %v2247_v2  ;;  %v1952_v4 = vld [vmem:[%s2174_s15 + $0x9a8] sm:$0xff] }
  0x76   : > { %777 = vmatpush.msra.mxu2 %v1831_v5  ;;  %703 = vmatpush.msrb.mxu3 %v1764_v6  ;;  %v1905_v5 = vld [vmem:[%s2174_s15 + $0x830] sm:$0xff]  ;;  %v1962_v6 = vld [vmem:[%s2174_s15 + $0x9f8] sm:$0xff] }
  0x77   : > { %720 = vmatpush.msrb.mxu1 %v1821_v8  ;;  %760 = vmatpush.msrb.mxu0 %v1774_v9  ;;  %v1895_v8 = vld [vmem:[%s2174_s15 + $0x7e0] sm:$0xff]  ;;  %v1949_v9 = vld [vmem:[%s2174_s15 + $0x990] sm:$0xff] }
  0x78   : > { %778 = vmatpush.msra.mxu2 %v1828_v10  ;;  %704 = vmatpush.msrb.mxu3 %v1761_v11  ;;  %v1902_v10 = vld [vmem:[%s2174_s15 + $0x818] sm:$0xff]  ;;  %v1959_v11 = vld [vmem:[%s2174_s15 + $0x9e0] sm:$0xff] }
  0x79   : > { %721 = vmatpush.msrb.mxu1 %v1818_v12  ;;  %761 = vmatpush.msrb.mxu0 %v1771_v13  ;;  %v1892_v12 = vld [vmem:[%s2174_s15 + $0x7c8] sm:$0xff]  ;;  %v1946_v13 = vld [vmem:[%s2174_s15 + $0x978] sm:$0xff] }
  0x7a   : > { %779 = vmatpush.msra.mxu2 %v1825_v14  ;;  %705 = vmatpush.msrb.mxu3 %v1758_v15  ;;  %v1899_v14 = vld [vmem:[%s2174_s15 + $0x800] sm:$0xff]  ;;  %v1956_v15 = vld [vmem:[%s2174_s15 + $0x9c8] sm:$0xff] }
  0x7b   : > { %722 = vmatpush.msrb.mxu1 %v1815_v16  ;;  %762 = vmatpush.msrb.mxu0 %v1768_v17  ;;  %v1889_v16 = vld [vmem:[%s2174_s15 + $0x7b0] sm:$0xff]  ;;  %v1943_v17 = vld [vmem:[%s2174_s15 + $0x960] sm:$0xff] }
  0x7c   : > { %780 = vmatpush.msra.mxu2 %v1822_v18  ;;  %706 = vmatpush.msrb.mxu3 %v1755_v19  ;;  %v1896_v18 = vld [vmem:[%s2174_s15 + $0x7e8] sm:$0xff]  ;;  %v1953_v19 = vld [vmem:[%s2174_s15 + $0x9b0] sm:$0xff] }
  0x7d   : > { %723 = vmatpush.msrb.mxu1 %v1812_v21  ;;  %763 = vmatpush.msrb.mxu0 %v1765_v22  ;;  %v1886_v21 = vld [vmem:[%s2174_s15 + $0x798] sm:$0xff]  ;;  %v1940_v22 = vld [vmem:[%s2174_s15 + $0x948] sm:$0xff] }
  0x7e   : > { %781 = vmatpush.msra.mxu2 %v1819_v23  ;;  %707 = vmatpush.msrb.mxu3 %v1752_v24  ;;  %v1893_v23 = vld [vmem:[%s2174_s15 + $0x7d0] sm:$0xff]  ;;  %v1950_v24 = vld [vmem:[%s2174_s15 + $0x998] sm:$0xff] }
  0x7f   : > { %724 = vmatpush.msrb.mxu1 %v1809_v25  ;;  %764 = vmatpush.msrb.mxu0 %v1762_v26  ;;  %v1883_v25 = vld [vmem:[%s2174_s15 + $0x780] sm:$0xff]  ;;  %v1937_v26 = vld [vmem:[%s2174_s15 + $0x930] sm:$0xff] }
  0x80   : > { %708 = vmatmul.f32.vlgmr.msrb.gmra.mxu3 %v2256_v7  ;;  %782 = vmatpush.msra.mxu2 %v1816_v27  ;;  %v1890_v27 = vld [vmem:[%s2174_s15 + $0x7b8] sm:$0xff] }
  0x81   : > { %1869 = vmatpush.msk.msra.mxu3 %vm273_vm0, %v1864_v28  ;;  %725 = vmatpush.msrb.mxu1 %v1806_v29  ;;  %v1947_v28 = vld [vmem:[%s2174_s15 + $0x980] sm:$0xff]  ;;  %v1880_v29 = vld [vmem:[%s2174_s15 + $0x768] sm:$0xff] }
  0x82   : > { %765 = vmatpush.msrb.mxu0 %v1759_v30  ;;  %1868 = vmatmul.msk.f32.vlgmr.msrb.gmra.mxu2 %vm269_vm1, %v2247_v2  ;;  %v1934_v30 = vld [vmem:[%s2174_s15 + $0x918] sm:$0xff] }
  0x83   : > { %783 = vmatpush.msra.mxu2 %v1813_v31  ;;  %803 = vmatpush.msra.mxu3 %v1861_v32  ;;  %v1887_v31 = vld [vmem:[%s2174_s15 + $0x7a0] sm:$0xff]  ;;  %v1944_v32 = vld [vmem:[%s2174_s15 + $0x968] sm:$0xff] }
  0x84   : > { %726 = vmatpush.msrb.mxu1 %v1803_v33  ;;  %766 = vmatpush.msrb.mxu0 %v1756_v34  ;;  %v1877_v33 = vld [vmem:[%s2174_s15 + $0x750] sm:$0xff]  ;;  %v1931_v34 = vld [vmem:[%s2174_s15 + $0x900] sm:$0xff] }
  0x85   : > { %784 = vmatpush.msra.mxu2 %v1810_v35  ;;  %804 = vmatpush.msra.mxu3 %v1858_v36  ;;  %v1884_v35 = vld [vmem:[%s2174_s15 + $0x788] sm:$0xff]  ;;  %v1941_v36 = vld [vmem:[%s2174_s15 + $0x950] sm:$0xff] }
  0x86   : > { %727 = vmatpush.msrb.mxu1 %v1800_v37  ;;  %767 = vmatpush.msrb.mxu0 %v1753_v38  ;;  %v1874_v37 = vld [vmem:[%s2174_s15 + $0x738] sm:$0xff]  ;;  %v1928_v38 = vld [vmem:[%s2174_s15 + $0x8e8] sm:$0xff] }
  0x87   : > { %728 = vmatmul.f32.vlgmr.msrb.gmra.mxu1 %v2277_v20  ;;  %785 = vmatpush.msra.mxu2 %v1807_v39  ;;  %v1881_v39 = vld [vmem:[%s2174_s15 + $0x770] sm:$0xff] }
  0x88   : > { %805 = vmatpush.msra.mxu3 %v1855_v40  ;;  %972 = vmatpush.msra.mxu1 %v1916_v41  ;;  %v1938_v40 = vld [vmem:[%s2174_s15 + $0x938] sm:$0xff]  ;;  %v1871_v41 = vld [vmem:[%s2174_s15 + $0x720] sm:$0xff] }
  0x89   : > { %1985 = vmatpush.msk.msra.mxu0 %vm273_vm0, %v1982_v42  ;;  %786 = vmatpush.msra.mxu2 %v1804_v43  ;;  %v1925_v42 = vld [vmem:[%s2174_s15 + $0x8d0] sm:$0xff]  ;;  %v1878_v43 = vld [vmem:[%s2174_s15 + $0x758] sm:$0xff] }
  0x8a   : > { %806 = vmatpush.msra.mxu3 %v1852_v44  ;;  %973 = vmatpush.msra.mxu1 %v1913_v45  ;;  %v1935_v44 = vld [vmem:[%s2174_s15 + $0x920] sm:$0xff] }
  0x8b   : > { %1023 = vmatpush.msra.mxu0 %v1979_v46  ;;  %787 = vmatpush.msra.mxu2 %v1801_v47  ;;  %v1983_v45 = vld [vmem:[%s2174_s15 + $0xaa0] sm:$0xf]  ;;  %v1922_v46 = vld [vmem:[%s2174_s15 + $0x8b8] sm:$0xff] }
  0x8c   : > { %807 = vmatpush.msra.mxu3 %v1849_v48  ;;  %974 = vmatpush.msra.mxu1 %v1910_v49  ;;  %v1875_v47 = vld [vmem:[%s2174_s15 + $0x740] sm:$0xff]  ;;  %v1932_v48 = vld [vmem:[%s2174_s15 + $0x908] sm:$0xff] }
  0x8d   : > { %1024 = vmatpush.msra.mxu0 %v1976_v50  ;;  %788 = vmatmul.f32.vlgmr.msra.gmra.mxu2 %v2277_v20  ;;  %v1980_v49 = vld [vmem:[%s2174_s15 + $0xa88] sm:$0xff]  ;;  %v1919_v50 = vld [vmem:[%s2174_s15 + $0x8a0] sm:$0xff] }
  0x8e   : > { %992 = vmatpush.msrb.mxu3 %v1964_v51  ;;  %1032 = vmatpush.msrb.mxu2 %v1917_v52  ;;  %v1872_v51 = vld [vmem:[%s2174_s15 + $0x728] sm:$0xff]  ;;  %v1929_v52 = vld [vmem:[%s2174_s15 + $0x8f0] sm:$0xff] }
  0x8f   : > { %975 = vmatpush.msra.mxu1 %v1907_v53  ;;  %1025 = vmatpush.msra.mxu0 %v1973_v54  ;;  %v1977_v53 = vld [vmem:[%s2174_s15 + $0xa70] sm:$0xff]  ;;  %v1918_v54 = vld [vmem:[%s2174_s15 + $0x898] sm:$0xff] }
  0x90   : > { %1870 = vmatmul.msk.f32.vlgmr.msra.gmra.mxu3 %vm269_vm1, %v2247_v2  ;;  %1033 = vmatpush.msrb.mxu2 %v1914_v55  ;;  %v1926_v55 = vld [vmem:[%s2174_s15 + $0x8d8] sm:$0xff] }
  0x91   : > { %993 = vmatpush.msrb.mxu3 %v1961_v56  ;;  %976 = vmatpush.msra.mxu1 %v1904_v57  ;;  %v1974_v56 = vld [vmem:[%s2174_s15 + $0xa58] sm:$0xff]  ;;  %v1984_v57 = vld [vmem:[%s2174_s15 + $0xaa8] sm:$0xf] }
  0x92   : > { %1026 = vmatpush.msra.mxu0 %v1970_v58  ;;  %1034 = vmatpush.msrb.mxu2 %v1911_v59  ;;  %v1923_v58 = vld [vmem:[%s2174_s15 + $0x8c0] sm:$0xff] }
  0x93   : > { %994 = vmatpush.msrb.mxu3 %v1958_v60  ;;  %977 = vmatpush.msra.mxu1 %v1901_v61  ;;  %v1971_v59 = vld [vmem:[%s2174_s15 + $0xa40] sm:$0xff]  ;;  %v1981_v60 = vld [vmem:[%s2174_s15 + $0xa90] sm:$0xff]  ;;  %v1912_v61 = vld [vmem:[%s2174_s15 + $0x868] sm:$0xff] }
  0x94   : > { %1027 = vmatpush.msra.mxu0 %v1967_v62  ;;  %1035 = vmatpush.msrb.mxu2 %v1908_v63  ;;  %v1920_v62 = vld [vmem:[%s2174_s15 + $0x8a8] sm:$0xff]  ;;  %v1909_v63 = vld [vmem:[%s2174_s15 + $0x850] sm:$0xff] }
  0x95   : > { %768 = vmatmul.f32.vlgmr.msrb.gmra.mxu0 %v2256_v7  ;;  %995 = vmatpush.msrb.mxu3 %v1955_v0  ;;  %v1966_v0 = vld [vmem:[%s2174_s15 + $0xa18] sm:$0xff] }
  0x96   : > { %1052 = vmatpush.msrb.mxu0 %v1965_v1  ;;  %978 = vmatpush.msra.mxu1 %v1898_v3  ;;  %v1978_v1 = vld [vmem:[%s2174_s15 + $0xa78] sm:$0xff] }
  0x97   : > { %996 = vmatpush.msrb.mxu3 %v1952_v4  ;;  %1036 = vmatpush.msrb.mxu2 %v1905_v5  ;;  %v1906_v3 = vld [vmem:[%s2174_s15 + $0x838] sm:$0xff]  ;;  %v1963_v4 = vld [vmem:[%s2174_s15 + $0xa00] sm:$0xff] }
  0x98   : > { %1053 = vmatpush.msrb.mxu0 %v1962_v6  ;;  %979 = vmatpush.msra.mxu1 %v1895_v8  ;;  %v1975_v5 = vld [vmem:[%s2174_s15 + $0xa60] sm:$0xff]  ;;  %v2036_v6 = vld [vmem:[%s2174_s15 + $0xc18] sm:$0xff]  ;;  %v2549_v8 = vld [vmem:[%s2921_s0 + $0x10] sm:$0xff] }
  0x99   : > { %997 = vmatpush.msrb.mxu3 %v1949_v9  ;;  %1037 = vmatpush.msrb.mxu2 %v1902_v10  ;;  %v1960_v9 = vld [vmem:[%s2174_s15 + $0x9e8] sm:$0xff] }
  0x9a   : > { %1054 = vmatpush.msrb.mxu0 %v1959_v11  ;;  %980 = vmatpush.msra.mxu1 %v1892_v12  ;;  %v1972_v10 = vld [vmem:[%s2174_s15 + $0xa48] sm:$0xff]  ;;  %v2033_v11 = vld [vmem:[%s2174_s15 + $0xc00] sm:$0xff] }
  0x9b   : > { %998 = vmatpush.msrb.mxu3 %v1946_v13  ;;  %1038 = vmatpush.msrb.mxu2 %v1899_v14  ;;  %v1900_v12 = vld [vmem:[%s2174_s15 + $0x808] sm:$0xff]  ;;  %v1957_v13 = vld [vmem:[%s2174_s15 + $0x9d0] sm:$0xff] }
  0x9c   : > { %1055 = vmatpush.msrb.mxu0 %v1956_v15  ;;  %981 = vmatpush.msra.mxu1 %v1889_v16  ;;  %v1969_v14 = vld [vmem:[%s2174_s15 + $0xa30] sm:$0xff]  ;;  %v2030_v15 = vld [vmem:[%s2174_s15 + $0xbe8] sm:$0xff]  ;;  %v2084_v16 = vld [vmem:[%s2174_s15 + $0xd98] sm:$0xff] }
  0x9d   : > { %999 = vmatpush.msrb.mxu3 %v1943_v17  ;;  %1039 = vmatpush.msrb.mxu2 %v1896_v18  ;;  %v1897_v17 = vld [vmem:[%s2174_s15 + $0x7f0] sm:$0xff]  ;;  %v1954_v18 = vld [vmem:[%s2174_s15 + $0x9b8] sm:$0xff] }
  0x9e   : > { %1056 = vmatpush.msrb.mxu0 %v1953_v19  ;;  %982 = vmatpush.msra.mxu1 %v1886_v21  ;;  %v2027_v19 = vld [vmem:[%s2174_s15 + $0xbd0] sm:$0xff]  ;;  %v2081_v21 = vld [vmem:[%s2174_s15 + $0xd80] sm:$0xff] }
  0x9f   : > { %1000 = vmatpush.msrb.mxu3 %v1940_v22  ;;  %1040 = vmatpush.msrb.mxu2 %v1893_v23  ;;  %v1894_v22 = vld [vmem:[%s2174_s15 + $0x7d8] sm:$0xff]  ;;  %v1951_v23 = vld [vmem:[%s2174_s15 + $0x9a0] sm:$0xff] }
  0xa0   : > { %1057 = vmatpush.msrb.mxu0 %v1950_v24  ;;  %983 = vmatpush.msra.mxu1 %v1883_v25  ;;  %v2024_v24 = vld [vmem:[%s2174_s15 + $0xbb8] sm:$0xff]  ;;  %v2078_v25 = vld [vmem:[%s2174_s15 + $0xd68] sm:$0xff] }
  0xa1   : > { %1001 = vmatpush.msrb.mxu3 %v1937_v26  ;;  %1041 = vmatpush.msrb.mxu2 %v1890_v27  ;;  %v1891_v26 = vld [vmem:[%s2174_s15 + $0x7c0] sm:$0xff]  ;;  %v1948_v27 = vld [vmem:[%s2174_s15 + $0x988] sm:$0xff] }
  0xa2   : > { %1058 = vmatpush.msrb.mxu0 %v1947_v28  ;;  %984 = vmatpush.msra.mxu1 %v1880_v29  ;;  %v2021_v28 = vld [vmem:[%s2174_s15 + $0xba0] sm:$0xff]  ;;  %v2075_v29 = vld [vmem:[%s2174_s15 + $0xd50] sm:$0xff] }
  0xa3   : > { %1002 = vmatpush.msrb.mxu3 %v1934_v30  ;;  %1042 = vmatpush.msrb.mxu2 %v1887_v31  ;;  %v1888_v30 = vld [vmem:[%s2174_s15 + $0x7a8] sm:$0xff]  ;;  %v1945_v31 = vld [vmem:[%s2174_s15 + $0x970] sm:$0xff] }
  0xa4   : > { %1059 = vmatpush.msrb.mxu0 %v1944_v32  ;;  %985 = vmatpush.msra.mxu1 %v1877_v33  ;;  %v2018_v32 = vld [vmem:[%s2174_s15 + $0xb88] sm:$0xff]  ;;  %v2072_v33 = vld [vmem:[%s2174_s15 + $0xd38] sm:$0xff] }
  0xa5   : > { %1003 = vmatpush.msrb.mxu3 %v1931_v34  ;;  %1043 = vmatpush.msrb.mxu2 %v1884_v35  ;;  %v1885_v34 = vld [vmem:[%s2174_s15 + $0x790] sm:$0xff]  ;;  %v1942_v35 = vld [vmem:[%s2174_s15 + $0x958] sm:$0xff] }
  0xa6   : > { %1060 = vmatpush.msrb.mxu0 %v1941_v36  ;;  %986 = vmatpush.msra.mxu1 %v1874_v37  ;;  %v2015_v36 = vld [vmem:[%s2174_s15 + $0xb70] sm:$0xff]  ;;  %v2069_v37 = vld [vmem:[%s2174_s15 + $0xd20] sm:$0xff] }
  0xa7   : > { %1004 = vmatpush.msrb.mxu3 %v1928_v38  ;;  %1044 = vmatpush.msrb.mxu2 %v1881_v39  ;;  %v1882_v38 = vld [vmem:[%s2174_s15 + $0x778] sm:$0xff]  ;;  %v1939_v39 = vld [vmem:[%s2174_s15 + $0x940] sm:$0xff] }
  0xa8   : > { %1061 = vmatpush.msrb.mxu0 %v1938_v40  ;;  %987 = vmatpush.msra.mxu1 %v1871_v41  ;;  %v2012_v40 = vld [vmem:[%s2174_s15 + $0xb58] sm:$0xff]  ;;  %v2066_v41 = vld [vmem:[%s2174_s15 + $0xd08] sm:$0xff] }
  0xa9   : > { %1005 = vmatpush.msrb.mxu3 %v1925_v42  ;;  %1045 = vmatpush.msrb.mxu2 %v1878_v43  ;;  %v1879_v42 = vld [vmem:[%s2174_s15 + $0x760] sm:$0xff]  ;;  %v1936_v43 = vld [vmem:[%s2174_s15 + $0x928] sm:$0xff] }
  0xaa   : > { %1062 = vmatpush.msrb.mxu0 %v1935_v44  ;;  %1987 = vmatpush.msk.msrb.mxu1 %vm273_vm0, %v1983_v45  ;;  %v2009_v44 = vld [vmem:[%s2174_s15 + $0xb40] sm:$0xff]  ;;  %v2063_v45 = vld [vmem:[%s2174_s15 + $0xcf0] sm:$0xff] }
  0xab   : > { %1006 = vmatpush.msrb.mxu3 %v1922_v46  ;;  %1046 = vmatpush.msrb.mxu2 %v1875_v47  ;;  %v1876_v46 = vld [vmem:[%s2174_s15 + $0x748] sm:$0xff]  ;;  %v1933_v47 = vld [vmem:[%s2174_s15 + $0x910] sm:$0xff] }
  0xac   : > { %1063 = vmatpush.msrb.mxu0 %v1932_v48  ;;  %1083 = vmatpush.msrb.mxu1 %v1980_v49  ;;  %v2006_v48 = vld [vmem:[%s2174_s15 + $0xb28] sm:$0xff]  ;;  %v2060_v49 = vld [vmem:[%s2174_s15 + $0xcd8] sm:$0xff] }
  0xad   : > { %1986 = vmatmul.msk.f32.vlgmr.msra.gmra.mxu0 %vm269_vm1, %v2247_v2  ;;  %1007 = vmatpush.msrb.mxu3 %v1919_v50  ;;  %v1915_v2 = vld [vmem:[%s2174_s15 + $0x880] sm:$0xff]  ;;  %v1873_v50 = vld [vmem:[%s2174_s15 + $0x730] sm:$0xff] }
  0xae   : > { %1047 = vmatpush.msrb.mxu2 %v1872_v51  ;;  %1064 = vmatpush.msrb.mxu0 %v1929_v52  ;;  %v1930_v51 = vld [vmem:[%s2174_s15 + $0x8f8] sm:$0xff]  ;;  %v2003_v52 = vld [vmem:[%s2174_s15 + $0xb10] sm:$0xff] }
  0xaf   : > { %1084 = vmatpush.msrb.mxu1 %v1977_v53  ;;  %1008 = vmatmul.f32.vlgmr.msrb.gmra.mxu3 %v2277_v20  ;;  %v2057_v53 = vld [vmem:[%s2174_s15 + $0xcc0] sm:$0xff] }
  0xb0   : > { %988 = vmatmul.f32.vlgmr.msra.gmra.mxu1 %v2256_v7  ;;  %1048 = vmatmul.f32.vlgmr.msrb.gmra.mxu2 %v2256_v7  ;;  %v1968_v7 = vld [vmem:[%s2174_s15 + $0xa28] sm:$0xff] }
  0xb1   : > { %1092 = vmatpush.msra.mxu3 %v1918_v54  ;;  %1065 = vmatpush.msrb.mxu0 %v1926_v55  ;;  %v2102_v54 = vld [vmem:[%s2174_s15 + $0xe28] sm:$0xf]  ;;  %v1927_v55 = vld [vmem:[%s2174_s15 + $0x8e0] sm:$0xff] }
  0xb2   : > { %1085 = vmatpush.msrb.mxu1 %v1974_v56  ;;  %1989 = vmatpush.msk.msra.mxu2 %vm273_vm0, %v1984_v57  ;;  %v2000_v56 = vld [vmem:[%s2174_s15 + $0xaf8] sm:$0xff]  ;;  %v2604_v57 = vld [vmem:[%s2921_s0] sm:$0xff] }
  0xb3   : > { %1093 = vmatpush.msra.mxu3 %v1915_v2  ;;  %1066 = vmatpush.msrb.mxu0 %v1923_v58  ;;  %v2054_v2 = vld [vmem:[%s2174_s15 + $0xca8] sm:$0xff]  ;;  %v2099_v58 = vld [vmem:[%s2174_s15 + $0xe10] sm:$0xff] }
  0xb4   : > { %1086 = vmatpush.msrb.mxu1 %v1971_v59  ;;  %1143 = vmatpush.msra.mxu2 %v1981_v60  ;;  %v1924_v59 = vld [vmem:[%s2174_s15 + $0x8c8] sm:$0xff]  ;;  %v1997_v60 = vld [vmem:[%s2174_s15 + $0xae0] sm:$0xff] }
  0xb5   : > { %1094 = vmatpush.msra.mxu3 %v1912_v61  ;;  %1067 = vmatpush.msrb.mxu0 %v1920_v62  ;;  %v2051_v61 = vld [vmem:[%s2174_s15 + $0xc90] sm:$0xff]  ;;  %v2096_v62 = vld [vmem:[%s2174_s15 + $0xdf8] sm:$0xff] }
  0xb6   : > { %1087 = vmatpush.msrb.mxu1 %v1968_v7  ;;  %1068 = vmatmul.f32.vlgmr.msrb.gmra.mxu0 %v2277_v20  ;;  %v1903_v20 = vld [vmem:[%s2174_s15 + $0x820] sm:$0xff]  ;;  %v2616_v7 = vpop.f32.mrf.mxu3 }
  0xb7   : > { %1095 = vmatpush.msra.mxu3 %v1909_v63  ;;  %1144 = vmatpush.msra.mxu2 %v1978_v1  ;;  %v1921_v63 = vld [vmem:[%s2174_s15 + $0x8b0] sm:$0xff]  ;;  %v2048_v1 = vld [vmem:[%s2174_s15 + $0xc78] sm:$0xff] }
  0xb8   : > { %1112 = vmatpush.msra.mxu1 %v1966_v0  ;;  %1312 = vmatpush.msra.mxu0 %v2036_v6  ;;  %v1994_v0 = vld [vmem:[%s2174_s15 + $0xac8] sm:$0xff]  ;;  %v2103_v6 = vld [vmem:[%s2174_s15 + $0xe30] sm:$0xf] }
  0xb9   : > { %1988 = vmatmul.msk.f32.vlgmr.msrb.gmra.mxu1 %vm269_vm1, %v2549_v8  ;;  %1096 = vmatpush.msra.mxu3 %v1906_v3  ;;  %v2093_v3 = vld [vmem:[%s2174_s15 + $0xde0] sm:$0xff] }
  0xba   : > { %1113 = vmatpush.msra.mxu1 %v1963_v4  ;;  %1145 = vmatpush.msra.mxu2 %v1975_v5  ;;  %v1991_v4 = vld [vmem:[%s2174_s15 + $0xab0] sm:$0xff]  ;;  %v2045_v5 = vld [vmem:[%s2174_s15 + $0xc60] sm:$0xff] }
  0xbb   : > { %1097 = vmatpush.msra.mxu3 %v1903_v20  ;;  %1313 = vmatpush.msra.mxu0 %v2033_v11  ;;  %v2628_v20 = vld [vmem:[%s2921_s0 + $0x8] sm:$0xff] }
  0xbc   : > { %1114 = vmatpush.msra.mxu1 %v1960_v9  ;;  %1146 = vmatpush.msra.mxu2 %v1972_v10  ;;  %v2090_v9 = vld [vmem:[%s2174_s15 + $0xdc8] sm:$0xff]  ;;  %v2037_v10 = vld [vmem:[%s2174_s15 + $0xc20] sm:$0xff] }
  0xbd   : > { %1098 = vmatpush.msra.mxu3 %v1900_v12  ;;  %1314 = vmatpush.msra.mxu0 %v2030_v15  ;;  %v2042_v11 = vld [vmem:[%s2174_s15 + $0xc48] sm:$0xff]  ;;  %v2100_v12 = vld [vmem:[%s2174_s15 + $0xe18] sm:$0xff] }
  0xbe   : > { %1115 = vmatpush.msra.mxu1 %v1957_v13  ;;  %1147 = vmatpush.msra.mxu2 %v1969_v14  ;;  %v2635_v13 = vpop.f32.mrf.mxu2  ;;  %v2087_v14 = vld [vmem:[%s2174_s15 + $0xdb0] sm:$0xff]  ;;  %v2034_v15 = vld [vmem:[%s2174_s15 + $0xc08] sm:$0xff] }
  0xbf   : > { %1099 = vmatpush.msra.mxu3 %v1897_v17  ;;  %1315 = vmatpush.msra.mxu0 %v2027_v19  ;;  %v2039_v17 = vld [vmem:[%s2174_s15 + $0xc30] sm:$0xff]  ;;  %v2082_v19 = vld [vmem:[%s2174_s15 + $0xd88] sm:$0xff] }
  0xc0   : > { %1332 = vmatpush.msrb.mxu2 %v2084_v16  ;;  %1116 = vmatpush.msra.mxu1 %v1954_v18  ;;  %v2085_v16 = vld [vmem:[%s2174_s15 + $0xda0] sm:$0xff] }
  0xc1   : > { %1100 = vmatpush.msra.mxu3 %v1894_v22  ;;  %1316 = vmatpush.msra.mxu0 %v2024_v24  ;;  %v2097_v18 = vld [vmem:[%s2174_s15 + $0xe00] sm:$0xff]  ;;  %v320_v22 = vpop.f32.mrf.mxu1  ;;  %v2031_v24 = vld [vmem:[%s2174_s15 + $0xbf0] sm:$0xff] }
  0xc2   : > { %1333 = vmatpush.msrb.mxu2 %v2081_v21  ;;  %1117 = vmatpush.msra.mxu1 %v1951_v23  ;;  %v2038_v21 = vld [vmem:[%s2174_s15 + $0xc28] sm:$0xff]  ;;  %v400_v23 = vpop.f32.mrf.mxu3 }
  0xc3   : > { %1101 = vmatpush.msra.mxu3 %v1891_v26  ;;  %1317 = vmatpush.msra.mxu0 %v2021_v28  ;;  %v2035_v26 = vld [vmem:[%s2174_s15 + $0xc10] sm:$0xff]  ;;  %v2028_v28 = vld [vmem:[%s2174_s15 + $0xbd8] sm:$0xff] }
  0xc4   : > { %1334 = vmatpush.msrb.mxu2 %v2078_v25  ;;  %1118 = vmatpush.msra.mxu1 %v1948_v27  ;;  %v2094_v25 = vld [vmem:[%s2174_s15 + $0xde8] sm:$0xff]  ;;  %v2079_v27 = vld [vmem:[%s2174_s15 + $0xd70] sm:$0xff] }
  0xc5   : > { %1102 = vmatpush.msra.mxu3 %v1888_v30  ;;  %1318 = vmatpush.msra.mxu0 %v2018_v32  ;;  %v2032_v30 = vld [vmem:[%s2174_s15 + $0xbf8] sm:$0xff] }
  0xc6   : > { %1335 = vmatpush.msrb.mxu2 %v2075_v29  ;;  %1119 = vmatpush.msra.mxu1 %v1945_v31  ;;  %v2091_v29 = vld [vmem:[%s2174_s15 + $0xdd0] sm:$0xff]  ;;  %v300_v31 = vpop.f32.mrf.mxu0  ;;  %v2076_v32 = vld [vmem:[%s2174_s15 + $0xd58] sm:$0xff] }
  0xc7   : > { %1103 = vmatpush.msra.mxu3 %v1885_v34  ;;  %1319 = vmatpush.msra.mxu0 %v2015_v36  ;;  %v2088_v34 = vld [vmem:[%s2174_s15 + $0xdb8] sm:$0xff]  ;;  %v380_v36 = vpop.f32.mrf.mxu2 }
  0xc8   : > { %1336 = vmatpush.msrb.mxu2 %v2072_v33  ;;  %1120 = vmatpush.msra.mxu1 %v1942_v35  ;;  %v2025_v33 = vld [vmem:[%s2174_s15 + $0xbc0] sm:$0xff] }
  0xc9   : > { %1104 = vmatpush.msra.mxu3 %v1882_v38  ;;  %1320 = vmatpush.msra.mxu0 %v2012_v40  ;;  %v2029_v35 = vld [vmem:[%s2174_s15 + $0xbe0] sm:$0xff]  ;;  %v2086_v38 = vld [vmem:[%s2174_s15 + $0xda8] sm:$0xff] }
  0xca   : > { %1337 = vmatpush.msrb.mxu2 %v2069_v37  ;;  %1121 = vmatpush.msra.mxu1 %v1939_v39  ;;  %v2073_v37 = vld [vmem:[%s2174_s15 + $0xd40] sm:$0xff]  ;;  %v2022_v39 = vld [vmem:[%s2174_s15 + $0xba8] sm:$0xff] }
  0xcb   : > { %1105 = vmatpush.msra.mxu3 %v1879_v42  ;;  %1321 = vmatpush.msra.mxu0 %v2009_v44  ;;  %v2070_v40 = vld [vmem:[%s2174_s15 + $0xd28] sm:$0xff]  ;;  %v321_v44 = vadd.f32 %v320_v22, %v300_v31  ;;  %v2056_v31 = vld [vmem:[%s2174_s15 + $0xcb8] sm:$0xff] }
  0xcc   : > { %1338 = vmatpush.msrb.mxu2 %v2066_v41  ;;  %1122 = vmatpush.msra.mxu1 %v1936_v43  ;;  %v2026_v41 = vld [vmem:[%s2174_s15 + $0xbc8] sm:$0xff] }
  0xcd   : > { %1106 = vmatpush.msra.mxu3 %v1876_v46  ;;  %1322 = vmatpush.msra.mxu0 %v2006_v48  ;;  %v2083_v46 = vld [vmem:[%s2174_s15 + $0xd90] sm:$0xff] }
  0xce   : > { %1339 = vmatpush.msrb.mxu2 %v2063_v45  ;;  %1123 = vmatpush.msra.mxu1 %v1933_v47  ;;  %v381_v45 = vadd.f32 %v380_v36, %v2616_v7  ;;  %v2019_v47 = vld [vmem:[%s2174_s15 + $0xb90] sm:$0xff]  ;;  %v2010_v7 = vld [vmem:[%s2174_s15 + $0xb48] sm:$0xff]  ;;  %v2104_v36 = vld [vmem:[%s2174_s15 + $0xe38] sm:$0xf] }
  0xcf   : > { %1107 = vmatpush.msra.mxu3 %v1873_v50  ;;  %1323 = vmatpush.msra.mxu0 %v2003_v52  ;;  %v2067_v48 = vld [vmem:[%s2174_s15 + $0xd10] sm:$0xff]  ;;  %v2080_v50 = vld [vmem:[%s2174_s15 + $0xd78] sm:$0xff] }
  0xd0   : > { %1340 = vmatpush.msrb.mxu2 %v2060_v49  ;;  %1124 = vmatpush.msra.mxu1 %v1930_v51  ;;  %v2023_v49 = vld [vmem:[%s2174_s15 + $0xbb0] sm:$0xff]  ;;  %v2016_v51 = vld [vmem:[%s2174_s15 + $0xb78] sm:$0xff] }
  0xd1   : > { %1108 = vmatmul.f32.vlgmr.msra.gmra.mxu3 %v2604_v57  ;;  %1324 = vmatpush.msra.mxu0 %v2000_v56  ;;  %v2675_v56 = vadd.f32 %v2635_v13, %v321_v44  ;;  %v2044_v44 = vld [vmem:[%s2174_s15 + $0xc58] sm:$0xff] }
  0xd2   : > { %1341 = vmatpush.msrb.mxu2 %v2057_v53  ;;  %2105 = vmatpush.msk.msrb.mxu3 %vm273_vm0, %v2102_v54  ;;  %v2064_v53 = vld [vmem:[%s2174_s15 + $0xcf8] sm:$0xff] }
  0xd3   : > { %1125 = vmatpush.msra.mxu1 %v1927_v55  ;;  %1990 = vmatmul.msk.f32.vlgmr.msra.gmra.mxu2 %vm269_vm1, %v2549_v8  ;;  %v2020_v54 = vld [vmem:[%s2174_s15 + $0xb98] sm:$0xff] }
  0xd4   : > { %1342 = vmatpush.msrb.mxu2 %v2054_v2  ;;  %1363 = vmatpush.msrb.mxu3 %v2099_v58  ;;  %v2677_v2 = vadd.f32 %v400_v23, %v381_v45  ;;  %v2077_v58 = vld [vmem:[%s2174_s15 + $0xd60] sm:$0xff]  ;;  %v2062_v23 = vld [vmem:[%s2174_s15 + $0xce8] sm:$0xff]  ;;  %v2095_v45 = vld [vmem:[%s2174_s15 + $0xdf0] sm:$0xff] }
  0xd5   : > { %1126 = vmatpush.msra.mxu1 %v1924_v59  ;;  %1325 = vmatpush.msra.mxu0 %v1997_v60  ;;  %v2013_v59 = vld [vmem:[%s2174_s15 + $0xb60] sm:$0xff] }
  0xd6   : > { %1343 = vmatpush.msrb.mxu2 %v2051_v61  ;;  %1364 = vmatpush.msrb.mxu3 %v2096_v62  ;;  %v2061_v60 = vld [vmem:[%s2174_s15 + $0xce0] sm:$0xff]  ;;  %v2074_v62 = vld [vmem:[%s2174_s15 + $0xd48] sm:$0xff] }
  0xd7   : > { %1127 = vmatpush.msra.mxu1 %v1921_v63  ;;  %1326 = vmatpush.msra.mxu0 %v1994_v0  ;;  %v2017_v61 = vld [vmem:[%s2174_s15 + $0xb80] sm:$0xff]  ;;  %v2058_v0 = vld [vmem:[%s2174_s15 + $0xcc8] sm:$0xff] }
  0xd8   : > { %1128 = vmatmul.f32.vlgmr.msra.gmra.mxu1 %v2628_v20  ;;  %1344 = vmatpush.msrb.mxu2 %v2048_v1  ;;  %v2014_v1 = vld [vmem:[%s2174_s15 + $0xb68] sm:$0xff] }
  0xd9   : > { %1365 = vmatpush.msrb.mxu3 %v2093_v3  ;;  %1327 = vmatpush.msra.mxu0 %v1991_v4  ;;  %v465_v3 = vsel %vm463_vm2, %v2677_v2, 0.0  ;;  %v2071_v4 = vld [vmem:[%s2174_s15 + $0xd30] sm:$0xff] }
  0xda   : > { %1345 = vmatpush.msrb.mxu2 %v2045_v5  ;;  %1372 = vmatpush.msrb.mxu1 %v2037_v10  ;;  %v2007_v5 = vld [vmem:[%s2174_s15 + $0xb30] sm:$0xff] }
  0xdb   : > { %2107 = vmatpush.msk.msrb.mxu0 %vm273_vm0, %v2103_v6  ;;  %1366 = vmatpush.msrb.mxu3 %v2090_v9  ;;  %v464_v6 = vsel %vm463_vm2, %v2675_v56, 0.0  ;;  %v2055_v9 = vld [vmem:[%s2174_s15 + $0xcb0] sm:$0xff] }
  0xdc   : > { %1346 = vmatpush.msrb.mxu2 %v2042_v11  ;;  %1373 = vmatpush.msrb.mxu1 %v2034_v15  ;;  %v2011_v10 = vld [vmem:[%s2174_s15 + $0xb50] sm:$0xff]  ;;  %v2068_v11 = vld [vmem:[%s2174_s15 + $0xd18] sm:$0xff] }
  0xdd   : > { %1423 = vmatpush.msrb.mxu0 %v2100_v12  ;;  %1367 = vmatpush.msrb.mxu3 %v2087_v14  ;;  %v2004_v12 = vld [vmem:[%s2174_s15 + $0xb18] sm:$0xff] }
  0xde   : > { %1347 = vmatpush.msrb.mxu2 %v2039_v17  ;;  %1374 = vmatpush.msrb.mxu1 %v2031_v24  ;;  %v2052_v14 = vld [vmem:[%s2174_s15 + $0xc98] sm:$0xff]  ;;  %v2065_v17 = vld [vmem:[%s2174_s15 + $0xd00] sm:$0xff]  ;;  %v1998_v24 = vld [vmem:[%s2174_s15 + $0xae8] sm:$0xff] }
  0xdf   : > { %1392 = vmatpush.msra.mxu3 %v2085_v16  ;;  %1424 = vmatpush.msrb.mxu0 %v2097_v18  ;;  %v2008_v15 = vld [vmem:[%s2174_s15 + $0xb38] sm:$0xff]  ;;  %v466_v16 = vadd.f32 %v465_v3, %v464_v6  ;;  %v2001_v18 = vld [vmem:[%s2174_s15 + $0xb00] sm:$0xff] }
  0xe0   : > { %1348 = vmatmul.f32.vlgmr.msrb.gmra.mxu2 %v2628_v20  ;;  %2106 = vmatmul.msk.f32.vlgmr.msrb.gmra.mxu3 %vm269_vm1, %v2549_v8  ;;  %v440_v43 = vpop.f32.mrf.mxu3  ;;  %v460_v55 = vpop.f32.mrf.mxu0 }
  0xe1   : > { %1393 = vmatpush.msra.mxu3 %v2082_v19  ;;  %1432 = vmatpush.msra.mxu2 %v2038_v21  ;;  %v420_v42 = vpop.f32.mrf.mxu1  ;;  %v2049_v19 = vld [vmem:[%s2174_s15 + $0xc80] sm:$0xff] }
  0xe2   : > { %1425 = vmatpush.msrb.mxu0 %v2094_v25  ;;  %1375 = vmatpush.msrb.mxu1 %v2028_v28  ;;  %v441_v52 = vadd.f32 %v440_v43, %v420_v42  ;;  %v2005_v21 = vld [vmem:[%s2174_s15 + $0xb20] sm:$0xff]  ;;  %v2046_v25 = vld [vmem:[%s2174_s15 + $0xc68] sm:$0xff]  ;;  %v1995_v28 = vld [vmem:[%s2174_s15 + $0xad0] sm:$0xff] }
  0xe3   : > { %1433 = vmatpush.msra.mxu2 %v2035_v26  ;;  %1394 = vmatpush.msra.mxu3 %v2079_v27  ;;  %v2002_v26 = vld [vmem:[%s2174_s15 + $0xb08] sm:$0xff]  ;;  %v2059_v27 = vld [vmem:[%s2174_s15 + $0xcd0] sm:$0xff] }
  0xe4   : > { %1426 = vmatpush.msrb.mxu0 %v2091_v29  ;;  %1376 = vmatpush.msrb.mxu1 %v2025_v33  ;;  %v2685_v63 = vadd.f32 %v460_v55, %v441_v52  ;;  %v2043_v29 = vld [vmem:[%s2174_s15 + $0xc50] sm:$0xff]  ;;  %v2040_v33 = vld [vmem:[%s2174_s15 + $0xc38] sm:$0xff]  ;;  %v2098_v43 = vld [vmem:[%s2174_s15 + $0xe08] sm:$0xff] }
  0xe5   : > { %1434 = vmatpush.msra.mxu2 %v2032_v30  ;;  %1395 = vmatpush.msra.mxu3 %v2076_v32  ;;  %v1999_v30 = vld [vmem:[%s2174_s15 + $0xaf0] sm:$0xff]  ;;  %v1992_v32 = vld [vmem:[%s2174_s15 + $0xab8] sm:$0xff] }
  0xe6   : > { %1427 = vmatpush.msrb.mxu0 %v2088_v34  ;;  %1377 = vmatpush.msrb.mxu1 %v2022_v39  ;;  %v468_v13 = vsel %vm467_vm3, %v2685_v63, 0.0  ;;  %v1996_v34 = vld [vmem:[%s2174_s15 + $0xad8] sm:$0xff]  ;;  %v2050_v39 = vld [vmem:[%s2174_s15 + $0xc88] sm:$0xff]  ;;  %v2047_v42 = vld [vmem:[%s2174_s15 + $0xc70] sm:$0xff] }
  0xe7   : > { %1435 = vmatpush.msra.mxu2 %v2029_v35  ;;  %1328 = vmatmul.f32.vlgmr.msra.gmra.mxu0 %v2604_v57  ;;  %v469_v22 = vadd.f32 %v468_v13, %v466_v16  ;;  %v2053_v35 = vld [vmem:[%s2174_s15 + $0xca0] sm:$0xff]  ;;  %v2145_v13 = vmov 338.0  }
  0xe8   : > { %1396 = vmatpush.msra.mxu3 %v2073_v37  ;;  %1452 = vmatpush.msra.mxu0 %v2086_v38  ;;  %v1993_v37 = vld [vmem:[%s2174_s15 + $0xac0] sm:$0xff]  ;;  %2124 = vrcp.f32 %v2145_v13 }
  0xe9   : > { %1436 = vmatpush.msra.mxu2 %v2026_v41  ;;  %1378 = vmatpush.msrb.mxu1 %v2019_v47  ;;  %v2092_v47 = vld [vmem:[%s2174_s15 + $0xdd8] sm:$0xff] }
  0xea   : > { %1397 = vmatpush.msra.mxu3 %v2070_v40  ;;  %1453 = vmatpush.msra.mxu0 %v2083_v46  ;;  %v2101_v40 = vld [vmem:[%s2174_s15 + $0xe20] sm:$0xff] }
  0xeb   : > { %1437 = vmatpush.msra.mxu2 %v2023_v49  ;;  %1379 = vmatpush.msrb.mxu1 %v2016_v51  ;;  %v2041_v46 = vld [vmem:[%s2174_s15 + $0xc40] sm:$0xff] }
  0xec   : > { %1398 = vmatpush.msra.mxu3 %v2067_v48  ;;  %1454 = vmatpush.msra.mxu0 %v2080_v50  ;;  %v2089_v48 = vld [vmem:[%s2174_s15 + $0xdc0] sm:$0xff] }
  0xed   : > { %1438 = vmatpush.msra.mxu2 %v2020_v54  ;;  %1380 = vmatpush.msrb.mxu1 %v2013_v59  ;;  %v649_v38 = vpop.f32.mrf.mxu2 }
  0xee   : > { %1399 = vmatpush.msra.mxu3 %v2064_v53  ;;  %1455 = vmatpush.msra.mxu0 %v2077_v58 }
  0xef   : > { %1439 = vmatpush.msra.mxu2 %v2017_v61  ;;  %1381 = vmatpush.msrb.mxu1 %v2010_v7 }
  0xf0   : > { %1400 = vmatpush.msra.mxu3 %v2061_v60  ;;  %1456 = vmatpush.msra.mxu0 %v2074_v62  ;;  %v669_v52 = vpop.f32.mrf.mxu0 }
  0xf1   : > { %1440 = vmatpush.msra.mxu2 %v2014_v1  ;;  %1382 = vmatpush.msrb.mxu1 %v2007_v5  ;;  %v670_v53 = vadd.f32 %v669_v52, %v649_v38 }
  0xf2   : > { %1401 = vmatpush.msra.mxu3 %v2058_v0  ;;  %1457 = vmatpush.msra.mxu0 %v2071_v4  ;;  %v689_v41 = vpop.f32.mrf.mxu1 }
  0xf3   : > { %1441 = vmatpush.msra.mxu2 %v2011_v10  ;;  %1383 = vmatpush.msrb.mxu1 %v2004_v12  ;;  %v2742_v58 = vadd.f32 %v689_v41, %v670_v53 }
  0xf4   : > { %1402 = vmatpush.msra.mxu3 %v2055_v9  ;;  %1458 = vmatpush.msra.mxu0 %v2068_v11 }
  0xf5   : > { %1442 = vmatpush.msra.mxu2 %v2008_v15  ;;  %1384 = vmatpush.msrb.mxu1 %v2001_v18  ;;  %v812_v62 = vsel %vm463_vm2, %v2742_v58, 0.0  ;;  %v2125_v18 = vpop.eup %2124 }
  0xf6   : > { %1403 = vmatpush.msra.mxu3 %v2052_v14  ;;  %1459 = vmatpush.msra.mxu0 %v2065_v17  ;;  %vm477_vm4 = vweird.f32 %v2125_v18 }
  0xf7   : > { %1443 = vmatpush.msra.mxu2 %v2005_v21  ;;  %470 = vadd.xlane.f32.xlu0 %v469_v22 }
  0xf8   : > { %1404 = vmatpush.msra.mxu3 %v2049_v19  ;;  %1460 = vmatpush.msra.mxu0 %v2062_v23 }
  0xf9   : > { %1385 = vmatpush.msrb.mxu1 %v1998_v24  ;;  %1444 = vmatpush.msra.mxu2 %v2002_v26  ;;  %v473_v26 = vmul.f32 338.0, %v2125_v18 }
  0xfa   : > { %1405 = vmatpush.msra.mxu3 %v2046_v25  ;;  %1461 = vmatpush.msra.mxu0 %v2059_v27 }
  0xfb   : > { %1386 = vmatpush.msrb.mxu1 %v1995_v28  ;;  %1445 = vmatpush.msra.mxu2 %v1999_v30 }
  0xfc   : > { %1406 = vmatpush.msra.mxu3 %v2043_v29  ;;  %1462 = vmatpush.msra.mxu0 %v2056_v31  ;;  %v474_v29 = vsub.f32 1.0, %v473_v26 }
  0xfd   : > { %1387 = vmatpush.msrb.mxu1 %v1992_v32  ;;  %1446 = vmatpush.msra.mxu2 %v1996_v34 }
  0xfe   : > { %1407 = vmatpush.msra.mxu3 %v2040_v33  ;;  %1463 = vmatpush.msra.mxu0 %v2053_v35  ;;  %v475_v30 = vmul.f32 %v2125_v18, %v474_v29 }
  0xff   : > { %2109 = vmatpush.msk.msra.mxu1 %vm273_vm0, %v2104_v36  ;;  %1408 = vmatmul.f32.vlgmr.msra.gmra.mxu3 %v2628_v20 }
 0x100   : > { %2108 = vmatmul.msk.f32.vlgmr.msrb.gmra.mxu0 %vm269_vm1, %v2549_v8  ;;  %1447 = vmatpush.msra.mxu2 %v1993_v37  ;;  %v476_v31 = vadd.f32 %v2125_v18, %v475_v30 }
 0x101   : > { %1464 = vmatpush.msra.mxu0 %v2050_v39  ;;  %1483 = vmatpush.msra.mxu1 %v2101_v40 }
 0x102   : > { %1388 = vmatmul.f32.vlgmr.msrb.gmra.mxu1 %v2604_v57  ;;  %1448 = vmatmul.f32.vlgmr.msra.gmra.mxu2 %v2604_v57  ;;  %v2764_v32 = vsel %vm477_vm4, %v2125_v18, %v476_v31 }
 0x103   : > { %1465 = vmatpush.msra.mxu0 %v2047_v42  ;;  %1484 = vmatpush.msra.mxu1 %v2098_v43  ;;  %v709_v50 = vpop.f32.mrf.mxu3 }
 0x104   : > { %v729_v51 = vpop.f32.mrf.mxu1 }
 0x105   : > { %1466 = vmatpush.msra.mxu0 %v2044_v44  ;;  %1485 = vmatpush.msra.mxu1 %v2095_v45  ;;  %v749_v49 = vpop.f32.mrf.mxu2  ;;  %v730_v57 = vadd.f32 %v729_v51, %v709_v50 }
 0x107   : > { %1467 = vmatpush.msra.mxu0 %v2041_v46  ;;  %1486 = vmatpush.msra.mxu1 %v2092_v47  ;;  %v2740_v54 = vadd.f32 %v749_v49, %v730_v57 }
 0x108   : > { %1468 = vmatmul.f32.vlgmr.msra.gmra.mxu0 %v2628_v20 }
 0x109   : > { %1487 = vmatpush.msra.mxu1 %v2089_v48  ;;  %v813_v60 = vsel %vm463_vm2, %v2740_v54, 0.0 }
 0x10a   : > { %2110 = vmatmul.msk.f32.vlgmr.msra.gmra.mxu1 %vm269_vm1, %v2549_v8  ;;  %v814_v0 = vadd.f32 %v813_v60, %v812_v62  ;;  %vm1673_vm1 = vcmask 670720  }
 0x110   : > { %v789_v55 = vpop.f32.mrf.mxu2 }
 0x112   : > { %v769_v59 = vpop.f32.mrf.mxu0 }
 0x113   : > { %v790_v61 = vadd.f32 %v789_v55, %v769_v59  ;;  %v809_v20 = vpop.f32.mrf.mxu3 }
 0x115   : > { %v2748_v7 = vadd.f32 %v809_v20, %v790_v61 }
 0x117   : > { %v815_v8 = vsel %vm467_vm3, %v2748_v7, 0.0 }
 0x118   : > { %v816_v1 = vadd.f32 %v815_v8, %v814_v0 }
 0x11a   : > { %817 = vadd.xlane.f32.xlu1 %v816_v1 }
 0x12a   : > { %v1029_v3 = vpop.f32.mrf.mxu0 }
 0x12d   : > { %v989_v4 = vpop.f32.mrf.mxu1 }
 0x132   : > { %v1009_v5 = vpop.f32.mrf.mxu3 }
 0x133   : > { %v1049_v6 = vpop.f32.mrf.mxu2  ;;  %v1069_v9 = vpop.f32.mrf.mxu0  ;;  %v1010_v11 = vadd.f32 %v1009_v5, %v989_v4 }
 0x134   : > { %v1070_v12 = vadd.f32 %v1069_v9, %v1049_v6 }
 0x135   : > { %v2752_v14 = vadd.f32 %v1029_v3, %v1010_v11 }
 0x136   : > { %v1089_v10 = vpop.f32.mrf.mxu1 }
 0x137   : > { %v2754_v15 = vadd.f32 %v1089_v10, %v1070_v12  ;;  %v1152_v23 = vsel %vm463_vm2, %v2752_v14, 0.0 }
 0x139   : > { %v1153_v19 = vsel %vm463_vm2, %v2754_v15, 0.0 }
 0x13a   : > { %v1154_v25 = vadd.f32 %v1153_v19, %v1152_v23 }
 0x154   : > { %v1109_v16 = vpop.f32.mrf.mxu3 }
 0x155   : > { %v1129_v17 = vpop.f32.mrf.mxu1 }
 0x156   : > { %v1130_v21 = vadd.f32 %v1129_v17, %v1109_v16  ;;  %v1149_v22 = vpop.f32.mrf.mxu2 }
 0x158   : > { %v2760_v24 = vadd.f32 %v1149_v22, %v1130_v21 }
 0x15a   : > { %v1155_v27 = vsel %vm467_vm3, %v2760_v24, 0.0 }
 0x15b   : > { %v1156_v28 = vadd.f32 %v1155_v27, %v1154_v25 }
 0x15d   : > { %1157 = vadd.xlane.f32.xlu0 %v1156_v28 }
 0x163   : > { %v1349_v45 = vpop.f32.mrf.mxu2 }
 0x164   : > { %v1329_v43 = vpop.f32.mrf.mxu0 }
 0x165   : > { %v1350_v47 = vadd.f32 %v1349_v45, %v1329_v43 }
 0x16a   : > { %v471_v33 = vpop.xlane.xlu0 %470 }
 0x16b   : > { %v479_v34 = vmul.f32 %v2764_v32, %v471_v33 }
 0x16d   : > { %v2768_v35 = vsub.f32 %v2675_v56, %v479_v34  ;;  %v2771_v36 = vsub.f32 %v2677_v2, %v479_v34  ;;  %v2774_v37 = vsub.f32 %v2685_v63, %v479_v34  ;;  %v1369_v63 = vpop.f32.mrf.mxu3 }
 0x16e   : > { %v1370_v50 = vadd.f32 %v1369_v63, %v1350_v47 }
 0x16f   : > { %v483_v38 = vmul.f32 %v2768_v35, %v2768_v35  ;;  %v484_v39 = vmul.f32 %v2771_v36, %v2771_v36  ;;  %v485_v40 = vmul.f32 %v2774_v37, %v2774_v37 }
 0x170   : > { %v1492_v59 = vsel %vm463_vm2, %v1370_v50, 0.0 }
 0x171   : > { %v486_v41 = vsel %vm463_vm2, %v483_v38, 0.0  ;;  %v487_v56 = vsel %vm463_vm2, %v484_v39, 0.0  ;;  %v489_v2 = vsel %vm467_vm3, %v485_v40, 0.0 }
 0x172   : > { %v488_v42 = vadd.f32 %v487_v56, %v486_v41 }
 0x174   : > { %v490_v44 = vadd.f32 %v489_v2, %v488_v42 }
 0x176   : > { %491 = vadd.xlane.f32.xlu2 %v490_v44 }
 0x17d   : > { %v1429_v46 = vpop.f32.mrf.mxu0 }
 0x17f   : > { %v1389_v48 = vpop.f32.mrf.mxu1 }
 0x182   : > { %v1409_v49 = vpop.f32.mrf.mxu3 }
 0x183   : > { %v1410_v51 = vadd.f32 %v1409_v49, %v1389_v48 }
 0x185   : > { %v1430_v52 = vadd.f32 %v1429_v46, %v1410_v51  ;;  %v1449_v57 = vpop.f32.mrf.mxu2  ;;  %v1469_v53 = vpop.f32.mrf.mxu0 }
 0x186   : > { %v1470_v55 = vadd.f32 %v1469_v53, %v1449_v57 }
 0x187   : > { %v1489_v60 = vpop.f32.mrf.mxu1  ;;  %v1493_v61 = vsel %vm463_vm2, %v1430_v52, 0.0 }
 0x188   : > { %v1490_v20 = vadd.f32 %v1489_v60, %v1470_v55  ;;  %v1494_v62 = vadd.f32 %v1493_v61, %v1492_v59 }
 0x18a   : > { %v1495_v0 = vsel %vm467_vm3, %v1490_v20, 0.0 }
 0x18b   : > { %v1496_v8 = vadd.f32 %v1495_v0, %v1494_v62 }
 0x18d   : > { %1497 = vadd.xlane.f32.xlu1 %v1496_v8  ;;  %v818_v1 = vpop.xlane.xlu1 %817 }
 0x18e   : > { %v819_v3 = vmul.f32 %v818_v1, %v2764_v32 }
 0x190   : > { %v2790_v4 = vsub.f32 %v2742_v58, %v819_v3  ;;  %v2793_v5 = vsub.f32 %v2740_v54, %v819_v3  ;;  %v2796_v6 = vsub.f32 %v2748_v7, %v819_v3 }
 0x192   : > { %v823_v9 = vmul.f32 %v2790_v4, %v2790_v4  ;;  %v824_v10 = vmul.f32 %v2793_v5, %v2793_v5  ;;  %v825_v11 = vmul.f32 %v2796_v6, %v2796_v6 }
 0x194   : > { %v826_v12 = vsel %vm463_vm2, %v823_v9, 0.0  ;;  %v827_v58 = vsel %vm463_vm2, %v824_v10, 0.0  ;;  %v829_v54 = vsel %vm467_vm3, %v825_v11, 0.0 }
 0x195   : > { %v828_v13 = vadd.f32 %v827_v58, %v826_v12 }
 0x197   : > { %v830_v16 = vadd.f32 %v829_v54, %v828_v13 }
 0x199   : > { %831 = vadd.xlane.f32.xlu0 %v830_v16 }
 0x1d0   : > { %v1158_v7 = vpop.xlane.xlu0 %1157 }
 0x1d1   : > { %v1159_v17 = vmul.f32 %v1158_v7, %v2764_v32 }
 0x1d3   : > { %v2809_v18 = vsub.f32 %v2752_v14, %v1159_v17  ;;  %v2812_v19 = vsub.f32 %v2754_v15, %v1159_v17  ;;  %v2815_v21 = vsub.f32 %v2760_v24, %v1159_v17 }
 0x1d5   : > { %v1163_v22 = vmul.f32 %v2809_v18, %v2809_v18  ;;  %v1164_v23 = vmul.f32 %v2812_v19, %v2812_v19  ;;  %v1165_v25 = vmul.f32 %v2815_v21, %v2815_v21 }
 0x1d7   : > { %v1166_v26 = vsel %vm463_vm2, %v1163_v22, 0.0  ;;  %v1167_v14 = vsel %vm463_vm2, %v1164_v23, 0.0  ;;  %v1169_v15 = vsel %vm467_vm3, %v1165_v25, 0.0 }
 0x1d8   : > { %v1168_v27 = vadd.f32 %v1167_v14, %v1166_v26 }
 0x1da   : > { %v1170_v28 = vadd.f32 %v1169_v15, %v1168_v27 }
 0x1dc   : > { %1171 = vadd.xlane.f32.xlu2 %v1170_v28 }
 0x1e9   : > { %v492_v24 = vpop.xlane.xlu2 %491 }
 0x1ea   : > { %v493_v29 = vmul.f32 %v492_v24, %v2764_v32 }
 0x1ec   : > { %v494_v30 = vadd.f32 1e-05, %v493_v29 }
 0x1ee   : > { %2126 = vrsqrt.f32 %v494_v30  ;;  %vm501_vm6 = vweird.f32 %v494_v30 }
 0x1f4   : > { %v2127_v31 = vpop.eup %2126 }
 0x1f5   : > { %v496_v33 = vmul.f32 %v2127_v31, %v494_v30  ;;  %vm502_vm5 = vweird.f32 %v2127_v31 }
 0x1f6   : > { %vm503_vm7 = vmor %vm501_vm6, %vm502_vm5 }
 0x1f7   : > { %v497_v39 = vmul.f32 %v2127_v31, %v496_v33 }
 0x1f9   : > { %v498_v41 = vmul.f32 0.5, %v497_v39 }
 0x1fb   : > { %v499_v45 = vsub.f32 1.5, %v498_v41 }
 0x200   : > { %v1498_v34 = vpop.xlane.xlu1 %1497 }
 0x201   : > { %v1499_v38 = vmul.f32 %v1498_v34, %v2764_v32 }
 0x203   : > { %v2828_v40 = vsub.f32 %v1370_v50, %v1499_v38  ;;  %v2830_v56 = vsub.f32 %v1430_v52, %v1499_v38  ;;  %v2832_v42 = vsub.f32 %v1490_v20, %v1499_v38  ;;  %v500_v52 = vmul.f32 %v2127_v31, %v499_v45 }
 0x205   : > { %v1503_v2 = vmul.f32 %v2828_v40, %v2828_v40  ;;  %v1504_v43 = vmul.f32 %v2830_v56, %v2830_v56  ;;  %v1505_v44 = vmul.f32 %v2832_v42, %v2832_v42  ;;  %v504_v53 = vsel %vm503_vm7, %v2127_v31, %v500_v52 }
 0x206   : > { %v505_v55 = vmul.f32 %v504_v53, %v2768_v35  ;;  %v506_v60 = vmul.f32 %v504_v53, %v2771_v36  ;;  %v507_v61 = vmul.f32 %v504_v53, %v2774_v37 }
 0x207   : > { %v1506_v63 = vsel %vm463_vm2, %v1503_v2, 0.0  ;;  %v1507_v46 = vsel %vm463_vm2, %v1504_v43, 0.0  ;;  %v1509_v49 = vsel %vm467_vm3, %v1505_v44, 0.0 }
 0x208   : > { %v1508_v47 = vadd.f32 %v1507_v46, %v1506_v63  ;;  %v1531_v62 = vrot.slane %v505_v55, 7  ;;  %v1532_v8 = vrot.slane %v506_v60, 7  ;;  %v1533_v1 = vrot.slane %v507_v61, 7 }
 0x209   : > { %v1537_v9 = vrot.slane %v505_v55, 6  ;;  %v1538_v10 = vrot.slane %v506_v60, 6  ;;  %v1539_v12 = vrot.slane %v507_v61, 6  ;;  %v1543_v54 = vrot.slane %v505_v55, 5 }
 0x20a   : > { %v1510_v51 = vadd.f32 %v1509_v49, %v1508_v47  ;;  %v1624_v11 = vsel %vm463_vm2, %v505_v55, %v1531_v62  ;;  %v1625_v36 = vsel %vm463_vm2, %v506_v60, %v1532_v8  ;;  %v1626_v37 = vsel %vm463_vm2, %v507_v61, %v1533_v1 }
 0x20b   : > { %v1628_v13 = vsel %vm1627_vm8, %v1624_v11, %v1537_v9  ;;  %v1629_v16 = vsel %vm1627_vm8, %v1625_v36, %v1538_v10  ;;  %v1630_v17 = vsel %vm1627_vm8, %v1626_v37, %v1539_v12  ;;  %v1544_v26 = vrot.slane %v506_v60, 5 }
 0x20c   : > { %v832_v48 = vpop.xlane.xlu0 %831  ;;  %1511 = vadd.xlane.f32.xlu1 %v1510_v51  ;;  %v1545_v14 = vrot.slane %v507_v61, 5  ;;  %v1632_v27 = vsel %vm1631_vm11, %v1628_v13, %v1543_v54 }
 0x20d   : > { %v833_v50 = vmul.f32 %v832_v48, %v2764_v32  ;;  %v1633_v30 = vsel %vm1631_vm11, %v1629_v16, %v1544_v26 }
 0x20e   : > { %v1634_v31 = vsel %vm1631_vm11, %v1630_v17, %v1545_v14 }
 0x20f   : > { %v834_v57 = vadd.f32 1e-05, %v833_v50 }
 0x211   : > { %2128 = vrsqrt.f32 %v834_v57  ;;  %vm841_vm10 = vweird.f32 %v834_v57 }
 0x217   : > { %v2129_v59 = vpop.eup %2128 }
 0x218   : > { %v836_v20 = vmul.f32 %v2129_v59, %v834_v57  ;;  %vm842_vm9 = vweird.f32 %v2129_v59 }
 0x219   : > { %vm843_vm13 = vmor %vm841_vm10, %vm842_vm9 }
 0x21a   : > { %v837_v0 = vmul.f32 %v2129_v59, %v836_v20 }
 0x21c   : > { %v838_v3 = vmul.f32 0.5, %v837_v0 }
 0x21e   : > { %v839_v35 = vsub.f32 1.5, %v838_v3 }
 0x220   : > { %v840_v58 = vmul.f32 %v2129_v59, %v839_v35 }
 0x222   : > { %v844_v7 = vsel %vm843_vm13, %v2129_v59, %v840_v58 }
 0x223   : > { %v845_v22 = vmul.f32 %v844_v7, %v2790_v4  ;;  %v846_v23 = vmul.f32 %v844_v7, %v2793_v5  ;;  %v847_v25 = vmul.f32 %v844_v7, %v2796_v6 }
 0x225   : > { %v1552_v15 = vrot.slane %v845_v22, 4  ;;  %v1553_v28 = vrot.slane %v846_v23, 4  ;;  %v1554_v24 = vrot.slane %v847_v25, 4  ;;  %v1558_v29 = vrot.slane %v845_v22, 3 }
 0x226   : > { %v1559_v33 = vrot.slane %v846_v23, 3  ;;  %v1560_v4 = vrot.slane %v847_v25, 3  ;;  %v1564_v34 = vrot.slane %v845_v22, 2  ;;  %v1565_v5 = vrot.slane %v846_v23, 2 }
 0x227   : > { %v1566_v38 = vrot.slane %v847_v25, 2  ;;  %v1570_v6 = vrot.slane %v845_v22, 1  ;;  %v1571_v39 = vrot.slane %v846_v23, 1  ;;  %v1635_v41 = vsel %vm273_vm0, %v1632_v27, %v1552_v15 }
 0x228   : > { %v1636_v2 = vsel %vm273_vm0, %v1633_v30, %v1553_v28  ;;  %v1637_v43 = vsel %vm273_vm0, %v1634_v31, %v1554_v24  ;;  %v1572_v44 = vrot.slane %v847_v25, 1  ;;  %v1639_v63 = vsel %vm1638_vm12, %v1635_v41, %v1558_v29 }
 0x229   : > { %v1640_v45 = vsel %vm1638_vm12, %v1636_v2, %v1559_v33  ;;  %v1641_v46 = vsel %vm1638_vm12, %v1637_v43, %v1560_v4  ;;  %v1643_v47 = vsel %vm1642_vm14, %v1639_v63, %v1564_v34 }
 0x22a   : > { %v1644_v48 = vsel %vm1642_vm14, %v1640_v45, %v1565_v5  ;;  %v1645_v49 = vsel %vm1642_vm14, %v1641_v46, %v1566_v38  ;;  %v1647_v50 = vsel %vm1646_vm15, %v1643_v47, %v1570_v6 }
 0x22b   : > { %v1648_v51 = vsel %vm1646_vm15, %v1644_v48, %v1571_v39  ;;  %v1649_v52 = vsel %vm1646_vm15, %v1645_v49, %v1572_v44  ;;  %1671 = vst [vmem:[%s2870_s4] sm:$0xff] %v1647_v50 }
 0x22c   : > { %1672 = vst [vmem:[%s2870_s4 + $0x8] sm:$0xff] %v1648_v51 }
 0x22d   : > { %1674 = vst.msk [vmem:[%s2870_s4 + $0x10] sm:$0xff] %vm1673_vm1, %v1649_v52 }
 0x24f   : > { %v1172_v57 = vpop.xlane.xlu2 %1171 }
 0x250   : > { %v1173_v53 = vmul.f32 %v1172_v57, %v2764_v32 }
 0x252   : > { %v1174_v55 = vadd.f32 1e-05, %v1173_v53 }
 0x254   : > { %2130 = vrsqrt.f32 %v1174_v55  ;;  %vm1181_vm4 = vweird.f32 %v1174_v55 }
 0x25a   : > { %v2131_v59 = vpop.eup %2130 }
 0x25b   : > { %v1176_v60 = vmul.f32 %v2131_v59, %v1174_v55  ;;  %vm1182_vm3 = vweird.f32 %v2131_v59 }
 0x25c   : > { %vm1183_vm5 = vmor %vm1181_vm4, %vm1182_vm3 }
 0x25d   : > { %v1177_v61 = vmul.f32 %v2131_v59, %v1176_v60 }
 0x25f   : > { %v1178_v20 = vmul.f32 0.5, %v1177_v61 }
 0x261   : > { %v1179_v62 = vsub.f32 1.5, %v1178_v20 }
 0x263   : > { %v1180_v1 = vmul.f32 %v2131_v59, %v1179_v62 }
 0x265   : > { %v1184_v9 = vsel %vm1183_vm5, %v2131_v59, %v1180_v1 }
 0x266   : > { %v1185_v10 = vmul.f32 %v1184_v9, %v2809_v18  ;;  %v1186_v35 = vmul.f32 %v1184_v9, %v2812_v19  ;;  %v1187_v12 = vmul.f32 %v1184_v9, %v2815_v21 }
 0x268   : > { %v1579_v37 = vrot.slane %v1185_v10, 7  ;;  %v1580_v13 = vrot.slane %v1186_v35, 7  ;;  %v1581_v54 = vrot.slane %v1187_v12, 7  ;;  %v1585_v16 = vrot.slane %v1185_v10, 6 }
 0x269   : > { %v1586_v7 = vrot.slane %v1186_v35, 6  ;;  %v1587_v23 = vrot.slane %v1187_v12, 6  ;;  %v1591_v26 = vrot.slane %v1185_v10, 5  ;;  %v1592_v30 = vrot.slane %v1186_v35, 5 }
 0x26a   : > { %v1650_v17 = vsel %vm463_vm2, %v1185_v10, %v1579_v37  ;;  %v1651_v18 = vsel %vm463_vm2, %v1186_v35, %v1580_v13  ;;  %v1652_v25 = vsel %vm463_vm2, %v1187_v12, %v1581_v54  ;;  %v1593_v31 = vrot.slane %v1187_v12, 5 }
 0x26b   : > { %v1653_v21 = vsel %vm1627_vm8, %v1650_v17, %v1585_v16  ;;  %v1654_v14 = vsel %vm1627_vm8, %v1651_v18, %v1586_v7  ;;  %v1655_v15 = vsel %vm1627_vm8, %v1652_v25, %v1587_v23 }
 0x26c   : > { %v1656_v33 = vsel %vm1631_vm11, %v1653_v21, %v1591_v26  ;;  %v1657_v6 = vsel %vm1631_vm11, %v1654_v14, %v1592_v30  ;;  %v1658_v39 = vsel %vm1631_vm11, %v1655_v15, %v1593_v31 }
 0x27f   : > { %v1512_v0 = vpop.xlane.xlu1 %1511 }
 0x280   : > { %v1513_v8 = vmul.f32 %v1512_v0, %v2764_v32 }
 0x282   : > { %v1514_v3 = vadd.f32 1e-05, %v1513_v8 }
 0x284   : > { %2132 = vrsqrt.f32 %v1514_v3  ;;  %vm1521_vm7 = vweird.f32 %v1514_v3 }
 0x28a   : > { %v2133_v11 = vpop.eup %2132 }
 0x28b   : > { %v1516_v36 = vmul.f32 %v2133_v11, %v1514_v3  ;;  %vm1522_vm6 = vweird.f32 %v2133_v11 }
 0x28c   : > { %vm1523_vm9 = vmor %vm1521_vm7, %vm1522_vm6 }
 0x28d   : > { %v1517_v58 = vmul.f32 %v2133_v11, %v1516_v36 }
 0x28f   : > { %v1518_v32 = vmul.f32 0.5, %v1517_v58 }
 0x291   : > { %v1519_v22 = vsub.f32 1.5, %v1518_v32 }
 0x293   : > { %v1520_v19 = vmul.f32 %v2133_v11, %v1519_v22 }
 0x295   : > { %v1524_v27 = vsel %vm1523_vm9, %v2133_v11, %v1520_v19 }
 0x296   : > { %v1525_v28 = vmul.f32 %v1524_v27, %v2828_v40  ;;  %v1526_v24 = vmul.f32 %v1524_v27, %v2830_v56  ;;  %v1527_v29 = vmul.f32 %v1524_v27, %v2832_v42 }
 0x298   : > { %v1600_v4 = vrot.slane %v1525_v28, 4  ;;  %v1601_v34 = vrot.slane %v1526_v24, 4  ;;  %v1602_v5 = vrot.slane %v1527_v29, 4  ;;  %v1606_v38 = vrot.slane %v1525_v28, 3 }
 0x299   : > { %v1607_v41 = vrot.slane %v1526_v24, 3  ;;  %v1608_v2 = vrot.slane %v1527_v29, 3  ;;  %v1612_v43 = vrot.slane %v1525_v28, 2  ;;  %v1613_v40 = vrot.slane %v1526_v24, 2 }
 0x29a   : > { %v1614_v44 = vrot.slane %v1527_v29, 2  ;;  %v1618_v56 = vrot.slane %v1525_v28, 1  ;;  %v1619_v42 = vrot.slane %v1526_v24, 1  ;;  %v1659_v63 = vsel %vm273_vm0, %v1656_v33, %v1600_v4 }
 0x29b   : > { %v1660_v45 = vsel %vm273_vm0, %v1657_v6, %v1601_v34  ;;  %v1661_v46 = vsel %vm273_vm0, %v1658_v39, %v1602_v5  ;;  %v1620_v47 = vrot.slane %v1527_v29, 1  ;;  %v1662_v48 = vsel %vm1638_vm12, %v1659_v63, %v1606_v38 }
 0x29c   : > { %v1663_v49 = vsel %vm1638_vm12, %v1660_v45, %v1607_v41  ;;  %v1664_v50 = vsel %vm1638_vm12, %v1661_v46, %v1608_v2  ;;  %v1665_v51 = vsel %vm1642_vm14, %v1662_v48, %v1612_v43 }
 0x29d   : > { %v1666_v52 = vsel %vm1642_vm14, %v1663_v49, %v1613_v40  ;;  %v1667_v57 = vsel %vm1642_vm14, %v1664_v50, %v1614_v44  ;;  %v1668_v53 = vsel %vm1646_vm15, %v1665_v51, %v1618_v56 }
 0x29e   : > { %v1669_v55 = vsel %vm1646_vm15, %v1666_v52, %v1619_v42  ;;  %v1670_v59 = vsel %vm1646_vm15, %v1667_v57, %v1620_v47  ;;  %1675 = vst [vmem:[%s2870_s4 + $0x18] sm:$0xff] %v1668_v53 }
 0x29f   : > { %1676 = vst [vmem:[%s2870_s4 + $0x20] sm:$0xff] %v1669_v55 }
 0x2a0   : > { %1677 = vst.msk [vmem:[%s2870_s4 + $0x28] sm:$0xff] %vm1673_vm1, %v1670_v59 }
 0x2a1 PF: > { %s12_s9 = sadd.s32 1, %s2143_s9  }
 0x2a2   : > { %p9_p5 = scmp.ge.s32.totalorder %s12_s9, 6  }
 0x2a4   :  { %11 = sbr.rel (!%p9_p5) target bundleno = 1 (0x1), region = 61 }

// kernel: mpacv_forward.7
= control target key start
LH: loop header
LB: loop body
LE: loop exit
PB: predicated region body
PF: predicated region fallthrough
CT: control target
= control target key end

     0   :  { %vm270_vm0 = vcmask 523264   ;;  %vm1008_vm1 = vcmask 670720   ;;  %s2458_s1 = inlined_call_operand.vmem [shape: f32[576,338], index: 1, kind: input, shape index: {}]   ;;  %s2459_s0 = inlined_call_operand.vmem [shape: f32[64,576], index: 0, kind: input, shape index: {}]   ;;  %s2460_s2 = inlined_call_operand.vmem [shape: f32[64,338], index: 2, kind: input, shape index: {}]   ;;  %s2461_s3 = inlined_call_operand.vmem [shape: f32[64,338], index: 3, kind: output, shape index: {}]  }
   0x1   :  { %v99_v0 = vld [vmem:[%s2458_s1 + $0x168] sm:$0xff]  ;;  %v96_v3 = vld [vmem:[%s2458_s1 + $0x150] sm:$0xff]  ;;  %v93_v7 = vld [vmem:[%s2458_s1 + $0x138] sm:$0xff] }
   0x2   :  { %v195_v1 = vld [vmem:[%s2458_s1 + $0x468] sm:$0xff]  ;;  %295 = vmatpush.msra.mxu0 %v99_v0  ;;  %v192_v5 = vld [vmem:[%s2458_s1 + $0x450] sm:$0xff]  ;;  %v189_v9 = vld [vmem:[%s2458_s1 + $0x438] sm:$0xff] }
   0x3   :  { %v243_v2 = vld [vmem:[%s2458_s1 + $0x5e8] sm:$0xff]  ;;  %377 = vmatpush.msra.mxu2 %v195_v1  ;;  %v240_v6 = vld [vmem:[%s2458_s1 + $0x5d0] sm:$0xff]  ;;  %v237_v10 = vld [vmem:[%s2458_s1 + $0x5b8] sm:$0xff] }
   0x4   :  { %v1126_v4 = vld [vmem:[%s2458_s1 + $0x2e8] sm:$0xff]  ;;  %418 = vmatpush.msra.mxu3 %v243_v2  ;;  %v1141_v8 = vld [vmem:[%s2458_s1 + $0x2d0] sm:$0xff]  ;;  %296 = vmatpush.msra.mxu0 %v96_v3  ;;  %v90_v11 = vld [vmem:[%s2458_s1 + $0x120] sm:$0xff] }
   0x5   :  { %1059 = vmatpush.msra.mxu1 %v1126_v4  ;;  %378 = vmatpush.msra.mxu2 %v192_v5  ;;  %v1156_v12 = vld [vmem:[%s2458_s1 + $0x2b8] sm:$0xff]  ;;  %v186_v13 = vld [vmem:[%s2458_s1 + $0x420] sm:$0xff]  ;;  %v87_v16 = vld [vmem:[%s2458_s1 + $0x108] sm:$0xff] }
   0x6   :  { %419 = vmatpush.msra.mxu3 %v240_v6  ;;  %297 = vmatpush.msra.mxu0 %v93_v7  ;;  %v234_v14 = vld [vmem:[%s2458_s1 + $0x5a0] sm:$0xff]  ;;  %v183_v17 = vld [vmem:[%s2458_s1 + $0x408] sm:$0xff]  ;;  %v84_v20 = vld [vmem:[%s2458_s1 + $0xf0] sm:$0xff] }
   0x7   :  { %1060 = vmatpush.msra.mxu1 %v1141_v8  ;;  %379 = vmatpush.msra.mxu2 %v189_v9  ;;  %v1167_v15 = vld [vmem:[%s2458_s1 + $0x2a0] sm:$0xff]  ;;  %v231_v18 = vld [vmem:[%s2458_s1 + $0x588] sm:$0xff]  ;;  %v180_v21 = vld [vmem:[%s2458_s1 + $0x3f0] sm:$0xff] }
   0x8   :  { %420 = vmatpush.msra.mxu3 %v237_v10  ;;  %298 = vmatpush.msra.mxu0 %v90_v11  ;;  %v1182_v19 = vld [vmem:[%s2458_s1 + $0x288] sm:$0xff]  ;;  %v228_v22 = vld [vmem:[%s2458_s1 + $0x570] sm:$0xff]  ;;  %v81_v24 = vld [vmem:[%s2458_s1 + $0xd8] sm:$0xff] }
   0x9   :  { %1061 = vmatpush.msra.mxu1 %v1156_v12  ;;  %380 = vmatpush.msra.mxu2 %v186_v13  ;;  %v1197_v23 = vld [vmem:[%s2458_s1 + $0x270] sm:$0xff]  ;;  %v177_v25 = vld [vmem:[%s2458_s1 + $0x3d8] sm:$0xff]  ;;  %v78_v28 = vld [vmem:[%s2458_s1 + $0xc0] sm:$0xff] }
   0xa   :  { %421 = vmatpush.msra.mxu3 %v234_v14  ;;  %299 = vmatpush.msra.mxu0 %v87_v16  ;;  %v225_v26 = vld [vmem:[%s2458_s1 + $0x558] sm:$0xff]  ;;  %v174_v29 = vld [vmem:[%s2458_s1 + $0x3c0] sm:$0xff]  ;;  %v75_v32 = vld [vmem:[%s2458_s1 + $0xa8] sm:$0xff] }
   0xb   :  { %1062 = vmatpush.msra.mxu1 %v1167_v15  ;;  %381 = vmatpush.msra.mxu2 %v183_v17  ;;  %v1212_v27 = vld [vmem:[%s2458_s1 + $0x258] sm:$0xff]  ;;  %v222_v30 = vld [vmem:[%s2458_s1 + $0x540] sm:$0xff]  ;;  %v171_v33 = vld [vmem:[%s2458_s1 + $0x3a8] sm:$0xff] }
   0xc   :  { %422 = vmatpush.msra.mxu3 %v231_v18  ;;  %300 = vmatpush.msra.mxu0 %v84_v20  ;;  %v1227_v31 = vld [vmem:[%s2458_s1 + $0x240] sm:$0xff]  ;;  %v219_v34 = vld [vmem:[%s2458_s1 + $0x528] sm:$0xff]  ;;  %v72_v36 = vld [vmem:[%s2458_s1 + $0x90] sm:$0xff] }
   0xd   :  { %1063 = vmatpush.msra.mxu1 %v1182_v19  ;;  %382 = vmatpush.msra.mxu2 %v180_v21  ;;  %v1242_v35 = vld [vmem:[%s2458_s1 + $0x228] sm:$0xff]  ;;  %v168_v37 = vld [vmem:[%s2458_s1 + $0x390] sm:$0xff]  ;;  %v69_v40 = vld [vmem:[%s2458_s1 + $0x78] sm:$0xff] }
   0xe   :  { %423 = vmatpush.msra.mxu3 %v228_v22  ;;  %301 = vmatpush.msra.mxu0 %v81_v24  ;;  %v216_v38 = vld [vmem:[%s2458_s1 + $0x510] sm:$0xff]  ;;  %v165_v41 = vld [vmem:[%s2458_s1 + $0x378] sm:$0xff]  ;;  %v66_v44 = vld [vmem:[%s2458_s1 + $0x60] sm:$0xff] }
   0xf   :  { %1064 = vmatpush.msra.mxu1 %v1197_v23  ;;  %383 = vmatpush.msra.mxu2 %v177_v25  ;;  %v1257_v39 = vld [vmem:[%s2458_s1 + $0x210] sm:$0xff]  ;;  %v213_v42 = vld [vmem:[%s2458_s1 + $0x4f8] sm:$0xff]  ;;  %v162_v45 = vld [vmem:[%s2458_s1 + $0x360] sm:$0xff] }
  0x10   :  { %424 = vmatpush.msra.mxu3 %v225_v26  ;;  %302 = vmatpush.msra.mxu0 %v78_v28  ;;  %v1272_v43 = vld [vmem:[%s2458_s1 + $0x1f8] sm:$0xff]  ;;  %v210_v46 = vld [vmem:[%s2458_s1 + $0x4e0] sm:$0xff]  ;;  %v63_v48 = vld [vmem:[%s2458_s1 + $0x48] sm:$0xff] }
  0x11   :  { %1065 = vmatpush.msra.mxu1 %v1212_v27  ;;  %384 = vmatpush.msra.mxu2 %v174_v29  ;;  %v1287_v47 = vld [vmem:[%s2458_s1 + $0x1e0] sm:$0xff]  ;;  %v159_v49 = vld [vmem:[%s2458_s1 + $0x348] sm:$0xff]  ;;  %v60_v52 = vld [vmem:[%s2458_s1 + $0x30] sm:$0xff] }
  0x12   :  { %425 = vmatpush.msra.mxu3 %v222_v30  ;;  %303 = vmatpush.msra.mxu0 %v75_v32  ;;  %v207_v50 = vld [vmem:[%s2458_s1 + $0x4c8] sm:$0xff]  ;;  %v156_v53 = vld [vmem:[%s2458_s1 + $0x330] sm:$0xff]  ;;  %v57_v56 = vld [vmem:[%s2458_s1 + $0x18] sm:$0xff] }
  0x13   :  { %1066 = vmatpush.msra.mxu1 %v1227_v31  ;;  %385 = vmatpush.msra.mxu2 %v171_v33  ;;  %v1302_v51 = vld [vmem:[%s2458_s1 + $0x1c8] sm:$0xff]  ;;  %v204_v54 = vld [vmem:[%s2458_s1 + $0x4b0] sm:$0xff]  ;;  %v153_v57 = vld [vmem:[%s2458_s1 + $0x318] sm:$0xff] }
  0x14   :  { %426 = vmatpush.msra.mxu3 %v219_v34  ;;  %304 = vmatpush.msra.mxu0 %v72_v36  ;;  %v1317_v55 = vld [vmem:[%s2458_s1 + $0x1b0] sm:$0xff]  ;;  %v201_v58 = vld [vmem:[%s2458_s1 + $0x498] sm:$0xff]  ;;  %v54_v60 = vld [vmem:[%s2458_s1] sm:$0xff] }
  0x15   :  { %1067 = vmatpush.msra.mxu1 %v1242_v35  ;;  %386 = vmatpush.msra.mxu2 %v168_v37  ;;  %v1332_v59 = vld [vmem:[%s2458_s1 + $0x198] sm:$0xff]  ;;  %v150_v61 = vld [vmem:[%s2458_s1 + $0x300] sm:$0xff]  ;;  %v1353_v0 = vld [vmem:[%s2459_s0 + $0x10] sm:$0xff] }
  0x16   :  { %427 = vmatpush.msra.mxu3 %v216_v38  ;;  %305 = vmatpush.msra.mxu0 %v69_v40  ;;  %v198_v62 = vld [vmem:[%s2458_s1 + $0x480] sm:$0xff]  ;;  %v1358_v1 = vld [vmem:[%s2459_s0 + $0x18] sm:$0xff]  ;;  %v1363_v2 = vld [vmem:[%s2458_s1 + $0x6a8] sm:$0xff] }
  0x17   :  { %1068 = vmatpush.msra.mxu1 %v1257_v39  ;;  %387 = vmatpush.msra.mxu2 %v165_v41  ;;  %v1347_v63 = vld [vmem:[%s2459_s0] sm:$0xff]  ;;  %v148_v3 = vld [vmem:[%s2458_s1 + $0x2f0] sm:$0xff]  ;;  %v1379_v6 = vld [vmem:[%s2459_s0 + $0x58] sm:$0xff] }
  0x18   :  { %428 = vmatpush.msra.mxu3 %v213_v42  ;;  %306 = vmatpush.msra.mxu0 %v66_v44  ;;  %v1372_v5 = vld [vmem:[%s2458_s1 + $0x180] sm:$0xff]  ;;  %v145_v7 = vld [vmem:[%s2458_s1 + $0x2d8] sm:$0xff]  ;;  %v100_v9 = vld [vmem:[%s2458_s1 + $0x170] sm:$0xff] }
  0x19   :  { %1069 = vmatpush.msra.mxu1 %v1272_v43  ;;  %388 = vmatpush.msra.mxu2 %v162_v45  ;;  %v1393_v10 = vld [vmem:[%s2458_s1 + $0x690] sm:$0xff]  ;;  %v142_v11 = vld [vmem:[%s2458_s1 + $0x2c0] sm:$0xff]  ;;  %v97_v13 = vld [vmem:[%s2458_s1 + $0x158] sm:$0xff] }
  0x1a   :  { %429 = vmatpush.msra.mxu3 %v210_v46  ;;  %307 = vmatpush.msra.mxu0 %v63_v48  ;;  %v139_v14 = vld [vmem:[%s2458_s1 + $0x2a8] sm:$0xff]  ;;  %v1414_v16 = vld [vmem:[%s2459_s0 + $0x38] sm:$0xff]  ;;  %v1419_v17 = vld [vmem:[%s2459_s0 + $0x40] sm:$0xff] }
  0x1b   :  { %1070 = vmatpush.msra.mxu1 %v1287_v47  ;;  %389 = vmatpush.msra.mxu2 %v159_v49  ;;  %v1430_v18 = vld [vmem:[%s2458_s1 + $0x678] sm:$0xff]  ;;  %v136_v20 = vld [vmem:[%s2458_s1 + $0x290] sm:$0xff]  ;;  %v91_v21 = vld [vmem:[%s2458_s1 + $0x128] sm:$0xff] }
  0x1c   :  { %430 = vmatpush.msra.mxu3 %v207_v50  ;;  %308 = vmatpush.msra.mxu0 %v60_v52  ;;  %v133_v22 = vld [vmem:[%s2458_s1 + $0x278] sm:$0xff]  ;;  %v1453_v24 = vld [vmem:[%s2458_s1 + $0x660] sm:$0xff]  ;;  %v88_v25 = vld [vmem:[%s2458_s1 + $0x110] sm:$0xff] }
  0x1d   :  { %1071 = vmatpush.msra.mxu1 %v1302_v51  ;;  %390 = vmatpush.msra.mxu2 %v156_v53  ;;  %v1466_v26 = vld [vmem:[%s2459_s0 + $0x50] sm:$0xff]  ;;  %v1471_v28 = vld [vmem:[%s2458_s1 + $0x648] sm:$0xff]  ;;  %v85_v30 = vld [vmem:[%s2458_s1 + $0xf8] sm:$0xff] }
  0x1e   :  { %431 = vmatpush.msra.mxu3 %v204_v54  ;;  %309 = vmatpush.msra.mxu0 %v57_v56  ;;  %v1481_v29 = vld [vmem:[%s2459_s0 + $0x68] sm:$0xff]  ;;  %v82_v34 = vld [vmem:[%s2458_s1 + $0xe0] sm:$0xff]  ;;  %v124_v36 = vld [vmem:[%s2458_s1 + $0x230] sm:$0xff] }
  0x1f   :  { %1072 = vmatpush.msra.mxu1 %v1317_v55  ;;  %391 = vmatpush.msra.mxu2 %v153_v57  ;;  %v127_v32 = vld [vmem:[%s2458_s1 + $0x248] sm:$0xff]  ;;  %v1516_v37 = vld [vmem:[%s2458_s1 + $0x618] sm:$0xff]  ;;  %v76_v42 = vld [vmem:[%s2458_s1 + $0xb0] sm:$0xff] }
  0x20   :  { %432 = vmatpush.msra.mxu3 %v201_v58  ;;  %310 = vmatpush.msra.mxu0 %v54_v60  ;;  %v1503_v33 = vld [vmem:[%s2459_s0 + $0xa8] sm:$0xff]  ;;  %v1529_v40 = vld [vmem:[%s2459_s0 + $0x78] sm:$0xff]  ;;  %v118_v44 = vld [vmem:[%s2458_s1 + $0x200] sm:$0xff] }
  0x21   :  { %1073 = vmatpush.msra.mxu1 %v1332_v59  ;;  %392 = vmatpush.msra.mxu2 %v150_v61  ;;  %v79_v38 = vld [vmem:[%s2458_s1 + $0xc8] sm:$0xff]  ;;  %v1560_v45 = vld [vmem:[%s2458_s1 + $0x600] sm:$0xff]  ;;  %v73_v46 = vld [vmem:[%s2458_s1 + $0x98] sm:$0xff] }
  0x22   :  { %433 = vmatpush.msra.mxu3 %v198_v62  ;;  %311 = vmatmul.f32.vlgmr.msra.gmra.mxu0 %v1347_v63  ;;  %v1534_v41 = vld [vmem:[%s2459_s0 + $0x88] sm:$0xff]  ;;  %v70_v49 = vld [vmem:[%s2458_s1 + $0x80] sm:$0xff]  ;;  %v112_v50 = vld [vmem:[%s2458_s1 + $0x1d0] sm:$0xff] }
  0x23   :  { %393 = vmatmul.f32.vlgmr.msra.gmra.mxu2 %v1353_v0  ;;  %434 = vmatmul.f32.vlgmr.msra.gmra.mxu3 %v1358_v1  ;;  %v115_v48 = vld [vmem:[%s2458_s1 + $0x1e8] sm:$0xff]  ;;  %v1586_v52 = vld [vmem:[%s2459_s0 + $0xb0] sm:$0xff]  ;;  %v109_v54 = vld [vmem:[%s2458_s1 + $0x1b8] sm:$0xff] }
  0x24   :  { %1075 = vmatpush.msrb.mxu3 %v1363_v2  ;;  %541 = vmatpush.msrb.mxu2 %v148_v3  ;;  %v67_v53 = vld [vmem:[%s2458_s1 + $0x68] sm:$0xff]  ;;  %v196_v56 = vld [vmem:[%s2458_s1 + $0x470] sm:$0xff]  ;;  %v106_v58 = vld [vmem:[%s2458_s1 + $0x1a0] sm:$0xff] }
  0x25   :  { %1074 = vmatpush.msra.mxu1 %v1372_v5  ;;  %336 = vmatpush.msrb.mxu0 %v1126_v4  ;;  %v1406_v4 = vld [vmem:[%s2459_s0 + $0x28] sm:$0xff]  ;;  %v64_v57 = vld [vmem:[%s2458_s1 + $0x50] sm:$0xff]  ;;  %v61_v60 = vld [vmem:[%s2458_s1 + $0x38] sm:$0xff] }
  0x26   :  { %358 = vmatmul.f32.vlgmr.msra.gmra.mxu1 %v1379_v6  ;;  %542 = vmatpush.msrb.mxu2 %v145_v7  ;;  %v103_v61 = vld [vmem:[%s2458_s1 + $0x188] sm:$0xff]  ;;  %v101_v3 = vld [vmem:[%s2458_s1 + $0x178] sm:$0xff]  ;;  %v1645_v7 = vld [vmem:[%s2459_s0 + $0xe0] sm:$0xff] }
  0x27   :  { %500 = vmatpush.msrb.mxu1 %v100_v9  ;;  %337 = vmatpush.msrb.mxu0 %v1141_v8  ;;  %v94_v8 = vld [vmem:[%s2458_s1 + $0x140] sm:$0xff]  ;;  %v1632_v62 = vld [vmem:[%s2459_s0 + $0xc8] sm:$0xff] }
  0x28   :  { %1076 = vmatpush.msrb.mxu3 %v1393_v10  ;;  %543 = vmatpush.msrb.mxu2 %v142_v11  ;;  %v58_v9 = vld [vmem:[%s2458_s1 + $0x20] sm:$0xff] }
  0x29   :  { %501 = vmatpush.msrb.mxu1 %v97_v13  ;;  %338 = vmatpush.msrb.mxu0 %v1156_v12  ;;  %v1440_v12 = vld [vmem:[%s2459_s0 + $0x80] sm:$0xff] }
  0x2a   :  { %314 = vmatmul.f32.gmra.mxu0 %v1406_v4  ;;  %544 = vmatpush.msrb.mxu2 %v139_v14  ;;  %v190_v11 = vld [vmem:[%s2458_s1 + $0x440] sm:$0xff]  ;;  %v55_v14 = vld [vmem:[%s2458_s1 + $0x8] sm:$0xff] }
  0x2b   :  { %396 = vmatmul.f32.gmra.mxu2 %v1414_v16  ;;  %437 = vmatmul.f32.gmra.mxu3 %v1419_v17  ;;  %v98_v13 = vld [vmem:[%s2458_s1 + $0x160] sm:$0xff] }
  0x2c   :  { %502 = vmatpush.msrb.mxu1 %v94_v8  ;;  %339 = vmatpush.msrb.mxu0 %v1167_v15  ;;  %v130_v15 = vld [vmem:[%s2458_s1 + $0x260] sm:$0xff]  ;;  %v268_v8 = vld [vmem:[%s2458_s1 + $0x6b0] sm:$0xff] }
  0x2d   :  { %1077 = vmatpush.msrb.mxu3 %v1430_v18  ;;  %545 = vmatpush.msrb.mxu2 %v136_v20  ;;  %v187_v20 = vld [vmem:[%s2458_s1 + $0x428] sm:$0xff] }
  0x2e   :  { %361 = vmatmul.f32.gmra.mxu1 %v1440_v12  ;;  %340 = vmatpush.msrb.mxu0 %v1182_v19  ;;  %v1476_v19 = vld [vmem:[%s2459_s0 + $0x60] sm:$0xff] }
  0x2f   :  { %503 = vmatpush.msrb.mxu1 %v91_v21  ;;  %546 = vmatpush.msrb.mxu2 %v133_v22  ;;  %v95_v21 = vld [vmem:[%s2458_s1 + $0x148] sm:$0xff]  ;;  %v1692_v22 = vld [vmem:[%s2459_s0 + $0x100] sm:$0xff] }
  0x30   :  { %341 = vmatpush.msrb.mxu0 %v1197_v23  ;;  %1078 = vmatpush.msrb.mxu3 %v1453_v24  ;;  %v1496_v23 = vld [vmem:[%s2458_s1 + $0x630] sm:$0xff] }
  0x31   :  { %504 = vmatpush.msrb.mxu1 %v88_v25  ;;  %547 = vmatpush.msrb.mxu2 %v130_v15  ;;  %v1697_v25 = vld [vmem:[%s2459_s0 + $0x108] sm:$0xff]  ;;  %v262_v15 = vld [vmem:[%s2458_s1 + $0x680] sm:$0xff] }
  0x32   :  { %317 = vmatmul.f32.gmra.mxu0 %v1466_v26  ;;  %1079 = vmatpush.msrb.mxu3 %v1471_v28 }
  0x33   :  { %399 = vmatmul.f32.gmra.mxu2 %v1476_v19  ;;  %440 = vmatmul.f32.gmra.mxu3 %v1481_v29 }
  0x34   :  { %505 = vmatpush.msrb.mxu1 %v85_v30  ;;  %342 = vmatpush.msrb.mxu0 %v1212_v27  ;;  %v121_v27 = vld [vmem:[%s2458_s1 + $0x218] sm:$0xff]  ;;  %v92_v30 = vld [vmem:[%s2458_s1 + $0x130] sm:$0xff] }
  0x35   :  { %548 = vmatpush.msrb.mxu2 %v127_v32  ;;  %1080 = vmatpush.msrb.mxu3 %v1496_v23  ;;  %v259_v32 = vld [vmem:[%s2458_s1 + $0x668] sm:$0xff] }
  0x36   :  { %364 = vmatmul.f32.gmra.mxu1 %v1503_v33  ;;  %343 = vmatpush.msrb.mxu0 %v1227_v31  ;;  %v1539_v31 = vld [vmem:[%s2459_s0 + $0x90] sm:$0xff] }
  0x37   :  { %506 = vmatpush.msrb.mxu1 %v82_v34  ;;  %549 = vmatpush.msrb.mxu2 %v124_v36  ;;  %v89_v34 = vld [vmem:[%s2458_s1 + $0x118] sm:$0xff] }
  0x38   :  { %344 = vmatpush.msrb.mxu0 %v1242_v35  ;;  %1081 = vmatpush.msrb.mxu3 %v1516_v37  ;;  %v1555_v35 = vld [vmem:[%s2459_s0 + $0xd0] sm:$0xff]  ;;  %v1730_v36 = vld [vmem:[%s2459_s0 + $0x118] sm:$0xff] }
  0x39   :  { %507 = vmatpush.msrb.mxu1 %v79_v38  ;;  %550 = vmatpush.msrb.mxu2 %v121_v27  ;;  %v256_v38 = vld [vmem:[%s2458_s1 + $0x650] sm:$0xff]  ;;  %v86_v27 = vld [vmem:[%s2458_s1 + $0x100] sm:$0xff] }
  0x3a   :  { %320 = vmatmul.f32.gmra.mxu0 %v1529_v40  ;;  %1082 = vmatpush.msrb.mxu3 %v1560_v45 }
  0x3b   :  { %402 = vmatmul.f32.gmra.mxu2 %v1534_v41  ;;  %443 = vmatmul.f32.gmra.mxu3 %v1539_v31 }
  0x3c   :  { %508 = vmatpush.msrb.mxu1 %v76_v42  ;;  %345 = vmatpush.msrb.mxu0 %v1257_v39  ;;  %v1581_v39 = vld [vmem:[%s2459_s0 + $0xa0] sm:$0xff]  ;;  %v1746_v42 = vld [vmem:[%s2459_s0 + $0x130] sm:$0xff] }
  0x3d   :  { %551 = vmatpush.msrb.mxu2 %v118_v44  ;;  %582 = vmatpush.msra.mxu3 %v196_v56  ;;  %v175_v44 = vld [vmem:[%s2458_s1 + $0x3c8] sm:$0xff]  ;;  %v241_v56 = vld [vmem:[%s2458_s1 + $0x5d8] sm:$0xff] }
  0x3e   :  { %367 = vmatmul.f32.gmra.mxu1 %v1555_v35  ;;  %346 = vmatpush.msrb.mxu0 %v1272_v43  ;;  %v1591_v43 = vld [vmem:[%s2459_s0 + $0xb8] sm:$0xff] }
  0x3f   :  { %509 = vmatpush.msrb.mxu1 %v73_v46  ;;  %552 = vmatpush.msrb.mxu2 %v115_v48  ;;  %v83_v46 = vld [vmem:[%s2458_s1 + $0xe8] sm:$0xff]  ;;  %v169_v48 = vld [vmem:[%s2458_s1 + $0x398] sm:$0xff] }
  0x40   :  { %347 = vmatpush.msrb.mxu0 %v1287_v47  ;;  %v1606_v47 = vld [vmem:[%s2459_s0 + $0xf8] sm:$0xff] }
  0x41   :  { %510 = vmatpush.msrb.mxu1 %v70_v49  ;;  %553 = vmatpush.msrb.mxu2 %v112_v50  ;;  %v1770_v49 = vld [vmem:[%s2459_s0 + $0x8] sm:$0xff]  ;;  %v80_v50 = vld [vmem:[%s2458_s1 + $0xd0] sm:$0xff] }
  0x42   :  { %323 = vmatmul.f32.gmra.mxu0 %v1581_v39 }
  0x43   :  { %405 = vmatmul.f32.gmra.mxu2 %v1586_v52  ;;  %446 = vmatmul.f32.gmra.mxu3 %v1591_v43 }
  0x44   :  { %511 = vmatpush.msrb.mxu1 %v67_v53  ;;  %348 = vmatpush.msrb.mxu0 %v1302_v51  ;;  %v193_v51 = vld [vmem:[%s2458_s1 + $0x458] sm:$0xff]  ;;  %v244_v53 = vld [vmem:[%s2458_s1 + $0x5f0] sm:$0xff] }
  0x45   :  { %554 = vmatpush.msrb.mxu2 %v109_v54  ;;  %583 = vmatpush.msra.mxu3 %v193_v51  ;;  %v166_v54 = vld [vmem:[%s2458_s1 + $0x380] sm:$0xff] }
  0x46   :  { %370 = vmatmul.f32.gmra.mxu1 %v1606_v47  ;;  %349 = vmatpush.msrb.mxu0 %v1317_v55  ;;  %v1640_v55 = vld [vmem:[%s2459_s0 + $0xd8] sm:$0xff]  ;;  %v250_v51 = vld [vmem:[%s2458_s1 + $0x620] sm:$0xff] }
  0x47   :  { %512 = vmatpush.msrb.mxu1 %v64_v57  ;;  %555 = vmatpush.msrb.mxu2 %v106_v58  ;;  %v77_v57 = vld [vmem:[%s2458_s1 + $0xb8] sm:$0xff]  ;;  %v163_v58 = vld [vmem:[%s2458_s1 + $0x368] sm:$0xff] }
  0x48   :  { %350 = vmatpush.msrb.mxu0 %v1332_v59  ;;  %v1660_v59 = vld [vmem:[%s2459_s0 + $0x120] sm:$0xff]  ;;  %584 = vmatpush.msra.mxu3 %v190_v11  ;;  %v1823_v11 = vld [vmem:[%s2459_s0 + $0xe8] sm:$0xff] }
  0x49   :  { %513 = vmatpush.msrb.mxu1 %v61_v60  ;;  %556 = vmatpush.msrb.mxu2 %v103_v61  ;;  %v238_v60 = vld [vmem:[%s2458_s1 + $0x5c0] sm:$0xff]  ;;  %v160_v61 = vld [vmem:[%s2458_s1 + $0x350] sm:$0xff] }
  0x4a   :  { %326 = vmatmul.f32.gmra.mxu0 %v1632_v62  ;;  %585 = vmatpush.msra.mxu3 %v187_v20  ;;  %v71_v20 = vld [vmem:[%s2458_s1 + $0x88] sm:$0xff] }
  0x4b   :  { %705 = vmatpush.msra.mxu2 %v101_v3  ;;  %449 = vmatmul.f32.gmra.mxu3 %v1645_v7  ;;  %v74_v3 = vld [vmem:[%s2458_s1 + $0xa0] sm:$0xff] }
  0x4c   :  { %408 = vmatmul.f32.gmra.mxu2 %v1640_v55  ;;  %514 = vmatpush.msrb.mxu1 %v58_v9  ;;  %v1818_v9 = vld [vmem:[%s2459_s0 + $0x30] sm:$0xff] }
  0x4d   :  { %351 = vmatpush.msrb.mxu0 %v1372_v5  ;;  %706 = vmatpush.msra.mxu2 %v98_v13  ;;  %v1683_v5 = vld [vmem:[%s2459_s0 + $0xf0] sm:$0xff]  ;;  %v235_v13 = vld [vmem:[%s2458_s1 + $0x5a8] sm:$0xff] }
  0x4e   :  { %373 = vmatmul.f32.gmra.mxu1 %v1660_v59 }
  0x4f   :  { %467 = vmatpush.msra.mxu0 %v1363_v2  ;;  %515 = vmatpush.msrb.mxu1 %v55_v14  ;;  %v265_v2 = vld [vmem:[%s2458_s1 + $0x698] sm:$0xff] }
  0x50   :  { %707 = vmatpush.msra.mxu2 %v95_v21  ;;  %v157_v14 = vld [vmem:[%s2458_s1 + $0x338] sm:$0xff]  ;;  %v154_v21 = vld [vmem:[%s2458_s1 + $0x320] sm:$0xff] }
  0x51   :  { %468 = vmatpush.msra.mxu0 %v1393_v10  ;;  %672 = vmatpush.msra.mxu1 %v268_v8  ;;  %v184_v10 = vld [vmem:[%s2458_s1 + $0x410] sm:$0xff] }
  0x52   :  { %329 = vmatmul.f32.gmra.mxu0 %v1683_v5  ;;  %586 = vmatpush.msra.mxu3 %v184_v10  ;;  %v232_v8 = vld [vmem:[%s2458_s1 + $0x590] sm:$0xff]  ;;  %v247_v10 = vld [vmem:[%s2458_s1 + $0x608] sm:$0xff] }
  0x53   :  { %469 = vmatpush.msra.mxu0 %v1430_v18  ;;  %673 = vmatpush.msra.mxu1 %v265_v2  ;;  %v181_v18 = vld [vmem:[%s2458_s1 + $0x3f8] sm:$0xff] }
  0x54   :  { %411 = vmatmul.f32.gmra.mxu2 %v1692_v22  ;;  %452 = vmatmul.f32.gmra.mxu3 %v1697_v25  ;;  %v229_v2 = vld [vmem:[%s2458_s1 + $0x578] sm:$0xff] }
  0x55   :  { %674 = vmatpush.msra.mxu1 %v262_v15  ;;  %470 = vmatpush.msra.mxu0 %v1453_v24  ;;  %v178_v24 = vld [vmem:[%s2458_s1 + $0x3e0] sm:$0xff]  ;;  %v151_v15 = vld [vmem:[%s2458_s1 + $0x308] sm:$0xff] }
  0x56   :  { %708 = vmatpush.msra.mxu2 %v92_v30  ;;  %516 = vmatmul.f32.vlgmr.msrb.gmra.mxu1 %v1347_v63  ;;  %v68_v30 = vld [vmem:[%s2458_s1 + $0x70] sm:$0xff] }
  0x57   :  { %471 = vmatpush.msra.mxu0 %v1471_v28  ;;  %587 = vmatpush.msra.mxu3 %v181_v18  ;;  %v1741_v28 = vld [vmem:[%s2459_s0 + $0x128] sm:$0xff]  ;;  %v1860_v18 = vld [vmem:[%s2459_s0 + $0x20] sm:$0xff] }
  0x58   :  { %675 = vmatpush.msra.mxu1 %v259_v32  ;;  %709 = vmatpush.msra.mxu2 %v89_v34  ;;  %v149_v32 = vld [vmem:[%s2458_s1 + $0x2f8] sm:$0xff]  ;;  %v1868_v34 = vld [vmem:[%s2459_s0 + $0x110] sm:$0xff] }
  0x59   :  { %472 = vmatpush.msra.mxu0 %v1496_v23  ;;  %588 = vmatpush.msra.mxu3 %v178_v24  ;;  %v172_v23 = vld [vmem:[%s2458_s1 + $0x3b0] sm:$0xff]  ;;  %v226_v24 = vld [vmem:[%s2458_s1 + $0x560] sm:$0xff] }
  0x5a   :  { %676 = vmatpush.msra.mxu1 %v256_v38  ;;  %332 = vmatmul.f32.gmra.mxu0 %v1730_v36  ;;  %v146_v38 = vld [vmem:[%s2458_s1 + $0x2e0] sm:$0xff] }
  0x5b   :  { %710 = vmatpush.msra.mxu2 %v86_v27  ;;  %473 = vmatpush.msra.mxu0 %v1516_v37  ;;  %v253_v37 = vld [vmem:[%s2458_s1 + $0x638] sm:$0xff]  ;;  %v223_v27 = vld [vmem:[%s2458_s1 + $0x548] sm:$0xff] }
  0x5c   :  { %414 = vmatmul.f32.gmra.mxu2 %v1741_v28  ;;  %455 = vmatmul.f32.gmra.mxu3 %v1746_v42 }
  0x5d   :  { %589 = vmatpush.msra.mxu3 %v175_v44  ;;  %711 = vmatpush.msra.mxu2 %v83_v46  ;;  %v65_v44 = vld [vmem:[%s2458_s1 + $0x58] sm:$0xff]  ;;  %v143_v46 = vld [vmem:[%s2458_s1 + $0x2c8] sm:$0xff] }
  0x5e   :  { %519 = vmatmul.f32.gmra.mxu1 %v1406_v4  ;;  %474 = vmatpush.msra.mxu0 %v1560_v45  ;;  %v1781_v45 = vld [vmem:[%s2459_s0 + $0xc0] sm:$0xff] }
  0x5f   :  { %590 = vmatpush.msra.mxu3 %v172_v23  ;;  %677 = vmatpush.msra.mxu1 %v253_v37  ;;  %v220_v23 = vld [vmem:[%s2458_s1 + $0x530] sm:$0xff]  ;;  %v62_v37 = vld [vmem:[%s2458_s1 + $0x40] sm:$0xff] }
  0x60   :  { %712 = vmatpush.msra.mxu2 %v80_v50  ;;  %v1903_v50 = vld [vmem:[%s2459_s0 + $0x48] sm:$0xff] }
  0x61   :  { %591 = vmatpush.msra.mxu3 %v169_v48  ;;  %678 = vmatpush.msra.mxu1 %v250_v51  ;;  %v140_v48 = vld [vmem:[%s2458_s1 + $0x2b0] sm:$0xff]  ;;  %v134_v51 = vld [vmem:[%s2458_s1 + $0x280] sm:$0xff] }
  0x62   :  { %352 = vmatmul.f32.vlgmr.msrb.gmra.mxu0 %v1770_v49  ;;  %713 = vmatpush.msra.mxu2 %v77_v57  ;;  %v137_v57 = vld [vmem:[%s2458_s1 + $0x298] sm:$0xff] }
  0x63   :  { %623 = vmatpush.msrb.mxu0 %v244_v53  ;;  %592 = vmatpush.msra.mxu3 %v166_v54  ;;  %v245_v53 = vld [vmem:[%s2458_s1 + $0x5f8] sm:$0xff] }
  0x64   :  { %1039 = vmatmul.msk.f32.vlgmr.msrb.gmra.mxu3 %vm270_vm0, %v1781_v45  ;;  %557 = vmatmul.f32.vlgmr.msrb.gmra.mxu2 %v1770_v49  ;;  %v1911_v54 = vld [vmem:[%s2459_s0 + $0x138] sm:$0xff] }
  0x65   :  { %624 = vmatpush.msrb.mxu0 %v241_v56  ;;  %593 = vmatpush.msra.mxu3 %v163_v58  ;;  %v217_v56 = vld [vmem:[%s2458_s1 + $0x518] sm:$0xff]  ;;  %v214_v58 = vld [vmem:[%s2458_s1 + $0x500] sm:$0xff] }
  0x66   :  { %522 = vmatmul.f32.gmra.mxu1 %v1466_v26  ;;  %714 = vmatpush.msra.mxu2 %v74_v3  ;;  %v211_v3 = vld [vmem:[%s2458_s1 + $0x4e8] sm:$0xff] }
  0x67   :  { %625 = vmatpush.msrb.mxu0 %v238_v60  ;;  %594 = vmatpush.msra.mxu3 %v160_v61  ;;  %v59_v60 = vld [vmem:[%s2458_s1 + $0x28] sm:$0xff]  ;;  %v242_v61 = vld [vmem:[%s2458_s1 + $0x5e0] sm:$0xff] }
  0x68   :  { %715 = vmatpush.msra.mxu2 %v71_v20  ;;  %679 = vmatpush.msra.mxu1 %v247_v10  ;;  %v239_v20 = vld [vmem:[%s2458_s1 + $0x5c8] sm:$0xff]  ;;  %v236_v10 = vld [vmem:[%s2458_s1 + $0x5b0] sm:$0xff] }
  0x69   :  { %626 = vmatpush.msrb.mxu0 %v235_v13  ;;  %595 = vmatpush.msra.mxu3 %v157_v14  ;;  %v131_v13 = vld [vmem:[%s2458_s1 + $0x268] sm:$0xff]  ;;  %v56_v14 = vld [vmem:[%s2458_s1 + $0x10] sm:$0xff] }
  0x6a   :  { %355 = vmatmul.f32.gmra.mxu0 %v1818_v9  ;;  %716 = vmatpush.msra.mxu2 %v68_v30  ;;  %v1973_v30 = vld [vmem:[%s2458_s1 + $0x6b8] sm:$0xff] }
  0x6b   :  { %627 = vmatpush.msrb.mxu0 %v232_v8  ;;  %596 = vmatpush.msra.mxu3 %v154_v21  ;;  %v1949_v8 = vld [vmem:[%s2459_s0 + $0x70] sm:$0xff] }
  0x6c   :  { %1040 = vmatmul.msk.f32.gmra.mxu3 %vm270_vm0, %v1823_v11  ;;  %560 = vmatmul.f32.gmra.mxu2 %v1818_v9  ;;  %v208_v21 = vld [vmem:[%s2458_s1 + $0x4d0] sm:$0xff] }
  0x6d   :  { %628 = vmatpush.msrb.mxu0 %v229_v2  ;;  %597 = vmatpush.msra.mxu3 %v151_v15  ;;  %v128_v2 = vld [vmem:[%s2458_s1 + $0x250] sm:$0xff]  ;;  %v205_v15 = vld [vmem:[%s2458_s1 + $0x4b8] sm:$0xff] }
  0x6e   :  { %525 = vmatmul.f32.gmra.mxu1 %v1529_v40  ;;  %717 = vmatpush.msra.mxu2 %v65_v44  ;;  %v1992_v44 = vld [vmem:[%s2459_s0 + $0x98] sm:$0xff] }
  0x6f   :  { %746 = vmatpush.msrb.mxu3 %v149_v32  ;;  %629 = vmatpush.msrb.mxu0 %v226_v24  ;;  %v125_v32 = vld [vmem:[%s2458_s1 + $0x238] sm:$0xff]  ;;  %v202_v24 = vld [vmem:[%s2458_s1 + $0x4a0] sm:$0xff] }
  0x70   :  { %718 = vmatpush.msra.mxu2 %v62_v37  ;;  %828 = vmatpush.msrb.mxu1 %v245_v53  ;;  %v230_v37 = vld [vmem:[%s2458_s1 + $0x580] sm:$0xff] }
  0x71   :  { %747 = vmatpush.msrb.mxu3 %v146_v38  ;;  %630 = vmatpush.msrb.mxu0 %v223_v27  ;;  %v122_v38 = vld [vmem:[%s2458_s1 + $0x220] sm:$0xff]  ;;  %v233_v27 = vld [vmem:[%s2458_s1 + $0x598] sm:$0xff] }
  0x72   :  { %1035 = vmatmul.msk.f32.vlgmr.msra.gmra.mxu0 %vm270_vm0, %v1860_v18  ;;  %719 = vmatpush.msra.mxu2 %v59_v60  ;;  %v2013_v53 = vld [vmem:[%s2458_s1 + $0x6a0] sm:$0xff]  ;;  %v227_v60 = vld [vmem:[%s2458_s1 + $0x568] sm:$0xff] }
  0x73   :  { %748 = vmatpush.msrb.mxu3 %v143_v46  ;;  %631 = vmatpush.msrb.mxu0 %v220_v23  ;;  %v199_v46 = vld [vmem:[%s2458_s1 + $0x488] sm:$0xff]  ;;  %v197_v23 = vld [vmem:[%s2458_s1 + $0x478] sm:$0xff] }
  0x74   :  { %1041 = vmatmul.msk.f32.gmra.mxu3 %vm270_vm0, %v1868_v34  ;;  %563 = vmatmul.f32.gmra.mxu2 %v1379_v6 }
  0x75   :  { %749 = vmatpush.msrb.mxu3 %v140_v48  ;;  %632 = vmatpush.msrb.mxu0 %v217_v56  ;;  %v119_v48 = vld [vmem:[%s2458_s1 + $0x208] sm:$0xff]  ;;  %v194_v56 = vld [vmem:[%s2458_s1 + $0x460] sm:$0xff] }
  0x76   :  { %528 = vmatmul.f32.gmra.mxu1 %v1581_v39  ;;  %720 = vmatpush.msra.mxu2 %v56_v14  ;;  %v263_v14 = vld [vmem:[%s2458_s1 + $0x688] sm:$0xff] }
  0x77   :  { %750 = vmatpush.msrb.mxu3 %v137_v57  ;;  %829 = vmatpush.msrb.mxu1 %v242_v61  ;;  %v191_v57 = vld [vmem:[%s2458_s1 + $0x448] sm:$0xff]  ;;  %v188_v61 = vld [vmem:[%s2458_s1 + $0x430] sm:$0xff] }
  0x78   :  { %633 = vmatpush.msrb.mxu0 %v214_v58  ;;  %877 = vmatpush.msrb.mxu2 %v1973_v30  ;;  %v116_v58 = vld [vmem:[%s2458_s1 + $0x1f0] sm:$0xff] }
  0x79   :  { %751 = vmatpush.msrb.mxu3 %v134_v51  ;;  %830 = vmatpush.msrb.mxu1 %v239_v20  ;;  %v185_v51 = vld [vmem:[%s2458_s1 + $0x418] sm:$0xff]  ;;  %v182_v20 = vld [vmem:[%s2458_s1 + $0x400] sm:$0xff] }
  0x7a   :  { %1036 = vmatmul.msk.f32.gmra.mxu0 %vm270_vm0, %v1903_v50  ;;  %878 = vmatpush.msrb.mxu2 %v2013_v53 }
  0x7b   :  { %634 = vmatpush.msrb.mxu0 %v211_v3  ;;  %752 = vmatpush.msrb.mxu3 %v131_v13  ;;  %v113_v3 = vld [vmem:[%s2458_s1 + $0x1d8] sm:$0xff]  ;;  %v224_v13 = vld [vmem:[%s2458_s1 + $0x550] sm:$0xff] }
  0x7c   :  { %1042 = vmatmul.msk.f32.gmra.mxu3 %vm270_vm0, %v1911_v54  ;;  %566 = vmatmul.f32.gmra.mxu2 %v1440_v12 }
  0x7d   :  { %635 = vmatpush.msrb.mxu0 %v208_v21  ;;  %753 = vmatpush.msrb.mxu3 %v128_v2  ;;  %v179_v21 = vld [vmem:[%s2458_s1 + $0x3e8] sm:$0xff]  ;;  %v110_v2 = vld [vmem:[%s2458_s1 + $0x1c0] sm:$0xff] }
  0x7e   :  { %531 = vmatmul.f32.gmra.mxu1 %v1632_v62  ;;  %879 = vmatpush.msrb.mxu2 %v263_v14 }
  0x7f   :  { %831 = vmatpush.msrb.mxu1 %v236_v10  ;;  %636 = vmatpush.msrb.mxu0 %v205_v15  ;;  %v221_v15 = vld [vmem:[%s2458_s1 + $0x538] sm:$0xff]  ;;  %v176_v10 = vld [vmem:[%s2458_s1 + $0x3d0] sm:$0xff] }
  0x80   :  { %754 = vmatpush.msrb.mxu3 %v125_v32  ;;  %v107_v32 = vld [vmem:[%s2458_s1 + $0x1a8] sm:$0xff] }
  0x81   :  { %832 = vmatpush.msrb.mxu1 %v233_v27  ;;  %637 = vmatpush.msrb.mxu0 %v202_v24  ;;  %v260_v24 = vld [vmem:[%s2458_s1 + $0x670] sm:$0xff]  ;;  %v173_v27 = vld [vmem:[%s2458_s1 + $0x3b8] sm:$0xff] }
  0x82   :  { %1037 = vmatmul.msk.f32.gmra.mxu0 %vm270_vm0, %v1949_v8  ;;  %755 = vmatpush.msrb.mxu3 %v122_v38  ;;  %v218_v38 = vld [vmem:[%s2458_s1 + $0x520] sm:$0xff] }
  0x83   :  { %638 = vmatpush.msrb.mxu0 %v199_v46  ;;  %833 = vmatpush.msrb.mxu1 %v230_v37  ;;  %v215_v37 = vld [vmem:[%s2458_s1 + $0x508] sm:$0xff] }
  0x84   :  { %569 = vmatmul.f32.gmra.mxu2 %v1503_v33  ;;  %598 = vmatmul.f32.vlgmr.msra.gmra.mxu3 %v1353_v0 }
  0x85   :  { %756 = vmatpush.msrb.mxu3 %v119_v48  ;;  %787 = vmatpush.msra.mxu0 %v197_v23  ;;  %v170_v23 = vld [vmem:[%s2458_s1 + $0x3a0] sm:$0xff]  ;;  %v104_v48 = vld [vmem:[%s2458_s1 + $0x190] sm:$0xff] }
  0x86   :  { %534 = vmatmul.f32.gmra.mxu1 %v1683_v5  ;;  %880 = vmatpush.msrb.mxu2 %v260_v24 }
  0x87   :  { %788 = vmatpush.msra.mxu0 %v194_v56  ;;  %757 = vmatpush.msrb.mxu3 %v116_v58  ;;  %v257_v58 = vld [vmem:[%s2458_s1 + $0x658] sm:$0xff] }
  0x88   :  { %834 = vmatpush.msrb.mxu1 %v227_v60  ;;  %v212_v60 = vld [vmem:[%s2458_s1 + $0x4f0] sm:$0xff]  ;;  %881 = vmatpush.msrb.mxu2 %v257_v58 }
  0x89   :  { %789 = vmatpush.msra.mxu0 %v191_v57  ;;  %758 = vmatpush.msrb.mxu3 %v113_v3  ;;  %v167_v57 = vld [vmem:[%s2458_s1 + $0x388] sm:$0xff] }
  0x8a   :  { %1038 = vmatmul.msk.f32.gmra.mxu0 %vm270_vm0, %v1992_v44  ;;  %835 = vmatpush.msrb.mxu1 %v224_v13  ;;  %v161_v13 = vld [vmem:[%s2458_s1 + $0x358] sm:$0xff] }
  0x8b   :  { %790 = vmatpush.msra.mxu0 %v188_v61  ;;  %759 = vmatpush.msrb.mxu3 %v110_v2  ;;  %v164_v61 = vld [vmem:[%s2458_s1 + $0x370] sm:$0xff] }
  0x8c   :  { %572 = vmatmul.f32.gmra.mxu2 %v1555_v35  ;;  %601 = vmatmul.f32.gmra.mxu3 %v1414_v16 }
  0x8d   :  { %791 = vmatpush.msra.mxu0 %v185_v51  ;;  %836 = vmatpush.msrb.mxu1 %v221_v15  ;;  %v155_v15 = vld [vmem:[%s2458_s1 + $0x328] sm:$0xff] }
  0x8e   :  { %537 = vmatmul.f32.gmra.mxu1 %v1730_v36  ;;  %760 = vmatpush.msrb.mxu3 %v107_v32  ;;  %v203_v32 = vld [vmem:[%s2458_s1 + $0x4a8] sm:$0xff] }
  0x8f   :  { %792 = vmatpush.msra.mxu0 %v182_v20  ;;  %837 = vmatpush.msrb.mxu1 %v218_v38 }
  0x90   :  { %761 = vmatpush.msrb.mxu3 %v104_v48 }
  0x91   :  { %793 = vmatpush.msra.mxu0 %v179_v21  ;;  %838 = vmatpush.msrb.mxu1 %v215_v37  ;;  %v206_v21 = vld [vmem:[%s2458_s1 + $0x4c0] sm:$0xff] }
  0x92   :  { %639 = vmatmul.f32.vlgmr.msrb.gmra.mxu0 %v1358_v1  ;;  %1083 = vmatpush.msra.mxu3 %v1973_v30  ;;  %v209_v30 = vld [vmem:[%s2458_s1 + $0x4d8] sm:$0xff] }
  0x93   :  { %794 = vmatpush.msra.mxu0 %v176_v10  ;;  %839 = vmatpush.msrb.mxu1 %v212_v60 }
  0x94   :  { %575 = vmatmul.f32.gmra.mxu2 %v1606_v47  ;;  %604 = vmatmul.f32.gmra.mxu3 %v1476_v19 }
  0x95   :  { %795 = vmatpush.msra.mxu0 %v173_v27  ;;  %1084 = vmatpush.msra.mxu3 %v2013_v53  ;;  %v158_v53 = vld [vmem:[%s2458_s1 + $0x340] sm:$0xff]  ;;  %v200_v27 = vld [vmem:[%s2458_s1 + $0x490] sm:$0xff] }
  0x96   :  { %1043 = vmatmul.msk.f32.vlgmr.msra.gmra.mxu1 %vm270_vm0, %v1860_v18 }
  0x97   :  { %796 = vmatpush.msra.mxu0 %v170_v23  ;;  %1085 = vmatpush.msra.mxu3 %v263_v14  ;;  %v254_v14 = vld [vmem:[%s2458_s1 + $0x640] sm:$0xff]  ;;  %v251_v23 = vld [vmem:[%s2458_s1 + $0x628] sm:$0xff] }
  0x98   :  { %840 = vmatpush.msrb.mxu1 %v209_v30  ;;  %882 = vmatpush.msrb.mxu2 %v254_v14 }
  0x99   :  { %797 = vmatpush.msra.mxu0 %v167_v57  ;;  %1086 = vmatpush.msra.mxu3 %v260_v24  ;;  %v152_v24 = vld [vmem:[%s2458_s1 + $0x310] sm:$0xff] }
  0x9a   :  { %642 = vmatmul.f32.gmra.mxu0 %v1419_v17  ;;  %841 = vmatpush.msrb.mxu1 %v206_v21 }
  0x9b   :  { %798 = vmatpush.msra.mxu0 %v164_v61  ;;  %1087 = vmatpush.msra.mxu3 %v257_v58 }
  0x9c   :  { %578 = vmatmul.f32.gmra.mxu2 %v1660_v59  ;;  %607 = vmatmul.f32.gmra.mxu3 %v1534_v41 }
  0x9d   :  { %799 = vmatpush.msra.mxu0 %v161_v13  ;;  %1088 = vmatpush.msra.mxu3 %v254_v14 }
  0x9e   :  { %1044 = vmatmul.msk.f32.gmra.mxu1 %vm270_vm0, %v1903_v50  ;;  %883 = vmatpush.msrb.mxu2 %v251_v23 }
  0x9f   :  { %v2081_v46 = vpop.f32.mrf.mxu0  ;;  %800 = vmatpush.msra.mxu0 %v158_v53  ;;  %842 = vmatpush.msrb.mxu1 %v203_v32 }
  0xa0   :  { %1089 = vmatpush.msra.mxu3 %v251_v23 }
  0xa1   :  { %801 = vmatpush.msra.mxu0 %v155_v15  ;;  %843 = vmatpush.msrb.mxu1 %v200_v27 }
  0xa2   :  { %645 = vmatmul.f32.gmra.mxu0 %v1481_v29 }
  0xa3   :  { %v359_v56 = vpop.f32.mrf.mxu1  ;;  %802 = vmatpush.msra.mxu0 %v152_v24 }
  0xa4   :  { %610 = vmatmul.f32.gmra.mxu3 %v1586_v52  ;;  %721 = vmatmul.f32.vlgmr.msra.gmra.mxu2 %v1347_v63 }
  0xa6   :  { %1045 = vmatmul.msk.f32.gmra.mxu1 %vm270_vm0, %v1949_v8  ;;  %v2110_v63 = vpop.f32.mrf.mxu2  ;;  %v2112_v51 = vpop.f32.mrf.mxu3 }
  0xa7   :  { %v2114_v3 = vpop.f32.mrf.mxu0 }
  0xaa   :  { %648 = vmatmul.f32.gmra.mxu0 %v1539_v31 }
  0xab   :  { %v362_v20 = vpop.f32.mrf.mxu1 }
  0xac   :  { %613 = vmatmul.f32.gmra.mxu3 %v1640_v55  ;;  %724 = vmatmul.f32.gmra.mxu2 %v1406_v4 }
  0xae   :  { %1046 = vmatmul.msk.f32.gmra.mxu1 %vm270_vm0, %v1992_v44  ;;  %v2137_v4 = vpop.f32.mrf.mxu2  ;;  %v2139_v2 = vpop.f32.mrf.mxu3 }
  0xaf   :  { %v318_v10 = vpop.f32.mrf.mxu0 }
  0xb0   :  { %v360_v48 = vadd.f32 %v359_v56, %v318_v10  ;;  %v248_v56 = vld [vmem:[%s2458_s1 + $0x610] sm:$0xff] }
  0xb1   :  { %884 = vmatpush.msrb.mxu2 %v248_v56  ;;  %1090 = vmatpush.msra.mxu3 %v248_v56 }
  0xb2   :  { %651 = vmatmul.f32.gmra.mxu0 %v1591_v43 }
  0xb3   :  { %v365_v38 = vpop.f32.mrf.mxu1 }
  0xb4   :  { %616 = vmatmul.f32.gmra.mxu3 %v1692_v22  ;;  %727 = vmatmul.f32.gmra.mxu2 %v1466_v26 }
  0xb6   :  { %1047 = vmatmul.msk.f32.gmra.mxu1 %vm270_vm0, %v1781_v45  ;;  %v400_v37 = vpop.f32.mrf.mxu2  ;;  %v441_v57 = vpop.f32.mrf.mxu3 }
  0xb7   :  { %v401_v58 = vadd.f32 %v400_v37, %v360_v48  ;;  %v321_v26 = vpop.f32.mrf.mxu0 }
  0xb8   :  { %v363_v13 = vadd.f32 %v362_v20, %v321_v26 }
  0xb9   :  { %v2161_v60 = vadd.f32 %v441_v57, %v401_v58 }
  0xba   :  { %654 = vmatmul.f32.gmra.mxu0 %v1645_v7 }
  0xbb   :  { %v368_v61 = vpop.f32.mrf.mxu1 }
  0xbc   :  { %619 = vmatmul.f32.gmra.mxu3 %v1741_v28  ;;  %730 = vmatmul.f32.gmra.mxu2 %v1529_v40 }
  0xbe   :  { %1048 = vmatmul.msk.f32.gmra.mxu1 %vm270_vm0, %v1823_v11  ;;  %v403_v30 = vpop.f32.mrf.mxu2  ;;  %v444_v53 = vpop.f32.mrf.mxu3 }
  0xbf   :  { %v404_v21 = vadd.f32 %v403_v30, %v363_v13  ;;  %v324_v14 = vpop.f32.mrf.mxu0 }
  0xc1   :  { %v2171_v15 = vadd.f32 %v444_v53, %v404_v21 }
  0xc2   :  { %657 = vmatmul.f32.gmra.mxu0 %v1697_v25 }
  0xc3   :  { %v2174_v10 = vpop.f32.mrf.mxu1 }
  0xc4   :  { %733 = vmatmul.f32.gmra.mxu2 %v1581_v39  ;;  %762 = vmatmul.f32.vlgmr.msrb.gmra.mxu3 %v1770_v49 }
  0xc6   :  { %1049 = vmatmul.msk.f32.gmra.mxu1 %vm270_vm0, %v1868_v34  ;;  %v406_v40 = vpop.f32.mrf.mxu2  ;;  %v447_v20 = vpop.f32.mrf.mxu3 }
  0xc7   :  { %v327_v32 = vpop.f32.mrf.mxu0 }
  0xca   :  { %660 = vmatmul.f32.gmra.mxu0 %v1746_v42 }
  0xcb   :  { %v2181_v24 = vpop.f32.mrf.mxu1 }
  0xcc   :  { %736 = vmatmul.f32.gmra.mxu2 %v1632_v62  ;;  %765 = vmatmul.f32.gmra.mxu3 %v1818_v9 }
  0xce   :  { %1050 = vmatmul.msk.f32.gmra.mxu1 %vm270_vm0, %v1911_v54  ;;  %v450_v27 = vpop.f32.mrf.mxu3 }
  0xcf   :  { %v409_v39 = vpop.f32.mrf.mxu2  ;;  %v330_v49 = vpop.f32.mrf.mxu0 }
  0xd2   :  { %803 = vmatmul.f32.vlgmr.msra.gmra.mxu0 %v1353_v0 }
  0xd3   :  { %v2188_v23 = vpop.f32.mrf.mxu1 }
  0xd4   :  { %739 = vmatmul.f32.gmra.mxu2 %v1683_v5  ;;  %768 = vmatmul.f32.gmra.mxu3 %v1379_v6 }
  0xd6   :  { %844 = vmatmul.f32.vlgmr.msrb.gmra.mxu1 %v1358_v1  ;;  %v366_v1 = vadd.f32 %v365_v38, %v324_v14 }
  0xd7   :  { %v412_v48 = vpop.f32.mrf.mxu2  ;;  %v2193_v62 = vpop.f32.mrf.mxu3 }
  0xd8   :  { %v2195_v9 = vpop.f32.mrf.mxu0  ;;  %v407_v58 = vadd.f32 %v406_v40, %v366_v1 }
  0xda   :  { %806 = vmatmul.f32.gmra.mxu0 %v1414_v16 }
  0xdb   :  { %v2198_v37 = vpop.f32.mrf.mxu1 }
  0xdc   :  { %742 = vmatmul.f32.gmra.mxu2 %v1730_v36  ;;  %771 = vmatmul.f32.gmra.mxu3 %v1440_v12  ;;  %v448_v36 = vadd.f32 %v447_v20, %v407_v58 }
  0xde   :  { %847 = vmatmul.f32.gmra.mxu1 %v1419_v17  ;;  %v946_v17 = vld [vmem:[%s2460_s2 + $0x60] sm:$0xff] }
  0xdf   :  { %v2203_v0 = vpop.f32.mrf.mxu2  ;;  %v2205_v6 = vpop.f32.mrf.mxu3  ;;  %v970_v56 = vmul.f32 0.5, %v946_v17 }
  0xe0   :  { %v353_v5 = vpop.f32.mrf.mxu0 }
  0xe1   :  { %v354_v57 = vadd.f32 %v353_v5, %v2081_v46 }
  0xe2   :  { %809 = vmatmul.f32.gmra.mxu0 %v1476_v19  ;;  %v369_v19 = vadd.f32 %v368_v61, %v327_v32 }
  0xe3   :  { %v395_v26 = vadd.f32 %v2110_v63, %v354_v57  ;;  %v2210_v16 = vpop.f32.mrf.mxu1 }
  0xe4   :  { %774 = vmatmul.f32.gmra.mxu3 %v1503_v33  ;;  %1051 = vmatmul.msk.f32.vlgmr.msrb.gmra.mxu2 %vm270_vm0, %v1860_v18  ;;  %v410_v30 = vadd.f32 %v409_v39, %v369_v19 }
  0xe5   :  { %v436_v12 = vadd.f32 %v2112_v51, %v395_v26 }
  0xe6   :  { %850 = vmatmul.f32.gmra.mxu1 %v1481_v29  ;;  %v949_v29 = vld [vmem:[%s2460_s2 + $0x78] sm:$0xff]  ;;  %v451_v61 = vadd.f32 %v450_v27, %v410_v30 }
  0xe7   :  { %v488_v46 = vpop.f32.mrf.mxu3  ;;  %v2220_v63 = vpop.f32.mrf.mxu2  ;;  %v973_v40 = vmul.f32 0.5, %v949_v29 }
  0xe8   :  { %v489_v38 = vadd.f32 %v488_v46, %v448_v36  ;;  %v356_v13 = vpop.f32.mrf.mxu0 }
  0xe9   :  { %v357_v33 = vadd.f32 %v356_v13, %v2114_v3 }
  0xea   :  { %v922_v18 = vmul.f32 0.5, %v489_v38  ;;  %812 = vmatmul.f32.gmra.mxu0 %v1534_v41  ;;  %v934_v41 = vld [vmem:[%s2460_s2] sm:$0xff] }
  0xeb   :  { %v398_v53 = vadd.f32 %v2137_v4, %v357_v33  ;;  %v2225_v51 = vpop.f32.mrf.mxu1  ;;  %v958_v32 = vmul.f32 0.5, %v934_v41 }
  0xec   :  { %v994_v21 = vadd.f32 %v970_v56, %v922_v18  ;;  %777 = vmatmul.f32.gmra.mxu3 %v1555_v35  ;;  %1052 = vmatmul.msk.f32.gmra.mxu2 %vm270_vm0, %v1903_v50  ;;  %v372_v50 = vadd.f32 %v2174_v10, %v330_v49  ;;  %v952_v10 = vld [vmem:[%s2460_s2 + $0x90] sm:$0xff] }
  0xed   :  { %v439_v3 = vadd.f32 %v2139_v2, %v398_v53  ;;  %v976_v58 = vmul.f32 0.5, %v952_v10  ;;  %v938_v10 = vld [vmem:[%s2460_s2 + $0x20] sm:$0xff] }
  0xee   :  { %1019 = vst [vmem:[%s2461_s3 + $0x60] sm:$0xff] %v994_v21  ;;  %853 = vmatmul.f32.gmra.mxu1 %v1539_v31  ;;  %v413_v39 = vadd.f32 %v412_v48, %v372_v50  ;;  %v375_v48 = vadd.f32 %v2181_v24, %v2195_v9  ;;  %v955_v24 = vld [vmem:[%s2460_s2 + $0xa8] sm:$0xff] }
  0xef   :  { %v491_v35 = vpop.f32.mrf.mxu3  ;;  %v2241_v4 = vpop.f32.mrf.mxu2  ;;  %v979_v13 = vmul.f32 0.5, %v955_v24 }
  0xf0   :  { %v492_v14 = vadd.f32 %v491_v35, %v451_v61  ;;  %v476_v20 = vpop.f32.mrf.mxu0  ;;  %v454_v49 = vadd.f32 %v2193_v62, %v413_v39  ;;  %v416_v36 = vadd.f32 %v2203_v0, %v375_v48 }
  0xf1   :  { %v477_v2 = vadd.f32 %v476_v20, %v436_v12 }
  0xf2   :  { %v925_v27 = vmul.f32 0.5, %v492_v14  ;;  %815 = vmatmul.f32.gmra.mxu0 %v1586_v52  ;;  %v937_v52 = vld [vmem:[%s2460_s2 + $0x18] sm:$0xff]  ;;  %v457_v9 = vadd.f32 %v2205_v6, %v416_v36 }
  0xf3   :  { %v910_v1 = vmul.f32 0.5, %v477_v2  ;;  %v2245_v57 = vpop.f32.mrf.mxu1  ;;  %v961_v12 = vmul.f32 0.5, %v937_v52  ;;  %v962_v52 = vmul.f32 0.5, %v938_v10  ;;  %v941_v36 = vld [vmem:[%s2460_s2 + $0x38] sm:$0xff] }
  0xf4   :  { %v997_v5 = vadd.f32 %v973_v40, %v925_v27  ;;  %780 = vmatmul.f32.gmra.mxu3 %v1606_v47  ;;  %1053 = vmatmul.msk.f32.gmra.mxu2 %vm270_vm0, %v1949_v8 }
  0xf5   :  { %v982_v31 = vadd.f32 %v958_v32, %v910_v1 }
  0xf6   :  { %1022 = vst [vmem:[%s2461_s3 + $0x78] sm:$0xff] %v997_v5  ;;  %856 = vmatmul.f32.gmra.mxu1 %v1591_v43 }
  0xf7   :  { %1006 = vst [vmem:[%s2461_s3] sm:$0xff] %v982_v31  ;;  %v494_v47 = vpop.f32.mrf.mxu3  ;;  %v2264_v8 = vpop.f32.mrf.mxu2 }
  0xf8   :  { %v495_v62 = vadd.f32 %v494_v47, %v454_v49  ;;  %v479_v26 = vpop.f32.mrf.mxu0 }
  0xf9   :  { %v480_v17 = vadd.f32 %v479_v26, %v439_v3 }
  0xfa   :  { %v928_v46 = vmul.f32 0.5, %v495_v62  ;;  %818 = vmatmul.f32.gmra.mxu0 %v1640_v55  ;;  %v940_v55 = vld [vmem:[%s2460_s2 + $0x30] sm:$0xff] }
  0xfb   :  { %v913_v19 = vmul.f32 0.5, %v480_v17  ;;  %v2270_v56 = vpop.f32.mrf.mxu1  ;;  %v964_v30 = vmul.f32 0.5, %v940_v55 }
  0xfc   :  { %v1000_v38 = vadd.f32 %v976_v58, %v928_v46  ;;  %783 = vmatmul.f32.gmra.mxu3 %v1660_v59  ;;  %1054 = vmatmul.msk.f32.gmra.mxu2 %vm270_vm0, %v1992_v44 }
  0xfd   :  { %v985_v43 = vadd.f32 %v961_v12, %v913_v19  ;;  %v965_v19 = vmul.f32 0.5, %v941_v36 }
  0xfe   :  { %1025 = vst [vmem:[%s2461_s3 + $0x90] sm:$0xff] %v1000_v38  ;;  %859 = vmatmul.f32.gmra.mxu1 %v1645_v7 }
  0xff   :  { %1010 = vst [vmem:[%s2461_s3 + $0x18] sm:$0xff] %v985_v43  ;;  %v497_v59 = vpop.f32.mrf.mxu3  ;;  %v2289_v44 = vpop.f32.mrf.mxu2 }
 0x100   :  { %v498_v0 = vadd.f32 %v497_v59, %v457_v9  ;;  %v482_v6 = vpop.f32.mrf.mxu0 }
 0x101   :  { %v483_v33 = vadd.f32 %v482_v6, %v2161_v60  ;;  %v943_v60 = vld [vmem:[%s2460_s2 + $0x48] sm:$0xff] }
 0x102   :  { %v931_v18 = vmul.f32 0.5, %v498_v0  ;;  %821 = vmatmul.f32.gmra.mxu0 %v1692_v22  ;;  %v967_v61 = vmul.f32 0.5, %v943_v60 }
 0x103   :  { %v916_v53 = vmul.f32 0.5, %v483_v33  ;;  %v2293_v29 = vpop.f32.mrf.mxu1 }
 0x104   :  { %v1003_v21 = vadd.f32 %v979_v13, %v931_v18  ;;  %1055 = vmatmul.msk.f32.gmra.mxu2 %vm270_vm0, %v1781_v45  ;;  %1057 = vmatmul.msk.f32.vlgmr.msra.gmra.mxu3 %vm270_vm0, %v1868_v34  ;;  %v944_v13 = vld [vmem:[%s2460_s2 + $0x50] sm:$0xff] }
 0x105   :  { %v988_v7 = vadd.f32 %v964_v30, %v916_v53  ;;  %v968_v33 = vmul.f32 0.5, %v944_v13 }
 0x106   :  { %1028 = vst [vmem:[%s2461_s3 + $0xa8] sm:$0xff] %v1003_v21  ;;  %862 = vmatmul.f32.gmra.mxu1 %v1697_v25  ;;  %v559_v25 = vadd.f32 %v2220_v63, %v2188_v23  ;;  %v562_v23 = vadd.f32 %v2241_v4, %v2198_v37  ;;  %v565_v37 = vadd.f32 %v2264_v8, %v2210_v16 }
 0x107   :  { %1013 = vst [vmem:[%s2461_s3 + $0x30] sm:$0xff] %v988_v7  ;;  %v570_v22 = vpop.f32.mrf.mxu2  ;;  %v599_v45 = vpop.f32.mrf.mxu3  ;;  %v568_v16 = vadd.f32 %v2289_v44, %v2225_v51 }
 0x108   :  { %v485_v3 = vpop.f32.mrf.mxu0  ;;  %v600_v14 = vadd.f32 %v599_v45, %v559_v25  ;;  %v571_v51 = vadd.f32 %v570_v22, %v2245_v57 }
 0x109   :  { %v486_v34 = vadd.f32 %v485_v3, %v2171_v15  ;;  %v947_v3 = vld [vmem:[%s2460_s2 + $0x68] sm:$0xff] }
 0x10a   :  { %824 = vmatmul.f32.gmra.mxu0 %v1741_v28 }
 0x10b   :  { %v919_v41 = vmul.f32 0.5, %v486_v34  ;;  %v2311_v35 = vpop.f32.mrf.mxu1 }
 0x10c   :  { %1056 = vmatmul.msk.f32.gmra.mxu2 %vm270_vm0, %v1823_v11  ;;  %1058 = vmatmul.msk.f32.gmra.mxu3 %vm270_vm0, %v1911_v54  ;;  %v935_v11 = vld [vmem:[%s2460_s2 + $0x8] sm:$0xff] }
 0x10d   :  { %v991_v50 = vadd.f32 %v967_v61, %v919_v41  ;;  %v959_v2 = vmul.f32 0.5, %v935_v11  ;;  %v971_v61 = vmul.f32 0.5, %v947_v3  ;;  %v950_v11 = vld [vmem:[%s2460_s2 + $0x80] sm:$0xff] }
 0x10e   :  { %865 = vmatmul.f32.gmra.mxu1 %v1746_v42 }
 0x10f   :  { %1016 = vst [vmem:[%s2461_s3 + $0x48] sm:$0xff] %v991_v50  ;;  %v573_v28 = vpop.f32.mrf.mxu2  ;;  %v602_v15 = vpop.f32.mrf.mxu3 }
 0x110   :  { %v640_v40 = vpop.f32.mrf.mxu0  ;;  %v603_v32 = vadd.f32 %v602_v15, %v562_v23  ;;  %v574_v57 = vadd.f32 %v573_v28, %v2270_v56  ;;  %v974_v23 = vmul.f32 0.5, %v950_v11 }
 0x111   :  { %v641_v20 = vadd.f32 %v640_v40, %v600_v14 }
 0x113   :  { %v681_v54 = vpop.f32.mrf.mxu1 }
 0x114   :  { %v682_v63 = vadd.f32 %v681_v54, %v641_v20 }
 0x116   :  { %v911_v39 = vmul.f32 0.5, %v682_v63 }
 0x117   :  { %v576_v27 = vpop.f32.mrf.mxu2  ;;  %v605_v1 = vpop.f32.mrf.mxu3 }
 0x118   :  { %v643_v5 = vpop.f32.mrf.mxu0  ;;  %v983_v42 = vadd.f32 %v959_v2, %v911_v39  ;;  %v606_v47 = vadd.f32 %v605_v1, %v565_v37  ;;  %v577_v56 = vadd.f32 %v576_v27, %v2293_v29 }
 0x119   :  { %v644_v31 = vadd.f32 %v643_v5, %v603_v32 }
 0x11a   :  { %1007 = vst [vmem:[%s2461_s3 + $0x8] sm:$0xff] %v983_v42 }
 0x11b   :  { %v684_v49 = vpop.f32.mrf.mxu1 }
 0x11c   :  { %v685_v4 = vadd.f32 %v684_v49, %v644_v31  ;;  %v953_v31 = vld [vmem:[%s2460_s2 + $0x98] sm:$0xff] }
 0x11d   :  { %v977_v49 = vmul.f32 0.5, %v953_v31 }
 0x11e   :  { %v914_v48 = vmul.f32 0.5, %v685_v4 }
 0x11f   :  { %v579_v62 = vpop.f32.mrf.mxu2  ;;  %v608_v58 = vpop.f32.mrf.mxu3 }
 0x120   :  { %v646_v26 = vpop.f32.mrf.mxu0  ;;  %v986_v17 = vadd.f32 %v962_v52, %v914_v48  ;;  %v609_v38 = vadd.f32 %v608_v58, %v568_v16  ;;  %v580_v29 = vadd.f32 %v579_v62, %v2311_v35 }
 0x121   :  { %v647_v12 = vadd.f32 %v646_v26, %v606_v47 }
 0x122   :  { %1011 = vst [vmem:[%s2461_s3 + $0x20] sm:$0xff] %v986_v17  ;;  %v956_v17 = vld [vmem:[%s2460_s2 + $0xb0] sm:$0xff] }
 0x123   :  { %v687_v46 = vpop.f32.mrf.mxu1  ;;  %v980_v62 = vmul.f32 0.5, %v956_v17 }
 0x124   :  { %v688_v8 = vadd.f32 %v687_v46, %v647_v12 }
 0x126   :  { %v917_v43 = vmul.f32 0.5, %v688_v8 }
 0x127   :  { %v611_v24 = vpop.f32.mrf.mxu3  ;;  %v2344_v9 = vpop.f32.mrf.mxu2 }
 0x128   :  { %v649_v55 = vpop.f32.mrf.mxu0  ;;  %v989_v59 = vadd.f32 %v965_v19, %v917_v43  ;;  %v612_v30 = vadd.f32 %v611_v24, %v571_v51 }
 0x129   :  { %v650_v0 = vadd.f32 %v649_v55, %v609_v38 }
 0x12a   :  { %1014 = vst [vmem:[%s2461_s3 + $0x38] sm:$0xff] %v989_v59 }
 0x12b   :  { %v690_v6 = vpop.f32.mrf.mxu1 }
 0x12c   :  { %v691_v44 = vadd.f32 %v690_v6, %v650_v0 }
 0x12e   :  { %v920_v18 = vmul.f32 0.5, %v691_v44 }
 0x12f   :  { %v614_v53 = vpop.f32.mrf.mxu3  ;;  %v2353_v21 = vpop.f32.mrf.mxu2 }
 0x130   :  { %v652_v7 = vpop.f32.mrf.mxu0  ;;  %v992_v60 = vadd.f32 %v968_v33, %v920_v18  ;;  %v615_v41 = vadd.f32 %v614_v53, %v574_v57 }
 0x131   :  { %v653_v45 = vadd.f32 %v652_v7, %v612_v30  ;;  %v936_v30 = vld [vmem:[%s2460_s2 + $0x10] sm:$0xff] }
 0x132   :  { %1017 = vst [vmem:[%s2461_s3 + $0x50] sm:$0xff] %v992_v60  ;;  %v960_v3 = vmul.f32 0.5, %v936_v30 }
 0x133   :  { %v693_v34 = vpop.f32.mrf.mxu1 }
 0x134   :  { %v694_v22 = vadd.f32 %v693_v34, %v653_v45 }
 0x136   :  { %v923_v25 = vmul.f32 0.5, %v694_v22 }
 0x137   :  { %v617_v50 = vpop.f32.mrf.mxu3  ;;  %v2362_v14 = vpop.f32.mrf.mxu2 }
 0x138   :  { %v655_v15 = vpop.f32.mrf.mxu0  ;;  %v995_v40 = vadd.f32 %v971_v61, %v923_v25  ;;  %v618_v63 = vadd.f32 %v617_v50, %v577_v56 }
 0x139   :  { %v656_v20 = vadd.f32 %v655_v15, %v615_v41  ;;  %v939_v41 = vld [vmem:[%s2460_s2 + $0x28] sm:$0xff] }
 0x13a   :  { %1020 = vst [vmem:[%s2461_s3 + $0x68] sm:$0xff] %v995_v40 }
 0x13b   :  { %v696_v54 = vpop.f32.mrf.mxu1 }
 0x13c   :  { %v697_v28 = vadd.f32 %v696_v54, %v656_v20  ;;  %v963_v20 = vmul.f32 0.5, %v939_v41 }
 0x13e   :  { %v926_v2 = vmul.f32 0.5, %v697_v28 }
 0x13f   :  { %v620_v32 = vpop.f32.mrf.mxu3  ;;  %v2371_v39 = vpop.f32.mrf.mxu2 }
 0x140   :  { %v658_v1 = vpop.f32.mrf.mxu0  ;;  %v998_v5 = vadd.f32 %v974_v23, %v926_v2  ;;  %v621_v37 = vadd.f32 %v620_v32, %v580_v29 }
 0x141   :  { %v659_v42 = vadd.f32 %v658_v1, %v618_v63  ;;  %v942_v63 = vld [vmem:[%s2460_s2 + $0x40] sm:$0xff] }
 0x142   :  { %1023 = vst [vmem:[%s2461_s3 + $0x80] sm:$0xff] %v998_v5 }
 0x143   :  { %v699_v10 = vpop.f32.mrf.mxu1 }
 0x144   :  { %v700_v27 = vadd.f32 %v699_v10, %v659_v42  ;;  %v966_v42 = vmul.f32 0.5, %v942_v63 }
 0x146   :  { %v929_v4 = vmul.f32 0.5, %v700_v27 }
 0x147   :  { %v2380_v52 = vpop.f32.mrf.mxu2  ;;  %v763_v47 = vpop.f32.mrf.mxu3 }
 0x148   :  { %v661_v48 = vpop.f32.mrf.mxu0  ;;  %v1001_v58 = vadd.f32 %v977_v49, %v929_v4  ;;  %v764_v6 = vadd.f32 %v763_v47, %v2344_v9 }
 0x149   :  { %v662_v26 = vadd.f32 %v661_v48, %v621_v37  ;;  %v945_v37 = vld [vmem:[%s2460_s2 + $0x58] sm:$0xff] }
 0x14a   :  { %1026 = vst [vmem:[%s2461_s3 + $0x98] sm:$0xff] %v1001_v58  ;;  %v969_v17 = vmul.f32 0.5, %v945_v37 }
 0x14b   :  { %v702_v12 = vpop.f32.mrf.mxu1 }
 0x14c   :  { %v703_v35 = vadd.f32 %v702_v12, %v662_v26 }
 0x14e   :  { %v932_v36 = vmul.f32 0.5, %v703_v35 }
 0x14f   :  { %v2388_v46 = vpop.f32.mrf.mxu2  ;;  %v766_v16 = vpop.f32.mrf.mxu3 }
 0x150   :  { %v804_v8 = vpop.f32.mrf.mxu0  ;;  %v1004_v19 = vadd.f32 %v980_v62, %v932_v36  ;;  %v767_v60 = vadd.f32 %v766_v16, %v2353_v21 }
 0x151   :  { %v805_v44 = vadd.f32 %v804_v8, %v764_v6 }
 0x152   :  { %1029 = vst [vmem:[%s2461_s3 + $0xb0] sm:$0xff] %v1004_v19  ;;  %v948_v19 = vld [vmem:[%s2460_s2 + $0x70] sm:$0xff] }
 0x153   :  { %v845_v38 = vpop.f32.mrf.mxu1 }
 0x154   :  { %v846_v18 = vadd.f32 %v845_v38, %v805_v44  ;;  %v954_v38 = vld [vmem:[%s2460_s2 + $0xa0] sm:$0xff] }
 0x157   :  { %v740_v43 = vpop.f32.mrf.mxu2  ;;  %v769_v24 = vpop.f32.mrf.mxu3 }
 0x158   :  { %v807_v55 = vpop.f32.mrf.mxu0  ;;  %v770_v15 = vadd.f32 %v769_v24, %v2362_v14 }
 0x159   :  { %v808_v57 = vadd.f32 %v807_v55, %v767_v60  ;;  %v972_v55 = vmul.f32 0.5, %v948_v19 }
 0x15b   :  { %v848_v59 = vpop.f32.mrf.mxu1 }
 0x15c   :  { %v849_v25 = vadd.f32 %v848_v59, %v808_v57  ;;  %v951_v57 = vld [vmem:[%s2460_s2 + $0x88] sm:$0xff] }
 0x15f   :  { %v2393_v0 = vpop.f32.mrf.mxu2  ;;  %v772_v13 = vpop.f32.mrf.mxu3 }
 0x160   :  { %v810_v51 = vpop.f32.mrf.mxu0  ;;  %v773_v14 = vadd.f32 %v772_v13, %v2371_v39  ;;  %v978_v13 = vmul.f32 0.5, %v954_v38 }
 0x161   :  { %v811_v54 = vadd.f32 %v810_v51, %v770_v15 }
 0x163   :  { %v851_v33 = vpop.f32.mrf.mxu1 }
 0x164   :  { %v852_v2 = vadd.f32 %v851_v33, %v811_v54 }
 0x167   :  { %v775_v53 = vpop.f32.mrf.mxu3  ;;  %v886_v7 = vpop.f32.mrf.mxu2 }
 0x168   :  { %v887_v45 = vadd.f32 %v886_v7, %v846_v18  ;;  %v813_v34 = vpop.f32.mrf.mxu0  ;;  %v776_v39 = vadd.f32 %v775_v53, %v2380_v52 }
 0x169   :  { %v814_v10 = vadd.f32 %v813_v34, %v773_v14 }
 0x16a   :  { %v912_v22 = vmul.f32 0.5, %v887_v45 }
 0x16b   :  { %v854_v9 = vpop.f32.mrf.mxu1 }
 0x16c   :  { %v984_v61 = vadd.f32 %v960_v3, %v912_v22  ;;  %v855_v4 = vadd.f32 %v854_v9, %v814_v10 }
 0x16e   :  { %1009 = vst.msk [vmem:[%s2461_s3 + $0x10] sm:$0xff] %vm1008_vm1, %v984_v61 }
 0x16f   :  { %v778_v50 = vpop.f32.mrf.mxu3  ;;  %v889_v21 = vpop.f32.mrf.mxu2 }
 0x170   :  { %v890_v40 = vadd.f32 %v889_v21, %v849_v25  ;;  %v816_v11 = vpop.f32.mrf.mxu0  ;;  %v779_v6 = vadd.f32 %v778_v50, %v2388_v46  ;;  %v957_v46 = vld [vmem:[%s2460_s2 + $0xb8] sm:$0xff]  ;;  %v975_v25 = vmul.f32 0.5, %v951_v57 }
 0x171   :  { %v817_v35 = vadd.f32 %v816_v11, %v776_v39  ;;  %v981_v21 = vmul.f32 0.5, %v957_v46 }
 0x172   :  { %v915_v56 = vmul.f32 0.5, %v890_v40 }
 0x173   :  { %v857_v23 = vpop.f32.mrf.mxu1 }
 0x174   :  { %v987_v28 = vadd.f32 %v963_v20, %v915_v56  ;;  %v858_v24 = vadd.f32 %v857_v23, %v817_v35 }
 0x176   :  { %1012 = vst.msk [vmem:[%s2461_s3 + $0x28] sm:$0xff] %vm1008_vm1, %v987_v28 }
 0x177   :  { %v781_v32 = vpop.f32.mrf.mxu3  ;;  %v892_v1 = vpop.f32.mrf.mxu2 }
 0x178   :  { %v893_v5 = vadd.f32 %v892_v1, %v852_v2  ;;  %v819_v31 = vpop.f32.mrf.mxu0  ;;  %v782_v58 = vadd.f32 %v781_v32, %v740_v43 }
 0x179   :  { %v820_v18 = vadd.f32 %v819_v31, %v779_v6 }
 0x17a   :  { %v918_v29 = vmul.f32 0.5, %v893_v5 }
 0x17b   :  { %v860_v49 = vpop.f32.mrf.mxu1 }
 0x17c   :  { %v990_v27 = vadd.f32 %v966_v42, %v918_v29  ;;  %v861_v22 = vadd.f32 %v860_v49, %v820_v18 }
 0x17e   :  { %1015 = vst.msk [vmem:[%s2461_s3 + $0x40] sm:$0xff] %vm1008_vm1, %v990_v27 }
 0x17f   :  { %v784_v47 = vpop.f32.mrf.mxu3  ;;  %v895_v48 = vpop.f32.mrf.mxu2 }
 0x180   :  { %v896_v26 = vadd.f32 %v895_v48, %v855_v4  ;;  %v822_v12 = vpop.f32.mrf.mxu0  ;;  %v785_v51 = vadd.f32 %v784_v47, %v2393_v0 }
 0x181   :  { %v823_v36 = vadd.f32 %v822_v12, %v782_v58 }
 0x182   :  { %v921_v62 = vmul.f32 0.5, %v896_v26 }
 0x183   :  { %v863_v8 = vpop.f32.mrf.mxu1 }
 0x184   :  { %v993_v16 = vadd.f32 %v969_v17, %v921_v62  ;;  %v864_v52 = vadd.f32 %v863_v8, %v823_v36 }
 0x186   :  { %1018 = vst.msk [vmem:[%s2461_s3 + $0x58] sm:$0xff] %vm1008_vm1, %v993_v16 }
 0x187   :  { %v898_v43 = vpop.f32.mrf.mxu2  ;;  %v904_v59 = vpop.f32.mrf.mxu3 }
 0x188   :  { %v899_v44 = vadd.f32 %v898_v43, %v858_v24  ;;  %v905_v33 = vadd.f32 %v904_v59, %v864_v52  ;;  %v825_v30 = vpop.f32.mrf.mxu0 }
 0x189   :  { %v826_v60 = vadd.f32 %v825_v30, %v785_v51 }
 0x18a   :  { %v924_v53 = vmul.f32 0.5, %v899_v44  ;;  %v930_v7 = vmul.f32 0.5, %v905_v33 }
 0x18b   :  { %v866_v34 = vpop.f32.mrf.mxu1 }
 0x18c   :  { %v996_v45 = vadd.f32 %v972_v55, %v924_v53  ;;  %v1002_v3 = vadd.f32 %v978_v13, %v930_v7  ;;  %v867_v0 = vadd.f32 %v866_v34, %v826_v60 }
 0x18e   :  { %1021 = vst.msk [vmem:[%s2461_s3 + $0x70] sm:$0xff] %vm1008_vm1, %v996_v45 }
 0x18f   :  { %1027 = vst.msk [vmem:[%s2461_s3 + $0xa0] sm:$0xff] %vm1008_vm1, %v1002_v3  ;;  %v901_v61 = vpop.f32.mrf.mxu2  ;;  %v907_v9 = vpop.f32.mrf.mxu3 }
 0x190   :  { %v902_v41 = vadd.f32 %v901_v61, %v861_v22  ;;  %v908_v50 = vadd.f32 %v907_v9, %v867_v0 }
 0x192   :  { %v927_v15 = vmul.f32 0.5, %v902_v41  ;;  %v933_v40 = vmul.f32 0.5, %v908_v50 }
 0x194   :  { %v999_v20 = vadd.f32 %v975_v25, %v927_v15  ;;  %v1005_v11 = vadd.f32 %v981_v21, %v933_v40 }
 0x196   :  { %1024 = vst.msk [vmem:[%s2461_s3 + $0x88] sm:$0xff] %vm1008_vm1, %v999_v20 }
 0x197   :  { %1030 = vst.msk [vmem:[%s2461_s3 + $0xb8] sm:$0xff] %vm1008_vm1, %v1005_v11 }

</bundles_post_ra>
